<compile_context>
chip_gen: v6e
topology: v6e:2x2x1
jax: 0.10.0
libtpu: 0.0.40
codegen_flags: <defaults>
</compile_context>

<pallas_src>
import jax
import jax.numpy as jnp
from jax.experimental import pallas as pl
from jax.experimental.pallas import tpu as pltpu


# ----------------------------------------------------------------------------
# In-kernel building block: Conv3x3(pad=1)+bias -> ReLU -> MaxPool2x2 -> BN
# ----------------------------------------------------------------------------

def _conv_block(pad_ref, conv_ref, wm_ref, b_ref, s_ref, t_ref,
                H, W, Cin, Cout, act):
    """One conv block, entirely on-chip.

    act: (H, W, Cin) f32 value.  Returns the (H//2, W//2, Cout) block output.
    pad_ref: VMEM scratch (H+2, W+2, Cin) holding the zero-padded activation.
    conv_ref: VMEM scratch (H, W, Cout) holding the pre-pool conv output.
    """
    # Zero border + interior write.  Re-zeroed every grid step: scratch
    # persists across steps and under "parallel" semantics each core runs only
    # a subset of steps, so a "first step only" init would be wrong.
    pad_ref[...] = jnp.zeros_like(pad_ref)
    pad_ref[1:H + 1, 1:W + 1, :] = act

    # 3x3 conv as 9*Cin broadcast-FMAs on the VPU ("in-VMEM im2col": taps are
    # shifted views of pad_ref; the (H*W, 9*Cin) patch matrix is never built).
    # TODO(synk): switch to an im2col MXU matmul for large channel counts.
    acc = None
    for k in range(9):
        dy, dx = k // 3, k % 3
        for c in range(Cin):
            tap = pad_ref[dy:dy + H, dx:dx + W, c:c + 1]      # (H, W, 1)
            wrow = wm_ref[pl.ds(k * Cin + c, 1), :]           # (1, Cout)
            term = tap * wrow                                 # (H, W, Cout)
            acc = term if acc is None else acc + term
    conv_ref[...] = jnp.maximum(acc + b_ref[...], 0.0)        # bias + ReLU

    # 2x2/2 max-pool with stride-2 reads straight out of VMEM (floor mode,
    # matching nn.MaxPool2d), then eval-mode BatchNorm2d folded to scale/shift.
    Hp, Wp = H // 2, W // 2
    p00 = conv_ref[pl.ds(0, Hp, stride=2), pl.ds(0, Wp, stride=2), :]
    p01 = conv_ref[pl.ds(0, Hp, stride=2), pl.ds(1, Wp, stride=2), :]
    p10 = conv_ref[pl.ds(1, Hp, stride=2), pl.ds(0, Wp, stride=2), :]
    p11 = conv_ref[pl.ds(1, Hp, stride=2), pl.ds(1, Wp, stride=2), :]
    pooled = jnp.maximum(jnp.maximum(p00, p01), jnp.maximum(p10, p11))
    return pooled * s_ref[...] + t_ref[...]                   # (Hp, Wp, Cout)


# ----------------------------------------------------------------------------
# Fused forward pass (one pallas_call, grid over the batch)
# ----------------------------------------------------------------------------

def _const_spec(shape):
    nd = len(shape)
    return pl.BlockSpec(shape, lambda b, _nd=nd: (0,) * _nd)


def build_forward(n_mels, n_frames, filters):
    """Builds the fused Pallas forward pass for a fixed architecture."""
    dims = []
    H, W, cin = n_mels, n_frames, 1
    for cout in filters:
        dims.append((H, W, cin, cout))
        H, W, cin = H // 2, W // 2, cout
    Hf, Wf, Cf = H, W, cin
    L = len(filters)
    n_in = 1 + 4 * L + 6            # x, (wm, b, s, t) * L, w1, b1, s1, t1, w2, b2

    def kernel(*refs):
        x_ref = refs[0]
        o_ref = refs[n_in]
        scratch = refs[n_in + 1:]

        act = x_ref[0]                                        # (H0, W0, 1)
        for l, (bh, bw, ci, co) in enumerate(dims):
            wm, bc, sc, tc = refs[1 + 4 * l:5 + 4 * l]
            act = _conv_block(scratch[2 * l], scratch[2 * l + 1],
                              wm, bc, sc, tc, bh, bw, ci, co, act)

        w1, b1, s1, t1, w2, b2 = refs[1 + 4 * L:n_in]

        # Dense head.  w1 rows were permuted at prep time to the NHWC flatten
        # order of `act`, so no transpose is needed; the F-dim contraction is
        # decomposed per spatial position to avoid any in-kernel flatten /
        # relayout of the activation.
        final_ref = scratch[2 * L]                            # (Hf, Wf, Cf)
        final_ref[...] = act
        acc = None
        for hh in range(Hf):
            for ww in range(Wf):
                v = final_ref[hh:hh + 1, ww, :]               # (1, Cf)
                wr = w1[pl.ds((hh * Wf + ww) * Cf, Cf), :]    # (Cf, D)
                d = jnp.dot(v, wr, preferred_element_type=jnp.float32)
                acc = d if acc is None else acc + d
        h1 = jnp.maximum(acc + b1[...], 0.0)                  # dense1 + ReLU
        h1 = h1 * s1[...] + t1[...]                           # BatchNorm1d (eval, folded)
        logits = jnp.dot(h1, w2[...],
                         preferred_element_type=jnp.float32) + b2[...]
        # softmax(dim=1): single reciprocal + multiply (approx=True would use
        # the EUP; exact keeps row sums == 1 to fp precision).
        m = jnp.max(logits, axis=1, keepdims=True)
        e = jnp.exp(logits - m)
        denom = jnp.sum(e, axis=1, keepdims=True)
        o_ref[0] = e * pl.reciprocal(denom, approx=False)

    def forward(x_nchw, params):
        B = x_nchw.shape[0]
        n_classes = params["b2"].shape[1]
        # NCHW (B, 1, H, W) -> (B, H, W, 1): pure reshape (C == 1), free.
        x = x_nchw.reshape(B, n_mels, n_frames, 1)

        inputs = [x]
        in_specs = [pl.BlockSpec((1, n_mels, n_frames, 1),
                                 lambda b: (b, 0, 0, 0))]
        for blk in params["blocks"]:
            for a in blk:                       # wm, bias, bn_scale, bn_shift
                inputs.append(a)
                in_specs.append(_const_spec(a.shape))
        for name in ("w1", "b1", "bn1_s", "bn1_t", "w2", "b2"):
            a = params[name]
            inputs.append(a)
            in_specs.append(_const_spec(a.shape))

        scratch = []
        for (bh, bw, ci, co) in dims:
            scratch.append(pltpu.VMEM((bh + 2, bw + 2, ci), jnp.float32))
            scratch.append(pltpu.VMEM((bh, bw, co), jnp.float32))
        scratch.append(pltpu.VMEM((Hf, Wf, Cf), jnp.float32))

        out = pl.pallas_call(
            kernel,
            out_shape=jax.ShapeDtypeStruct((B, 1, n_classes), jnp.float32),
            grid_spec=pltpu.PrefetchScalarGridSpec(
                num_scalar_prefetch=0,
                grid=(B,),                      # one sample per grid step
                in_specs=in_specs,
                out_specs=pl.BlockSpec((1, 1, n_classes), lambda b: (b, 0, 0)),
                scratch_shapes=scratch),
            compiler_params=pltpu.CompilerParams(
                # Batch steps are independent -> megacore-shardable on v7x.
                dimension_semantics=("parallel",)),
        )(*inputs)
        return out.reshape(B, n_classes)

    return forward


# ----------------------------------------------------------------------------
# Parameters: PyTorch-layout init + host-side prep (BN fold, layout/permute)
# ----------------------------------------------------------------------------

def _fold_bn(gamma, beta, mean, var, eps=1e-5):
    scale = gamma / jnp.sqrt(var + eps)
    return scale, beta - mean * scale


def init_params(key, n_mels, n_frames, filters, dense_out=16, n_classes=7):
    """Random parameters in PyTorch-like layouts (eval mode: running stats)."""
    raw = {"conv": []}
    in_c = 1
    for out_c in filters:
        key, k1, k2, k3, k4, k5, k6 = jax.random.split(key, 7)
        w = jax.random.normal(k1, (out_c, in_c, 3, 3), jnp.float32) * 0.1  # OIHW
        b = jax.random.normal(k2, (out_c,), jnp.float32) * 0.1
        gamma = jax.random.uniform(k3, (out_c,), jnp.float32, 0.5, 1.5)
        beta = jax.random.normal(k4, (out_c,), jnp.float32) * 0.1
        mean = jax.random.normal(k5, (out_c,), jnp.float32) * 0.1
        var = jax.random.uniform(k6, (out_c,), jnp.float32, 0.5, 1.5)
        raw["conv"].append((w, b, gamma, beta, mean, var))
        in_c = out_c

    L = len(filters)
    feat = in_c * (n_mels // 2 ** L) * (n_frames // 2 ** L)
    key, k1, k2, k3, k4, k5, k6, k7, k8 = jax.random.split(key, 9)
    raw["w1"] = jax.random.normal(k1, (dense_out, feat), jnp.float32) * 0.1
    raw["b1"] = jax.random.normal(k2, (dense_out,), jnp.float32) * 0.1
    raw["bn1"] = (jax.random.uniform(k3, (dense_out,), jnp.float32, 0.5, 1.5),
                  jax.random.normal(k4, (dense_out,), jnp.float32) * 0.1,
                  jax.random.normal(k5, (dense_out,), jnp.float32) * 0.1,
                  jax.random.uniform(k6, (dense_out,), jnp.float32, 0.5, 1.5))
    raw["w2"] = jax.random.normal(k7, (n_classes, dense_out), jnp.float32) * 0.1
    raw["b2"] = jax.random.normal(k8, (n_classes,), jnp.float32) * 0.1
    return raw


def prepare_params(raw, n_mels, n_frames, filters):
    """Host-side, one-time conversion to kernel layouts (free at runtime)."""
    blocks = []
    for (w, b, g, beta, mu, var) in raw["conv"]:
        out_c, in_c = w.shape[0], w.shape[1]
        # OIHW -> (ky, kx, cin, cout) -> (9*cin, cout); row index = (ky*3+kx)*cin + c.
        wm = jnp.transpose(w, (2, 3, 1, 0)).reshape(9 * in_c, out_c)
        s, t = _fold_bn(g, beta, mu, var)
        blocks.append((wm, b.reshape(1, out_c),
                       s.reshape(1, out_c), t.reshape(1, out_c)))

    L = len(filters)
    Hf, Wf, Cf = n_mels // 2 ** L, n_frames // 2 ** L, filters[-1]
    D = raw["w1"].shape[0]
    O = raw["w2"].shape[0]
    # Fold the NCHW flatten permutation into w1: torch flattens (C, H, W),
    # the kernel consumes (H, W, C) -> permute rows once here.
    w1 = jnp.transpose(raw["w1"], (1, 0)).reshape(Cf, Hf, Wf, D)
    w1 = jnp.transpose(w1, (1, 2, 0, 3)).reshape(Hf * Wf * Cf, D)
    g1, b1, m1, v1 = raw["bn1"]
    s1, t1 = _fold_bn(g1, b1, m1, v1)
    return {"blocks": blocks,
            "w1": w1, "b1": raw["b1"].reshape(1, D),
            "bn1_s": s1.reshape(1, D), "bn1_t": t1.reshape(1, D),
            "w2": jnp.transpose(raw["w2"], (1, 0)),
            "b2": raw["b2"].reshape(1, O)}


# ----------------------------------------------------------------------------
# Pure-JAX reference (PyTorch eval-mode semantics) for validation
# ----------------------------------------------------------------------------

def reference_forward(x_nchw, raw, eps=1e-5):
    x = x_nchw
    for (w, b, g, beta, mu, var) in raw["conv"]:
        x = jax.lax.conv_general_dilated(
            x, w, window_strides=(1, 1), padding=((1, 1), (1, 1)),
            dimension_numbers=("NCHW", "OIHW", "NCHW"))
        x = x + b[None, :, None, None]
        x = jnp.maximum(x, 0.0)
        x = jax.lax.reduce_window(x, -jnp.inf, jax.lax.max,
                                  (1, 1, 2, 2), (1, 1, 2, 2), "VALID")
        x = ((x - mu[None, :, None, None])
             / jnp.sqrt(var[None, :, None, None] + eps)
             * g[None, :, None, None] + beta[None, :, None, None])
    flat = x.reshape(x.shape[0], -1)            # nn.Flatten on NCHW
    h = flat @ raw["w1"].T + raw["b1"]
    h = jnp.maximum(h, 0.0)
    g1, b1, m1, v1 = raw["bn1"]
    h = (h - m1) / jnp.sqrt(v1 + eps) * g1 + b1
    logits = h @ raw["w2"].T + raw["b2"]
    return jax.nn.softmax(logits, axis=1)


# ----------------------------------------------------------------------------

if __name__ == "__main__":
    n_mels, n_frames = 16, 16
    filters = [4, 8]
    batch = 2

    key = jax.random.PRNGKey(0)
    key, kx, kp = jax.random.split(key, 3)
    x = jax.random.normal(kx, (batch, 1, n_mels, n_frames), jnp.float32)

    raw = init_params(kp, n_mels, n_frames, filters)
    params = prepare_params(raw, n_mels, n_frames, filters)
    forward = build_forward(n_mels, n_frames, filters)

    out = jax.jit(forward)(x, params)
    out = jax.block_until_ready(out)

    ref = reference_forward(x, raw)

    assert out.shape == (batch, 7), out.shape
    assert bool(jnp.all(jnp.isfinite(out)))
    assert bool(jnp.allclose(jnp.sum(out, axis=1), 1.0, atol=1e-4))
    assert bool(jnp.allclose(out, ref, atol=2e-3)), \
        float(jnp.max(jnp.abs(out - ref)))
    print("KERNEL_OK")
</pallas_src>

<mosaic_0001>
module attributes {stable_mosaic.version = 11 : i64} {
  func.func @kernel(%arg0: i32, %arg1: memref<1x16x16x1xf32, #tpu.memory_space<vmem>>, %arg2: memref<9x4xf32, #tpu.memory_space<vmem>>, %arg3: memref<1x4xf32, #tpu.memory_space<vmem>>, %arg4: memref<1x4xf32, #tpu.memory_space<vmem>>, %arg5: memref<1x4xf32, #tpu.memory_space<vmem>>, %arg6: memref<36x8xf32, #tpu.memory_space<vmem>>, %arg7: memref<1x8xf32, #tpu.memory_space<vmem>>, %arg8: memref<1x8xf32, #tpu.memory_space<vmem>>, %arg9: memref<1x8xf32, #tpu.memory_space<vmem>>, %arg10: memref<128x16xf32, #tpu.memory_space<vmem>>, %arg11: memref<1x16xf32, #tpu.memory_space<vmem>>, %arg12: memref<1x16xf32, #tpu.memory_space<vmem>>, %arg13: memref<1x16xf32, #tpu.memory_space<vmem>>, %arg14: memref<16x7xf32, #tpu.memory_space<vmem>>, %arg15: memref<1x7xf32, #tpu.memory_space<vmem>>, %arg16: memref<1x1x7xf32, #tpu.memory_space<vmem>>, %arg17: memref<18x18x1xf32, #tpu.memory_space<vmem>>, %arg18: memref<16x16x4xf32, #tpu.memory_space<vmem>>, %arg19: memref<10x10x4xf32, #tpu.memory_space<vmem>>, %arg20: memref<8x8x8xf32, #tpu.memory_space<vmem>>, %arg21: memref<4x4x8xf32, #tpu.memory_space<vmem>>) attributes {dimension_semantics = [#tpu.dimension_semantics<parallel>], iteration_bounds = array<i64: 2>, scalar_prefetch = 0 : i64, scratch_operands = 5 : i64, tpu.core_type = #tpu.core_type<tc>, window_params = [{transform_indices = @transform_0, window_bounds = array<i64: 1, 16, 16, 1>}, {pipeline_mode = #tpu.pipeline_mode<synchronous>, transform_indices = @transform_1, window_bounds = array<i64: 9, 4>}, {pipeline_mode = #tpu.pipeline_mode<synchronous>, transform_indices = @transform_2, window_bounds = array<i64: 1, 4>}, {pipeline_mode = #tpu.pipeline_mode<synchronous>, transform_indices = @transform_3, window_bounds = array<i64: 1, 4>}, {pipeline_mode = #tpu.pipeline_mode<synchronous>, transform_indices = @transform_4, window_bounds = array<i64: 1, 4>}, {pipeline_mode = #tpu.pipeline_mode<synchronous>, transform_indices = @transform_5, window_bounds = array<i64: 36, 8>}, {pipeline_mode = #tpu.pipeline_mode<synchronous>, transform_indices = @transform_6, window_bounds = array<i64: 1, 8>}, {pipeline_mode = #tpu.pipeline_mode<synchronous>, transform_indices = @transform_7, window_bounds = array<i64: 1, 8>}, {pipeline_mode = #tpu.pipeline_mode<synchronous>, transform_indices = @transform_8, window_bounds = array<i64: 1, 8>}, {pipeline_mode = #tpu.pipeline_mode<synchronous>, transform_indices = @transform_9, window_bounds = array<i64: 128, 16>}, {pipeline_mode = #tpu.pipeline_mode<synchronous>, transform_indices = @transform_10, window_bounds = array<i64: 1, 16>}, {pipeline_mode = #tpu.pipeline_mode<synchronous>, transform_indices = @transform_11, window_bounds = array<i64: 1, 16>}, {pipeline_mode = #tpu.pipeline_mode<synchronous>, transform_indices = @transform_12, window_bounds = array<i64: 1, 16>}, {pipeline_mode = #tpu.pipeline_mode<synchronous>, transform_indices = @transform_13, window_bounds = array<i64: 16, 7>}, {pipeline_mode = #tpu.pipeline_mode<synchronous>, transform_indices = @transform_14, window_bounds = array<i64: 1, 7>}, {transform_indices = @transform_15, window_bounds = array<i64: 1, 1, 7>}]} {
    %c0 = arith.constant 0 : index
    %c0_0 = arith.constant 0 : index
    %c0_1 = arith.constant 0 : index
    %c0_2 = arith.constant 0 : index
    %0 = vector.load %arg1[%c0, %c0_0, %c0_1, %c0_2] : memref<1x16x16x1xf32, #tpu.memory_space<vmem>>, vector<1x16x16x1xf32>
    %1 = vector.shape_cast %0 : vector<1x16x16x1xf32> to vector<16x16x1xf32>
    %cst = arith.constant 0.000000e+00 : f32
    %2 = vector.broadcast %cst : f32 to vector<18x18x1xf32>
    %c0_3 = arith.constant 0 : index
    %c0_4 = arith.constant 0 : index
    %c0_5 = arith.constant 0 : index
    %3 = vector.load %arg17[%c0_3, %c0_4, %c0_5] : memref<18x18x1xf32, #tpu.memory_space<vmem>>, vector<18x18x1xf32>
    tpu.vector_store %arg17[%c0_3, %c0_4, %c0_5], %2 {strides = array<i32>} : memref<18x18x1xf32, #tpu.memory_space<vmem>>, vector<18x18x1xf32>,
    %c1 = arith.constant 1 : index
    %c1_6 = arith.constant 1 : index
    %c0_7 = arith.constant 0 : index
    %4 = vector.load %arg17[%c1, %c1_6, %c0_7] : memref<18x18x1xf32, #tpu.memory_space<vmem>>, vector<16x16x1xf32>
    tpu.vector_store %arg17[%c1, %c1_6, %c0_7], %1 {strides = array<i32>} : memref<18x18x1xf32, #tpu.memory_space<vmem>>, vector<16x16x1xf32>,
    %c0_8 = arith.constant 0 : index
    %c0_9 = arith.constant 0 : index
    %c0_10 = arith.constant 0 : index
    %5 = vector.load %arg17[%c0_8, %c0_9, %c0_10] : memref<18x18x1xf32, #tpu.memory_space<vmem>>, vector<16x16x1xf32>
    %c0_11 = arith.constant 0 : index
    %c0_12 = arith.constant 0 : index
    %6 = vector.load %arg2[%c0_11, %c0_12] : memref<9x4xf32, #tpu.memory_space<vmem>>, vector<1x4xf32>
    %7 = vector.shape_cast %6 : vector<1x4xf32> to vector<1x1x4xf32>
    %8 = vector.broadcast %5 : vector<16x16x1xf32> to vector<16x16x4xf32>
    %9 = vector.broadcast %7 : vector<1x1x4xf32> to vector<16x16x4xf32>
    %10 = arith.mulf %8, %9 : vector<16x16x4xf32>
    %c0_13 = arith.constant 0 : index
    %c1_14 = arith.constant 1 : index
    %c0_15 = arith.constant 0 : index
    %11 = vector.load %arg17[%c0_13, %c1_14, %c0_15] : memref<18x18x1xf32, #tpu.memory_space<vmem>>, vector<16x16x1xf32>
    %c1_16 = arith.constant 1 : index
    %c0_17 = arith.constant 0 : index
    %12 = vector.load %arg2[%c1_16, %c0_17] : memref<9x4xf32, #tpu.memory_space<vmem>>, vector<1x4xf32>
    %13 = vector.shape_cast %12 : vector<1x4xf32> to vector<1x1x4xf32>
    %14 = vector.broadcast %11 : vector<16x16x1xf32> to vector<16x16x4xf32>
    %15 = vector.broadcast %13 : vector<1x1x4xf32> to vector<16x16x4xf32>
    %16 = arith.mulf %14, %15 : vector<16x16x4xf32>
    %17 = arith.addf %10, %16 : vector<16x16x4xf32>
    %c0_18 = arith.constant 0 : index
    %c2 = arith.constant 2 : index
    %c0_19 = arith.constant 0 : index
    %18 = vector.load %arg17[%c0_18, %c2, %c0_19] : memref<18x18x1xf32, #tpu.memory_space<vmem>>, vector<16x16x1xf32>
    %c2_20 = arith.constant 2 : index
    %c0_21 = arith.constant 0 : index
    %19 = vector.load %arg2[%c2_20, %c0_21] : memref<9x4xf32, #tpu.memory_space<vmem>>, vector<1x4xf32>
    %20 = vector.shape_cast %19 : vector<1x4xf32> to vector<1x1x4xf32>
    %21 = vector.broadcast %18 : vector<16x16x1xf32> to vector<16x16x4xf32>
    %22 = vector.broadcast %20 : vector<1x1x4xf32> to vector<16x16x4xf32>
    %23 = arith.mulf %21, %22 : vector<16x16x4xf32>
    %24 = arith.addf %17, %23 : vector<16x16x4xf32>
    %c1_22 = arith.constant 1 : index
    %c0_23 = arith.constant 0 : index
    %c0_24 = arith.constant 0 : index
    %25 = vector.load %arg17[%c1_22, %c0_23, %c0_24] : memref<18x18x1xf32, #tpu.memory_space<vmem>>, vector<16x16x1xf32>
    %c3 = arith.constant 3 : index
    %c0_25 = arith.constant 0 : index
    %26 = vector.load %arg2[%c3, %c0_25] : memref<9x4xf32, #tpu.memory_space<vmem>>, vector<1x4xf32>
    %27 = vector.shape_cast %26 : vector<1x4xf32> to vector<1x1x4xf32>
    %28 = vector.broadcast %25 : vector<16x16x1xf32> to vector<16x16x4xf32>
    %29 = vector.broadcast %27 : vector<1x1x4xf32> to vector<16x16x4xf32>
    %30 = arith.mulf %28, %29 : vector<16x16x4xf32>
    %31 = arith.addf %24, %30 : vector<16x16x4xf32>
    %c1_26 = arith.constant 1 : index
    %c1_27 = arith.constant 1 : index
    %c0_28 = arith.constant 0 : index
    %32 = vector.load %arg17[%c1_26, %c1_27, %c0_28] : memref<18x18x1xf32, #tpu.memory_space<vmem>>, vector<16x16x1xf32>
    %c4 = arith.constant 4 : index
    %c0_29 = arith.constant 0 : index
    %33 = vector.load %arg2[%c4, %c0_29] : memref<9x4xf32, #tpu.memory_space<vmem>>, vector<1x4xf32>
    %34 = vector.shape_cast %33 : vector<1x4xf32> to vector<1x1x4xf32>
    %35 = vector.broadcast %32 : vector<16x16x1xf32> to vector<16x16x4xf32>
    %36 = vector.broadcast %34 : vector<1x1x4xf32> to vector<16x16x4xf32>
    %37 = arith.mulf %35, %36 : vector<16x16x4xf32>
    %38 = arith.addf %31, %37 : vector<16x16x4xf32>
    %c1_30 = arith.constant 1 : index
    %c2_31 = arith.constant 2 : index
    %c0_32 = arith.constant 0 : index
    %39 = vector.load %arg17[%c1_30, %c2_31, %c0_32] : memref<18x18x1xf32, #tpu.memory_space<vmem>>, vector<16x16x1xf32>
    %c5 = arith.constant 5 : index
    %c0_33 = arith.constant 0 : index
    %40 = vector.load %arg2[%c5, %c0_33] : memref<9x4xf32, #tpu.memory_space<vmem>>, vector<1x4xf32>
    %41 = vector.shape_cast %40 : vector<1x4xf32> to vector<1x1x4xf32>
    %42 = vector.broadcast %39 : vector<16x16x1xf32> to vector<16x16x4xf32>
    %43 = vector.broadcast %41 : vector<1x1x4xf32> to vector<16x16x4xf32>
    %44 = arith.mulf %42, %43 : vector<16x16x4xf32>
    %45 = arith.addf %38, %44 : vector<16x16x4xf32>
    %c2_34 = arith.constant 2 : index
    %c0_35 = arith.constant 0 : index
    %c0_36 = arith.constant 0 : index
    %46 = vector.load %arg17[%c2_34, %c0_35, %c0_36] : memref<18x18x1xf32, #tpu.memory_space<vmem>>, vector<16x16x1xf32>
    %c6 = arith.constant 6 : index
    %c0_37 = arith.constant 0 : index
    %47 = vector.load %arg2[%c6, %c0_37] : memref<9x4xf32, #tpu.memory_space<vmem>>, vector<1x4xf32>
    %48 = vector.shape_cast %47 : vector<1x4xf32> to vector<1x1x4xf32>
    %49 = vector.broadcast %46 : vector<16x16x1xf32> to vector<16x16x4xf32>
    %50 = vector.broadcast %48 : vector<1x1x4xf32> to vector<16x16x4xf32>
    %51 = arith.mulf %49, %50 : vector<16x16x4xf32>
    %52 = arith.addf %45, %51 : vector<16x16x4xf32>
    %c2_38 = arith.constant 2 : index
    %c1_39 = arith.constant 1 : index
    %c0_40 = arith.constant 0 : index
    %53 = vector.load %arg17[%c2_38, %c1_39, %c0_40] : memref<18x18x1xf32, #tpu.memory_space<vmem>>, vector<16x16x1xf32>
    %c7 = arith.constant 7 : index
    %c0_41 = arith.constant 0 : index
    %54 = vector.load %arg2[%c7, %c0_41] : memref<9x4xf32, #tpu.memory_space<vmem>>, vector<1x4xf32>
    %55 = vector.shape_cast %54 : vector<1x4xf32> to vector<1x1x4xf32>
    %56 = vector.broadcast %53 : vector<16x16x1xf32> to vector<16x16x4xf32>
    %57 = vector.broadcast %55 : vector<1x1x4xf32> to vector<16x16x4xf32>
    %58 = arith.mulf %56, %57 : vector<16x16x4xf32>
    %59 = arith.addf %52, %58 : vector<16x16x4xf32>
    %c2_42 = arith.constant 2 : index
    %c2_43 = arith.constant 2 : index
    %c0_44 = arith.constant 0 : index
    %60 = vector.load %arg17[%c2_42, %c2_43, %c0_44] : memref<18x18x1xf32, #tpu.memory_space<vmem>>, vector<16x16x1xf32>
    %c8 = arith.constant 8 : index
    %c0_45 = arith.constant 0 : index
    %61 = vector.load %arg2[%c8, %c0_45] : memref<9x4xf32, #tpu.memory_space<vmem>>, vector<1x4xf32>
    %62 = vector.shape_cast %61 : vector<1x4xf32> to vector<1x1x4xf32>
    %63 = vector.broadcast %60 : vector<16x16x1xf32> to vector<16x16x4xf32>
    %64 = vector.broadcast %62 : vector<1x1x4xf32> to vector<16x16x4xf32>
    %65 = arith.mulf %63, %64 : vector<16x16x4xf32>
    %66 = arith.addf %59, %65 : vector<16x16x4xf32>
    %c0_46 = arith.constant 0 : index
    %c0_47 = arith.constant 0 : index
    %67 = vector.load %arg3[%c0_46, %c0_47] : memref<1x4xf32, #tpu.memory_space<vmem>>, vector<1x4xf32>
    %68 = vector.shape_cast %67 : vector<1x4xf32> to vector<1x1x4xf32>
    %69 = vector.broadcast %68 : vector<1x1x4xf32> to vector<16x16x4xf32>
    %70 = arith.addf %66, %69 : vector<16x16x4xf32>
    %cst_48 = arith.constant 0.000000e+00 : f32
    %71 = vector.broadcast %cst_48 : f32 to vector<16x16x4xf32>
    %72 = arith.maximumf %70, %71 : vector<16x16x4xf32>
    %c0_49 = arith.constant 0 : index
    %c0_50 = arith.constant 0 : index
    %c0_51 = arith.constant 0 : index
    %73 = vector.load %arg18[%c0_49, %c0_50, %c0_51] : memref<16x16x4xf32, #tpu.memory_space<vmem>>, vector<16x16x4xf32>
    tpu.vector_store %arg18[%c0_49, %c0_50, %c0_51], %72 {strides = array<i32>} : memref<16x16x4xf32, #tpu.memory_space<vmem>>, vector<16x16x4xf32>,
    %c0_52 = arith.constant 0 : index
    %c0_53 = arith.constant 0 : index
    %c0_54 = arith.constant 0 : index
    %74 = tpu.strided_load %arg18[%c0_52, %c0_53, %c0_54] {strides = array<i32: 2, 2, 1>} : memref<16x16x4xf32, #tpu.memory_space<vmem>>, vector<8x8x4xf32>
    %c0_55 = arith.constant 0 : index
    %c1_56 = arith.constant 1 : index
    %c0_57 = arith.constant 0 : index
    %75 = tpu.strided_load %arg18[%c0_55, %c1_56, %c0_57] {strides = array<i32: 2, 2, 1>} : memref<16x16x4xf32, #tpu.memory_space<vmem>>, vector<8x8x4xf32>
    %c1_58 = arith.constant 1 : index
    %c0_59 = arith.constant 0 : index
    %c0_60 = arith.constant 0 : index
    %76 = tpu.strided_load %arg18[%c1_58, %c0_59, %c0_60] {strides = array<i32: 2, 2, 1>} : memref<16x16x4xf32, #tpu.memory_space<vmem>>, vector<8x8x4xf32>
    %c1_61 = arith.constant 1 : index
    %c1_62 = arith.constant 1 : index
    %c0_63 = arith.constant 0 : index
    %77 = tpu.strided_load %arg18[%c1_61, %c1_62, %c0_63] {strides = array<i32: 2, 2, 1>} : memref<16x16x4xf32, #tpu.memory_space<vmem>>, vector<8x8x4xf32>
    %78 = arith.maximumf %74, %75 : vector<8x8x4xf32>
    %79 = arith.maximumf %76, %77 : vector<8x8x4xf32>
    %80 = arith.maximumf %78, %79 : vector<8x8x4xf32>
    %c0_64 = arith.constant 0 : index
    %c0_65 = arith.constant 0 : index
    %81 = vector.load %arg4[%c0_64, %c0_65] : memref<1x4xf32, #tpu.memory_space<vmem>>, vector<1x4xf32>
    %82 = vector.shape_cast %81 : vector<1x4xf32> to vector<1x1x4xf32>
    %83 = vector.broadcast %82 : vector<1x1x4xf32> to vector<8x8x4xf32>
    %84 = arith.mulf %80, %83 : vector<8x8x4xf32>
    %c0_66 = arith.constant 0 : index
    %c0_67 = arith.constant 0 : index
    %85 = vector.load %arg5[%c0_66, %c0_67] : memref<1x4xf32, #tpu.memory_space<vmem>>, vector<1x4xf32>
    %86 = vector.shape_cast %85 : vector<1x4xf32> to vector<1x1x4xf32>
    %87 = vector.broadcast %86 : vector<1x1x4xf32> to vector<8x8x4xf32>
    %88 = arith.addf %84, %87 : vector<8x8x4xf32>
    %cst_68 = arith.constant 0.000000e+00 : f32
    %89 = vector.broadcast %cst_68 : f32 to vector<10x10x4xf32>
    %c0_69 = arith.constant 0 : index
    %c0_70 = arith.constant 0 : index
    %c0_71 = arith.constant 0 : index
    %90 = vector.load %arg19[%c0_69, %c0_70, %c0_71] : memref<10x10x4xf32, #tpu.memory_space<vmem>>, vector<10x10x4xf32>
    tpu.vector_store %arg19[%c0_69, %c0_70, %c0_71], %89 {strides = array<i32>} : memref<10x10x4xf32, #tpu.memory_space<vmem>>, vector<10x10x4xf32>,
    %c1_72 = arith.constant 1 : index
    %c1_73 = arith.constant 1 : index
    %c0_74 = arith.constant 0 : index
    %91 = vector.load %arg19[%c1_72, %c1_73, %c0_74] : memref<10x10x4xf32, #tpu.memory_space<vmem>>, vector<8x8x4xf32>
    tpu.vector_store %arg19[%c1_72, %c1_73, %c0_74], %88 {strides = array<i32>} : memref<10x10x4xf32, #tpu.memory_space<vmem>>, vector<8x8x4xf32>,
    %c0_75 = arith.constant 0 : index
    %c0_76 = arith.constant 0 : index
    %c0_77 = arith.constant 0 : index
    %92 = vector.load %arg19[%c0_75, %c0_76, %c0_77] : memref<10x10x4xf32, #tpu.memory_space<vmem>>, vector<8x8x1xf32>
    %c0_78 = arith.constant 0 : index
    %c0_79 = arith.constant 0 : index
    %93 = vector.load %arg6[%c0_78, %c0_79] : memref<36x8xf32, #tpu.memory_space<vmem>>, vector<1x8xf32>
    %94 = vector.shape_cast %93 : vector<1x8xf32> to vector<1x1x8xf32>
    %95 = vector.broadcast %92 : vector<8x8x1xf32> to vector<8x8x8xf32>
    %96 = vector.broadcast %94 : vector<1x1x8xf32> to vector<8x8x8xf32>
    %97 = arith.mulf %95, %96 : vector<8x8x8xf32>
    %c0_80 = arith.constant 0 : index
    %c0_81 = arith.constant 0 : index
    %c1_82 = arith.constant 1 : index
    %98 = vector.load %arg19[%c0_80, %c0_81, %c1_82] : memref<10x10x4xf32, #tpu.memory_space<vmem>>, vector<8x8x1xf32>
    %c1_83 = arith.constant 1 : index
    %c0_84 = arith.constant 0 : index
    %99 = vector.load %arg6[%c1_83, %c0_84] : memref<36x8xf32, #tpu.memory_space<vmem>>, vector<1x8xf32>
    %100 = vector.shape_cast %99 : vector<1x8xf32> to vector<1x1x8xf32>
    %101 = vector.broadcast %98 : vector<8x8x1xf32> to vector<8x8x8xf32>
    %102 = vector.broadcast %100 : vector<1x1x8xf32> to vector<8x8x8xf32>
    %103 = arith.mulf %101, %102 : vector<8x8x8xf32>
    %104 = arith.addf %97, %103 : vector<8x8x8xf32>
    %c0_85 = arith.constant 0 : index
    %c0_86 = arith.constant 0 : index
    %c2_87 = arith.constant 2 : index
    %105 = vector.load %arg19[%c0_85, %c0_86, %c2_87] : memref<10x10x4xf32, #tpu.memory_space<vmem>>, vector<8x8x1xf32>
    %c2_88 = arith.constant 2 : index
    %c0_89 = arith.constant 0 : index
    %106 = vector.load %arg6[%c2_88, %c0_89] : memref<36x8xf32, #tpu.memory_space<vmem>>, vector<1x8xf32>
    %107 = vector.shape_cast %106 : vector<1x8xf32> to vector<1x1x8xf32>
    %108 = vector.broadcast %105 : vector<8x8x1xf32> to vector<8x8x8xf32>
    %109 = vector.broadcast %107 : vector<1x1x8xf32> to vector<8x8x8xf32>
    %110 = arith.mulf %108, %109 : vector<8x8x8xf32>
    %111 = arith.addf %104, %110 : vector<8x8x8xf32>
    %c0_90 = arith.constant 0 : index
    %c0_91 = arith.constant 0 : index
    %c3_92 = arith.constant 3 : index
    %112 = vector.load %arg19[%c0_90, %c0_91, %c3_92] : memref<10x10x4xf32, #tpu.memory_space<vmem>>, vector<8x8x1xf32>
    %c3_93 = arith.constant 3 : index
    %c0_94 = arith.constant 0 : index
    %113 = vector.load %arg6[%c3_93, %c0_94] : memref<36x8xf32, #tpu.memory_space<vmem>>, vector<1x8xf32>
    %114 = vector.shape_cast %113 : vector<1x8xf32> to vector<1x1x8xf32>
    %115 = vector.broadcast %112 : vector<8x8x1xf32> to vector<8x8x8xf32>
    %116 = vector.broadcast %114 : vector<1x1x8xf32> to vector<8x8x8xf32>
    %117 = arith.mulf %115, %116 : vector<8x8x8xf32>
    %118 = arith.addf %111, %117 : vector<8x8x8xf32>
    %c0_95 = arith.constant 0 : index
    %c1_96 = arith.constant 1 : index
    %c0_97 = arith.constant 0 : index
    %119 = vector.load %arg19[%c0_95, %c1_96, %c0_97] : memref<10x10x4xf32, #tpu.memory_space<vmem>>, vector<8x8x1xf32>
    %c4_98 = arith.constant 4 : index
    %c0_99 = arith.constant 0 : index
    %120 = vector.load %arg6[%c4_98, %c0_99] : memref<36x8xf32, #tpu.memory_space<vmem>>, vector<1x8xf32>
    %121 = vector.shape_cast %120 : vector<1x8xf32> to vector<1x1x8xf32>
    %122 = vector.broadcast %119 : vector<8x8x1xf32> to vector<8x8x8xf32>
    %123 = vector.broadcast %121 : vector<1x1x8xf32> to vector<8x8x8xf32>
    %124 = arith.mulf %122, %123 : vector<8x8x8xf32>
    %125 = arith.addf %118, %124 : vector<8x8x8xf32>
    %c0_100 = arith.constant 0 : index
    %c1_101 = arith.constant 1 : index
    %c1_102 = arith.constant 1 : index
    %126 = vector.load %arg19[%c0_100, %c1_101, %c1_102] : memref<10x10x4xf32, #tpu.memory_space<vmem>>, vector<8x8x1xf32>
    %c5_103 = arith.constant 5 : index
    %c0_104 = arith.constant 0 : index
    %127 = vector.load %arg6[%c5_103, %c0_104] : memref<36x8xf32, #tpu.memory_space<vmem>>, vector<1x8xf32>
    %128 = vector.shape_cast %127 : vector<1x8xf32> to vector<1x1x8xf32>
    %129 = vector.broadcast %126 : vector<8x8x1xf32> to vector<8x8x8xf32>
    %130 = vector.broadcast %128 : vector<1x1x8xf32> to vector<8x8x8xf32>
    %131 = arith.mulf %129, %130 : vector<8x8x8xf32>
    %132 = arith.addf %125, %131 : vector<8x8x8xf32>
    %c0_105 = arith.constant 0 : index
    %c1_106 = arith.constant 1 : index
    %c2_107 = arith.constant 2 : index
    %133 = vector.load %arg19[%c0_105, %c1_106, %c2_107] : memref<10x10x4xf32, #tpu.memory_space<vmem>>, vector<8x8x1xf32>
    %c6_108 = arith.constant 6 : index
    %c0_109 = arith.constant 0 : index
    %134 = vector.load %arg6[%c6_108, %c0_109] : memref<36x8xf32, #tpu.memory_space<vmem>>, vector<1x8xf32>
    %135 = vector.shape_cast %134 : vector<1x8xf32> to vector<1x1x8xf32>
    %136 = vector.broadcast %133 : vector<8x8x1xf32> to vector<8x8x8xf32>
    %137 = vector.broadcast %135 : vector<1x1x8xf32> to vector<8x8x8xf32>
    %138 = arith.mulf %136, %137 : vector<8x8x8xf32>
    %139 = arith.addf %132, %138 : vector<8x8x8xf32>
    %c0_110 = arith.constant 0 : index
    %c1_111 = arith.constant 1 : index
    %c3_112 = arith.constant 3 : index
    %140 = vector.load %arg19[%c0_110, %c1_111, %c3_112] : memref<10x10x4xf32, #tpu.memory_space<vmem>>, vector<8x8x1xf32>
    %c7_113 = arith.constant 7 : index
    %c0_114 = arith.constant 0 : index
    %141 = vector.load %arg6[%c7_113, %c0_114] : memref<36x8xf32, #tpu.memory_space<vmem>>, vector<1x8xf32>
    %142 = vector.shape_cast %141 : vector<1x8xf32> to vector<1x1x8xf32>
    %143 = vector.broadcast %140 : vector<8x8x1xf32> to vector<8x8x8xf32>
    %144 = vector.broadcast %142 : vector<1x1x8xf32> to vector<8x8x8xf32>
    %145 = arith.mulf %143, %144 : vector<8x8x8xf32>
    %146 = arith.addf %139, %145 : vector<8x8x8xf32>
    %c0_115 = arith.constant 0 : index
    %c2_116 = arith.constant 2 : index
    %c0_117 = arith.constant 0 : index
    %147 = vector.load %arg19[%c0_115, %c2_116, %c0_117] : memref<10x10x4xf32, #tpu.memory_space<vmem>>, vector<8x8x1xf32>
    %c8_118 = arith.constant 8 : index
    %c0_119 = arith.constant 0 : index
    %148 = vector.load %arg6[%c8_118, %c0_119] : memref<36x8xf32, #tpu.memory_space<vmem>>, vector<1x8xf32>
    %149 = vector.shape_cast %148 : vector<1x8xf32> to vector<1x1x8xf32>
    %150 = vector.broadcast %147 : vector<8x8x1xf32> to vector<8x8x8xf32>
    %151 = vector.broadcast %149 : vector<1x1x8xf32> to vector<8x8x8xf32>
    %152 = arith.mulf %150, %151 : vector<8x8x8xf32>
    %153 = arith.addf %146, %152 : vector<8x8x8xf32>
    %c0_120 = arith.constant 0 : index
    %c2_121 = arith.constant 2 : index
    %c1_122 = arith.constant 1 : index
    %154 = vector.load %arg19[%c0_120, %c2_121, %c1_122] : memref<10x10x4xf32, #tpu.memory_space<vmem>>, vector<8x8x1xf32>
    %c9 = arith.constant 9 : index
    %c0_123 = arith.constant 0 : index
    %155 = vector.load %arg6[%c9, %c0_123] : memref<36x8xf32, #tpu.memory_space<vmem>>, vector<1x8xf32>
    %156 = vector.shape_cast %155 : vector<1x8xf32> to vector<1x1x8xf32>
    %157 = vector.broadcast %154 : vector<8x8x1xf32> to vector<8x8x8xf32>
    %158 = vector.broadcast %156 : vector<1x1x8xf32> to vector<8x8x8xf32>
    %159 = arith.mulf %157, %158 : vector<8x8x8xf32>
    %160 = arith.addf %153, %159 : vector<8x8x8xf32>
    %c0_124 = arith.constant 0 : index
    %c2_125 = arith.constant 2 : index
    %c2_126 = arith.constant 2 : index
    %161 = vector.load %arg19[%c0_124, %c2_125, %c2_126] : memref<10x10x4xf32, #tpu.memory_space<vmem>>, vector<8x8x1xf32>
    %c10 = arith.constant 10 : index
    %c0_127 = arith.constant 0 : index
    %162 = vector.load %arg6[%c10, %c0_127] : memref<36x8xf32, #tpu.memory_space<vmem>>, vector<1x8xf32>
    %163 = vector.shape_cast %162 : vector<1x8xf32> to vector<1x1x8xf32>
    %164 = vector.broadcast %161 : vector<8x8x1xf32> to vector<8x8x8xf32>
    %165 = vector.broadcast %163 : vector<1x1x8xf32> to vector<8x8x8xf32>
    %166 = arith.mulf %164, %165 : vector<8x8x8xf32>
    %167 = arith.addf %160, %166 : vector<8x8x8xf32>
    %c0_128 = arith.constant 0 : index
    %c2_129 = arith.constant 2 : index
    %c3_130 = arith.constant 3 : index
    %168 = vector.load %arg19[%c0_128, %c2_129, %c3_130] : memref<10x10x4xf32, #tpu.memory_space<vmem>>, vector<8x8x1xf32>
    %c11 = arith.constant 11 : index
    %c0_131 = arith.constant 0 : index
    %169 = vector.load %arg6[%c11, %c0_131] : memref<36x8xf32, #tpu.memory_space<vmem>>, vector<1x8xf32>
    %170 = vector.shape_cast %169 : vector<1x8xf32> to vector<1x1x8xf32>
    %171 = vector.broadcast %168 : vector<8x8x1xf32> to vector<8x8x8xf32>
    %172 = vector.broadcast %170 : vector<1x1x8xf32> to vector<8x8x8xf32>
    %173 = arith.mulf %171, %172 : vector<8x8x8xf32>
    %174 = arith.addf %167, %173 : vector<8x8x8xf32>
    %c1_132 = arith.constant 1 : index
    %c0_133 = arith.constant 0 : index
    %c0_134 = arith.constant 0 : index
    %175 = vector.load %arg19[%c1_132, %c0_133, %c0_134] : memref<10x10x4xf32, #tpu.memory_space<vmem>>, vector<8x8x1xf32>
    %c12 = arith.constant 12 : index
    %c0_135 = arith.constant 0 : index
    %176 = vector.load %arg6[%c12, %c0_135] : memref<36x8xf32, #tpu.memory_space<vmem>>, vector<1x8xf32>
    %177 = vector.shape_cast %176 : vector<1x8xf32> to vector<1x1x8xf32>
    %178 = vector.broadcast %175 : vector<8x8x1xf32> to vector<8x8x8xf32>
    %179 = vector.broadcast %177 : vector<1x1x8xf32> to vector<8x8x8xf32>
    %180 = arith.mulf %178, %179 : vector<8x8x8xf32>
    %181 = arith.addf %174, %180 : vector<8x8x8xf32>
    %c1_136 = arith.constant 1 : index
    %c0_137 = arith.constant 0 : index
    %c1_138 = arith.constant 1 : index
    %182 = vector.load %arg19[%c1_136, %c0_137, %c1_138] : memref<10x10x4xf32, #tpu.memory_space<vmem>>, vector<8x8x1xf32>
    %c13 = arith.constant 13 : index
    %c0_139 = arith.constant 0 : index
    %183 = vector.load %arg6[%c13, %c0_139] : memref<36x8xf32, #tpu.memory_space<vmem>>, vector<1x8xf32>
    %184 = vector.shape_cast %183 : vector<1x8xf32> to vector<1x1x8xf32>
    %185 = vector.broadcast %182 : vector<8x8x1xf32> to vector<8x8x8xf32>
    %186 = vector.broadcast %184 : vector<1x1x8xf32> to vector<8x8x8xf32>
    %187 = arith.mulf %185, %186 : vector<8x8x8xf32>
    %188 = arith.addf %181, %187 : vector<8x8x8xf32>
    %c1_140 = arith.constant 1 : index
    %c0_141 = arith.constant 0 : index
    %c2_142 = arith.constant 2 : index
    %189 = vector.load %arg19[%c1_140, %c0_141, %c2_142] : memref<10x10x4xf32, #tpu.memory_space<vmem>>, vector<8x8x1xf32>
    %c14 = arith.constant 14 : index
    %c0_143 = arith.constant 0 : index
    %190 = vector.load %arg6[%c14, %c0_143] : memref<36x8xf32, #tpu.memory_space<vmem>>, vector<1x8xf32>
    %191 = vector.shape_cast %190 : vector<1x8xf32> to vector<1x1x8xf32>
    %192 = vector.broadcast %189 : vector<8x8x1xf32> to vector<8x8x8xf32>
    %193 = vector.broadcast %191 : vector<1x1x8xf32> to vector<8x8x8xf32>
    %194 = arith.mulf %192, %193 : vector<8x8x8xf32>
    %195 = arith.addf %188, %194 : vector<8x8x8xf32>
    %c1_144 = arith.constant 1 : index
    %c0_145 = arith.constant 0 : index
    %c3_146 = arith.constant 3 : index
    %196 = vector.load %arg19[%c1_144, %c0_145, %c3_146] : memref<10x10x4xf32, #tpu.memory_space<vmem>>, vector<8x8x1xf32>
    %c15 = arith.constant 15 : index
    %c0_147 = arith.constant 0 : index
    %197 = vector.load %arg6[%c15, %c0_147] : memref<36x8xf32, #tpu.memory_space<vmem>>, vector<1x8xf32>
    %198 = vector.shape_cast %197 : vector<1x8xf32> to vector<1x1x8xf32>
    %199 = vector.broadcast %196 : vector<8x8x1xf32> to vector<8x8x8xf32>
    %200 = vector.broadcast %198 : vector<1x1x8xf32> to vector<8x8x8xf32>
    %201 = arith.mulf %199, %200 : vector<8x8x8xf32>
    %202 = arith.addf %195, %201 : vector<8x8x8xf32>
    %c1_148 = arith.constant 1 : index
    %c1_149 = arith.constant 1 : index
    %c0_150 = arith.constant 0 : index
    %203 = vector.load %arg19[%c1_148, %c1_149, %c0_150] : memref<10x10x4xf32, #tpu.memory_space<vmem>>, vector<8x8x1xf32>
    %c16 = arith.constant 16 : index
    %c0_151 = arith.constant 0 : index
    %204 = vector.load %arg6[%c16, %c0_151] : memref<36x8xf32, #tpu.memory_space<vmem>>, vector<1x8xf32>
    %205 = vector.shape_cast %204 : vector<1x8xf32> to vector<1x1x8xf32>
    %206 = vector.broadcast %203 : vector<8x8x1xf32> to vector<8x8x8xf32>
    %207 = vector.broadcast %205 : vector<1x1x8xf32> to vector<8x8x8xf32>
    %208 = arith.mulf %206, %207 : vector<8x8x8xf32>
    %209 = arith.addf %202, %208 : vector<8x8x8xf32>
    %c1_152 = arith.constant 1 : index
    %c1_153 = arith.constant 1 : index
    %c1_154 = arith.constant 1 : index
    %210 = vector.load %arg19[%c1_152, %c1_153, %c1_154] : memref<10x10x4xf32, #tpu.memory_space<vmem>>, vector<8x8x1xf32>
    %c17 = arith.constant 17 : index
    %c0_155 = arith.constant 0 : index
    %211 = vector.load %arg6[%c17, %c0_155] : memref<36x8xf32, #tpu.memory_space<vmem>>, vector<1x8xf32>
    %212 = vector.shape_cast %211 : vector<1x8xf32> to vector<1x1x8xf32>
    %213 = vector.broadcast %210 : vector<8x8x1xf32> to vector<8x8x8xf32>
    %214 = vector.broadcast %212 : vector<1x1x8xf32> to vector<8x8x8xf32>
    %215 = arith.mulf %213, %214 : vector<8x8x8xf32>
    %216 = arith.addf %209, %215 : vector<8x8x8xf32>
    %c1_156 = arith.constant 1 : index
    %c1_157 = arith.constant 1 : index
    %c2_158 = arith.constant 2 : index
    %217 = vector.load %arg19[%c1_156, %c1_157, %c2_158] : memref<10x10x4xf32, #tpu.memory_space<vmem>>, vector<8x8x1xf32>
    %c18 = arith.constant 18 : index
    %c0_159 = arith.constant 0 : index
    %218 = vector.load %arg6[%c18, %c0_159] : memref<36x8xf32, #tpu.memory_space<vmem>>, vector<1x8xf32>
    %219 = vector.shape_cast %218 : vector<1x8xf32> to vector<1x1x8xf32>
    %220 = vector.broadcast %217 : vector<8x8x1xf32> to vector<8x8x8xf32>
    %221 = vector.broadcast %219 : vector<1x1x8xf32> to vector<8x8x8xf32>
    %222 = arith.mulf %220, %221 : vector<8x8x8xf32>
    %223 = arith.addf %216, %222 : vector<8x8x8xf32>
    %c1_160 = arith.constant 1 : index
    %c1_161 = arith.constant 1 : index
    %c3_162 = arith.constant 3 : index
    %224 = vector.load %arg19[%c1_160, %c1_161, %c3_162] : memref<10x10x4xf32, #tpu.memory_space<vmem>>, vector<8x8x1xf32>
    %c19 = arith.constant 19 : index
    %c0_163 = arith.constant 0 : index
    %225 = vector.load %arg6[%c19, %c0_163] : memref<36x8xf32, #tpu.memory_space<vmem>>, vector<1x8xf32>
    %226 = vector.shape_cast %225 : vector<1x8xf32> to vector<1x1x8xf32>
    %227 = vector.broadcast %224 : vector<8x8x1xf32> to vector<8x8x8xf32>
    %228 = vector.broadcast %226 : vector<1x1x8xf32> to vector<8x8x8xf32>
    %229 = arith.mulf %227, %228 : vector<8x8x8xf32>
    %230 = arith.addf %223, %229 : vector<8x8x8xf32>
    %c1_164 = arith.constant 1 : index
    %c2_165 = arith.constant 2 : index
    %c0_166 = arith.constant 0 : index
    %231 = vector.load %arg19[%c1_164, %c2_165, %c0_166] : memref<10x10x4xf32, #tpu.memory_space<vmem>>, vector<8x8x1xf32>
    %c20 = arith.constant 20 : index
    %c0_167 = arith.constant 0 : index
    %232 = vector.load %arg6[%c20, %c0_167] : memref<36x8xf32, #tpu.memory_space<vmem>>, vector<1x8xf32>
    %233 = vector.shape_cast %232 : vector<1x8xf32> to vector<1x1x8xf32>
    %234 = vector.broadcast %231 : vector<8x8x1xf32> to vector<8x8x8xf32>
    %235 = vector.broadcast %233 : vector<1x1x8xf32> to vector<8x8x8xf32>
    %236 = arith.mulf %234, %235 : vector<8x8x8xf32>
    %237 = arith.addf %230, %236 : vector<8x8x8xf32>
    %c1_168 = arith.constant 1 : index
    %c2_169 = arith.constant 2 : index
    %c1_170 = arith.constant 1 : index
    %238 = vector.load %arg19[%c1_168, %c2_169, %c1_170] : memref<10x10x4xf32, #tpu.memory_space<vmem>>, vector<8x8x1xf32>
    %c21 = arith.constant 21 : index
    %c0_171 = arith.constant 0 : index
    %239 = vector.load %arg6[%c21, %c0_171] : memref<36x8xf32, #tpu.memory_space<vmem>>, vector<1x8xf32>
    %240 = vector.shape_cast %239 : vector<1x8xf32> to vector<1x1x8xf32>
    %241 = vector.broadcast %238 : vector<8x8x1xf32> to vector<8x8x8xf32>
    %242 = vector.broadcast %240 : vector<1x1x8xf32> to vector<8x8x8xf32>
    %243 = arith.mulf %241, %242 : vector<8x8x8xf32>
    %244 = arith.addf %237, %243 : vector<8x8x8xf32>
    %c1_172 = arith.constant 1 : index
    %c2_173 = arith.constant 2 : index
    %c2_174 = arith.constant 2 : index
    %245 = vector.load %arg19[%c1_172, %c2_173, %c2_174] : memref<10x10x4xf32, #tpu.memory_space<vmem>>, vector<8x8x1xf32>
    %c22 = arith.constant 22 : index
    %c0_175 = arith.constant 0 : index
    %246 = vector.load %arg6[%c22, %c0_175] : memref<36x8xf32, #tpu.memory_space<vmem>>, vector<1x8xf32>
    %247 = vector.shape_cast %246 : vector<1x8xf32> to vector<1x1x8xf32>
    %248 = vector.broadcast %245 : vector<8x8x1xf32> to vector<8x8x8xf32>
    %249 = vector.broadcast %247 : vector<1x1x8xf32> to vector<8x8x8xf32>
    %250 = arith.mulf %248, %249 : vector<8x8x8xf32>
    %251 = arith.addf %244, %250 : vector<8x8x8xf32>
    %c1_176 = arith.constant 1 : index
    %c2_177 = arith.constant 2 : index
    %c3_178 = arith.constant 3 : index
    %252 = vector.load %arg19[%c1_176, %c2_177, %c3_178] : memref<10x10x4xf32, #tpu.memory_space<vmem>>, vector<8x8x1xf32>
    %c23 = arith.constant 23 : index
    %c0_179 = arith.constant 0 : index
    %253 = vector.load %arg6[%c23, %c0_179] : memref<36x8xf32, #tpu.memory_space<vmem>>, vector<1x8xf32>
    %254 = vector.shape_cast %253 : vector<1x8xf32> to vector<1x1x8xf32>
    %255 = vector.broadcast %252 : vector<8x8x1xf32> to vector<8x8x8xf32>
    %256 = vector.broadcast %254 : vector<1x1x8xf32> to vector<8x8x8xf32>
    %257 = arith.mulf %255, %256 : vector<8x8x8xf32>
    %258 = arith.addf %251, %257 : vector<8x8x8xf32>
    %c2_180 = arith.constant 2 : index
    %c0_181 = arith.constant 0 : index
    %c0_182 = arith.constant 0 : index
    %259 = vector.load %arg19[%c2_180, %c0_181, %c0_182] : memref<10x10x4xf32, #tpu.memory_space<vmem>>, vector<8x8x1xf32>
    %c24 = arith.constant 24 : index
    %c0_183 = arith.constant 0 : index
    %260 = vector.load %arg6[%c24, %c0_183] : memref<36x8xf32, #tpu.memory_space<vmem>>, vector<1x8xf32>
    %261 = vector.shape_cast %260 : vector<1x8xf32> to vector<1x1x8xf32>
    %262 = vector.broadcast %259 : vector<8x8x1xf32> to vector<8x8x8xf32>
    %263 = vector.broadcast %261 : vector<1x1x8xf32> to vector<8x8x8xf32>
    %264 = arith.mulf %262, %263 : vector<8x8x8xf32>
    %265 = arith.addf %258, %264 : vector<8x8x8xf32>
    %c2_184 = arith.constant 2 : index
    %c0_185 = arith.constant 0 : index
    %c1_186 = arith.constant 1 : index
    %266 = vector.load %arg19[%c2_184, %c0_185, %c1_186] : memref<10x10x4xf32, #tpu.memory_space<vmem>>, vector<8x8x1xf32>
    %c25 = arith.constant 25 : index
    %c0_187 = arith.constant 0 : index
    %267 = vector.load %arg6[%c25, %c0_187] : memref<36x8xf32, #tpu.memory_space<vmem>>, vector<1x8xf32>
    %268 = vector.shape_cast %267 : vector<1x8xf32> to vector<1x1x8xf32>
    %269 = vector.broadcast %266 : vector<8x8x1xf32> to vector<8x8x8xf32>
    %270 = vector.broadcast %268 : vector<1x1x8xf32> to vector<8x8x8xf32>
    %271 = arith.mulf %269, %270 : vector<8x8x8xf32>
    %272 = arith.addf %265, %271 : vector<8x8x8xf32>
    %c2_188 = arith.constant 2 : index
    %c0_189 = arith.constant 0 : index
    %c2_190 = arith.constant 2 : index
    %273 = vector.load %arg19[%c2_188, %c0_189, %c2_190] : memref<10x10x4xf32, #tpu.memory_space<vmem>>, vector<8x8x1xf32>
    %c26 = arith.constant 26 : index
    %c0_191 = arith.constant 0 : index
    %274 = vector.load %arg6[%c26, %c0_191] : memref<36x8xf32, #tpu.memory_space<vmem>>, vector<1x8xf32>
    %275 = vector.shape_cast %274 : vector<1x8xf32> to vector<1x1x8xf32>
    %276 = vector.broadcast %273 : vector<8x8x1xf32> to vector<8x8x8xf32>
    %277 = vector.broadcast %275 : vector<1x1x8xf32> to vector<8x8x8xf32>
    %278 = arith.mulf %276, %277 : vector<8x8x8xf32>
    %279 = arith.addf %272, %278 : vector<8x8x8xf32>
    %c2_192 = arith.constant 2 : index
    %c0_193 = arith.constant 0 : index
    %c3_194 = arith.constant 3 : index
    %280 = vector.load %arg19[%c2_192, %c0_193, %c3_194] : memref<10x10x4xf32, #tpu.memory_space<vmem>>, vector<8x8x1xf32>
    %c27 = arith.constant 27 : index
    %c0_195 = arith.constant 0 : index
    %281 = vector.load %arg6[%c27, %c0_195] : memref<36x8xf32, #tpu.memory_space<vmem>>, vector<1x8xf32>
    %282 = vector.shape_cast %281 : vector<1x8xf32> to vector<1x1x8xf32>
    %283 = vector.broadcast %280 : vector<8x8x1xf32> to vector<8x8x8xf32>
    %284 = vector.broadcast %282 : vector<1x1x8xf32> to vector<8x8x8xf32>
    %285 = arith.mulf %283, %284 : vector<8x8x8xf32>
    %286 = arith.addf %279, %285 : vector<8x8x8xf32>
    %c2_196 = arith.constant 2 : index
    %c1_197 = arith.constant 1 : index
    %c0_198 = arith.constant 0 : index
    %287 = vector.load %arg19[%c2_196, %c1_197, %c0_198] : memref<10x10x4xf32, #tpu.memory_space<vmem>>, vector<8x8x1xf32>
    %c28 = arith.constant 28 : index
    %c0_199 = arith.constant 0 : index
    %288 = vector.load %arg6[%c28, %c0_199] : memref<36x8xf32, #tpu.memory_space<vmem>>, vector<1x8xf32>
    %289 = vector.shape_cast %288 : vector<1x8xf32> to vector<1x1x8xf32>
    %290 = vector.broadcast %287 : vector<8x8x1xf32> to vector<8x8x8xf32>
    %291 = vector.broadcast %289 : vector<1x1x8xf32> to vector<8x8x8xf32>
    %292 = arith.mulf %290, %291 : vector<8x8x8xf32>
    %293 = arith.addf %286, %292 : vector<8x8x8xf32>
    %c2_200 = arith.constant 2 : index
    %c1_201 = arith.constant 1 : index
    %c1_202 = arith.constant 1 : index
    %294 = vector.load %arg19[%c2_200, %c1_201, %c1_202] : memref<10x10x4xf32, #tpu.memory_space<vmem>>, vector<8x8x1xf32>
    %c29 = arith.constant 29 : index
    %c0_203 = arith.constant 0 : index
    %295 = vector.load %arg6[%c29, %c0_203] : memref<36x8xf32, #tpu.memory_space<vmem>>, vector<1x8xf32>
    %296 = vector.shape_cast %295 : vector<1x8xf32> to vector<1x1x8xf32>
    %297 = vector.broadcast %294 : vector<8x8x1xf32> to vector<8x8x8xf32>
    %298 = vector.broadcast %296 : vector<1x1x8xf32> to vector<8x8x8xf32>
    %299 = arith.mulf %297, %298 : vector<8x8x8xf32>
    %300 = arith.addf %293, %299 : vector<8x8x8xf32>
    %c2_204 = arith.constant 2 : index
    %c1_205 = arith.constant 1 : index
    %c2_206 = arith.constant 2 : index
    %301 = vector.load %arg19[%c2_204, %c1_205, %c2_206] : memref<10x10x4xf32, #tpu.memory_space<vmem>>, vector<8x8x1xf32>
    %c30 = arith.constant 30 : index
    %c0_207 = arith.constant 0 : index
    %302 = vector.load %arg6[%c30, %c0_207] : memref<36x8xf32, #tpu.memory_space<vmem>>, vector<1x8xf32>
    %303 = vector.shape_cast %302 : vector<1x8xf32> to vector<1x1x8xf32>
    %304 = vector.broadcast %301 : vector<8x8x1xf32> to vector<8x8x8xf32>
    %305 = vector.broadcast %303 : vector<1x1x8xf32> to vector<8x8x8xf32>
    %306 = arith.mulf %304, %305 : vector<8x8x8xf32>
    %307 = arith.addf %300, %306 : vector<8x8x8xf32>
    %c2_208 = arith.constant 2 : index
    %c1_209 = arith.constant 1 : index
    %c3_210 = arith.constant 3 : index
    %308 = vector.load %arg19[%c2_208, %c1_209, %c3_210] : memref<10x10x4xf32, #tpu.memory_space<vmem>>, vector<8x8x1xf32>
    %c31 = arith.constant 31 : index
    %c0_211 = arith.constant 0 : index
    %309 = vector.load %arg6[%c31, %c0_211] : memref<36x8xf32, #tpu.memory_space<vmem>>, vector<1x8xf32>
    %310 = vector.shape_cast %309 : vector<1x8xf32> to vector<1x1x8xf32>
    %311 = vector.broadcast %308 : vector<8x8x1xf32> to vector<8x8x8xf32>
    %312 = vector.broadcast %310 : vector<1x1x8xf32> to vector<8x8x8xf32>
    %313 = arith.mulf %311, %312 : vector<8x8x8xf32>
    %314 = arith.addf %307, %313 : vector<8x8x8xf32>
    %c2_212 = arith.constant 2 : index
    %c2_213 = arith.constant 2 : index
    %c0_214 = arith.constant 0 : index
    %315 = vector.load %arg19[%c2_212, %c2_213, %c0_214] : memref<10x10x4xf32, #tpu.memory_space<vmem>>, vector<8x8x1xf32>
    %c32 = arith.constant 32 : index
    %c0_215 = arith.constant 0 : index
    %316 = vector.load %arg6[%c32, %c0_215] : memref<36x8xf32, #tpu.memory_space<vmem>>, vector<1x8xf32>
    %317 = vector.shape_cast %316 : vector<1x8xf32> to vector<1x1x8xf32>
    %318 = vector.broadcast %315 : vector<8x8x1xf32> to vector<8x8x8xf32>
    %319 = vector.broadcast %317 : vector<1x1x8xf32> to vector<8x8x8xf32>
    %320 = arith.mulf %318, %319 : vector<8x8x8xf32>
    %321 = arith.addf %314, %320 : vector<8x8x8xf32>
    %c2_216 = arith.constant 2 : index
    %c2_217 = arith.constant 2 : index
    %c1_218 = arith.constant 1 : index
    %322 = vector.load %arg19[%c2_216, %c2_217, %c1_218] : memref<10x10x4xf32, #tpu.memory_space<vmem>>, vector<8x8x1xf32>
    %c33 = arith.constant 33 : index
    %c0_219 = arith.constant 0 : index
    %323 = vector.load %arg6[%c33, %c0_219] : memref<36x8xf32, #tpu.memory_space<vmem>>, vector<1x8xf32>
    %324 = vector.shape_cast %323 : vector<1x8xf32> to vector<1x1x8xf32>
    %325 = vector.broadcast %322 : vector<8x8x1xf32> to vector<8x8x8xf32>
    %326 = vector.broadcast %324 : vector<1x1x8xf32> to vector<8x8x8xf32>
    %327 = arith.mulf %325, %326 : vector<8x8x8xf32>
    %328 = arith.addf %321, %327 : vector<8x8x8xf32>
    %c2_220 = arith.constant 2 : index
    %c2_221 = arith.constant 2 : index
    %c2_222 = arith.constant 2 : index
    %329 = vector.load %arg19[%c2_220, %c2_221, %c2_222] : memref<10x10x4xf32, #tpu.memory_space<vmem>>, vector<8x8x1xf32>
    %c34 = arith.constant 34 : index
    %c0_223 = arith.constant 0 : index
    %330 = vector.load %arg6[%c34, %c0_223] : memref<36x8xf32, #tpu.memory_space<vmem>>, vector<1x8xf32>
    %331 = vector.shape_cast %330 : vector<1x8xf32> to vector<1x1x8xf32>
    %332 = vector.broadcast %329 : vector<8x8x1xf32> to vector<8x8x8xf32>
    %333 = vector.broadcast %331 : vector<1x1x8xf32> to vector<8x8x8xf32>
    %334 = arith.mulf %332, %333 : vector<8x8x8xf32>
    %335 = arith.addf %328, %334 : vector<8x8x8xf32>
    %c2_224 = arith.constant 2 : index
    %c2_225 = arith.constant 2 : index
    %c3_226 = arith.constant 3 : index
    %336 = vector.load %arg19[%c2_224, %c2_225, %c3_226] : memref<10x10x4xf32, #tpu.memory_space<vmem>>, vector<8x8x1xf32>
    %c35 = arith.constant 35 : index
    %c0_227 = arith.constant 0 : index
    %337 = vector.load %arg6[%c35, %c0_227] : memref<36x8xf32, #tpu.memory_space<vmem>>, vector<1x8xf32>
    %338 = vector.shape_cast %337 : vector<1x8xf32> to vector<1x1x8xf32>
    %339 = vector.broadcast %336 : vector<8x8x1xf32> to vector<8x8x8xf32>
    %340 = vector.broadcast %338 : vector<1x1x8xf32> to vector<8x8x8xf32>
    %341 = arith.mulf %339, %340 : vector<8x8x8xf32>
    %342 = arith.addf %335, %341 : vector<8x8x8xf32>
    %c0_228 = arith.constant 0 : index
    %c0_229 = arith.constant 0 : index
    %343 = vector.load %arg7[%c0_228, %c0_229] : memref<1x8xf32, #tpu.memory_space<vmem>>, vector<1x8xf32>
    %344 = vector.shape_cast %343 : vector<1x8xf32> to vector<1x1x8xf32>
    %345 = vector.broadcast %344 : vector<1x1x8xf32> to vector<8x8x8xf32>
    %346 = arith.addf %342, %345 : vector<8x8x8xf32>
    %cst_230 = arith.constant 0.000000e+00 : f32
    %347 = vector.broadcast %cst_230 : f32 to vector<8x8x8xf32>
    %348 = arith.maximumf %346, %347 : vector<8x8x8xf32>
    %c0_231 = arith.constant 0 : index
    %c0_232 = arith.constant 0 : index
    %c0_233 = arith.constant 0 : index
    %349 = vector.load %arg20[%c0_231, %c0_232, %c0_233] : memref<8x8x8xf32, #tpu.memory_space<vmem>>, vector<8x8x8xf32>
    tpu.vector_store %arg20[%c0_231, %c0_232, %c0_233], %348 {strides = array<i32>} : memref<8x8x8xf32, #tpu.memory_space<vmem>>, vector<8x8x8xf32>,
    %c0_234 = arith.constant 0 : index
    %c0_235 = arith.constant 0 : index
    %c0_236 = arith.constant 0 : index
    %350 = tpu.strided_load %arg20[%c0_234, %c0_235, %c0_236] {strides = array<i32: 2, 2, 1>} : memref<8x8x8xf32, #tpu.memory_space<vmem>>, vector<4x4x8xf32>
    %c0_237 = arith.constant 0 : index
    %c1_238 = arith.constant 1 : index
    %c0_239 = arith.constant 0 : index
    %351 = tpu.strided_load %arg20[%c0_237, %c1_238, %c0_239] {strides = array<i32: 2, 2, 1>} : memref<8x8x8xf32, #tpu.memory_space<vmem>>, vector<4x4x8xf32>
    %c1_240 = arith.constant 1 : index
    %c0_241 = arith.constant 0 : index
    %c0_242 = arith.constant 0 : index
    %352 = tpu.strided_load %arg20[%c1_240, %c0_241, %c0_242] {strides = array<i32: 2, 2, 1>} : memref<8x8x8xf32, #tpu.memory_space<vmem>>, vector<4x4x8xf32>
    %c1_243 = arith.constant 1 : index
    %c1_244 = arith.constant 1 : index
    %c0_245 = arith.constant 0 : index
    %353 = tpu.strided_load %arg20[%c1_243, %c1_244, %c0_245] {strides = array<i32: 2, 2, 1>} : memref<8x8x8xf32, #tpu.memory_space<vmem>>, vector<4x4x8xf32>
    %354 = arith.maximumf %350, %351 : vector<4x4x8xf32>
    %355 = arith.maximumf %352, %353 : vector<4x4x8xf32>
    %356 = arith.maximumf %354, %355 : vector<4x4x8xf32>
    %c0_246 = arith.constant 0 : index
    %c0_247 = arith.constant 0 : index
    %357 = vector.load %arg8[%c0_246, %c0_247] : memref<1x8xf32, #tpu.memory_space<vmem>>, vector<1x8xf32>
    %358 = vector.shape_cast %357 : vector<1x8xf32> to vector<1x1x8xf32>
    %359 = vector.broadcast %358 : vector<1x1x8xf32> to vector<4x4x8xf32>
    %360 = arith.mulf %356, %359 : vector<4x4x8xf32>
    %c0_248 = arith.constant 0 : index
    %c0_249 = arith.constant 0 : index
    %361 = vector.load %arg9[%c0_248, %c0_249] : memref<1x8xf32, #tpu.memory_space<vmem>>, vector<1x8xf32>
    %362 = vector.shape_cast %361 : vector<1x8xf32> to vector<1x1x8xf32>
    %363 = vector.broadcast %362 : vector<1x1x8xf32> to vector<4x4x8xf32>
    %364 = arith.addf %360, %363 : vector<4x4x8xf32>
    %c0_250 = arith.constant 0 : index
    %c0_251 = arith.constant 0 : index
    %c0_252 = arith.constant 0 : index
    %365 = vector.load %arg21[%c0_250, %c0_251, %c0_252] : memref<4x4x8xf32, #tpu.memory_space<vmem>>, vector<4x4x8xf32>
    tpu.vector_store %arg21[%c0_250, %c0_251, %c0_252], %364 {strides = array<i32>} : memref<4x4x8xf32, #tpu.memory_space<vmem>>, vector<4x4x8xf32>,
    %c0_253 = arith.constant 0 : index
    %c0_254 = arith.constant 0 : index
    %c0_255 = arith.constant 0 : index
    %366 = vector.load %arg21[%c0_253, %c0_254, %c0_255] : memref<4x4x8xf32, #tpu.memory_space<vmem>>, vector<1x1x8xf32>
    %367 = vector.shape_cast %366 : vector<1x1x8xf32> to vector<1x8xf32>
    %c0_256 = arith.constant 0 : index
    %c0_257 = arith.constant 0 : index
    %368 = vector.load %arg10[%c0_256, %c0_257] : memref<128x16xf32, #tpu.memory_space<vmem>>, vector<8x16xf32>
    %cst_258 = arith.constant dense<0.000000e+00> : vector<1x16xf32>
    %369 = tpu.matmul %367, %368, %cst_258 {dimension_numbers = #tpu.dot_dimension_numbers<[1], [0], [0], [1], [0, 0, 1, 1], [], []>} : vector<1x8xf32>, vector<8x16xf32>, vector<1x16xf32> -> vector<1x16xf32>
    %c0_259 = arith.constant 0 : index
    %c1_260 = arith.constant 1 : index
    %c0_261 = arith.constant 0 : index
    %370 = vector.load %arg21[%c0_259, %c1_260, %c0_261] : memref<4x4x8xf32, #tpu.memory_space<vmem>>, vector<1x1x8xf32>
    %371 = vector.shape_cast %370 : vector<1x1x8xf32> to vector<1x8xf32>
    %c8_262 = arith.constant 8 : index
    %c0_263 = arith.constant 0 : index
    %372 = vector.load %arg10[%c8_262, %c0_263] : memref<128x16xf32, #tpu.memory_space<vmem>>, vector<8x16xf32>
    %cst_264 = arith.constant dense<0.000000e+00> : vector<1x16xf32>
    %373 = tpu.matmul %371, %372, %cst_264 {dimension_numbers = #tpu.dot_dimension_numbers<[1], [0], [0], [1], [0, 0, 1, 1], [], []>} : vector<1x8xf32>, vector<8x16xf32>, vector<1x16xf32> -> vector<1x16xf32>
    %374 = arith.addf %369, %373 : vector<1x16xf32>
    %c0_265 = arith.constant 0 : index
    %c2_266 = arith.constant 2 : index
    %c0_267 = arith.constant 0 : index
    %375 = vector.load %arg21[%c0_265, %c2_266, %c0_267] : memref<4x4x8xf32, #tpu.memory_space<vmem>>, vector<1x1x8xf32>
    %376 = vector.shape_cast %375 : vector<1x1x8xf32> to vector<1x8xf32>
    %c16_268 = arith.constant 16 : index
    %c0_269 = arith.constant 0 : index
    %377 = vector.load %arg10[%c16_268, %c0_269] : memref<128x16xf32, #tpu.memory_space<vmem>>, vector<8x16xf32>
    %cst_270 = arith.constant dense<0.000000e+00> : vector<1x16xf32>
    %378 = tpu.matmul %376, %377, %cst_270 {dimension_numbers = #tpu.dot_dimension_numbers<[1], [0], [0], [1], [0, 0, 1, 1], [], []>} : vector<1x8xf32>, vector<8x16xf32>, vector<1x16xf32> -> vector<1x16xf32>
    %379 = arith.addf %374, %378 : vector<1x16xf32>
    %c0_271 = arith.constant 0 : index
    %c3_272 = arith.constant 3 : index
    %c0_273 = arith.constant 0 : index
    %380 = vector.load %arg21[%c0_271, %c3_272, %c0_273] : memref<4x4x8xf32, #tpu.memory_space<vmem>>, vector<1x1x8xf32>
    %381 = vector.shape_cast %380 : vector<1x1x8xf32> to vector<1x8xf32>
    %c24_274 = arith.constant 24 : index
    %c0_275 = arith.constant 0 : index
    %382 = vector.load %arg10[%c24_274, %c0_275] : memref<128x16xf32, #tpu.memory_space<vmem>>, vector<8x16xf32>
    %cst_276 = arith.constant dense<0.000000e+00> : vector<1x16xf32>
    %383 = tpu.matmul %381, %382, %cst_276 {dimension_numbers = #tpu.dot_dimension_numbers<[1], [0], [0], [1], [0, 0, 1, 1], [], []>} : vector<1x8xf32>, vector<8x16xf32>, vector<1x16xf32> -> vector<1x16xf32>
    %384 = arith.addf %379, %383 : vector<1x16xf32>
    %c1_277 = arith.constant 1 : index
    %c0_278 = arith.constant 0 : index
    %c0_279 = arith.constant 0 : index
    %385 = vector.load %arg21[%c1_277, %c0_278, %c0_279] : memref<4x4x8xf32, #tpu.memory_space<vmem>>, vector<1x1x8xf32>
    %386 = vector.shape_cast %385 : vector<1x1x8xf32> to vector<1x8xf32>
    %c32_280 = arith.constant 32 : index
    %c0_281 = arith.constant 0 : index
    %387 = vector.load %arg10[%c32_280, %c0_281] : memref<128x16xf32, #tpu.memory_space<vmem>>, vector<8x16xf32>
    %cst_282 = arith.constant dense<0.000000e+00> : vector<1x16xf32>
    %388 = tpu.matmul %386, %387, %cst_282 {dimension_numbers = #tpu.dot_dimension_numbers<[1], [0], [0], [1], [0, 0, 1, 1], [], []>} : vector<1x8xf32>, vector<8x16xf32>, vector<1x16xf32> -> vector<1x16xf32>
    %389 = arith.addf %384, %388 : vector<1x16xf32>
    %c1_283 = arith.constant 1 : index
    %c1_284 = arith.constant 1 : index
    %c0_285 = arith.constant 0 : index
    %390 = vector.load %arg21[%c1_283, %c1_284, %c0_285] : memref<4x4x8xf32, #tpu.memory_space<vmem>>, vector<1x1x8xf32>
    %391 = vector.shape_cast %390 : vector<1x1x8xf32> to vector<1x8xf32>
    %c40 = arith.constant 40 : index
    %c0_286 = arith.constant 0 : index
    %392 = vector.load %arg10[%c40, %c0_286] : memref<128x16xf32, #tpu.memory_space<vmem>>, vector<8x16xf32>
    %cst_287 = arith.constant dense<0.000000e+00> : vector<1x16xf32>
    %393 = tpu.matmul %391, %392, %cst_287 {dimension_numbers = #tpu.dot_dimension_numbers<[1], [0], [0], [1], [0, 0, 1, 1], [], []>} : vector<1x8xf32>, vector<8x16xf32>, vector<1x16xf32> -> vector<1x16xf32>
    %394 = arith.addf %389, %393 : vector<1x16xf32>
    %c1_288 = arith.constant 1 : index
    %c2_289 = arith.constant 2 : index
    %c0_290 = arith.constant 0 : index
    %395 = vector.load %arg21[%c1_288, %c2_289, %c0_290] : memref<4x4x8xf32, #tpu.memory_space<vmem>>, vector<1x1x8xf32>
    %396 = vector.shape_cast %395 : vector<1x1x8xf32> to vector<1x8xf32>
    %c48 = arith.constant 48 : index
    %c0_291 = arith.constant 0 : index
    %397 = vector.load %arg10[%c48, %c0_291] : memref<128x16xf32, #tpu.memory_space<vmem>>, vector<8x16xf32>
    %cst_292 = arith.constant dense<0.000000e+00> : vector<1x16xf32>
    %398 = tpu.matmul %396, %397, %cst_292 {dimension_numbers = #tpu.dot_dimension_numbers<[1], [0], [0], [1], [0, 0, 1, 1], [], []>} : vector<1x8xf32>, vector<8x16xf32>, vector<1x16xf32> -> vector<1x16xf32>
    %399 = arith.addf %394, %398 : vector<1x16xf32>
    %c1_293 = arith.constant 1 : index
    %c3_294 = arith.constant 3 : index
    %c0_295 = arith.constant 0 : index
    %400 = vector.load %arg21[%c1_293, %c3_294, %c0_295] : memref<4x4x8xf32, #tpu.memory_space<vmem>>, vector<1x1x8xf32>
    %401 = vector.shape_cast %400 : vector<1x1x8xf32> to vector<1x8xf32>
    %c56 = arith.constant 56 : index
    %c0_296 = arith.constant 0 : index
    %402 = vector.load %arg10[%c56, %c0_296] : memref<128x16xf32, #tpu.memory_space<vmem>>, vector<8x16xf32>
    %cst_297 = arith.constant dense<0.000000e+00> : vector<1x16xf32>
    %403 = tpu.matmul %401, %402, %cst_297 {dimension_numbers = #tpu.dot_dimension_numbers<[1], [0], [0], [1], [0, 0, 1, 1], [], []>} : vector<1x8xf32>, vector<8x16xf32>, vector<1x16xf32> -> vector<1x16xf32>
    %404 = arith.addf %399, %403 : vector<1x16xf32>
    %c2_298 = arith.constant 2 : index
    %c0_299 = arith.constant 0 : index
    %c0_300 = arith.constant 0 : index
    %405 = vector.load %arg21[%c2_298, %c0_299, %c0_300] : memref<4x4x8xf32, #tpu.memory_space<vmem>>, vector<1x1x8xf32>
    %406 = vector.shape_cast %405 : vector<1x1x8xf32> to vector<1x8xf32>
    %c64 = arith.constant 64 : index
    %c0_301 = arith.constant 0 : index
    %407 = vector.load %arg10[%c64, %c0_301] : memref<128x16xf32, #tpu.memory_space<vmem>>, vector<8x16xf32>
    %cst_302 = arith.constant dense<0.000000e+00> : vector<1x16xf32>
    %408 = tpu.matmul %406, %407, %cst_302 {dimension_numbers = #tpu.dot_dimension_numbers<[1], [0], [0], [1], [0, 0, 1, 1], [], []>} : vector<1x8xf32>, vector<8x16xf32>, vector<1x16xf32> -> vector<1x16xf32>
    %409 = arith.addf %404, %408 : vector<1x16xf32>
    %c2_303 = arith.constant 2 : index
    %c1_304 = arith.constant 1 : index
    %c0_305 = arith.constant 0 : index
    %410 = vector.load %arg21[%c2_303, %c1_304, %c0_305] : memref<4x4x8xf32, #tpu.memory_space<vmem>>, vector<1x1x8xf32>
    %411 = vector.shape_cast %410 : vector<1x1x8xf32> to vector<1x8xf32>
    %c72 = arith.constant 72 : index
    %c0_306 = arith.constant 0 : index
    %412 = vector.load %arg10[%c72, %c0_306] : memref<128x16xf32, #tpu.memory_space<vmem>>, vector<8x16xf32>
    %cst_307 = arith.constant dense<0.000000e+00> : vector<1x16xf32>
    %413 = tpu.matmul %411, %412, %cst_307 {dimension_numbers = #tpu.dot_dimension_numbers<[1], [0], [0], [1], [0, 0, 1, 1], [], []>} : vector<1x8xf32>, vector<8x16xf32>, vector<1x16xf32> -> vector<1x16xf32>
    %414 = arith.addf %409, %413 : vector<1x16xf32>
    %c2_308 = arith.constant 2 : index
    %c2_309 = arith.constant 2 : index
    %c0_310 = arith.constant 0 : index
    %415 = vector.load %arg21[%c2_308, %c2_309, %c0_310] : memref<4x4x8xf32, #tpu.memory_space<vmem>>, vector<1x1x8xf32>
    %416 = vector.shape_cast %415 : vector<1x1x8xf32> to vector<1x8xf32>
    %c80 = arith.constant 80 : index
    %c0_311 = arith.constant 0 : index
    %417 = vector.load %arg10[%c80, %c0_311] : memref<128x16xf32, #tpu.memory_space<vmem>>, vector<8x16xf32>
    %cst_312 = arith.constant dense<0.000000e+00> : vector<1x16xf32>
    %418 = tpu.matmul %416, %417, %cst_312 {dimension_numbers = #tpu.dot_dimension_numbers<[1], [0], [0], [1], [0, 0, 1, 1], [], []>} : vector<1x8xf32>, vector<8x16xf32>, vector<1x16xf32> -> vector<1x16xf32>
    %419 = arith.addf %414, %418 : vector<1x16xf32>
    %c2_313 = arith.constant 2 : index
    %c3_314 = arith.constant 3 : index
    %c0_315 = arith.constant 0 : index
    %420 = vector.load %arg21[%c2_313, %c3_314, %c0_315] : memref<4x4x8xf32, #tpu.memory_space<vmem>>, vector<1x1x8xf32>
    %421 = vector.shape_cast %420 : vector<1x1x8xf32> to vector<1x8xf32>
    %c88 = arith.constant 88 : index
    %c0_316 = arith.constant 0 : index
    %422 = vector.load %arg10[%c88, %c0_316] : memref<128x16xf32, #tpu.memory_space<vmem>>, vector<8x16xf32>
    %cst_317 = arith.constant dense<0.000000e+00> : vector<1x16xf32>
    %423 = tpu.matmul %421, %422, %cst_317 {dimension_numbers = #tpu.dot_dimension_numbers<[1], [0], [0], [1], [0, 0, 1, 1], [], []>} : vector<1x8xf32>, vector<8x16xf32>, vector<1x16xf32> -> vector<1x16xf32>
    %424 = arith.addf %419, %423 : vector<1x16xf32>
    %c3_318 = arith.constant 3 : index
    %c0_319 = arith.constant 0 : index
    %c0_320 = arith.constant 0 : index
    %425 = vector.load %arg21[%c3_318, %c0_319, %c0_320] : memref<4x4x8xf32, #tpu.memory_space<vmem>>, vector<1x1x8xf32>
    %426 = vector.shape_cast %425 : vector<1x1x8xf32> to vector<1x8xf32>
    %c96 = arith.constant 96 : index
    %c0_321 = arith.constant 0 : index
    %427 = vector.load %arg10[%c96, %c0_321] : memref<128x16xf32, #tpu.memory_space<vmem>>, vector<8x16xf32>
    %cst_322 = arith.constant dense<0.000000e+00> : vector<1x16xf32>
    %428 = tpu.matmul %426, %427, %cst_322 {dimension_numbers = #tpu.dot_dimension_numbers<[1], [0], [0], [1], [0, 0, 1, 1], [], []>} : vector<1x8xf32>, vector<8x16xf32>, vector<1x16xf32> -> vector<1x16xf32>
    %429 = arith.addf %424, %428 : vector<1x16xf32>
    %c3_323 = arith.constant 3 : index
    %c1_324 = arith.constant 1 : index
    %c0_325 = arith.constant 0 : index
    %430 = vector.load %arg21[%c3_323, %c1_324, %c0_325] : memref<4x4x8xf32, #tpu.memory_space<vmem>>, vector<1x1x8xf32>
    %431 = vector.shape_cast %430 : vector<1x1x8xf32> to vector<1x8xf32>
    %c104 = arith.constant 104 : index
    %c0_326 = arith.constant 0 : index
    %432 = vector.load %arg10[%c104, %c0_326] : memref<128x16xf32, #tpu.memory_space<vmem>>, vector<8x16xf32>
    %cst_327 = arith.constant dense<0.000000e+00> : vector<1x16xf32>
    %433 = tpu.matmul %431, %432, %cst_327 {dimension_numbers = #tpu.dot_dimension_numbers<[1], [0], [0], [1], [0, 0, 1, 1], [], []>} : vector<1x8xf32>, vector<8x16xf32>, vector<1x16xf32> -> vector<1x16xf32>
    %434 = arith.addf %429, %433 : vector<1x16xf32>
    %c3_328 = arith.constant 3 : index
    %c2_329 = arith.constant 2 : index
    %c0_330 = arith.constant 0 : index
    %435 = vector.load %arg21[%c3_328, %c2_329, %c0_330] : memref<4x4x8xf32, #tpu.memory_space<vmem>>, vector<1x1x8xf32>
    %436 = vector.shape_cast %435 : vector<1x1x8xf32> to vector<1x8xf32>
    %c112 = arith.constant 112 : index
    %c0_331 = arith.constant 0 : index
    %437 = vector.load %arg10[%c112, %c0_331] : memref<128x16xf32, #tpu.memory_space<vmem>>, vector<8x16xf32>
    %cst_332 = arith.constant dense<0.000000e+00> : vector<1x16xf32>
    %438 = tpu.matmul %436, %437, %cst_332 {dimension_numbers = #tpu.dot_dimension_numbers<[1], [0], [0], [1], [0, 0, 1, 1], [], []>} : vector<1x8xf32>, vector<8x16xf32>, vector<1x16xf32> -> vector<1x16xf32>
    %439 = arith.addf %434, %438 : vector<1x16xf32>
    %c3_333 = arith.constant 3 : index
    %c3_334 = arith.constant 3 : index
    %c0_335 = arith.constant 0 : index
    %440 = vector.load %arg21[%c3_333, %c3_334, %c0_335] : memref<4x4x8xf32, #tpu.memory_space<vmem>>, vector<1x1x8xf32>
    %441 = vector.shape_cast %440 : vector<1x1x8xf32> to vector<1x8xf32>
    %c120 = arith.constant 120 : index
    %c0_336 = arith.constant 0 : index
    %442 = vector.load %arg10[%c120, %c0_336] : memref<128x16xf32, #tpu.memory_space<vmem>>, vector<8x16xf32>
    %cst_337 = arith.constant dense<0.000000e+00> : vector<1x16xf32>
    %443 = tpu.matmul %441, %442, %cst_337 {dimension_numbers = #tpu.dot_dimension_numbers<[1], [0], [0], [1], [0, 0, 1, 1], [], []>} : vector<1x8xf32>, vector<8x16xf32>, vector<1x16xf32> -> vector<1x16xf32>
    %444 = arith.addf %439, %443 : vector<1x16xf32>
    %c0_338 = arith.constant 0 : index
    %c0_339 = arith.constant 0 : index
    %445 = vector.load %arg11[%c0_338, %c0_339] : memref<1x16xf32, #tpu.memory_space<vmem>>, vector<1x16xf32>
    %446 = arith.addf %444, %445 : vector<1x16xf32>
    %cst_340 = arith.constant 0.000000e+00 : f32
    %447 = vector.broadcast %cst_340 : f32 to vector<1x16xf32>
    %448 = arith.maximumf %446, %447 : vector<1x16xf32>
    %c0_341 = arith.constant 0 : index
    %c0_342 = arith.constant 0 : index
    %449 = vector.load %arg12[%c0_341, %c0_342] : memref<1x16xf32, #tpu.memory_space<vmem>>, vector<1x16xf32>
    %450 = arith.mulf %448, %449 : vector<1x16xf32>
    %c0_343 = arith.constant 0 : index
    %c0_344 = arith.constant 0 : index
    %451 = vector.load %arg13[%c0_343, %c0_344] : memref<1x16xf32, #tpu.memory_space<vmem>>, vector<1x16xf32>
    %452 = arith.addf %450, %451 : vector<1x16xf32>
    %c0_345 = arith.constant 0 : index
    %c0_346 = arith.constant 0 : index
    %453 = vector.load %arg14[%c0_345, %c0_346] : memref<16x7xf32, #tpu.memory_space<vmem>>, vector<16x7xf32>
    %cst_347 = arith.constant dense<0.000000e+00> : vector<1x7xf32>
    %454 = tpu.matmul %452, %453, %cst_347 {dimension_numbers = #tpu.dot_dimension_numbers<[1], [0], [0], [1], [0, 0, 1, 1], [], []>} : vector<1x16xf32>, vector<16x7xf32>, vector<1x7xf32> -> vector<1x7xf32>
    %c0_348 = arith.constant 0 : index
    %c0_349 = arith.constant 0 : index
    %455 = vector.load %arg15[%c0_348, %c0_349] : memref<1x7xf32, #tpu.memory_space<vmem>>, vector<1x7xf32>
    %456 = arith.addf %454, %455 : vector<1x7xf32>
    %cst_350 = arith.constant dense<0xFF800000> : vector<1xf32>
    %457 = vector.multi_reduction <maximumf>, %456, %cst_350 [1] : vector<1x7xf32> to vector<1xf32>
    %458 = vector.shape_cast %457 : vector<1xf32> to vector<1x1xf32>
    %459 = vector.broadcast %458 : vector<1x1xf32> to vector<1x7xf32>
    %460 = arith.subf %456, %459 : vector<1x7xf32>
    %461 = math.exp %460 : vector<1x7xf32>
    %cst_351 = arith.constant dense<0.000000e+00> : vector<1xf32>
    %462 = vector.multi_reduction <add>, %461, %cst_351 [1] : vector<1x7xf32> to vector<1xf32>
    %463 = vector.shape_cast %462 : vector<1xf32> to vector<1x1xf32>
    %464 = tpu.reciprocal %463 : vector<1x1xf32> -> vector<1x1xf32>
    %465 = vector.broadcast %464 : vector<1x1xf32> to vector<1x7xf32>
    %466 = arith.mulf %461, %465 : vector<1x7xf32>
    %c0_352 = arith.constant 0 : index
    %c0_353 = arith.constant 0 : index
    %c0_354 = arith.constant 0 : index
    %467 = vector.load %arg16[%c0_352, %c0_353, %c0_354] : memref<1x1x7xf32, #tpu.memory_space<vmem>>, vector<1x1x7xf32>
    %468 = vector.shape_cast %467 : vector<1x1x7xf32> to vector<1x7xf32>
    %469 = vector.shape_cast %466 : vector<1x7xf32> to vector<1x1x7xf32>
    tpu.vector_store %arg16[%c0_352, %c0_353, %c0_354], %469 {strides = array<i32>} : memref<1x1x7xf32, #tpu.memory_space<vmem>>, vector<1x1x7xf32>,
    return
  }
  func.func @transform_0(%arg0: i32) -> (i32, i32, i32, i32) {
    %c0_i32 = arith.constant 0 : i32
    %c0_i32_0 = arith.constant 0 : i32
    %c0_i32_1 = arith.constant 0 : i32
    %c0_i32_2 = arith.constant 0 : i32
    return %arg0, %c0_i32, %c0_i32_0, %c0_i32_1 : i32, i32, i32, i32
  }
  func.func @transform_1(%arg0: i32) -> (i32, i32) {
    %c0_i32 = arith.constant 0 : i32
    %c0_i32_0 = arith.constant 0 : i32
    %c0_i32_1 = arith.constant 0 : i32
    return %c0_i32, %c0_i32_0 : i32, i32
  }
  func.func @transform_2(%arg0: i32) -> (i32, i32) {
    %c0_i32 = arith.constant 0 : i32
    %c0_i32_0 = arith.constant 0 : i32
    %c0_i32_1 = arith.constant 0 : i32
    return %c0_i32, %c0_i32_0 : i32, i32
  }
  func.func @transform_3(%arg0: i32) -> (i32, i32) {
    %c0_i32 = arith.constant 0 : i32
    %c0_i32_0 = arith.constant 0 : i32
    %c0_i32_1 = arith.constant 0 : i32
    return %c0_i32, %c0_i32_0 : i32, i32
  }
  func.func @transform_4(%arg0: i32) -> (i32, i32) {
    %c0_i32 = arith.constant 0 : i32
    %c0_i32_0 = arith.constant 0 : i32
    %c0_i32_1 = arith.constant 0 : i32
    return %c0_i32, %c0_i32_0 : i32, i32
  }
  func.func @transform_5(%arg0: i32) -> (i32, i32) {
    %c0_i32 = arith.constant 0 : i32
    %c0_i32_0 = arith.constant 0 : i32
    %c0_i32_1 = arith.constant 0 : i32
    return %c0_i32, %c0_i32_0 : i32, i32
  }
  func.func @transform_6(%arg0: i32) -> (i32, i32) {
    %c0_i32 = arith.constant 0 : i32
    %c0_i32_0 = arith.constant 0 : i32
    %c0_i32_1 = arith.constant 0 : i32
    return %c0_i32, %c0_i32_0 : i32, i32
  }
  func.func @transform_7(%arg0: i32) -> (i32, i32) {
    %c0_i32 = arith.constant 0 : i32
    %c0_i32_0 = arith.constant 0 : i32
    %c0_i32_1 = arith.constant 0 : i32
    return %c0_i32, %c0_i32_0 : i32, i32
  }
  func.func @transform_8(%arg0: i32) -> (i32, i32) {
    %c0_i32 = arith.constant 0 : i32
    %c0_i32_0 = arith.constant 0 : i32
    %c0_i32_1 = arith.constant 0 : i32
    return %c0_i32, %c0_i32_0 : i32, i32
  }
  func.func @transform_9(%arg0: i32) -> (i32, i32) {
    %c0_i32 = arith.constant 0 : i32
    %c0_i32_0 = arith.constant 0 : i32
    %c0_i32_1 = arith.constant 0 : i32
    return %c0_i32, %c0_i32_0 : i32, i32
  }
  func.func @transform_10(%arg0: i32) -> (i32, i32) {
    %c0_i32 = arith.constant 0 : i32
    %c0_i32_0 = arith.constant 0 : i32
    %c0_i32_1 = arith.constant 0 : i32
    return %c0_i32, %c0_i32_0 : i32, i32
  }
  func.func @transform_11(%arg0: i32) -> (i32, i32) {
    %c0_i32 = arith.constant 0 : i32
    %c0_i32_0 = arith.constant 0 : i32
    %c0_i32_1 = arith.constant 0 : i32
    return %c0_i32, %c0_i32_0 : i32, i32
  }
  func.func @transform_12(%arg0: i32) -> (i32, i32) {
    %c0_i32 = arith.constant 0 : i32
    %c0_i32_0 = arith.constant 0 : i32
    %c0_i32_1 = arith.constant 0 : i32
    return %c0_i32, %c0_i32_0 : i32, i32
  }
  func.func @transform_13(%arg0: i32) -> (i32, i32) {
    %c0_i32 = arith.constant 0 : i32
    %c0_i32_0 = arith.constant 0 : i32
    %c0_i32_1 = arith.constant 0 : i32
    return %c0_i32, %c0_i32_0 : i32, i32
  }
  func.func @transform_14(%arg0: i32) -> (i32, i32) {
    %c0_i32 = arith.constant 0 : i32
    %c0_i32_0 = arith.constant 0 : i32
    %c0_i32_1 = arith.constant 0 : i32
    return %c0_i32, %c0_i32_0 : i32, i32
  }
  func.func @transform_15(%arg0: i32) -> (i32, i32, i32) {
    %c0_i32 = arith.constant 0 : i32
    %c0_i32_0 = arith.constant 0 : i32
    %c0_i32_1 = arith.constant 0 : i32
    return %arg0, %c0_i32, %c0_i32_0 : i32, i32, i32
  }
}

</mosaic_0001>

<bundles_post_ra>
// kernel: forward.1
= control target key start
LH: loop header
LB: loop body
LE: loop exit
PB: predicated region body
PF: predicated region fallthrough
CT: control target
= control target key end

     0   :  { %s11492_s0 = inlined_call_operand.vmem [shape: f32[2,16,16,1], index: 0, kind: input, shape index: {}]   ;;  %s11493_s1 = inlined_call_operand.vmem [shape: f32[9,4], index: 1, kind: input, shape index: {}]   ;;  %s11494_s2 = inlined_call_operand.vmem [shape: f32[1,4], index: 2, kind: input, shape index: {}]   ;;  %s11495_s3 = inlined_call_operand.vmem [shape: f32[1,4], index: 3, kind: input, shape index: {}]   ;;  %s11496_s4 = inlined_call_operand.vmem [shape: f32[1,4], index: 4, kind: input, shape index: {}]   ;;  %s11497_s5 = inlined_call_operand.vmem [shape: f32[36,8], index: 5, kind: input, shape index: {}]   ;;  %s11498_s6 = inlined_call_operand.vmem [shape: f32[1,8], index: 6, kind: input, shape index: {}]   ;;  %s11499_s7 = inlined_call_operand.vmem [shape: f32[1,8], index: 7, kind: input, shape index: {}]   ;;  %s11500_s8 = inlined_call_operand.vmem [shape: f32[1,8], index: 8, kind: input, shape index: {}]   ;;  %s11501_s9 = inlined_call_operand.vmem [shape: f32[128,16], index: 9, kind: input, shape index: {}]   ;;  %s11502_s10 = inlined_call_operand.vmem [shape: f32[1,16], index: 10, kind: input, shape index: {}]   ;;  %s11503_s11 = inlined_call_operand.vmem [shape: f32[1,16], index: 11, kind: input, shape index: {}]   ;;  %s11504_s12 = inlined_call_operand.vmem [shape: f32[1,16], index: 12, kind: input, shape index: {}]   ;;  %s11505_s13 = inlined_call_operand.vmem [shape: f32[16,7], index: 13, kind: input, shape index: {}]   ;;  %s11506_s14 = inlined_call_operand.vmem [shape: f32[1,7], index: 14, kind: input, shape index: {}]   ;;  %s11507_s15 = inlined_call_operand.hbm [shape: f32[2,1,7], index: 15, kind: output, shape index: {}]  }
   0x1   :  { %11563 = sst [smem:[#allocation198_spill]] %s11492_s0 }
   0x2   :  { %11564 = sst [smem:[#allocation199_spill]] %s11493_s1 }
   0x3   :  { %11565 = sst [smem:[#allocation200_spill]] %s11494_s2 }
   0x4   :  { %11566 = sst [smem:[#allocation201_spill]] %s11495_s3 }
   0x5   :  { %11567 = sst [smem:[#allocation202_spill]] %s11496_s4 }
   0x6   :  { %11568 = sst [smem:[#allocation203_spill]] %s11497_s5 }
   0x7   :  { %20 = vsyncpa [#allocation8], 0 }
   0x8   :  { %22 = vsyncpa [#allocation8 + $0x1], 0  ;;  %s7207_s18 = smov 0   ;;  %s7209_s19 = smov 0  }
   0x9   :  { %s7211_s20 = smov 0   ;;  %s7213_s21 = smov 0  }
   0xa LB: > { %s7228_s22 = sadd.s32 4294967295, %s7118_s21   ;;  %s6733_s23 = sadd.s32 4294967294, %s7118_s21   ;;  %s7118_s21 = sphi %s7213_s21, %s12410_s21   ;;  %s7114_s20 = sphi %s7211_s20, %s12409_s20   ;;  %s7110_s19 = sphi %s7209_s19, %s12408_s19   ;;  %s7106_s18 = sphi %s7207_s18, %s12407_s18  }
   0xb   : > { %s7232_s24 = sadd.s32 1, %s7118_s21   ;;  %s355_s25 = sadd.s32 1, %s7114_s20 }
   0xc   : > { %s352_s26 = ssub.s32 %s7118_s21, %s7232_s24  ;;  %p365_p0 = scmp.ne.s32.totalorder %s7114_s20, %s7110_s19 }
   0xd   : > { %p353_p1 = scmp.eq.s32.totalorder %s352_s26, 0  ;;  %p366_p2 = scmp.eq.s32.totalorder %s7228_s22, 1 }
   0xe   : > { %p371_p3 = scmp.ne.s32.totalorder %s7110_s19, %s7106_s18  ;;  %p372_p4 = scmp.eq.s32.totalorder %s6733_s23, 1 }
   0xf   : > { %s7243_s27 = scalar_select %p353_p1, %s7114_s20, %s355_s25  }
  0x10   : > { %p7245_p5 = por %p366_p2, %p365_p0  ;;  %p7249_p6 = por %p372_p4, %p371_p3 }
  0x11   : > { %p6736_p7 = scmp.ge.s32.totalorder %s7118_s21, 1  ;;  %p440_p8 = scmp.lt.s32.totalorder %s7118_s21, 3 }
  0x13   : > { %p441_p9 = pnand %p6736_p7, %p440_p8 }
  0x15   : > { %444 = sbr.rel (%p441_p9) target bundleno = 2364 (0x93c), region = 80 }
  0x1a   : > { %vm524_vm0 = vcmask 7168   ;;  %p487_p10 = scmp.lt.s32.totalorder %s7228_s22, 1  ;;  %vm527_vm1 = vcmask 1024   ;;  %v11508_v0 = vmov 0   ;;  %v11510_v1 = vmov 0.0   ;;  %s11571_s0 = sld [smem:[#allocation198_spill]] }
  0x1b   : > { %6978 = vset.pattern.permute.xlu0 %v11508_v0  ;;  %525 = vst.msk [vmem:[#allocation2] sm:$0xff] %vm524_vm0, %v11510_v1  ;;  %526 = vst.msk [vmem:[#allocation2 + $0x8] sm:$0xff] %vm524_vm0, %v11510_v1  ;;  %6979 = vset.pattern.permute.xlu1 %v11508_v0  ;;  %vm3002_vm2 = vcmask 31744   ;;  %s11821_s1 = sld [smem:[#allocation199_spill]]  ;;  %vm3153_vm3 = vcmask 25600   ;;  %vm7125_vm4 = vmmov 0  }
  0x1c   : > { %529 = vst.msk [vmem:[#allocation2 + $0x18] sm:$0xff] %vm524_vm0, %v11510_v1  ;;  %530 = vst.msk [vmem:[#allocation2 + $0x20] sm:$0xff] %vm524_vm0, %v11510_v1  ;;  %s488_s30 = scalar_select %p487_p10, %s7228_s22, 1  ;;  %6846 = vmatprep.subr.mxu0 %v11510_v1  ;;  %6851 = vmatprep.subr.mxu1 %v11510_v1  ;;  %vm5250_vm5 = vcmask 64512   ;;  %vm5324_vm6 = vcmask 60416   ;;  %vm6556_vm7 = vcmask 130048  }
  0x1d   : > { %532 = vst.msk [vmem:[#allocation2 + $0x30] sm:$0xff] %vm524_vm0, %v11510_v1  ;;  %533 = vst.msk [vmem:[#allocation2 + $0x38] sm:$0xff] %vm524_vm0, %v11510_v1  ;;  %s12057_s2 = sld [smem:[#allocation200_spill]]  ;;  %vm6630_vm8 = vcmask 49152  }
  0x1e   : > { %535 = vst.msk [vmem:[#allocation2 + $0x48] sm:$0xff] %vm524_vm0, %v11510_v1  ;;  %536 = vst.msk [vmem:[#allocation2 + $0x50] sm:$0xff] %vm524_vm0, %v11510_v1  ;;  %s6810_s16 = sshll.u32 %s488_s30, 8  ;;  %s12076_s3 = sld [smem:[#allocation201_spill]] }
  0x1f   : > { %538 = vst.msk [vmem:[#allocation2 + $0x60] sm:$0xff] %vm524_vm0, %v11510_v1  ;;  %539 = vst.msk [vmem:[#allocation2 + $0x68] sm:$0xff] %vm524_vm0, %v11510_v1  ;;  %s12079_s4 = sld [smem:[#allocation202_spill]] }
  0x20   : > { %541 = vst.msk [vmem:[#allocation2 + $0x78] sm:$0xff] %vm524_vm0, %v11510_v1  ;;  %542 = vst.msk [vmem:[#allocation2 + $0x80] sm:$0xff] %vm524_vm0, %v11510_v1  ;;  %s7374_s25 = scalar_lea.vmem %s11571_s0, %s6810_s16  ;;  %s12233_s5 = sld [smem:[#allocation203_spill]] }
  0x21   : > { %544 = vst.msk [vmem:[#allocation2 + $0x90] sm:$0xff] %vm524_vm0, %v11510_v1  ;;  %545 = vst.msk [vmem:[#allocation2 + $0x98] sm:$0xff] %vm524_vm0, %v11510_v1  ;;  %v492_v2 = vld [vmem:[%s7374_s25] sm:$0xff]  ;;  %v494_v3 = vld [vmem:[%s7374_s25 + $0x10] sm:$0xff]  ;;  %s485_s0 = sand.u32 1, %s7110_s19  }
  0x22   : > { %547 = vst.msk [vmem:[#allocation2 + $0xa8] sm:$0xff] %vm524_vm0, %v11510_v1  ;;  %548 = vst.msk [vmem:[#allocation2 + $0xb0] sm:$0xff] %vm524_vm0, %v11510_v1  ;;  %v493_v4 = vld [vmem:[%s7374_s25 + $0x8] sm:$0xff]  ;;  %v496_v5 = vld [vmem:[%s7374_s25 + $0x20] sm:$0xff]  ;;  %s486_s26 = scalar_lea.vmem [#allocation7], %s485_s0 }
  0x23   : > { %550 = vst.msk [vmem:[#allocation2 + $0xc0] sm:$0xff] %vm524_vm0, %v11510_v1  ;;  %551 = vst.msk [vmem:[#allocation2 + $0xc8] sm:$0xff] %vm524_vm0, %v11510_v1  ;;  %v495_v6 = vld [vmem:[%s7374_s25 + $0x18] sm:$0xff]  ;;  %v498_v7 = vld [vmem:[%s7374_s25 + $0x30] sm:$0xff]  ;;  %s6656_s30 = sshll.u32 %s486_s26, 4  ;;  %s6657_s30 = int_to_ptr.vmem [resolvable:$true] %s6656_s30 }
  0x24   : > { %553 = vst.msk [vmem:[#allocation2 + $0xd8] sm:$0xff] %vm524_vm0, %v11510_v1  ;;  %554 = vst.msk [vmem:[#allocation2 + $0xe0] sm:$0xff] %vm524_vm0, %v11510_v1  ;;  %v613_v8 = vld [vmem:[#allocation2] sm:$0xff]  ;;  %v614_v9 = vld [vmem:[#allocation2 + $0x8] sm:$0xff] }
  0x25   : > { %556 = vst.msk [vmem:[#allocation2 + $0xf0] sm:$0xff] %vm524_vm0, %v11510_v1  ;;  %557 = vst.msk [vmem:[#allocation2 + $0xf8] sm:$0xff] %vm524_vm0, %v11510_v1  ;;  %v497_v10 = vld [vmem:[%s7374_s25 + $0x28] sm:$0xff]  ;;  %648 = vperm.xlu0 %6978, %v613_v8   ;;  %v500_v11 = vld [vmem:[%s7374_s25 + $0x40] sm:$0xff] }
  0x26   : > { %559 = vst.msk [vmem:[#allocation2 + $0x108] sm:$0xff] %vm524_vm0, %v11510_v1  ;;  %560 = vst.msk [vmem:[#allocation2 + $0x110] sm:$0xff] %vm524_vm0, %v11510_v1  ;;  %v499_v12 = vld [vmem:[%s7374_s25 + $0x38] sm:$0xff]  ;;  %v502_v13 = vld [vmem:[%s7374_s25 + $0x50] sm:$0xff] }
  0x27   : > { %562 = vst.msk [vmem:[#allocation2 + $0x120] sm:$0xff] %vm524_vm0, %v11510_v1  ;;  %563 = vst.msk [vmem:[#allocation2 + $0x128] sm:$0xff] %vm524_vm0, %v11510_v1  ;;  %v501_v14 = vld [vmem:[%s7374_s25 + $0x48] sm:$0xff]  ;;  %v504_v15 = vld [vmem:[%s7374_s25 + $0x60] sm:$0xff] }
  0x28   : > { %565 = vst.msk [vmem:[#allocation2 + $0x138] sm:$0xff] %vm524_vm0, %v11510_v1  ;;  %566 = vst.msk [vmem:[#allocation2 + $0x140] sm:$0xff] %vm524_vm0, %v11510_v1  ;;  %v503_v16 = vld [vmem:[%s7374_s25 + $0x58] sm:$0xff]  ;;  %v506_v17 = vld [vmem:[%s7374_s25 + $0x70] sm:$0xff] }
  0x29   : > { %568 = vst.msk [vmem:[#allocation2 + $0x150] sm:$0xff] %vm524_vm0, %v11510_v1  ;;  %569 = vst.msk [vmem:[#allocation2 + $0x158] sm:$0xff] %vm524_vm0, %v11510_v1  ;;  %v505_v18 = vld [vmem:[%s7374_s25 + $0x68] sm:$0xff]  ;;  %v508_v19 = vld [vmem:[%s7374_s25 + $0x80] sm:$0xff]  ;;  %653 = vperm.xlu0 %6978, %v614_v9  }
  0x2a   : > { %571 = vst.msk [vmem:[#allocation2 + $0x168] sm:$0xff] %vm524_vm0, %v11510_v1  ;;  %572 = vst.msk [vmem:[#allocation2 + $0x170] sm:$0xff] %vm524_vm0, %v11510_v1  ;;  %v507_v20 = vld [vmem:[%s7374_s25 + $0x78] sm:$0xff]  ;;  %v510_v21 = vld [vmem:[%s7374_s25 + $0x90] sm:$0xff] }
  0x2b   : > { %574 = vst.msk [vmem:[#allocation2 + $0x180] sm:$0xff] %vm524_vm0, %v11510_v1  ;;  %575 = vst.msk [vmem:[#allocation2 + $0x188] sm:$0xff] %vm524_vm0, %v11510_v1  ;;  %v509_v22 = vld [vmem:[%s7374_s25 + $0x88] sm:$0xff]  ;;  %v512_v23 = vld [vmem:[%s7374_s25 + $0xa0] sm:$0xff] }
  0x2c   : > { %577 = vst.msk [vmem:[#allocation2 + $0x198] sm:$0xff] %vm524_vm0, %v11510_v1  ;;  %578 = vst.msk [vmem:[#allocation2 + $0x1a0] sm:$0xff] %vm524_vm0, %v11510_v1  ;;  %v511_v24 = vld [vmem:[%s7374_s25 + $0x98] sm:$0xff]  ;;  %v514_v25 = vld [vmem:[%s7374_s25 + $0xb0] sm:$0xff] }
  0x2d   : > { %531 = vst.msk [vmem:[#allocation2 + $0x28] sm:$0x3] %vm527_vm1, %v11510_v1  ;;  %528 = vst.msk [vmem:[#allocation2 + $0x10] sm:$0x3] %vm527_vm1, %v11510_v1  ;;  %v513_v29 = vld [vmem:[%s7374_s25 + $0xa8] sm:$0xff]  ;;  %v516_v30 = vld [vmem:[%s7374_s25 + $0xc0] sm:$0xff] }
  0x2e   : > { %534 = vst.msk [vmem:[#allocation2 + $0x40] sm:$0x3] %vm527_vm1, %v11510_v1  ;;  %537 = vst.msk [vmem:[#allocation2 + $0x58] sm:$0x3] %vm527_vm1, %v11510_v1  ;;  %v515_v34 = vld [vmem:[%s7374_s25 + $0xb8] sm:$0xff]  ;;  %v518_v35 = vld [vmem:[%s7374_s25 + $0xd0] sm:$0xff] }
  0x2f   : > { %540 = vst.msk [vmem:[#allocation2 + $0x70] sm:$0x3] %vm527_vm1, %v11510_v1  ;;  %543 = vst.msk [vmem:[#allocation2 + $0x88] sm:$0x3] %vm527_vm1, %v11510_v1  ;;  %v517_v36 = vld [vmem:[%s7374_s25 + $0xc8] sm:$0xff]  ;;  %v520_v37 = vld [vmem:[%s7374_s25 + $0xe0] sm:$0xff] }
  0x30   : > { %546 = vst.msk [vmem:[#allocation2 + $0xa0] sm:$0x3] %vm527_vm1, %v11510_v1  ;;  %549 = vst.msk [vmem:[#allocation2 + $0xb8] sm:$0x3] %vm527_vm1, %v11510_v1  ;;  %v519_v38 = vld [vmem:[%s7374_s25 + $0xd8] sm:$0xff]  ;;  %v521_v40 = vld [vmem:[%s7374_s25 + $0xe8] sm:$0xff] }
  0x31   : > { %552 = vst.msk [vmem:[#allocation2 + $0xd0] sm:$0x3] %vm527_vm1, %v11510_v1  ;;  %555 = vst.msk [vmem:[#allocation2 + $0xe8] sm:$0x3] %vm527_vm1, %v11510_v1  ;;  %v842_v63 = vld [vmem:[#allocation2 + $0x1] sm:$0xff] }
  0x32   : > { %558 = vst.msk [vmem:[#allocation2 + $0x100] sm:$0x3] %vm527_vm1, %v11510_v1  ;;  %561 = vst.msk [vmem:[#allocation2 + $0x118] sm:$0x3] %vm527_vm1, %v11510_v1 }
  0x33   : > { %564 = vst.msk [vmem:[#allocation2 + $0x130] sm:$0x3] %vm527_vm1, %v11510_v1  ;;  %567 = vst.msk [vmem:[#allocation2 + $0x148] sm:$0x3] %vm527_vm1, %v11510_v1 }
  0x34   : > { %570 = vst.msk [vmem:[#allocation2 + $0x160] sm:$0x3] %vm527_vm1, %v11510_v1  ;;  %573 = vst.msk [vmem:[#allocation2 + $0x178] sm:$0x3] %vm527_vm1, %v11510_v1 }
  0x35   : > { %576 = vst.msk [vmem:[#allocation2 + $0x190] sm:$0x3] %vm527_vm1, %v11510_v1  ;;  %579 = vst.msk [vmem:[#allocation2 + $0x1a8] sm:$0x3] %vm527_vm1, %v11510_v1 }
  0x36   : > { %581 = vst.msk [vmem:[#allocation2 + $0x19] sm:$0xff] %vm524_vm0, %v492_v2  ;;  %583 = vst.msk [vmem:[#allocation2 + $0x31] sm:$0xff] %vm524_vm0, %v494_v3 }
  0x37   : > { %582 = vst.msk [vmem:[#allocation2 + $0x21] sm:$0xff] %vm524_vm0, %v493_v4  ;;  %585 = vst.msk [vmem:[#allocation2 + $0x49] sm:$0xff] %vm524_vm0, %v496_v5  ;;  %v843_v4 = vld [vmem:[#allocation2 + $0x9] sm:$0xff] }
  0x38   : > { %584 = vst.msk [vmem:[#allocation2 + $0x39] sm:$0xff] %vm524_vm0, %v495_v6  ;;  %587 = vst.msk [vmem:[#allocation2 + $0x61] sm:$0xff] %vm524_vm0, %v498_v7 }
  0x39   : > { %586 = vst.msk [vmem:[#allocation2 + $0x51] sm:$0xff] %vm524_vm0, %v497_v10  ;;  %589 = vst.msk [vmem:[#allocation2 + $0x79] sm:$0xff] %vm524_vm0, %v500_v11 }
  0x3a   : > { %588 = vst.msk [vmem:[#allocation2 + $0x69] sm:$0xff] %vm524_vm0, %v499_v12  ;;  %591 = vst.msk [vmem:[#allocation2 + $0x91] sm:$0xff] %vm524_vm0, %v502_v13 }
  0x3b   : > { %590 = vst.msk [vmem:[#allocation2 + $0x81] sm:$0xff] %vm524_vm0, %v501_v14  ;;  %593 = vst.msk [vmem:[#allocation2 + $0xa9] sm:$0xff] %vm524_vm0, %v504_v15 }
  0x3c   : > { %592 = vst.msk [vmem:[#allocation2 + $0x99] sm:$0xff] %vm524_vm0, %v503_v16  ;;  %595 = vst.msk [vmem:[#allocation2 + $0xc1] sm:$0xff] %vm524_vm0, %v506_v17 }
  0x3d   : > { %594 = vst.msk [vmem:[#allocation2 + $0xb1] sm:$0xff] %vm524_vm0, %v505_v18  ;;  %597 = vst.msk [vmem:[#allocation2 + $0xd9] sm:$0xff] %vm524_vm0, %v508_v19  ;;  %v7417_v26 = vld [vmem:[#allocation2 + $0x18] sm:$0xff]  ;;  %v7419_v27 = vld [vmem:[#allocation2 + $0x30] sm:$0xff] }
  0x3e   : > { %596 = vst.msk [vmem:[#allocation2 + $0xc9] sm:$0xff] %vm524_vm0, %v507_v20  ;;  %599 = vst.msk [vmem:[#allocation2 + $0xf1] sm:$0xff] %vm524_vm0, %v510_v21  ;;  %658 = vperm.xlu1 %6979, %v7417_v26   ;;  %v7425_v28 = vld [vmem:[#allocation2 + $0x20] sm:$0xff]  ;;  %668 = vperm.xlu0 %6978, %v7419_v27   ;;  %v7432_v31 = vld [vmem:[#allocation2 + $0x48] sm:$0xff] }
  0x3f   : > { %598 = vst.msk [vmem:[#allocation2 + $0xe1] sm:$0xff] %vm524_vm0, %v509_v22  ;;  %601 = vst.msk [vmem:[#allocation2 + $0x109] sm:$0xff] %vm524_vm0, %v512_v23  ;;  %v7435_v32 = vld [vmem:[#allocation2 + $0x38] sm:$0xff]  ;;  %v7438_v33 = vld [vmem:[#allocation2 + $0x60] sm:$0xff] }
  0x40   : > { %600 = vst.msk [vmem:[#allocation2 + $0xf9] sm:$0xff] %vm524_vm0, %v511_v24  ;;  %603 = vst.msk [vmem:[#allocation2 + $0x121] sm:$0xff] %vm524_vm0, %v514_v25  ;;  %v7449_v39 = vld [vmem:[#allocation2 + $0x50] sm:$0xff]  ;;  %v7456_v41 = vld [vmem:[#allocation2 + $0x78] sm:$0xff] }
  0x41   : > { %602 = vst.msk [vmem:[#allocation2 + $0x111] sm:$0xff] %vm524_vm0, %v513_v29  ;;  %605 = vst.msk [vmem:[#allocation2 + $0x139] sm:$0xff] %vm524_vm0, %v516_v30  ;;  %v7459_v42 = vld [vmem:[#allocation2 + $0x68] sm:$0xff]  ;;  %v7462_v43 = vld [vmem:[#allocation2 + $0x90] sm:$0xff] }
  0x42   : > { %663 = vperm.xlu1 %6979, %v7425_v28   ;;  %678 = vperm.xlu0 %6978, %v7432_v31   ;;  %604 = vst.msk [vmem:[#allocation2 + $0x129] sm:$0xff] %vm524_vm0, %v515_v34  ;;  %607 = vst.msk [vmem:[#allocation2 + $0x151] sm:$0xff] %vm524_vm0, %v518_v35  ;;  %v7465_v44 = vld [vmem:[#allocation2 + $0x80] sm:$0xff]  ;;  %v7468_v45 = vld [vmem:[#allocation2 + $0xa8] sm:$0xff] }
  0x43   : > { %606 = vst.msk [vmem:[#allocation2 + $0x141] sm:$0xff] %vm524_vm0, %v517_v36  ;;  %609 = vst.msk [vmem:[#allocation2 + $0x169] sm:$0xff] %vm524_vm0, %v520_v37  ;;  %v7471_v46 = vld [vmem:[#allocation2 + $0x98] sm:$0xff]  ;;  %v7474_v47 = vld [vmem:[#allocation2 + $0xc0] sm:$0xff] }
  0x44   : > { %608 = vst.msk [vmem:[#allocation2 + $0x159] sm:$0xff] %vm524_vm0, %v519_v38  ;;  %610 = vst.msk [vmem:[#allocation2 + $0x171] sm:$0xff] %vm524_vm0, %v521_v40  ;;  %v7477_v48 = vld [vmem:[#allocation2 + $0xb0] sm:$0xff]  ;;  %v7480_v49 = vld [vmem:[#allocation2 + $0xd8] sm:$0xff] }
  0x45   : > { %v7483_v50 = vld [vmem:[#allocation2 + $0xc8] sm:$0xff]  ;;  %v7486_v51 = vld [vmem:[#allocation2 + $0xf0] sm:$0xff]  ;;  %v7525_v3 = vld [vmem:[#allocation2 + $0x19] sm:$0xff] }
  0x46   : > { %673 = vperm.xlu1 %6979, %v7435_v32   ;;  %688 = vperm.xlu0 %6978, %v7438_v33   ;;  %v7489_v52 = vld [vmem:[#allocation2 + $0xe0] sm:$0xff]  ;;  %v7492_v53 = vld [vmem:[#allocation2 + $0x108] sm:$0xff]  ;;  %v7529_v5 = vld [vmem:[#allocation2 + $0x31] sm:$0xff] }
  0x47   : > { %v7495_v54 = vld [vmem:[#allocation2 + $0xf8] sm:$0xff]  ;;  %v7498_v55 = vld [vmem:[#allocation2 + $0x120] sm:$0xff]  ;;  %v7534_v7 = vld [vmem:[#allocation2 + $0x49] sm:$0xff] }
  0x48   : > { %v7501_v56 = vld [vmem:[#allocation2 + $0x110] sm:$0xff]  ;;  %v7504_v57 = vld [vmem:[#allocation2 + $0x138] sm:$0xff]  ;;  %v7531_v6 = vld [vmem:[#allocation2 + $0x21] sm:$0xff] }
  0x49   : > { %v7507_v58 = vld [vmem:[#allocation2 + $0x128] sm:$0xff]  ;;  %v7510_v59 = vld [vmem:[#allocation2 + $0x150] sm:$0xff]  ;;  %v7537_v8 = vld [vmem:[#allocation2 + $0x39] sm:$0xff] }
  0x4a   : > { %683 = vperm.xlu1 %6979, %v7449_v39   ;;  %698 = vperm.xlu0 %6978, %v7456_v41   ;;  %v7513_v60 = vld [vmem:[#allocation2 + $0x140] sm:$0xff]  ;;  %v7516_v61 = vld [vmem:[#allocation2 + $0x168] sm:$0xff]  ;;  %v7543_v10 = vld [vmem:[#allocation2 + $0x51] sm:$0xff] }
  0x4b   : > { %v7519_v62 = vld [vmem:[#allocation2 + $0x158] sm:$0xff]  ;;  %v7523_v2 = vld [vmem:[#allocation2 + $0x170] sm:$0xff]  ;;  %v7540_v9 = vld [vmem:[#allocation2 + $0x61] sm:$0xff] }
  0x4c   : > { %v7546_v11 = vld [vmem:[#allocation2 + $0x79] sm:$0xff]  ;;  %v7549_v12 = vld [vmem:[#allocation2 + $0x69] sm:$0xff]  ;;  %v7552_v13 = vld [vmem:[#allocation2 + $0x91] sm:$0xff] }
  0x4d   : > { %v7555_v14 = vld [vmem:[#allocation2 + $0x81] sm:$0xff]  ;;  %v7558_v15 = vld [vmem:[#allocation2 + $0xa9] sm:$0xff]  ;;  %v7561_v16 = vld [vmem:[#allocation2 + $0x99] sm:$0xff] }
  0x4e   : > { %693 = vperm.xlu1 %6979, %v7459_v42   ;;  %708 = vperm.xlu0 %6978, %v7462_v43   ;;  %v7564_v17 = vld [vmem:[#allocation2 + $0xc1] sm:$0xff]  ;;  %v7567_v18 = vld [vmem:[#allocation2 + $0xb1] sm:$0xff]  ;;  %v7570_v19 = vld [vmem:[#allocation2 + $0xd9] sm:$0xff] }
  0x4f   : > { %v7573_v20 = vld [vmem:[#allocation2 + $0xc9] sm:$0xff]  ;;  %v7576_v21 = vld [vmem:[#allocation2 + $0xf1] sm:$0xff]  ;;  %v7579_v22 = vld [vmem:[#allocation2 + $0xe1] sm:$0xff] }
  0x50   : > { %v7582_v23 = vld [vmem:[#allocation2 + $0x109] sm:$0xff]  ;;  %v7585_v24 = vld [vmem:[#allocation2 + $0xf9] sm:$0xff]  ;;  %v7588_v25 = vld [vmem:[#allocation2 + $0x121] sm:$0xff] }
  0x51   : > { %v7591_v29 = vld [vmem:[#allocation2 + $0x111] sm:$0xff]  ;;  %v7594_v30 = vld [vmem:[#allocation2 + $0x139] sm:$0xff]  ;;  %v7597_v34 = vld [vmem:[#allocation2 + $0x129] sm:$0xff] }
  0x52   : > { %703 = vperm.xlu1 %6979, %v7465_v44   ;;  %718 = vperm.xlu0 %6978, %v7468_v45   ;;  %11572 = vst [vmem:[#allocation10_spill] sm:$0xff] %v7597_v34  ;;  %v522_v35 = vld [vmem:[%s7374_s25 + $0xf0] sm:$0xff]  ;;  %v7605_v37 = vld [vmem:[#allocation2 + $0x141] sm:$0xff]  ;;  %v523_v40 = vld [vmem:[%s7374_s25 + $0xf8] sm:$0xff]  ;;  %s6807_s25 = sshll.u32 %s7228_s22, 4 }
  0x53   : > { %611 = vst.msk [vmem:[#allocation2 + $0x181] sm:$0xff] %vm524_vm0, %v522_v35  ;;  %v7602_v36 = vld [vmem:[#allocation2 + $0x151] sm:$0xff]  ;;  %11574 = vst [vmem:[#allocation12_spill] sm:$0xff] %v7605_v37  ;;  %v7608_v38 = vld [vmem:[#allocation2 + $0x169] sm:$0xff]  ;;  %s6654_s23 = scalar_lea.hbm %s11507_s15, %s6807_s25 }
  0x54   : > { %11573 = vst [vmem:[#allocation11_spill] sm:$0xff] %v7602_v36  ;;  %11575 = vst [vmem:[#allocation13_spill] sm:$0xff] %v7608_v38  ;;  %v1103_v35 = vld [vmem:[#allocation2 + $0x2] sm:$0xff]  ;;  %v7621_v1 = vld [vmem:[#allocation2 + $0x171] sm:$0xff] }
  0x55   : > { %612 = vst.msk [vmem:[#allocation2 + $0x189] sm:$0xff] %vm524_vm0, %v523_v40 }
  0x56   : > { %713 = vperm.xlu1 %6979, %v7471_v46   ;;  %728 = vperm.xlu0 %6978, %v7474_v47  }
  0x5a   : > { %723 = vperm.xlu1 %6979, %v7477_v48   ;;  %738 = vperm.xlu0 %6978, %v7480_v49  }
  0x5e   : > { %733 = vperm.xlu1 %6979, %v7483_v50   ;;  %748 = vperm.xlu0 %6978, %v7486_v51  }
  0x62   : > { %743 = vperm.xlu1 %6979, %v7489_v52   ;;  %758 = vperm.xlu0 %6978, %v7492_v53  }
  0x66   : > { %753 = vperm.xlu1 %6979, %v7495_v54   ;;  %768 = vperm.xlu0 %6978, %v7498_v55  }
  0x6a   : > { %763 = vperm.xlu1 %6979, %v7501_v56   ;;  %778 = vperm.xlu0 %6978, %v7504_v57  }
  0x6e   : > { %773 = vperm.xlu1 %6979, %v7507_v58   ;;  %788 = vperm.xlu0 %6978, %v7510_v59  }
  0x72   : > { %783 = vperm.xlu1 %6979, %v7513_v60   ;;  %798 = vperm.xlu0 %6978, %v7516_v61  }
  0x76   : > { %793 = vperm.xlu1 %6979, %v7519_v62   ;;  %877 = vperm.xlu0 %6978, %v842_v63  }
  0x7a   : > { %803 = vperm.xlu1 %6979, %v7523_v2   ;;  %887 = vperm.xlu0 %6978, %v7525_v3  }
  0x7e   : > { %882 = vperm.xlu1 %6979, %v843_v4   ;;  %897 = vperm.xlu0 %6978, %v7529_v5   ;;  %v7615_v4 = vld [vmem:[#allocation2 + $0x159] sm:$0xff] }
  0x7f   : > { %11577 = vst [vmem:[#allocation15_spill] sm:$0xff] %v7615_v4 }
  0x82   : > { %892 = vperm.xlu1 %6979, %v7531_v6   ;;  %907 = vperm.xlu0 %6978, %v7534_v7  }
  0x86   : > { %902 = vperm.xlu1 %6979, %v7537_v8   ;;  %917 = vperm.xlu0 %6978, %v7540_v9  }
  0x8a   : > { %912 = vperm.xlu1 %6979, %v7543_v10   ;;  %927 = vperm.xlu0 %6978, %v7546_v11  }
  0x8e   : > { %922 = vperm.xlu1 %6979, %v7549_v12   ;;  %937 = vperm.xlu0 %6978, %v7552_v13  }
  0x92   : > { %932 = vperm.xlu1 %6979, %v7555_v14   ;;  %947 = vperm.xlu0 %6978, %v7558_v15  }
  0x96   : > { %942 = vperm.xlu1 %6979, %v7561_v16   ;;  %957 = vperm.xlu0 %6978, %v7564_v17  }
  0x9a   : > { %952 = vperm.xlu1 %6979, %v7567_v18   ;;  %967 = vperm.xlu0 %6978, %v7570_v19  }
  0x9e   : > { %962 = vperm.xlu1 %6979, %v7573_v20   ;;  %977 = vperm.xlu0 %6978, %v7576_v21  }
  0xa0   : > { %v7613_v63 = vpop.permute.xlu0 %648 }
  0xa1   : > { %11576 = vst [vmem:[#allocation14_spill] sm:$0xff] %v7613_v63  ;;  %v1104_v63 = vld [vmem:[#allocation2 + $0xa] sm:$0xff] }
  0xa2   : > { %972 = vperm.xlu1 %6979, %v7579_v22   ;;  %987 = vperm.xlu0 %6978, %v7582_v23  }
  0xa4   : > { %v7619_v0 = vpop.permute.xlu0 %653 }
  0xa5   : > { %11578 = vst [vmem:[#allocation16_spill] sm:$0xff] %v7619_v0 }
  0xa6   : > { %982 = vperm.xlu1 %6979, %v7585_v24   ;;  %997 = vperm.xlu0 %6978, %v7588_v25  }
  0xaa   : > { %992 = vperm.xlu1 %6979, %v7591_v29   ;;  %1007 = vperm.xlu0 %6978, %v7594_v30  }
  0xae   : > { %1002 = vperm.xlu1 %6979, %v7597_v34   ;;  %1017 = vperm.xlu0 %6978, %v7602_v36   ;;  %v7625_v34 = vld [vmem:[#allocation2 + $0x1a] sm:$0xff] }
  0xaf   : > { %11580 = vst [vmem:[#allocation18_spill] sm:$0xff] %v7625_v34 }
  0xb2   : > { %1012 = vperm.xlu1 %6979, %v7605_v37   ;;  %1027 = vperm.xlu0 %6978, %v7608_v38   ;;  %v7633_v37 = vld [vmem:[#allocation2 + $0x32] sm:$0xff] }
  0xb3   : > { %11583 = vst [vmem:[#allocation21_spill] sm:$0xff] %v7633_v37 }
  0xb6   : > { %1022 = vperm.xlu1 %6979, %v7615_v4   ;;  %1138 = vperm.xlu0 %6978, %v1103_v35   ;;  %v7637_v4 = vld [vmem:[#allocation2 + $0x22] sm:$0xff] }
  0xb7   : > { %11585 = vst [vmem:[#allocation23_spill] sm:$0xff] %v7637_v4 }
  0xb9   : > { %v7623_v36 = vpop.permute.xlu1 %658  ;;  %v7628_v40 = vpop.permute.xlu0 %668 }
  0xba   : > { %11579 = vst [vmem:[#allocation17_spill] sm:$0xff] %v7623_v36  ;;  %1032 = vperm.xlu1 %6979, %v7621_v1   ;;  %11581 = vst [vmem:[#allocation19_spill] sm:$0xff] %v7628_v40  ;;  %1148 = vperm.xlu0 %6978, %v7625_v34   ;;  %v7642_v36 = vld [vmem:[#allocation2 + $0x4a] sm:$0xff]  ;;  %v7647_v34 = vld [vmem:[#allocation2 + $0x3a] sm:$0xff] }
  0xbb   : > { %11587 = vst [vmem:[#allocation25_spill] sm:$0xff] %v7642_v36  ;;  %11589 = vst [vmem:[#allocation27_spill] sm:$0xff] %v7647_v34 }
  0xbd   : > { %v7631_v38 = vpop.permute.xlu1 %663  ;;  %v7635_v0 = vpop.permute.xlu0 %678 }
  0xbe   : > { %11582 = vst [vmem:[#allocation20_spill] sm:$0xff] %v7631_v38  ;;  %1143 = vperm.xlu1 %6979, %v1104_v63   ;;  %11584 = vst [vmem:[#allocation22_spill] sm:$0xff] %v7635_v0  ;;  %1158 = vperm.xlu0 %6978, %v7633_v37   ;;  %v7652_v63 = vld [vmem:[#allocation2 + $0x62] sm:$0xff]  ;;  %v7657_v37 = vld [vmem:[#allocation2 + $0x52] sm:$0xff] }
  0xbf   : > { %11591 = vst [vmem:[#allocation29_spill] sm:$0xff] %v7652_v63  ;;  %11593 = vst [vmem:[#allocation31_spill] sm:$0xff] %v7657_v37 }
  0xc1   : > { %v7640_v35 = vpop.permute.xlu1 %673  ;;  %v7645_v40 = vpop.permute.xlu0 %688 }
  0xc2   : > { %11586 = vst [vmem:[#allocation24_spill] sm:$0xff] %v7640_v35  ;;  %1153 = vperm.xlu1 %6979, %v7637_v4   ;;  %11588 = vst [vmem:[#allocation26_spill] sm:$0xff] %v7645_v40  ;;  %1168 = vperm.xlu0 %6978, %v7642_v36   ;;  %v7662_v4 = vld [vmem:[#allocation2 + $0x7a] sm:$0xff]  ;;  %v7667_v36 = vld [vmem:[#allocation2 + $0x6a] sm:$0xff] }
  0xc3   : > { %11595 = vst [vmem:[#allocation33_spill] sm:$0xff] %v7662_v4  ;;  %11597 = vst [vmem:[#allocation35_spill] sm:$0xff] %v7667_v36 }
  0xc5   : > { %v7650_v38 = vpop.permute.xlu1 %683  ;;  %v7655_v0 = vpop.permute.xlu0 %698 }
  0xc6   : > { %11590 = vst [vmem:[#allocation28_spill] sm:$0xff] %v7650_v38  ;;  %1163 = vperm.xlu1 %6979, %v7647_v34   ;;  %11592 = vst [vmem:[#allocation30_spill] sm:$0xff] %v7655_v0  ;;  %1178 = vperm.xlu0 %6978, %v7652_v63   ;;  %v7672_v34 = vld [vmem:[#allocation2 + $0x92] sm:$0xff]  ;;  %v7677_v63 = vld [vmem:[#allocation2 + $0x82] sm:$0xff] }
  0xc7   : > { %11599 = vst [vmem:[#allocation37_spill] sm:$0xff] %v7672_v34  ;;  %11601 = vst [vmem:[#allocation39_spill] sm:$0xff] %v7677_v63 }
  0xc9   : > { %v7660_v35 = vpop.permute.xlu1 %693  ;;  %v7665_v40 = vpop.permute.xlu0 %708 }
  0xca   : > { %11594 = vst [vmem:[#allocation32_spill] sm:$0xff] %v7660_v35  ;;  %1173 = vperm.xlu1 %6979, %v7657_v37   ;;  %11596 = vst [vmem:[#allocation34_spill] sm:$0xff] %v7665_v40  ;;  %1188 = vperm.xlu0 %6978, %v7662_v4   ;;  %v7682_v37 = vld [vmem:[#allocation2 + $0xaa] sm:$0xff]  ;;  %v7687_v4 = vld [vmem:[#allocation2 + $0x9a] sm:$0xff] }
  0xcb   : > { %11603 = vst [vmem:[#allocation41_spill] sm:$0xff] %v7682_v37  ;;  %11605 = vst [vmem:[#allocation43_spill] sm:$0xff] %v7687_v4 }
  0xcd   : > { %v7670_v38 = vpop.permute.xlu1 %703  ;;  %v7675_v0 = vpop.permute.xlu0 %718 }
  0xce   : > { %11598 = vst [vmem:[#allocation36_spill] sm:$0xff] %v7670_v38  ;;  %1183 = vperm.xlu1 %6979, %v7667_v36   ;;  %11600 = vst [vmem:[#allocation38_spill] sm:$0xff] %v7675_v0  ;;  %1198 = vperm.xlu0 %6978, %v7672_v34   ;;  %v7692_v36 = vld [vmem:[#allocation2 + $0xc2] sm:$0xff]  ;;  %v7697_v34 = vld [vmem:[#allocation2 + $0xb2] sm:$0xff] }
  0xcf   : > { %11607 = vst [vmem:[#allocation45_spill] sm:$0xff] %v7692_v36  ;;  %11609 = vst [vmem:[#allocation47_spill] sm:$0xff] %v7697_v34 }
  0xd1   : > { %v7680_v35 = vpop.permute.xlu1 %713  ;;  %v7685_v40 = vpop.permute.xlu0 %728 }
  0xd2   : > { %11602 = vst [vmem:[#allocation40_spill] sm:$0xff] %v7680_v35  ;;  %1193 = vperm.xlu1 %6979, %v7677_v63   ;;  %11604 = vst [vmem:[#allocation42_spill] sm:$0xff] %v7685_v40  ;;  %1208 = vperm.xlu0 %6978, %v7682_v37   ;;  %v7702_v63 = vld [vmem:[#allocation2 + $0xda] sm:$0xff]  ;;  %v7707_v37 = vld [vmem:[#allocation2 + $0xca] sm:$0xff] }
  0xd3   : > { %11611 = vst [vmem:[#allocation49_spill] sm:$0xff] %v7702_v63  ;;  %11613 = vst [vmem:[#allocation51_spill] sm:$0xff] %v7707_v37 }
  0xd5   : > { %v7690_v38 = vpop.permute.xlu1 %723  ;;  %v7695_v0 = vpop.permute.xlu0 %738 }
  0xd6   : > { %11606 = vst [vmem:[#allocation44_spill] sm:$0xff] %v7690_v38  ;;  %1203 = vperm.xlu1 %6979, %v7687_v4   ;;  %11608 = vst [vmem:[#allocation46_spill] sm:$0xff] %v7695_v0  ;;  %1218 = vperm.xlu0 %6978, %v7692_v36   ;;  %v7712_v4 = vld [vmem:[#allocation2 + $0xf2] sm:$0xff]  ;;  %v7717_v36 = vld [vmem:[#allocation2 + $0xe2] sm:$0xff] }
  0xd7   : > { %11615 = vst [vmem:[#allocation53_spill] sm:$0xff] %v7712_v4  ;;  %11617 = vst [vmem:[#allocation55_spill] sm:$0xff] %v7717_v36 }
  0xd9   : > { %v7700_v35 = vpop.permute.xlu1 %733  ;;  %v7705_v40 = vpop.permute.xlu0 %748 }
  0xda   : > { %11610 = vst [vmem:[#allocation48_spill] sm:$0xff] %v7700_v35  ;;  %1213 = vperm.xlu1 %6979, %v7697_v34   ;;  %11612 = vst [vmem:[#allocation50_spill] sm:$0xff] %v7705_v40  ;;  %1228 = vperm.xlu0 %6978, %v7702_v63   ;;  %v7722_v34 = vld [vmem:[#allocation2 + $0x10a] sm:$0xff]  ;;  %v7727_v63 = vld [vmem:[#allocation2 + $0xfa] sm:$0xff] }
  0xdb   : > { %11619 = vst [vmem:[#allocation57_spill] sm:$0xff] %v7722_v34  ;;  %11621 = vst [vmem:[#allocation59_spill] sm:$0xff] %v7727_v63 }
  0xdd   : > { %v7710_v38 = vpop.permute.xlu1 %743  ;;  %v7715_v0 = vpop.permute.xlu0 %758 }
  0xde   : > { %11614 = vst [vmem:[#allocation52_spill] sm:$0xff] %v7710_v38  ;;  %1223 = vperm.xlu1 %6979, %v7707_v37   ;;  %11616 = vst [vmem:[#allocation54_spill] sm:$0xff] %v7715_v0  ;;  %1238 = vperm.xlu0 %6978, %v7712_v4   ;;  %v7732_v37 = vld [vmem:[#allocation2 + $0x122] sm:$0xff]  ;;  %v7737_v4 = vld [vmem:[#allocation2 + $0x112] sm:$0xff] }
  0xdf   : > { %11623 = vst [vmem:[#allocation61_spill] sm:$0xff] %v7732_v37  ;;  %11625 = vst [vmem:[#allocation63_spill] sm:$0xff] %v7737_v4 }
  0xe1   : > { %v7720_v35 = vpop.permute.xlu1 %753  ;;  %v7725_v40 = vpop.permute.xlu0 %768 }
  0xe2   : > { %11618 = vst [vmem:[#allocation56_spill] sm:$0xff] %v7720_v35  ;;  %1233 = vperm.xlu1 %6979, %v7717_v36   ;;  %11620 = vst [vmem:[#allocation58_spill] sm:$0xff] %v7725_v40  ;;  %1248 = vperm.xlu0 %6978, %v7722_v34   ;;  %v7742_v36 = vld [vmem:[#allocation2 + $0x13a] sm:$0xff]  ;;  %v7747_v34 = vld [vmem:[#allocation2 + $0x12a] sm:$0xff] }
  0xe3   : > { %11627 = vst [vmem:[#allocation65_spill] sm:$0xff] %v7742_v36  ;;  %11629 = vst [vmem:[#allocation67_spill] sm:$0xff] %v7747_v34 }
  0xe5   : > { %v7730_v38 = vpop.permute.xlu1 %763  ;;  %v7735_v0 = vpop.permute.xlu0 %778 }
  0xe6   : > { %11622 = vst [vmem:[#allocation60_spill] sm:$0xff] %v7730_v38  ;;  %1243 = vperm.xlu1 %6979, %v7727_v63   ;;  %11624 = vst [vmem:[#allocation62_spill] sm:$0xff] %v7735_v0  ;;  %1258 = vperm.xlu0 %6978, %v7732_v37   ;;  %v7752_v63 = vld [vmem:[#allocation2 + $0x152] sm:$0xff]  ;;  %v7757_v37 = vld [vmem:[#allocation2 + $0x142] sm:$0xff] }
  0xe7   : > { %11632 = vst [vmem:[#allocation70_spill] sm:$0xff] %v7757_v37 }
  0xe9   : > { %v7740_v35 = vpop.permute.xlu1 %773  ;;  %v7745_v40 = vpop.permute.xlu0 %788 }
  0xea   : > { %11626 = vst [vmem:[#allocation64_spill] sm:$0xff] %v7740_v35  ;;  %1253 = vperm.xlu1 %6979, %v7737_v4   ;;  %11628 = vst [vmem:[#allocation66_spill] sm:$0xff] %v7745_v40  ;;  %1268 = vperm.xlu0 %6978, %v7742_v36   ;;  %v7762_v4 = vld [vmem:[#allocation2 + $0x16a] sm:$0xff]  ;;  %v7767_v36 = vld [vmem:[#allocation2 + $0x15a] sm:$0xff] }
  0xed   : > { %v7750_v38 = vpop.permute.xlu1 %783  ;;  %v7755_v0 = vpop.permute.xlu0 %798 }
  0xee   : > { %11630 = vst [vmem:[#allocation68_spill] sm:$0xff] %v7750_v38  ;;  %1263 = vperm.xlu1 %6979, %v7747_v34   ;;  %11631 = vst [vmem:[#allocation69_spill] sm:$0xff] %v7755_v0  ;;  %1278 = vperm.xlu0 %6978, %v7752_v63   ;;  %v7775_v34 = vld [vmem:[#allocation2 + $0x172] sm:$0xff] }
  0xf1   : > { %v7760_v35 = vpop.permute.xlu1 %793  ;;  %v7765_v40 = vpop.permute.xlu0 %877 }
  0xf2   : > { %11633 = vst [vmem:[#allocation71_spill] sm:$0xff] %v7760_v35  ;;  %1273 = vperm.xlu1 %6979, %v7757_v37   ;;  %11634 = vst [vmem:[#allocation72_spill] sm:$0xff] %v7765_v40  ;;  %1288 = vperm.xlu0 %6978, %v7762_v4  }
  0xf5   : > { %v7770_v38 = vpop.permute.xlu1 %803  ;;  %v7773_v0 = vpop.permute.xlu0 %887 }
  0xf6   : > { %11635 = vst [vmem:[#allocation73_spill] sm:$0xff] %v7770_v38  ;;  %1283 = vperm.xlu1 %6979, %v7767_v36   ;;  %11636 = vst [vmem:[#allocation74_spill] sm:$0xff] %v7773_v0  ;;  %1399 = vperm.xlu0 %6978, %v7417_v26  }
  0xf9   : > { %v7778_v35 = vpop.permute.xlu1 %882  ;;  %v7781_v37 = vpop.permute.xlu0 %897 }
  0xfa   : > { %11637 = vst [vmem:[#allocation75_spill] sm:$0xff] %v7778_v35  ;;  %1293 = vperm.xlu1 %6979, %v7775_v34   ;;  %1409 = vperm.xlu0 %6978, %v7419_v27  }
  0xfd   : > { %v7784_v40 = vpop.permute.xlu1 %892  ;;  %v7787_v38 = vpop.permute.xlu0 %907 }
  0xfe   : > { %1404 = vperm.xlu1 %6979, %v7425_v28   ;;  %1419 = vperm.xlu0 %6978, %v7432_v31  }
 0x101   : > { %v7790_v0 = vpop.permute.xlu1 %902  ;;  %v7793_v26 = vpop.permute.xlu0 %917 }
 0x102   : > { %1414 = vperm.xlu1 %6979, %v7435_v32   ;;  %1429 = vperm.xlu0 %6978, %v7438_v33  }
 0x105   : > { %v7796_v35 = vpop.permute.xlu1 %912  ;;  %v7799_v27 = vpop.permute.xlu0 %927 }
 0x106   : > { %1424 = vperm.xlu1 %6979, %v7449_v39   ;;  %1439 = vperm.xlu0 %6978, %v7456_v41  }
 0x109   : > { %v7802_v28 = vpop.permute.xlu1 %922  ;;  %v7805_v31 = vpop.permute.xlu0 %937 }
 0x10a   : > { %1434 = vperm.xlu1 %6979, %v7459_v42   ;;  %1449 = vperm.xlu0 %6978, %v7462_v43  }
 0x10d   : > { %v7808_v32 = vpop.permute.xlu1 %932  ;;  %v7811_v33 = vpop.permute.xlu0 %947 }
 0x10e   : > { %1444 = vperm.xlu1 %6979, %v7465_v44   ;;  %1459 = vperm.xlu0 %6978, %v7468_v45  }
 0x111   : > { %v7814_v39 = vpop.permute.xlu1 %942  ;;  %v7817_v41 = vpop.permute.xlu0 %957 }
 0x112   : > { %1454 = vperm.xlu1 %6979, %v7471_v46   ;;  %1469 = vperm.xlu0 %6978, %v7474_v47  }
 0x115   : > { %v7820_v42 = vpop.permute.xlu1 %952  ;;  %v7823_v43 = vpop.permute.xlu0 %967 }
 0x116   : > { %1464 = vperm.xlu1 %6979, %v7477_v48   ;;  %1479 = vperm.xlu0 %6978, %v7480_v49  }
 0x119   : > { %v7826_v44 = vpop.permute.xlu1 %962  ;;  %v7829_v45 = vpop.permute.xlu0 %977 }
 0x11a   : > { %1474 = vperm.xlu1 %6979, %v7483_v50   ;;  %1489 = vperm.xlu0 %6978, %v7486_v51  }
 0x11d   : > { %v7832_v46 = vpop.permute.xlu1 %972  ;;  %v7835_v47 = vpop.permute.xlu0 %987 }
 0x11e   : > { %1484 = vperm.xlu1 %6979, %v7489_v52   ;;  %1499 = vperm.xlu0 %6978, %v7492_v53  }
 0x121   : > { %v7838_v48 = vpop.permute.xlu1 %982  ;;  %v7841_v49 = vpop.permute.xlu0 %997 }
 0x122   : > { %1494 = vperm.xlu1 %6979, %v7495_v54   ;;  %1509 = vperm.xlu0 %6978, %v7498_v55  }
 0x125   : > { %v7844_v50 = vpop.permute.xlu1 %992  ;;  %v7847_v51 = vpop.permute.xlu0 %1007 }
 0x126   : > { %1504 = vperm.xlu1 %6979, %v7501_v56   ;;  %11638 = vst [vmem:[#allocation76_spill] sm:$0xff] %v7847_v51  ;;  %1519 = vperm.xlu0 %6978, %v7504_v57   ;;  %v7864_v51 = vld [vmem:[#allocation2 + $0x180] sm:$0xff] }
 0x129   : > { %v7850_v52 = vpop.permute.xlu1 %1002  ;;  %v7853_v53 = vpop.permute.xlu0 %1017 }
 0x12a   : > { %1514 = vperm.xlu1 %6979, %v7507_v58   ;;  %1529 = vperm.xlu0 %6978, %v7510_v59  }
 0x12d   : > { %v7856_v54 = vpop.permute.xlu1 %1012  ;;  %v7859_v55 = vpop.permute.xlu0 %1027 }
 0x12e   : > { %11639 = vst [vmem:[#allocation77_spill] sm:$0xff] %v7856_v54  ;;  %1524 = vperm.xlu1 %6979, %v7513_v60   ;;  %11640 = vst [vmem:[#allocation78_spill] sm:$0xff] %v7859_v55  ;;  %1539 = vperm.xlu0 %6978, %v7516_v61   ;;  %v7875_v60 = vld [vmem:[#allocation2 + $0x188] sm:$0xff] }
 0x12f   : > { %v11863_v55 = vld [vmem:[#allocation66_spill] sm:$0xff] }
 0x131   : > { %v7862_v56 = vpop.permute.xlu1 %1022  ;;  %v7867_v57 = vpop.permute.xlu0 %1138 }
 0x132   : > { %11641 = vst [vmem:[#allocation79_spill] sm:$0xff] %v7862_v56  ;;  %1534 = vperm.xlu1 %6979, %v7519_v62   ;;  %11642 = vst [vmem:[#allocation80_spill] sm:$0xff] %v7867_v57  ;;  %1549 = vperm.xlu0 %6978, %v7864_v51   ;;  %v11859_v57 = vld [vmem:[#allocation64_spill] sm:$0xff] }
 0x135   : > { %v7870_v58 = vpop.permute.xlu1 %1032  ;;  %v7873_v59 = vpop.permute.xlu0 %1148 }
 0x136   : > { %11643 = vst [vmem:[#allocation81_spill] sm:$0xff] %v7870_v58  ;;  %1544 = vperm.xlu1 %6979, %v7523_v2   ;;  %11644 = vst [vmem:[#allocation82_spill] sm:$0xff] %v7873_v59  ;;  %1660 = vperm.xlu0 %6978, %v7525_v3  }
 0x139   : > { %v7878_v61 = vpop.permute.xlu1 %1143  ;;  %v7881_v56 = vpop.permute.xlu0 %1158 }
 0x13a   : > { %11645 = vst [vmem:[#allocation83_spill] sm:$0xff] %v7878_v61  ;;  %1554 = vperm.xlu1 %6979, %v7875_v60   ;;  %11646 = vst [vmem:[#allocation84_spill] sm:$0xff] %v7881_v56  ;;  %1670 = vperm.xlu0 %6978, %v7529_v5  }
 0x13d   : > { %v7884_v62 = vpop.permute.xlu1 %1153  ;;  %v7887_v58 = vpop.permute.xlu0 %1168 }
 0x13e   : > { %11647 = vst [vmem:[#allocation85_spill] sm:$0xff] %v7884_v62  ;;  %1665 = vperm.xlu1 %6979, %v7531_v6   ;;  %11648 = vst [vmem:[#allocation86_spill] sm:$0xff] %v7887_v58  ;;  %1680 = vperm.xlu0 %6978, %v7534_v7   ;;  %v11850_v58 = vld [vmem:[#allocation56_spill] sm:$0xff] }
 0x141   : > { %v7890_v2 = vpop.permute.xlu1 %1163  ;;  %v7893_v3 = vpop.permute.xlu0 %1178 }
 0x142   : > { %11649 = vst [vmem:[#allocation87_spill] sm:$0xff] %v7890_v2  ;;  %1675 = vperm.xlu1 %6979, %v7537_v8   ;;  %11650 = vst [vmem:[#allocation88_spill] sm:$0xff] %v7893_v3  ;;  %1690 = vperm.xlu0 %6978, %v7540_v9   ;;  %v11847_v3 = vld [vmem:[#allocation54_spill] sm:$0xff]  ;;  %v11848_v2 = vld [vmem:[#allocation72_spill] sm:$0xff] }
 0x145   : > { %v7896_v61 = vpop.permute.xlu1 %1173  ;;  %v7899_v5 = vpop.permute.xlu0 %1188 }
 0x146   : > { %11651 = vst [vmem:[#allocation89_spill] sm:$0xff] %v7896_v61  ;;  %1685 = vperm.xlu1 %6979, %v7543_v10   ;;  %11652 = vst [vmem:[#allocation90_spill] sm:$0xff] %v7899_v5  ;;  %1700 = vperm.xlu0 %6978, %v7546_v11   ;;  %v11846_v61 = vld [vmem:[#allocation52_spill] sm:$0xff] }
 0x149   : > { %v7902_v6 = vpop.permute.xlu1 %1183  ;;  %v7905_v7 = vpop.permute.xlu0 %1198 }
 0x14a   : > { %11653 = vst [vmem:[#allocation91_spill] sm:$0xff] %v7902_v6  ;;  %1695 = vperm.xlu1 %6979, %v7549_v12   ;;  %11654 = vst [vmem:[#allocation92_spill] sm:$0xff] %v7905_v7  ;;  %1710 = vperm.xlu0 %6978, %v7552_v13  }
 0x14d   : > { %v7908_v8 = vpop.permute.xlu1 %1193  ;;  %v7911_v9 = vpop.permute.xlu0 %1208 }
 0x14e   : > { %11655 = vst [vmem:[#allocation93_spill] sm:$0xff] %v7908_v8  ;;  %1705 = vperm.xlu1 %6979, %v7555_v14   ;;  %11656 = vst [vmem:[#allocation94_spill] sm:$0xff] %v7911_v9  ;;  %1720 = vperm.xlu0 %6978, %v7558_v15   ;;  %v2687_v9 = vld [vmem:[#allocation2 + $0xfa] sm:$0xff] }
 0x151   : > { %v7914_v10 = vpop.permute.xlu1 %1203  ;;  %v7917_v11 = vpop.permute.xlu0 %1218 }
 0x152   : > { %11657 = vst [vmem:[#allocation95_spill] sm:$0xff] %v7914_v10  ;;  %1715 = vperm.xlu1 %6979, %v7561_v16   ;;  %11658 = vst [vmem:[#allocation96_spill] sm:$0xff] %v7917_v11  ;;  %1730 = vperm.xlu0 %6978, %v7564_v17  }
 0x155   : > { %v7920_v12 = vpop.permute.xlu1 %1213  ;;  %v7923_v13 = vpop.permute.xlu0 %1228 }
 0x156   : > { %11659 = vst [vmem:[#allocation97_spill] sm:$0xff] %v7920_v12  ;;  %1725 = vperm.xlu1 %6979, %v7567_v18   ;;  %11660 = vst [vmem:[#allocation98_spill] sm:$0xff] %v7923_v13  ;;  %1740 = vperm.xlu0 %6978, %v7570_v19  }
 0x159   : > { %v7926_v14 = vpop.permute.xlu1 %1223  ;;  %v7929_v15 = vpop.permute.xlu0 %1238 }
 0x15a   : > { %11661 = vst [vmem:[#allocation99_spill] sm:$0xff] %v7926_v14  ;;  %1735 = vperm.xlu1 %6979, %v7573_v20   ;;  %11662 = vst [vmem:[#allocation100_spill] sm:$0xff] %v7929_v15  ;;  %1750 = vperm.xlu0 %6978, %v7576_v21   ;;  %v11832_v15 = vld [vmem:[#allocation26_spill] sm:$0xff] }
 0x15b   : > { %v11834_v14 = vld [vmem:[#allocation30_spill] sm:$0xff] }
 0x15d   : > { %v7932_v16 = vpop.permute.xlu1 %1233  ;;  %v7935_v17 = vpop.permute.xlu0 %1248 }
 0x15e   : > { %11663 = vst [vmem:[#allocation101_spill] sm:$0xff] %v7932_v16  ;;  %1745 = vperm.xlu1 %6979, %v7579_v22   ;;  %11664 = vst [vmem:[#allocation102_spill] sm:$0xff] %v7935_v17  ;;  %1760 = vperm.xlu0 %6978, %v7582_v23   ;;  %v11670_v17 = vld [vmem:[#allocation10_spill] sm:$0xff] }
 0x161   : > { %v7938_v18 = vpop.permute.xlu1 %1243  ;;  %v7941_v19 = vpop.permute.xlu0 %1258 }
 0x162   : > { %11665 = vst [vmem:[#allocation103_spill] sm:$0xff] %v7938_v18  ;;  %1755 = vperm.xlu1 %6979, %v7585_v24   ;;  %11666 = vst [vmem:[#allocation104_spill] sm:$0xff] %v7941_v19  ;;  %1770 = vperm.xlu0 %6978, %v7588_v25   ;;  %v11672_v18 = vld [vmem:[#allocation11_spill] sm:$0xff]  ;;  %v11674_v19 = vld [vmem:[#allocation12_spill] sm:$0xff] }
 0x165   : > { %v7944_v20 = vpop.permute.xlu1 %1253  ;;  %v7947_v21 = vpop.permute.xlu0 %1268 }
 0x166   : > { %11667 = vst [vmem:[#allocation105_spill] sm:$0xff] %v7944_v20  ;;  %1765 = vperm.xlu1 %6979, %v7591_v29   ;;  %11668 = vst [vmem:[#allocation106_spill] sm:$0xff] %v7947_v21  ;;  %1780 = vperm.xlu0 %6978, %v7594_v30   ;;  %v11676_v20 = vld [vmem:[#allocation13_spill] sm:$0xff]  ;;  %v11678_v30 = vld [vmem:[#allocation15_spill] sm:$0xff] }
 0x167   : > { %v7964_v21 = vld [vmem:[#allocation2 + $0x181] sm:$0xff] }
 0x169   : > { %v7950_v22 = vpop.permute.xlu1 %1263  ;;  %v7953_v23 = vpop.permute.xlu0 %1278 }
 0x16a   : > { %11669 = vst [vmem:[#allocation107_spill] sm:$0xff] %v7950_v22  ;;  %1775 = vperm.xlu1 %6979, %v11670_v17   ;;  %11671 = vst [vmem:[#allocation10_spill] sm:$0xff] %v7953_v23  ;;  %1790 = vperm.xlu0 %6978, %v11672_v18   ;;  %v11691_v23 = vld [vmem:[#allocation27_spill] sm:$0xff] }
 0x16d   : > { %v7956_v24 = vpop.permute.xlu1 %1273  ;;  %v7959_v25 = vpop.permute.xlu0 %1288 }
 0x16e   : > { %11673 = vst [vmem:[#allocation11_spill] sm:$0xff] %v7956_v24  ;;  %1785 = vperm.xlu1 %6979, %v11674_v19   ;;  %11675 = vst [vmem:[#allocation12_spill] sm:$0xff] %v7959_v25  ;;  %1800 = vperm.xlu0 %6978, %v11676_v20   ;;  %v7975_v19 = vld [vmem:[#allocation2 + $0x189] sm:$0xff] }
 0x16f   : > { %v11682_v25 = vld [vmem:[#allocation18_spill] sm:$0xff]  ;;  %v11687_v24 = vld [vmem:[#allocation23_spill] sm:$0xff] }
 0x171   : > { %v7962_v29 = vpop.permute.xlu1 %1283  ;;  %v7967_v22 = vpop.permute.xlu0 %1399 }
 0x172   : > { %11677 = vst [vmem:[#allocation13_spill] sm:$0xff] %v7962_v29  ;;  %1795 = vperm.xlu1 %6979, %v11678_v30   ;;  %11679 = vst [vmem:[#allocation15_spill] sm:$0xff] %v7967_v22  ;;  %1810 = vperm.xlu0 %6978, %v7964_v21   ;;  %v11685_v30 = vld [vmem:[#allocation21_spill] sm:$0xff] }
 0x175   : > { %v7970_v17 = vpop.permute.xlu1 %1293  ;;  %v7973_v18 = vpop.permute.xlu0 %1409 }
 0x176   : > { %11680 = vst [vmem:[#allocation108_spill] sm:$0xff] %v7970_v17  ;;  %1805 = vperm.xlu1 %6979, %v7621_v1   ;;  %11681 = vst [vmem:[#allocation109_spill] sm:$0xff] %v7973_v18  ;;  %1921 = vperm.xlu0 %6978, %v11682_v25   ;;  %v11689_v1 = vld [vmem:[#allocation25_spill] sm:$0xff] }
 0x179   : > { %v7978_v20 = vpop.permute.xlu1 %1404  ;;  %v7981_v29 = vpop.permute.xlu0 %1419 }
 0x17a   : > { %11683 = vst [vmem:[#allocation18_spill] sm:$0xff] %v7978_v20  ;;  %1815 = vperm.xlu1 %6979, %v7975_v19   ;;  %11684 = vst [vmem:[#allocation110_spill] sm:$0xff] %v7981_v29  ;;  %1931 = vperm.xlu0 %6978, %v11685_v30   ;;  %v11693_v20 = vld [vmem:[#allocation29_spill] sm:$0xff]  ;;  %v11695_v29 = vld [vmem:[#allocation31_spill] sm:$0xff] }
 0x17d   : > { %v7984_v22 = vpop.permute.xlu1 %1414  ;;  %v7987_v17 = vpop.permute.xlu0 %1429 }
 0x17e   : > { %11686 = vst [vmem:[#allocation21_spill] sm:$0xff] %v7984_v22  ;;  %1926 = vperm.xlu1 %6979, %v11687_v24   ;;  %11688 = vst [vmem:[#allocation23_spill] sm:$0xff] %v7987_v17  ;;  %1941 = vperm.xlu0 %6978, %v11689_v1   ;;  %v11697_v22 = vld [vmem:[#allocation33_spill] sm:$0xff]  ;;  %v11699_v17 = vld [vmem:[#allocation35_spill] sm:$0xff] }
 0x181   : > { %v7990_v18 = vpop.permute.xlu1 %1424  ;;  %v7993_v25 = vpop.permute.xlu0 %1439 }
 0x182   : > { %11690 = vst [vmem:[#allocation25_spill] sm:$0xff] %v7990_v18  ;;  %1936 = vperm.xlu1 %6979, %v11691_v23   ;;  %11692 = vst [vmem:[#allocation27_spill] sm:$0xff] %v7993_v25  ;;  %1951 = vperm.xlu0 %6978, %v11693_v20   ;;  %v11701_v18 = vld [vmem:[#allocation37_spill] sm:$0xff]  ;;  %v11703_v25 = vld [vmem:[#allocation39_spill] sm:$0xff] }
 0x185   : > { %v7996_v16 = vpop.permute.xlu1 %1434  ;;  %v7999_v30 = vpop.permute.xlu0 %1449 }
 0x186   : > { %11694 = vst [vmem:[#allocation29_spill] sm:$0xff] %v7996_v16  ;;  %1946 = vperm.xlu1 %6979, %v11695_v29   ;;  %11696 = vst [vmem:[#allocation31_spill] sm:$0xff] %v7999_v30  ;;  %1961 = vperm.xlu0 %6978, %v11697_v22   ;;  %v11705_v16 = vld [vmem:[#allocation41_spill] sm:$0xff]  ;;  %v11707_v30 = vld [vmem:[#allocation43_spill] sm:$0xff] }
 0x189   : > { %v8002_v24 = vpop.permute.xlu1 %1444  ;;  %v8005_v1 = vpop.permute.xlu0 %1459 }
 0x18a   : > { %11698 = vst [vmem:[#allocation33_spill] sm:$0xff] %v8002_v24  ;;  %1956 = vperm.xlu1 %6979, %v11699_v17   ;;  %11700 = vst [vmem:[#allocation35_spill] sm:$0xff] %v8005_v1  ;;  %1971 = vperm.xlu0 %6978, %v11701_v18   ;;  %v11709_v24 = vld [vmem:[#allocation45_spill] sm:$0xff]  ;;  %v11711_v1 = vld [vmem:[#allocation47_spill] sm:$0xff] }
 0x18d   : > { %v8008_v23 = vpop.permute.xlu1 %1454  ;;  %v8011_v20 = vpop.permute.xlu0 %1469 }
 0x18e   : > { %11702 = vst [vmem:[#allocation37_spill] sm:$0xff] %v8008_v23  ;;  %1966 = vperm.xlu1 %6979, %v11703_v25   ;;  %11704 = vst [vmem:[#allocation39_spill] sm:$0xff] %v8011_v20  ;;  %1981 = vperm.xlu0 %6978, %v11705_v16   ;;  %v11713_v23 = vld [vmem:[#allocation49_spill] sm:$0xff]  ;;  %v11715_v20 = vld [vmem:[#allocation51_spill] sm:$0xff] }
 0x191   : > { %v8014_v29 = vpop.permute.xlu1 %1464  ;;  %v8017_v22 = vpop.permute.xlu0 %1479 }
 0x192   : > { %11706 = vst [vmem:[#allocation41_spill] sm:$0xff] %v8014_v29  ;;  %1976 = vperm.xlu1 %6979, %v11707_v30   ;;  %11708 = vst [vmem:[#allocation43_spill] sm:$0xff] %v8017_v22  ;;  %1991 = vperm.xlu0 %6978, %v11709_v24   ;;  %v11717_v29 = vld [vmem:[#allocation53_spill] sm:$0xff]  ;;  %v11719_v22 = vld [vmem:[#allocation55_spill] sm:$0xff] }
 0x195   : > { %v8020_v17 = vpop.permute.xlu1 %1474  ;;  %v8023_v18 = vpop.permute.xlu0 %1489 }
 0x196   : > { %11710 = vst [vmem:[#allocation45_spill] sm:$0xff] %v8020_v17  ;;  %1986 = vperm.xlu1 %6979, %v11711_v1   ;;  %11712 = vst [vmem:[#allocation47_spill] sm:$0xff] %v8023_v18  ;;  %2001 = vperm.xlu0 %6978, %v11713_v23   ;;  %v11721_v17 = vld [vmem:[#allocation57_spill] sm:$0xff]  ;;  %v11723_v18 = vld [vmem:[#allocation59_spill] sm:$0xff] }
 0x199   : > { %v8026_v25 = vpop.permute.xlu1 %1484  ;;  %v8029_v16 = vpop.permute.xlu0 %1499 }
 0x19a   : > { %11714 = vst [vmem:[#allocation49_spill] sm:$0xff] %v8026_v25  ;;  %1996 = vperm.xlu1 %6979, %v11715_v20   ;;  %11716 = vst [vmem:[#allocation51_spill] sm:$0xff] %v8029_v16  ;;  %2011 = vperm.xlu0 %6978, %v11717_v29   ;;  %v11725_v25 = vld [vmem:[#allocation61_spill] sm:$0xff]  ;;  %v11727_v16 = vld [vmem:[#allocation63_spill] sm:$0xff] }
 0x19d   : > { %v8032_v30 = vpop.permute.xlu1 %1494  ;;  %v8035_v24 = vpop.permute.xlu0 %1509 }
 0x19e   : > { %11718 = vst [vmem:[#allocation53_spill] sm:$0xff] %v8032_v30  ;;  %2006 = vperm.xlu1 %6979, %v11719_v22   ;;  %11720 = vst [vmem:[#allocation55_spill] sm:$0xff] %v8035_v24  ;;  %2021 = vperm.xlu0 %6978, %v11721_v17   ;;  %v11729_v30 = vld [vmem:[#allocation65_spill] sm:$0xff]  ;;  %v11731_v24 = vld [vmem:[#allocation67_spill] sm:$0xff] }
 0x1a1   : > { %v8038_v1 = vpop.permute.xlu1 %1504  ;;  %v8041_v23 = vpop.permute.xlu0 %1519 }
 0x1a2   : > { %11722 = vst [vmem:[#allocation57_spill] sm:$0xff] %v8038_v1  ;;  %2016 = vperm.xlu1 %6979, %v11723_v18   ;;  %11724 = vst [vmem:[#allocation59_spill] sm:$0xff] %v8041_v23  ;;  %2031 = vperm.xlu0 %6978, %v11725_v25   ;;  %v11734_v23 = vld [vmem:[#allocation70_spill] sm:$0xff] }
 0x1a5   : > { %v8044_v20 = vpop.permute.xlu1 %1514  ;;  %v8047_v29 = vpop.permute.xlu0 %1529 }
 0x1a6   : > { %11726 = vst [vmem:[#allocation61_spill] sm:$0xff] %v8044_v20  ;;  %2026 = vperm.xlu1 %6979, %v11727_v16   ;;  %11728 = vst [vmem:[#allocation63_spill] sm:$0xff] %v8047_v29  ;;  %2041 = vperm.xlu0 %6978, %v11729_v30   ;;  %v8064_v29 = vld [vmem:[#allocation2 + $0x182] sm:$0xff] }
 0x1a7   : > { %11737 = vst [vmem:[#allocation113_spill] sm:$0xff] %v8064_v29 }
 0x1a9   : > { %v8050_v22 = vpop.permute.xlu1 %1524  ;;  %v8053_v17 = vpop.permute.xlu0 %1539 }
 0x1aa   : > { %11730 = vst [vmem:[#allocation65_spill] sm:$0xff] %v8050_v22  ;;  %2036 = vperm.xlu1 %6979, %v11731_v24   ;;  %11732 = vst [vmem:[#allocation67_spill] sm:$0xff] %v8053_v17  ;;  %2051 = vperm.xlu0 %6978, %v7752_v63   ;;  %v2148_v63 = vld [vmem:[#allocation2 + $0x30] sm:$0xff]  ;;  %v2153_v22 = vld [vmem:[#allocation2 + $0x68] sm:$0xff] }
 0x1ad   : > { %v8056_v18 = vpop.permute.xlu1 %1534  ;;  %v8059_v25 = vpop.permute.xlu0 %1549 }
 0x1ae   : > { %11733 = vst [vmem:[#allocation111_spill] sm:$0xff] %v8056_v18  ;;  %2046 = vperm.xlu1 %6979, %v11734_v23   ;;  %11735 = vst [vmem:[#allocation70_spill] sm:$0xff] %v8059_v25  ;;  %2061 = vperm.xlu0 %6978, %v7762_v4   ;;  %v8075_v25 = vld [vmem:[#allocation2 + $0x18a] sm:$0xff] }
 0x1af   : > { %11741 = vst [vmem:[#allocation117_spill] sm:$0xff] %v8075_v25 }
 0x1b1   : > { %v8062_v16 = vpop.permute.xlu1 %1544  ;;  %v8067_v30 = vpop.permute.xlu0 %1660 }
 0x1b2   : > { %11736 = vst [vmem:[#allocation112_spill] sm:$0xff] %v8062_v16  ;;  %2056 = vperm.xlu1 %6979, %v7767_v36   ;;  %11738 = vst [vmem:[#allocation114_spill] sm:$0xff] %v8067_v30  ;;  %2071 = vperm.xlu0 %6978, %v8064_v29   ;;  %v2150_v16 = vld [vmem:[#allocation2 + $0x48] sm:$0xff]  ;;  %v2149_v30 = vld [vmem:[#allocation2 + $0x38] sm:$0xff] }
 0x1b5   : > { %v8070_v24 = vpop.permute.xlu1 %1554  ;;  %v8073_v23 = vpop.permute.xlu0 %1670 }
 0x1b6   : > { %11739 = vst [vmem:[#allocation115_spill] sm:$0xff] %v8070_v24  ;;  %2066 = vperm.xlu1 %6979, %v7775_v34   ;;  %11740 = vst [vmem:[#allocation116_spill] sm:$0xff] %v8073_v23  ;;  %2183 = vperm.xlu0 %6978, %v2148_v63   ;;  %v2152_v24 = vld [vmem:[#allocation2 + $0x60] sm:$0xff]  ;;  %v2151_v34 = vld [vmem:[#allocation2 + $0x50] sm:$0xff] }
 0x1b7   : > { %v2154_v63 = vld [vmem:[#allocation2 + $0x78] sm:$0xff] }
 0x1b9   : > { %v8077_v4 = vpop.permute.xlu1 %1665  ;;  %v8080_v36 = vpop.permute.xlu0 %1680 }
 0x1ba   : > { %11742 = vst [vmem:[#allocation118_spill] sm:$0xff] %v8077_v4  ;;  %2076 = vperm.xlu1 %6979, %v8075_v25   ;;  %11743 = vst [vmem:[#allocation119_spill] sm:$0xff] %v8080_v36  ;;  %2193 = vperm.xlu0 %6978, %v2150_v16   ;;  %v2156_v36 = vld [vmem:[#allocation2 + $0x90] sm:$0xff] }
 0x1bd   : > { %v8082_v18 = vpop.permute.xlu1 %1675  ;;  %v8084_v17 = vpop.permute.xlu0 %1690 }
 0x1be   : > { %11744 = vst [vmem:[#allocation120_spill] sm:$0xff] %v8082_v18  ;;  %2188 = vperm.xlu1 %6979, %v2149_v30   ;;  %11745 = vst [vmem:[#allocation121_spill] sm:$0xff] %v8084_v17  ;;  %2203 = vperm.xlu0 %6978, %v2152_v24   ;;  %v2155_v18 = vld [vmem:[#allocation2 + $0x80] sm:$0xff]  ;;  %v2158_v17 = vld [vmem:[#allocation2 + $0xa8] sm:$0xff] }
 0x1c1   : > { %v8086_v23 = vpop.permute.xlu1 %1685  ;;  %v8088_v4 = vpop.permute.xlu0 %1700 }
 0x1c2   : > { %11746 = vst [vmem:[#allocation122_spill] sm:$0xff] %v8086_v23  ;;  %2198 = vperm.xlu1 %6979, %v2151_v34   ;;  %11747 = vst [vmem:[#allocation123_spill] sm:$0xff] %v8088_v4  ;;  %2213 = vperm.xlu0 %6978, %v2154_v63   ;;  %v2157_v23 = vld [vmem:[#allocation2 + $0x98] sm:$0xff]  ;;  %v2160_v4 = vld [vmem:[#allocation2 + $0xc0] sm:$0xff] }
 0x1c5   : > { %v8090_v20 = vpop.permute.xlu1 %1695  ;;  %v8092_v16 = vpop.permute.xlu0 %1710 }
 0x1c6   : > { %11748 = vst [vmem:[#allocation124_spill] sm:$0xff] %v8090_v20  ;;  %2208 = vperm.xlu1 %6979, %v2153_v22   ;;  %11749 = vst [vmem:[#allocation125_spill] sm:$0xff] %v8092_v16  ;;  %2223 = vperm.xlu0 %6978, %v2156_v36   ;;  %v2159_v20 = vld [vmem:[#allocation2 + $0xb0] sm:$0xff]  ;;  %v2162_v16 = vld [vmem:[#allocation2 + $0xd8] sm:$0xff] }
 0x1c9   : > { %v8094_v30 = vpop.permute.xlu1 %1705  ;;  %v8096_v24 = vpop.permute.xlu0 %1720 }
 0x1ca   : > { %11750 = vst [vmem:[#allocation126_spill] sm:$0xff] %v8094_v30  ;;  %2218 = vperm.xlu1 %6979, %v2155_v18   ;;  %11751 = vst [vmem:[#allocation127_spill] sm:$0xff] %v8096_v24  ;;  %2233 = vperm.xlu0 %6978, %v2158_v17   ;;  %v2161_v30 = vld [vmem:[#allocation2 + $0xc8] sm:$0xff]  ;;  %v2164_v24 = vld [vmem:[#allocation2 + $0xf0] sm:$0xff] }
 0x1cd   : > { %v8098_v34 = vpop.permute.xlu1 %1715  ;;  %v8100_v63 = vpop.permute.xlu0 %1730 }
 0x1ce   : > { %11752 = vst [vmem:[#allocation128_spill] sm:$0xff] %v8098_v34  ;;  %2228 = vperm.xlu1 %6979, %v2157_v23   ;;  %11753 = vst [vmem:[#allocation129_spill] sm:$0xff] %v8100_v63  ;;  %2243 = vperm.xlu0 %6978, %v2160_v4   ;;  %v2163_v34 = vld [vmem:[#allocation2 + $0xe0] sm:$0xff]  ;;  %v2166_v63 = vld [vmem:[#allocation2 + $0x108] sm:$0xff] }
 0x1d1   : > { %v8102_v22 = vpop.permute.xlu1 %1725  ;;  %v8104_v36 = vpop.permute.xlu0 %1740 }
 0x1d2   : > { %11754 = vst [vmem:[#allocation130_spill] sm:$0xff] %v8102_v22  ;;  %2238 = vperm.xlu1 %6979, %v2159_v20   ;;  %11755 = vst [vmem:[#allocation131_spill] sm:$0xff] %v8104_v36  ;;  %2253 = vperm.xlu0 %6978, %v2162_v16   ;;  %v2165_v22 = vld [vmem:[#allocation2 + $0xf8] sm:$0xff]  ;;  %v2168_v36 = vld [vmem:[#allocation2 + $0x120] sm:$0xff] }
 0x1d5   : > { %v8106_v18 = vpop.permute.xlu1 %1735  ;;  %v8108_v17 = vpop.permute.xlu0 %1750 }
 0x1d6   : > { %11756 = vst [vmem:[#allocation132_spill] sm:$0xff] %v8106_v18  ;;  %2248 = vperm.xlu1 %6979, %v2161_v30   ;;  %11757 = vst [vmem:[#allocation133_spill] sm:$0xff] %v8108_v17  ;;  %2263 = vperm.xlu0 %6978, %v2164_v24   ;;  %v2167_v18 = vld [vmem:[#allocation2 + $0x110] sm:$0xff]  ;;  %v2170_v17 = vld [vmem:[#allocation2 + $0x138] sm:$0xff] }
 0x1d9   : > { %v8110_v23 = vpop.permute.xlu1 %1745  ;;  %v8112_v4 = vpop.permute.xlu0 %1760 }
 0x1da   : > { %11758 = vst [vmem:[#allocation134_spill] sm:$0xff] %v8110_v23  ;;  %2258 = vperm.xlu1 %6979, %v2163_v34   ;;  %11759 = vst [vmem:[#allocation135_spill] sm:$0xff] %v8112_v4  ;;  %2273 = vperm.xlu0 %6978, %v2166_v63   ;;  %v2169_v23 = vld [vmem:[#allocation2 + $0x128] sm:$0xff]  ;;  %v2172_v4 = vld [vmem:[#allocation2 + $0x150] sm:$0xff] }
 0x1dd   : > { %v8114_v20 = vpop.permute.xlu1 %1755  ;;  %v8116_v16 = vpop.permute.xlu0 %1770 }
 0x1de   : > { %11760 = vst [vmem:[#allocation136_spill] sm:$0xff] %v8114_v20  ;;  %2268 = vperm.xlu1 %6979, %v2165_v22   ;;  %11761 = vst [vmem:[#allocation137_spill] sm:$0xff] %v8116_v16  ;;  %2283 = vperm.xlu0 %6978, %v2168_v36   ;;  %v2171_v20 = vld [vmem:[#allocation2 + $0x140] sm:$0xff]  ;;  %v2174_v16 = vld [vmem:[#allocation2 + $0x168] sm:$0xff] }
 0x1e1   : > { %v8118_v30 = vpop.permute.xlu1 %1765  ;;  %v8120_v24 = vpop.permute.xlu0 %1780 }
 0x1e2   : > { %11762 = vst [vmem:[#allocation138_spill] sm:$0xff] %v8118_v30  ;;  %2278 = vperm.xlu1 %6979, %v2167_v18   ;;  %11763 = vst [vmem:[#allocation139_spill] sm:$0xff] %v8120_v24  ;;  %2293 = vperm.xlu0 %6978, %v2170_v17   ;;  %v2173_v30 = vld [vmem:[#allocation2 + $0x158] sm:$0xff] }
 0x1e3   : > { %v11830_v24 = vld [vmem:[#allocation24_spill] sm:$0xff] }
 0x1e5   : > { %v8122_v34 = vpop.permute.xlu1 %1775  ;;  %v8124_v63 = vpop.permute.xlu0 %1790 }
 0x1e6   : > { %11764 = vst [vmem:[#allocation140_spill] sm:$0xff] %v8122_v34  ;;  %2288 = vperm.xlu1 %6979, %v2169_v23   ;;  %11765 = vst [vmem:[#allocation141_spill] sm:$0xff] %v8124_v63  ;;  %2303 = vperm.xlu0 %6978, %v2172_v4   ;;  %v2175_v34 = vld [vmem:[#allocation2 + $0x170] sm:$0xff]  ;;  %v2178_v63 = vld [vmem:[#allocation2 + $0x198] sm:$0xff] }
 0x1e9   : > { %v8126_v22 = vpop.permute.xlu1 %1785  ;;  %v8128_v36 = vpop.permute.xlu0 %1800 }
 0x1ea   : > { %11766 = vst [vmem:[#allocation142_spill] sm:$0xff] %v8126_v22  ;;  %2298 = vperm.xlu1 %6979, %v2171_v20   ;;  %11767 = vst [vmem:[#allocation143_spill] sm:$0xff] %v8128_v36  ;;  %2313 = vperm.xlu0 %6978, %v2174_v16   ;;  %v2409_v36 = vld [vmem:[#allocation2 + $0x31] sm:$0xff] }
 0x1ed   : > { %v8130_v18 = vpop.permute.xlu1 %1795  ;;  %v8132_v17 = vpop.permute.xlu0 %1810 }
 0x1ee   : > { %11768 = vst [vmem:[#allocation144_spill] sm:$0xff] %v8130_v18  ;;  %2308 = vperm.xlu1 %6979, %v2173_v30   ;;  %11769 = vst [vmem:[#allocation145_spill] sm:$0xff] %v8132_v17  ;;  %2323 = vperm.xlu0 %6978, %v7864_v51   ;;  %v2179_v30 = vld [vmem:[#allocation2 + $0x1a0] sm:$0xff]  ;;  %v2411_v18 = vld [vmem:[#allocation2 + $0x49] sm:$0xff] }
 0x1f1   : > { %v8135_v23 = vpop.permute.xlu1 %1805  ;;  %v8137_v4 = vpop.permute.xlu0 %1921 }
 0x1f2   : > { %11770 = vst [vmem:[#allocation146_spill] sm:$0xff] %v8135_v23  ;;  %2318 = vperm.xlu1 %6979, %v2175_v34   ;;  %11771 = vst [vmem:[#allocation147_spill] sm:$0xff] %v8137_v4  ;;  %2333 = vperm.xlu0 %6978, %v2178_v63   ;;  %v2410_v23 = vld [vmem:[#allocation2 + $0x39] sm:$0xff]  ;;  %v2413_v63 = vld [vmem:[#allocation2 + $0x61] sm:$0xff] }
 0x1f3   : > { %v2412_v4 = vld [vmem:[#allocation2 + $0x51] sm:$0xff] }
 0x1f5   : > { %v8139_v20 = vpop.permute.xlu1 %1815  ;;  %v8142_v16 = vpop.permute.xlu0 %1931 }
 0x1f6   : > { %11772 = vst [vmem:[#allocation148_spill] sm:$0xff] %v8139_v20  ;;  %2328 = vperm.xlu1 %6979, %v7875_v60   ;;  %11773 = vst [vmem:[#allocation149_spill] sm:$0xff] %v8142_v16  ;;  %2444 = vperm.xlu0 %6978, %v2409_v36   ;;  %v2415_v16 = vld [vmem:[#allocation2 + $0x79] sm:$0xff] }
 0x1f9   : > { %v8144_v17 = vpop.permute.xlu1 %1926  ;;  %v8146_v51 = vpop.permute.xlu0 %1941 }
 0x1fa   : > { %11774 = vst [vmem:[#allocation150_spill] sm:$0xff] %v8144_v17  ;;  %2338 = vperm.xlu1 %6979, %v2179_v30   ;;  %11775 = vst [vmem:[#allocation151_spill] sm:$0xff] %v8146_v51  ;;  %2454 = vperm.xlu0 %6978, %v2411_v18   ;;  %v2414_v17 = vld [vmem:[#allocation2 + $0x69] sm:$0xff]  ;;  %v2417_v51 = vld [vmem:[#allocation2 + $0x91] sm:$0xff] }
 0x1fd   : > { %v8148_v34 = vpop.permute.xlu1 %1936  ;;  %v8150_v20 = vpop.permute.xlu0 %1951 }
 0x1fe   : > { %11776 = vst [vmem:[#allocation152_spill] sm:$0xff] %v8148_v34  ;;  %2449 = vperm.xlu1 %6979, %v2410_v23   ;;  %11777 = vst [vmem:[#allocation153_spill] sm:$0xff] %v8150_v20  ;;  %2464 = vperm.xlu0 %6978, %v2413_v63   ;;  %v2416_v34 = vld [vmem:[#allocation2 + $0x81] sm:$0xff]  ;;  %v2419_v20 = vld [vmem:[#allocation2 + $0xa9] sm:$0xff] }
 0x201   : > { %v8152_v60 = vpop.permute.xlu1 %1946  ;;  %v8154_v36 = vpop.permute.xlu0 %1961 }
 0x202   : > { %11778 = vst [vmem:[#allocation154_spill] sm:$0xff] %v8152_v60  ;;  %2459 = vperm.xlu1 %6979, %v2412_v4   ;;  %11779 = vst [vmem:[#allocation155_spill] sm:$0xff] %v8154_v36  ;;  %2474 = vperm.xlu0 %6978, %v2415_v16   ;;  %v2418_v60 = vld [vmem:[#allocation2 + $0x99] sm:$0xff]  ;;  %v2421_v36 = vld [vmem:[#allocation2 + $0xc1] sm:$0xff] }
 0x205   : > { %v8156_v30 = vpop.permute.xlu1 %1956  ;;  %v8158_v18 = vpop.permute.xlu0 %1971 }
 0x206   : > { %11780 = vst [vmem:[#allocation156_spill] sm:$0xff] %v8156_v30  ;;  %2469 = vperm.xlu1 %6979, %v2414_v17   ;;  %11781 = vst [vmem:[#allocation157_spill] sm:$0xff] %v8158_v18  ;;  %2484 = vperm.xlu0 %6978, %v2417_v51   ;;  %v2420_v30 = vld [vmem:[#allocation2 + $0xb1] sm:$0xff]  ;;  %v2423_v18 = vld [vmem:[#allocation2 + $0xd9] sm:$0xff] }
 0x209   : > { %v8160_v23 = vpop.permute.xlu1 %1966  ;;  %v8162_v63 = vpop.permute.xlu0 %1981 }
 0x20a   : > { %11782 = vst [vmem:[#allocation158_spill] sm:$0xff] %v8160_v23  ;;  %2479 = vperm.xlu1 %6979, %v2416_v34   ;;  %11783 = vst [vmem:[#allocation159_spill] sm:$0xff] %v8162_v63  ;;  %2494 = vperm.xlu0 %6978, %v2419_v20   ;;  %v2422_v23 = vld [vmem:[#allocation2 + $0xc9] sm:$0xff]  ;;  %v2425_v63 = vld [vmem:[#allocation2 + $0xf1] sm:$0xff] }
 0x20d   : > { %v8164_v4 = vpop.permute.xlu1 %1976  ;;  %v8166_v16 = vpop.permute.xlu0 %1991 }
 0x20e   : > { %11784 = vst [vmem:[#allocation160_spill] sm:$0xff] %v8164_v4  ;;  %2489 = vperm.xlu1 %6979, %v2418_v60   ;;  %11785 = vst [vmem:[#allocation161_spill] sm:$0xff] %v8166_v16  ;;  %2504 = vperm.xlu0 %6978, %v2421_v36   ;;  %v2424_v4 = vld [vmem:[#allocation2 + $0xe1] sm:$0xff]  ;;  %v2427_v16 = vld [vmem:[#allocation2 + $0x109] sm:$0xff] }
 0x211   : > { %v8168_v17 = vpop.permute.xlu1 %1986  ;;  %v8170_v51 = vpop.permute.xlu0 %2001 }
 0x212   : > { %11786 = vst [vmem:[#allocation162_spill] sm:$0xff] %v8168_v17  ;;  %2499 = vperm.xlu1 %6979, %v2420_v30   ;;  %11787 = vst [vmem:[#allocation163_spill] sm:$0xff] %v8170_v51  ;;  %2514 = vperm.xlu0 %6978, %v2423_v18   ;;  %v2426_v17 = vld [vmem:[#allocation2 + $0xf9] sm:$0xff]  ;;  %v2429_v51 = vld [vmem:[#allocation2 + $0x121] sm:$0xff] }
 0x215   : > { %v8172_v34 = vpop.permute.xlu1 %1996  ;;  %v8174_v20 = vpop.permute.xlu0 %2011 }
 0x216   : > { %11788 = vst [vmem:[#allocation164_spill] sm:$0xff] %v8172_v34  ;;  %2509 = vperm.xlu1 %6979, %v2422_v23   ;;  %11789 = vst [vmem:[#allocation165_spill] sm:$0xff] %v8174_v20  ;;  %2524 = vperm.xlu0 %6978, %v2425_v63   ;;  %v2428_v34 = vld [vmem:[#allocation2 + $0x111] sm:$0xff]  ;;  %v2431_v20 = vld [vmem:[#allocation2 + $0x139] sm:$0xff] }
 0x219   : > { %v8176_v60 = vpop.permute.xlu1 %2006  ;;  %v8178_v36 = vpop.permute.xlu0 %2021 }
 0x21a   : > { %11790 = vst [vmem:[#allocation166_spill] sm:$0xff] %v8176_v60  ;;  %2519 = vperm.xlu1 %6979, %v2424_v4   ;;  %11791 = vst [vmem:[#allocation167_spill] sm:$0xff] %v8178_v36  ;;  %2534 = vperm.xlu0 %6978, %v2427_v16   ;;  %v2430_v60 = vld [vmem:[#allocation2 + $0x129] sm:$0xff]  ;;  %v2433_v36 = vld [vmem:[#allocation2 + $0x151] sm:$0xff] }
 0x21d   : > { %v8180_v30 = vpop.permute.xlu1 %2016  ;;  %v8182_v18 = vpop.permute.xlu0 %2031 }
 0x21e   : > { %11792 = vst [vmem:[#allocation168_spill] sm:$0xff] %v8180_v30  ;;  %2529 = vperm.xlu1 %6979, %v2426_v17   ;;  %11793 = vst [vmem:[#allocation169_spill] sm:$0xff] %v8182_v18  ;;  %2544 = vperm.xlu0 %6978, %v2429_v51   ;;  %v2432_v30 = vld [vmem:[#allocation2 + $0x141] sm:$0xff]  ;;  %v2435_v18 = vld [vmem:[#allocation2 + $0x169] sm:$0xff] }
 0x221   : > { %v8184_v23 = vpop.permute.xlu1 %2026  ;;  %v8186_v63 = vpop.permute.xlu0 %2041 }
 0x222   : > { %11794 = vst [vmem:[#allocation170_spill] sm:$0xff] %v8184_v23  ;;  %2539 = vperm.xlu1 %6979, %v2428_v34   ;;  %11795 = vst [vmem:[#allocation171_spill] sm:$0xff] %v8186_v63  ;;  %2554 = vperm.xlu0 %6978, %v2431_v20   ;;  %v2434_v23 = vld [vmem:[#allocation2 + $0x159] sm:$0xff] }
 0x223   : > { %v11828_v63 = vld [vmem:[#allocation20_spill] sm:$0xff] }
 0x225   : > { %v8188_v4 = vpop.permute.xlu1 %2036  ;;  %v8190_v16 = vpop.permute.xlu0 %2051 }
 0x226   : > { %11796 = vst [vmem:[#allocation172_spill] sm:$0xff] %v8188_v4  ;;  %2549 = vperm.xlu1 %6979, %v2430_v60   ;;  %11797 = vst [vmem:[#allocation173_spill] sm:$0xff] %v8190_v16  ;;  %2564 = vperm.xlu0 %6978, %v2433_v36   ;;  %v2436_v4 = vld [vmem:[#allocation2 + $0x171] sm:$0xff]  ;;  %v2439_v16 = vld [vmem:[#allocation2 + $0x199] sm:$0xff] }
 0x229   : > { %v8192_v17 = vpop.permute.xlu1 %2046  ;;  %v8194_v51 = vpop.permute.xlu0 %2061 }
 0x22a   : > { %11798 = vst [vmem:[#allocation174_spill] sm:$0xff] %v8192_v17  ;;  %2559 = vperm.xlu1 %6979, %v2432_v30   ;;  %11799 = vst [vmem:[#allocation175_spill] sm:$0xff] %v8194_v51  ;;  %2574 = vperm.xlu0 %6978, %v2435_v18   ;;  %v2670_v51 = vld [vmem:[#allocation2 + $0x32] sm:$0xff]  ;;  %v11805_v18 = vmov 0.0  }
 0x22b   : > { %3152 = vst.msk [vmem:[#allocation4] sm:$0xff] %vm3002_vm2, %v11805_v18  ;;  %3155 = vst.msk [vmem:[#allocation4 + $0x10] sm:$0xff] %vm3002_vm2, %v11805_v18  ;;  %v2673_v17 = vld [vmem:[#allocation2 + $0x52] sm:$0xff] }
 0x22c   : > { %3157 = vst.msk [vmem:[#allocation4 + $0x20] sm:$0xff] %vm3002_vm2, %v11805_v18  ;;  %3159 = vst.msk [vmem:[#allocation4 + $0x30] sm:$0xff] %vm3002_vm2, %v11805_v18 }
 0x22d   : > { %v8196_v34 = vpop.permute.xlu1 %2056  ;;  %v8198_v20 = vpop.permute.xlu0 %2071  ;;  %3161 = vst.msk [vmem:[#allocation4 + $0x40] sm:$0xff] %vm3002_vm2, %v11805_v18  ;;  %3163 = vst.msk [vmem:[#allocation4 + $0x50] sm:$0xff] %vm3002_vm2, %v11805_v18 }
 0x22e   : > { %11800 = vst [vmem:[#allocation176_spill] sm:$0xff] %v8196_v34  ;;  %2569 = vperm.xlu1 %6979, %v2434_v23   ;;  %11801 = vst [vmem:[#allocation177_spill] sm:$0xff] %v8198_v20  ;;  %2584 = vperm.xlu0 %6978, %v7964_v21   ;;  %v2440_v23 = vld [vmem:[#allocation2 + $0x1a1] sm:$0xff] }
 0x22f   : > { %3165 = vst.msk [vmem:[#allocation4 + $0x60] sm:$0xff] %vm3002_vm2, %v11805_v18  ;;  %3167 = vst.msk [vmem:[#allocation4 + $0x70] sm:$0xff] %vm3002_vm2, %v11805_v18  ;;  %v2674_v20 = vld [vmem:[#allocation2 + $0x62] sm:$0xff] }
 0x230   : > { %3169 = vst.msk [vmem:[#allocation4 + $0x80] sm:$0xff] %vm3002_vm2, %v11805_v18  ;;  %3171 = vst.msk [vmem:[#allocation4 + $0x90] sm:$0xff] %vm3002_vm2, %v11805_v18 }
 0x231   : > { %v8201_v60 = vpop.permute.xlu1 %2066  ;;  %v8203_v36 = vpop.permute.xlu0 %2183  ;;  %3156 = vst.msk [vmem:[#allocation4 + $0x18] sm:$0x3] %vm3153_vm3, %v11805_v18  ;;  %3154 = vst.msk [vmem:[#allocation4 + $0x8] sm:$0x3] %vm3153_vm3, %v11805_v18 }
 0x232   : > { %11802 = vst [vmem:[#allocation178_spill] sm:$0xff] %v8201_v60  ;;  %2579 = vperm.xlu1 %6979, %v2436_v4   ;;  %11803 = vst [vmem:[#allocation179_spill] sm:$0xff] %v8203_v36  ;;  %2594 = vperm.xlu0 %6978, %v2439_v16   ;;  %v2672_v16 = vld [vmem:[#allocation2 + $0x4a] sm:$0xff]  ;;  %v2671_v36 = vld [vmem:[#allocation2 + $0x3a] sm:$0xff] }
 0x233   : > { %3158 = vst.msk [vmem:[#allocation4 + $0x28] sm:$0x3] %vm3153_vm3, %v11805_v18  ;;  %3160 = vst.msk [vmem:[#allocation4 + $0x38] sm:$0x3] %vm3153_vm3, %v11805_v18 }
 0x234   : > { %3162 = vst.msk [vmem:[#allocation4 + $0x48] sm:$0x3] %vm3153_vm3, %v11805_v18  ;;  %3164 = vst.msk [vmem:[#allocation4 + $0x58] sm:$0x3] %vm3153_vm3, %v11805_v18 }
 0x235   : > { %v8205_v30 = vpop.permute.xlu1 %2076  ;;  %v8228_v21 = vpop.permute.xlu0 %2193  ;;  %3166 = vst.msk [vmem:[#allocation4 + $0x68] sm:$0x3] %vm3153_vm3, %v11805_v18  ;;  %3168 = vst.msk [vmem:[#allocation4 + $0x78] sm:$0x3] %vm3153_vm3, %v11805_v18 }
 0x236   : > { %11804 = vst [vmem:[#allocation180_spill] sm:$0xff] %v8205_v30  ;;  %2589 = vperm.xlu1 %6979, %v7975_v19   ;;  %11806 = vst [vmem:[#allocation181_spill] sm:$0xff] %v8228_v21  ;;  %2705 = vperm.xlu0 %6978, %v2670_v51   ;;  %v2676_v21 = vld [vmem:[#allocation2 + $0x7a] sm:$0xff] }
 0x237   : > { %3170 = vst.msk [vmem:[#allocation4 + $0x88] sm:$0x3] %vm3153_vm3, %v11805_v18  ;;  %3172 = vst.msk [vmem:[#allocation4 + $0x98] sm:$0x3] %vm3153_vm3, %v11805_v18  ;;  %v11829_v18 = vld [vmem:[#allocation22_spill] sm:$0xff] }
 0x239   : > { %v8230_v4 = vpop.permute.xlu1 %2188  ;;  %v8232_v30 = vpop.permute.xlu0 %2203 }
 0x23a   : > { %11807 = vst [vmem:[#allocation182_spill] sm:$0xff] %v8230_v4  ;;  %2599 = vperm.xlu1 %6979, %v2440_v23   ;;  %11808 = vst [vmem:[#allocation183_spill] sm:$0xff] %v8232_v30  ;;  %2715 = vperm.xlu0 %6978, %v2672_v16   ;;  %v2675_v4 = vld [vmem:[#allocation2 + $0x6a] sm:$0xff]  ;;  %v2678_v30 = vld [vmem:[#allocation2 + $0x92] sm:$0xff] }
 0x23d   : > { %v8234_v60 = vpop.permute.xlu1 %2198  ;;  %v8236_v34 = vpop.permute.xlu0 %2213 }
 0x23e   : > { %11809 = vst [vmem:[#allocation184_spill] sm:$0xff] %v8234_v60  ;;  %2710 = vperm.xlu1 %6979, %v2671_v36   ;;  %11810 = vst [vmem:[#allocation185_spill] sm:$0xff] %v8236_v34  ;;  %2725 = vperm.xlu0 %6978, %v2674_v20   ;;  %v2677_v60 = vld [vmem:[#allocation2 + $0x82] sm:$0xff]  ;;  %v2680_v34 = vld [vmem:[#allocation2 + $0xaa] sm:$0xff] }
 0x241   : > { %v8238_v19 = vpop.permute.xlu1 %2208  ;;  %v8240_v51 = vpop.permute.xlu0 %2223 }
 0x242   : > { %11811 = vst [vmem:[#allocation186_spill] sm:$0xff] %v8238_v19  ;;  %2720 = vperm.xlu1 %6979, %v2673_v17   ;;  %11812 = vst [vmem:[#allocation187_spill] sm:$0xff] %v8240_v51  ;;  %2735 = vperm.xlu0 %6978, %v2676_v21   ;;  %v2679_v19 = vld [vmem:[#allocation2 + $0x9a] sm:$0xff]  ;;  %v2682_v51 = vld [vmem:[#allocation2 + $0xc2] sm:$0xff] }
 0x245   : > { %v8242_v23 = vpop.permute.xlu1 %2218  ;;  %v8244_v16 = vpop.permute.xlu0 %2233 }
 0x246   : > { %11813 = vst [vmem:[#allocation188_spill] sm:$0xff] %v8242_v23  ;;  %2730 = vperm.xlu1 %6979, %v2675_v4   ;;  %11814 = vst [vmem:[#allocation189_spill] sm:$0xff] %v8244_v16  ;;  %2745 = vperm.xlu0 %6978, %v2678_v30   ;;  %v2681_v23 = vld [vmem:[#allocation2 + $0xb2] sm:$0xff]  ;;  %v2684_v16 = vld [vmem:[#allocation2 + $0xda] sm:$0xff] }
 0x249   : > { %v8246_v36 = vpop.permute.xlu1 %2228  ;;  %v8248_v20 = vpop.permute.xlu0 %2243 }
 0x24a   : > { %11815 = vst [vmem:[#allocation190_spill] sm:$0xff] %v8246_v36  ;;  %2740 = vperm.xlu1 %6979, %v2677_v60   ;;  %11816 = vst [vmem:[#allocation191_spill] sm:$0xff] %v8248_v20  ;;  %2755 = vperm.xlu0 %6978, %v2680_v34   ;;  %v2683_v36 = vld [vmem:[#allocation2 + $0xca] sm:$0xff]  ;;  %v8261_v34 = vld [vmem:[%s11821_s1] ss:$0 sm:$0xff] }
 0x24b   : > { %v813_v22 = vmul.f32 %v8261_v34, %v11828_v63  ;;  %v8291_v1 = vmul.f32 %v8261_v34, %v11830_v24  ;;  %v8305_v63 = vmul.f32 %v8261_v34, %v11834_v14  ;;  %v8314_v24 = vld [vmem:[%s11821_s1 + $0x1] ss:$0 sm:$0xff]  ;;  %v11838_v14 = vld [vmem:[#allocation38_spill] sm:$0xff] }
 0x24c   : > { %v8326_v12 = vmul.f32 %v8261_v34, %v11838_v14  ;;  %v11844_v14 = vld [vmem:[#allocation48_spill] sm:$0xff] }
 0x24d   : > { %v8250_v17 = vpop.permute.xlu1 %2238  ;;  %v8252_v21 = vpop.permute.xlu0 %2253  ;;  %v8348_v5 = vmul.f32 %v8261_v34, %v11844_v14  ;;  %v2690_v14 = vld [vmem:[#allocation2 + $0x122] sm:$0xff] }
 0x24e   : > { %11817 = vst [vmem:[#allocation192_spill] sm:$0xff] %v8250_v17  ;;  %2750 = vperm.xlu1 %6979, %v2679_v19   ;;  %11818 = vst [vmem:[#allocation193_spill] sm:$0xff] %v8252_v21  ;;  %2765 = vperm.xlu0 %6978, %v2682_v51   ;;  %v2686_v19 = vld [vmem:[#allocation2 + $0xf2] sm:$0xff]  ;;  %v11827_v17 = vld [vmem:[#allocation19_spill] sm:$0xff] }
 0x24f   : > { %v814_v20 = vmul.f32 %v8261_v34, %v11827_v17 }
 0x251   : > { %v8254_v4 = vpop.permute.xlu1 %2248  ;;  %v8256_v30 = vpop.permute.xlu0 %2263 }
 0x252   : > { %11819 = vst [vmem:[#allocation194_spill] sm:$0xff] %v8254_v4  ;;  %2760 = vperm.xlu1 %6979, %v2681_v23   ;;  %11820 = vst [vmem:[#allocation195_spill] sm:$0xff] %v8256_v30  ;;  %2775 = vperm.xlu0 %6978, %v2684_v16   ;;  %v2685_v23 = vld [vmem:[#allocation2 + $0xe2] sm:$0xff]  ;;  %v11826_v4 = vld [vmem:[#allocation17_spill] sm:$0xff] }
 0x253   : > { %v11824_v16 = vld [vmem:[#allocation14_spill] sm:$0xff]  ;;  %v812_v21 = vmul.f32 %v8261_v34, %v11826_v4  ;;  %v8297_v4 = vmul.f32 %v8261_v34, %v11832_v15 }
 0x254   : > { %v11836_v15 = vld [vmem:[#allocation34_spill] sm:$0xff] }
 0x255   : > { %v8263_v60 = vpop.permute.xlu1 %2258  ;;  %v8275_v51 = vpop.permute.xlu0 %2273 }
 0x256   : > { %11822 = vst [vmem:[#allocation196_spill] sm:$0xff] %v8263_v60  ;;  %2770 = vperm.xlu1 %6979, %v2683_v36   ;;  %11823 = vst [vmem:[#allocation197_spill] sm:$0xff] %v8275_v51  ;;  %v810_v36 = vmul.f32 %v8261_v34, %v11824_v16  ;;  %v11825_v60 = vld [vmem:[#allocation16_spill] sm:$0xff]  ;;  %2785 = vperm.xlu0 %6978, %v2686_v19   ;;  %v816_v51 = vmul.f32 %v8261_v34, %v11829_v18 }
 0x257   : > { %v811_v30 = vmul.f32 %v8261_v34, %v11825_v60  ;;  %v2688_v60 = vld [vmem:[#allocation2 + $0x10a] sm:$0xff]  ;;  %v11833_v19 = vld [vmem:[#allocation28_spill] sm:$0xff] }
 0x258   : > { %v8301_v17 = vmul.f32 %v8261_v34, %v11833_v19  ;;  %v11835_v18 = vld [vmem:[#allocation32_spill] sm:$0xff] }
 0x259   : > { %v8293_v16 = vpop.permute.xlu1 %2268  ;;  %v8309_v13 = vmul.f32 %v8261_v34, %v11835_v18  ;;  %v11837_v19 = vld [vmem:[#allocation36_spill] sm:$0xff]  ;;  %v8332_v10 = vpop.permute.xlu0 %2283 }
 0x25a   : > { %11831 = vst [vmem:[#allocation14_spill] sm:$0xff] %v8293_v16  ;;  %2780 = vperm.xlu1 %6979, %v2685_v23   ;;  %v8318_v16 = vmul.f32 %v8261_v34, %v11836_v15  ;;  %v8322_v25 = vmul.f32 %v8261_v34, %v11837_v19  ;;  %v11839_v18 = vld [vmem:[#allocation40_spill] sm:$0xff]  ;;  %11840 = vst [vmem:[#allocation16_spill] sm:$0xff] %v8332_v10  ;;  %v11841_v23 = vld [vmem:[#allocation42_spill] sm:$0xff]  ;;  %2795 = vperm.xlu0 %6978, %v2688_v60  }
 0x25b   : > { %v8330_v11 = vmul.f32 %v8261_v34, %v11839_v18  ;;  %v8336_v8 = vmul.f32 %v8261_v34, %v11841_v23  ;;  %v11842_v15 = vld [vmem:[#allocation44_spill] sm:$0xff]  ;;  %v11843_v19 = vld [vmem:[#allocation46_spill] sm:$0xff]  ;;  %v8356_v23 = vmul.f32 %v8261_v34, %v11846_v61  ;;  %v8368_v60 = vmul.f32 %v8261_v34, %v11850_v58 }
 0x25c   : > { %v8340_v7 = vmul.f32 %v8261_v34, %v11842_v15  ;;  %v8344_v6 = vmul.f32 %v8261_v34, %v11843_v19  ;;  %v11845_v18 = vld [vmem:[#allocation50_spill] sm:$0xff]  ;;  %v8360_v15 = vmul.f32 %v8261_v34, %v11847_v3  ;;  %v1039_v19 = vmul.f32 %v8314_v24, %v11848_v2  ;;  %v11854_v61 = vld [vmem:[#allocation60_spill] sm:$0xff] }
 0x25d   : > { %v8352_v10 = vmul.f32 %v8261_v34, %v11845_v18  ;;  %v8364_v29 = vpop.permute.xlu1 %2278  ;;  %11851 = vst [vmem:[#allocation19_spill] sm:$0xff] %v8368_v60  ;;  %v11852_v18 = vld [vmem:[#allocation58_spill] sm:$0xff]  ;;  %v8376_v56 = vmul.f32 %v8261_v34, %v11854_v61  ;;  %v8386_v58 = vmul.f32 %v8261_v34, %v11859_v57  ;;  %v11861_v60 = vld [vmem:[#allocation75_spill] sm:$0xff]  ;;  %v8392_v61 = vpop.permute.xlu0 %2293  ;;  %v1042_v57 = vmul.f32 %v8314_v24, %v7784_v40  ;;  %v2692_v40 = vld [vmem:[#allocation2 + $0x13a] sm:$0xff] }
 0x25e   : > { %11849 = vst [vmem:[#allocation17_spill] sm:$0xff] %v8364_v29  ;;  %v8372_v62 = vmul.f32 %v8261_v34, %v11852_v18  ;;  %v11856_v3 = vld [vmem:[#allocation74_spill] sm:$0xff]  ;;  %2790 = vperm.xlu1 %6979, %v2687_v9   ;;  %v1040_v18 = vmul.f32 %v8314_v24, %v11861_v60  ;;  %11862 = vst [vmem:[#allocation28_spill] sm:$0xff] %v8392_v61  ;;  %v8396_v9 = vmul.f32 %v8261_v34, %v11863_v55  ;;  %v11868_v61 = vld [vmem:[#allocation71_spill] sm:$0xff] }
 0x25f   : > { %11855 = vst [vmem:[#allocation22_spill] sm:$0xff] %v8376_v56  ;;  %v1041_v59 = vmul.f32 %v8314_v24, %v11856_v3  ;;  %v11857_v2 = vld [vmem:[#allocation62_spill] sm:$0xff]  ;;  %11860 = vst [vmem:[#allocation26_spill] sm:$0xff] %v8386_v58  ;;  %v2689_v56 = vld [vmem:[#allocation2 + $0x112] sm:$0xff]  ;;  %v1045_v60 = vmul.f32 %v8314_v24, %v7787_v38  ;;  %2805 = vperm.xlu0 %6978, %v2690_v14   ;;  %v8414_v55 = vadd.f32 %v1039_v19, %v810_v36 }
 0x260   : > { %11853 = vst [vmem:[#allocation20_spill] sm:$0xff] %v8372_v62  ;;  %v8382_v29 = vmul.f32 %v8261_v34, %v11857_v2  ;;  %v1043_v62 = vmul.f32 %v8314_v24, %v7781_v37  ;;  %11864 = vst [vmem:[#allocation30_spill] sm:$0xff] %v8396_v9  ;;  %v11865_v3 = vld [vmem:[#allocation68_spill] sm:$0xff]  ;;  %v11867_v58 = vld [vmem:[#allocation69_spill] sm:$0xff]  ;;  %v1044_v38 = vmul.f32 %v8314_v24, %v7790_v0 }
 0x261   : > { %v8400_v2 = vmul.f32 %v8261_v34, %v11865_v3  ;;  %v8408_v37 = vmul.f32 %v8261_v34, %v11867_v58  ;;  %v11869_v9 = vld [vmem:[#allocation73_spill] sm:$0xff]  ;;  %v8422_v54 = vadd.f32 %v1041_v59, %v812_v21  ;;  %v1047_v14 = vmul.f32 %v8314_v24, %v7793_v26  ;;  %v8438_v21 = vpop.permute.xlu0 %2303  ;;  %v2691_v0 = vld [vmem:[#allocation2 + $0x12a] sm:$0xff] }
 0x262   : > { %11858 = vst [vmem:[#allocation24_spill] sm:$0xff] %v8382_v29  ;;  %v8412_v29 = vmul.f32 %v8261_v34, %v11868_v61  ;;  %v8418_v3 = vmul.f32 %v8261_v34, %v11869_v9  ;;  %v1046_v58 = vmul.f32 %v8314_v24, %v7796_v35  ;;  %2800 = vperm.xlu1 %6979, %v2689_v56   ;;  %11870 = vst [vmem:[#allocation34_spill] sm:$0xff] %v8438_v21  ;;  %v11957_v21 = vld [vmem:[#allocation112_spill] sm:$0xff] }
 0x263   : > { %11866 = vst [vmem:[#allocation32_spill] sm:$0xff] %v8400_v2  ;;  %v8420_v2 = vpop.permute.xlu1 %2288  ;;  %v8430_v36 = vadd.f32 %v1040_v18, %v811_v30  ;;  %v8432_v19 = vadd.f32 %v1043_v62, %v814_v20  ;;  %v1049_v34 = vmul.f32 %v8314_v24, %v7799_v27  ;;  %v1048_v59 = vmul.f32 %v8314_v24, %v7802_v28  ;;  %v2694_v30 = vld [vmem:[#allocation2 + $0x152] sm:$0xff] }
 0x264   : > { %v8440_v61 = vadd.f32 %v1042_v57, %v813_v22  ;;  %v8442_v26 = vadd.f32 %v1045_v60, %v816_v51  ;;  %v1051_v35 = vmul.f32 %v8314_v24, %v7805_v31  ;;  %v1050_v56 = vmul.f32 %v8314_v24, %v7808_v32  ;;  %2815 = vperm.xlu0 %6978, %v2692_v40   ;;  %v2696_v57 = vld [vmem:[#allocation2 + $0x16a] sm:$0xff]  ;;  %v11874_v60 = vld [vmem:[#allocation76_spill] sm:$0xff] }
 0x265   : > { %v1053_v27 = vmul.f32 %v8314_v24, %v7811_v33  ;;  %v1052_v28 = vmul.f32 %v8314_v24, %v7814_v39  ;;  %v1055_v62 = vmul.f32 %v8314_v24, %v7817_v41  ;;  %v1054_v22 = vmul.f32 %v8314_v24, %v7820_v42 }
 0x266   : > { %v8459_v31 = vadd.f32 %v1044_v38, %v8291_v1  ;;  %v8462_v32 = vadd.f32 %v1047_v14, %v8297_v4  ;;  %v8465_v33 = vadd.f32 %v1046_v58, %v8301_v17  ;;  %v1057_v39 = vmul.f32 %v8314_v24, %v7823_v43  ;;  %2810 = vperm.xlu1 %6979, %v2691_v0   ;;  %v8479_v4 = vpop.permute.xlu0 %2313  ;;  %v2693_v17 = vld [vmem:[#allocation2 + $0x142] sm:$0xff] }
 0x267   : > { %v8456_v20 = vpop.permute.xlu1 %2298  ;;  %v8470_v41 = vadd.f32 %v1049_v34, %v8305_v63  ;;  %v8473_v42 = vadd.f32 %v1048_v59, %v8309_v13  ;;  %v1056_v1 = vmul.f32 %v8314_v24, %v7826_v44  ;;  %v1059_v51 = vmul.f32 %v8314_v24, %v7829_v45  ;;  %11872 = vst [vmem:[#allocation38_spill] sm:$0xff] %v8479_v4  ;;  %v11877_v34 = vld [vmem:[#allocation78_spill] sm:$0xff] }
 0x268   : > { %11871 = vst [vmem:[#allocation36_spill] sm:$0xff] %v8456_v20  ;;  %v8482_v18 = vadd.f32 %v1051_v35, %v8318_v16  ;;  %v8485_v43 = vadd.f32 %v1050_v56, %v8322_v25  ;;  %v1058_v63 = vmul.f32 %v8314_v24, %v7832_v46  ;;  %v1061_v13 = vmul.f32 %v8314_v24, %v7835_v47  ;;  %v11879_v35 = vld [vmem:[#allocation80_spill] sm:$0xff]  ;;  %v11880_v56 = vld [vmem:[#allocation81_spill] sm:$0xff] }
 0x269   : > { %2825 = vperm.xlu0 %6978, %v2694_v30   ;;  %v8492_v44 = vadd.f32 %v1053_v27, %v8326_v12  ;;  %v8495_v45 = vadd.f32 %v1052_v28, %v8330_v11  ;;  %v8498_v9 = vadd.f32 %v1055_v62, %v8336_v8  ;;  %v8501_v16 = vadd.f32 %v1054_v22, %v8340_v7  ;;  %v8517_v7 = vld [vmem:[%s11821_s1 + $0x2] ss:$0 sm:$0xff]  ;;  %v11882_v28 = vld [vmem:[#allocation19_spill] sm:$0xff]  ;;  %v11883_v62 = vld [vmem:[#allocation20_spill] sm:$0xff] }
 0x26a   : > { %v8506_v46 = vadd.f32 %v1057_v39, %v8344_v6  ;;  %v1060_v47 = vmul.f32 %v8314_v24, %v7838_v48  ;;  %v1063_v12 = vmul.f32 %v8314_v24, %v7841_v49  ;;  %v1062_v11 = vmul.f32 %v8314_v24, %v7844_v50  ;;  %2820 = vperm.xlu1 %6979, %v2693_v17   ;;  %v8529_v40 = vpop.permute.xlu0 %2323  ;;  %v2695_v50 = vld [vmem:[#allocation2 + $0x15a] sm:$0xff]  ;;  %v11884_v30 = vld [vmem:[#allocation22_spill] sm:$0xff]  ;;  %v11886_v17 = vld [vmem:[#allocation24_spill] sm:$0xff] }
 0x26b   : > { %v8503_v25 = vpop.permute.xlu1 %2308  ;;  %v8520_v8 = vadd.f32 %v1056_v1, %v8348_v5  ;;  %v8523_v6 = vadd.f32 %v1059_v51, %v8352_v10  ;;  %v1065_v48 = vmul.f32 %v8314_v24, %v11874_v60  ;;  %v1064_v49 = vmul.f32 %v8314_v24, %v7850_v52  ;;  %11875 = vst [vmem:[#allocation42_spill] sm:$0xff] %v8529_v40  ;;  %v11876_v10 = vld [vmem:[#allocation77_spill] sm:$0xff]  ;;  %v11878_v52 = vld [vmem:[#allocation79_spill] sm:$0xff]  ;;  %v11885_v1 = vld [vmem:[#allocation82_spill] sm:$0xff] }
 0x26c   : > { %11873 = vst [vmem:[#allocation40_spill] sm:$0xff] %v8503_v25  ;;  %v8532_v38 = vadd.f32 %v1058_v63, %v8356_v23  ;;  %v8535_v14 = vadd.f32 %v1061_v13, %v8360_v15  ;;  %v1067_v5 = vmul.f32 %v8314_v24, %v7853_v53  ;;  %v1066_v58 = vmul.f32 %v8314_v24, %v11876_v10  ;;  %v11887_v13 = vld [vmem:[#allocation26_spill] sm:$0xff]  ;;  %v11889_v60 = vld [vmem:[#allocation84_spill] sm:$0xff]  ;;  %v11939_v40 = vld [vmem:[#allocation41_spill] sm:$0xff] }
 0x26d   : > { %2835 = vperm.xlu0 %6978, %v2696_v57   ;;  %v1069_v59 = vmul.f32 %v8314_v24, %v11877_v34  ;;  %v1068_v0 = vmul.f32 %v8314_v24, %v11878_v52  ;;  %v1300_v23 = vmul.f32 %v8517_v7, %v11879_v35  ;;  %v1070_v15 = vmul.f32 %v8314_v24, %v11880_v56  ;;  %v11888_v57 = vld [vmem:[#allocation83_spill] sm:$0xff]  ;;  %v11891_v34 = vld [vmem:[#allocation30_spill] sm:$0xff]  ;;  %v11892_v35 = vld [vmem:[#allocation32_spill] sm:$0xff] }
 0x26e   : > { %v8552_v53 = vadd.f32 %v1060_v47, %v11882_v28  ;;  %v8555_v22 = vadd.f32 %v1063_v12, %v11883_v62  ;;  %v8558_v39 = vadd.f32 %v1062_v11, %v11884_v30  ;;  %v1302_v51 = vmul.f32 %v8517_v7, %v11885_v1  ;;  %2830 = vperm.xlu1 %6979, %v2695_v50   ;;  %v8572_v10 = vpop.permute.xlu0 %2333  ;;  %v2697_v11 = vld [vmem:[#allocation2 + $0x172] sm:$0xff]  ;;  %v11895_v62 = vld [vmem:[#allocation113_spill] sm:$0xff] }
 0x26f   : > { %v8549_v27 = vpop.permute.xlu1 %2318  ;;  %v8563_v63 = vadd.f32 %v1065_v48, %v11886_v17  ;;  %v8566_v24 = vadd.f32 %v1064_v49, %v11887_v13  ;;  %v1301_v47 = vmul.f32 %v8517_v7, %v11888_v57  ;;  %v1304_v12 = vmul.f32 %v8517_v7, %v11889_v60  ;;  %11890 = vst [vmem:[#allocation46_spill] sm:$0xff] %v8572_v10  ;;  %v11893_v48 = vld [vmem:[#allocation85_spill] sm:$0xff]  ;;  %v11894_v49 = vld [vmem:[#allocation86_spill] sm:$0xff]  ;;  %v11897_v60 = vld [vmem:[#allocation87_spill] sm:$0xff] }
 0x270   : > { %11881 = vst [vmem:[#allocation44_spill] sm:$0xff] %v8549_v27  ;;  %v8575_v52 = vadd.f32 %v1067_v5, %v11891_v34  ;;  %v8578_v50 = vadd.f32 %v1066_v58, %v11892_v35  ;;  %v1303_v56 = vmul.f32 %v8517_v7, %v11893_v48  ;;  %v1306_v28 = vmul.f32 %v8517_v7, %v11894_v49  ;;  %v2700_v13 = vld [vmem:[#allocation2 + $0x19a] sm:$0xff] }
 0x271   : > { %2845 = vperm.xlu0 %6978, %v11895_v62   ;;  %v8586_v30 = vadd.f32 %v1069_v59, %v8408_v37  ;;  %v8589_v1 = vadd.f32 %v1068_v0, %v8412_v29  ;;  %v8592_v5 = vadd.f32 %v1300_v23, %v8414_v55  ;;  %v8595_v58 = vadd.f32 %v1070_v15, %v8418_v3  ;;  %v11898_v37 = vld [vmem:[#allocation88_spill] sm:$0xff]  ;;  %v11899_v29 = vld [vmem:[#allocation89_spill] sm:$0xff]  ;;  %v11900_v23 = vld [vmem:[#allocation90_spill] sm:$0xff] }
 0x272   : > { %v8600_v57 = vadd.f32 %v1302_v51, %v8422_v54  ;;  %v1305_v34 = vmul.f32 %v8517_v7, %v11897_v60  ;;  %v1308_v59 = vmul.f32 %v8517_v7, %v11898_v37  ;;  %v1307_v0 = vmul.f32 %v8517_v7, %v11899_v29  ;;  %2840 = vperm.xlu1 %6979, %v2697_v11   ;;  %v11901_v15 = vld [vmem:[#allocation91_spill] sm:$0xff]  ;;  %v8618_v35 = vpop.permute.xlu0 %2444  ;;  %v11902_v11 = vld [vmem:[#allocation92_spill] sm:$0xff] }
 0x273   : > { %v8597_v17 = vpop.permute.xlu1 %2328  ;;  %v8609_v55 = vadd.f32 %v1301_v47, %v8430_v36  ;;  %v8612_v3 = vadd.f32 %v1304_v12, %v8432_v19  ;;  %v1310_v54 = vmul.f32 %v8517_v7, %v11900_v23  ;;  %v1309_v51 = vmul.f32 %v8517_v7, %v11901_v15  ;;  %v11903_v47 = vld [vmem:[#allocation93_spill] sm:$0xff]  ;;  %v11904_v12 = vld [vmem:[#allocation94_spill] sm:$0xff]  ;;  %v11905_v60 = vld [vmem:[#allocation95_spill] sm:$0xff] }
 0x274   : > { %11896 = vst [vmem:[#allocation48_spill] sm:$0xff] %v8597_v17  ;;  %v8621_v48 = vadd.f32 %v1303_v56, %v8440_v61  ;;  %v8624_v49 = vadd.f32 %v1306_v28, %v8442_v26  ;;  %v1312_v36 = vmul.f32 %v8517_v7, %v11902_v11  ;;  %v1311_v19 = vmul.f32 %v8517_v7, %v11903_v47  ;;  %v11906_v29 = vld [vmem:[#allocation96_spill] sm:$0xff]  ;;  %v11909_v11 = vld [vmem:[#allocation117_spill] sm:$0xff] }
 0x275   : > { %2855 = vperm.xlu0 %6978, %v2700_v13   ;;  %v1314_v62 = vmul.f32 %v8517_v7, %v11904_v12  ;;  %v1313_v37 = vmul.f32 %v8517_v7, %v11905_v60  ;;  %v1316_v61 = vmul.f32 %v8517_v7, %v11906_v29  ;;  %v8639_v26 = vadd.f32 %v1305_v34, %v8459_v31  ;;  %v11908_v13 = vld [vmem:[#allocation97_spill] sm:$0xff]  ;;  %v3182_v47 = vld [vmem:[#allocation4] sm:$0xff]  ;;  %v11910_v31 = vld [vmem:[#allocation98_spill] sm:$0xff] }
 0x276   : > { %v8642_v28 = vadd.f32 %v1308_v59, %v8462_v32  ;;  %v8645_v23 = vadd.f32 %v1307_v0, %v8465_v33  ;;  %v1315_v15 = vmul.f32 %v8517_v7, %v11908_v13  ;;  %2850 = vperm.xlu1 %6979, %v11909_v11   ;;  %v8651_v12 = vadd.f32 %v1310_v54, %v8470_v41  ;;  %v11911_v32 = vld [vmem:[#allocation99_spill] sm:$0xff]  ;;  %v8660_v33 = vpop.permute.xlu0 %2454  ;;  %v2701_v0 = vld [vmem:[#allocation2 + $0x1a2] sm:$0xff]  ;;  %v11912_v41 = vld [vmem:[#allocation100_spill] sm:$0xff] }
 0x277   : > { %v8636_v56 = vpop.permute.xlu1 %2338  ;;  %v8654_v60 = vadd.f32 %v1309_v51, %v8473_v42  ;;  %v1318_v34 = vmul.f32 %v8517_v7, %v11910_v31  ;;  %v1317_v59 = vmul.f32 %v8517_v7, %v11911_v32  ;;  %v8663_v29 = vadd.f32 %v1312_v36, %v8482_v18  ;;  %v11913_v42 = vld [vmem:[#allocation101_spill] sm:$0xff] }
 0x278   : > { %11907 = vst [vmem:[#allocation50_spill] sm:$0xff] %v8636_v56  ;;  %v8666_v13 = vadd.f32 %v1311_v19, %v8485_v43  ;;  %v1320_v54 = vmul.f32 %v8517_v7, %v11912_v41  ;;  %v1319_v51 = vmul.f32 %v8517_v7, %v11913_v42  ;;  %v11546_v11 = vmov 1   ;;  %v11914_v43 = vld [vmem:[#allocation102_spill] sm:$0xff]  ;;  %v11915_v42 = vld [vmem:[#allocation103_spill] sm:$0xff]  ;;  %v11923_v17 = vld [vmem:[#allocation13_spill] sm:$0xff] }
 0x279   : > { %6980 = vset.pattern.permute.xlu0 %v11546_v11  ;;  %v8674_v31 = vadd.f32 %v1314_v62, %v8492_v44  ;;  %v8677_v32 = vadd.f32 %v1313_v37, %v8495_v45  ;;  %v8680_v18 = vadd.f32 %v1316_v61, %v8498_v9  ;;  %v1322_v36 = vmul.f32 %v8517_v7, %v11914_v43  ;;  %v11916_v44 = vld [vmem:[#allocation104_spill] sm:$0xff]  ;;  %v11917_v45 = vld [vmem:[#allocation105_spill] sm:$0xff]  ;;  %v8698_v9 = vld [vmem:[%s11821_s1 + $0x3] ss:$0 sm:$0xff] }
 0x27a   : > { %3245 = vperm.xlu0 %6980, %v3182_v47   ;;  %v8687_v41 = vadd.f32 %v1315_v15, %v8501_v16  ;;  %v1321_v11 = vmul.f32 %v8517_v7, %v11915_v42  ;;  %v1324_v62 = vmul.f32 %v8517_v7, %v11916_v44  ;;  %v1323_v37 = vmul.f32 %v8517_v7, %v11917_v45  ;;  %v11918_v15 = vld [vmem:[#allocation106_spill] sm:$0xff]  ;;  %v11919_v43 = vld [vmem:[#allocation107_spill] sm:$0xff]  ;;  %v8710_v44 = vpop.permute.xlu0 %2464 }
 0x27b   : > { %v8684_v19 = vpop.permute.xlu1 %2449  ;;  %2860 = vperm.xlu1 %6979, %v2701_v0   ;;  %v8701_v61 = vadd.f32 %v1318_v34, %v8506_v46  ;;  %v8704_v16 = vadd.f32 %v1317_v59, %v8520_v8  ;;  %v1326_v47 = vmul.f32 %v8517_v7, %v11918_v15  ;;  %v1325_v42 = vmul.f32 %v8517_v7, %v11919_v43  ;;  %v11920_v0 = vld [vmem:[#allocation10_spill] sm:$0xff]  ;;  %v11921_v34 = vld [vmem:[#allocation11_spill] sm:$0xff]  ;;  %v11922_v15 = vld [vmem:[#allocation12_spill] sm:$0xff] }
 0x27c   : > { %v8713_v45 = vadd.f32 %v1320_v54, %v8523_v6  ;;  %v8716_v56 = vadd.f32 %v1319_v51, %v8532_v38  ;;  %v1328_v46 = vmul.f32 %v8517_v7, %v11920_v0  ;;  %v1327_v8 = vmul.f32 %v8517_v7, %v11921_v34  ;;  %v11924_v6 = vld [vmem:[#allocation15_spill] sm:$0xff] }
 0x27d   : > { %v8723_v59 = vadd.f32 %v1322_v36, %v8535_v14  ;;  %v1330_v43 = vmul.f32 %v8517_v7, %v11922_v15  ;;  %v1329_v10 = vmul.f32 %v8517_v7, %v11923_v17  ;;  %v1561_v54 = vmul.f32 %v8698_v9, %v11924_v6  ;;  %v11925_v36 = vld [vmem:[#allocation108_spill] sm:$0xff]  ;;  %v11926_v6 = vld [vmem:[#allocation109_spill] sm:$0xff] }
 0x27e   : > { %v8734_v51 = vadd.f32 %v1321_v11, %v8552_v53  ;;  %v8737_v0 = vadd.f32 %v1324_v62, %v8555_v22  ;;  %v8740_v14 = vadd.f32 %v1323_v37, %v8558_v39  ;;  %v1331_v34 = vmul.f32 %v8517_v7, %v11925_v36  ;;  %v11927_v53 = vld [vmem:[#allocation18_spill] sm:$0xff]  ;;  %v8754_v22 = vpop.permute.xlu0 %2474  ;;  %v11929_v37 = vld [vmem:[#allocation21_spill] sm:$0xff] }
 0x27f   : > { %v8731_v38 = vpop.permute.xlu1 %2459  ;;  %v8745_v15 = vadd.f32 %v1326_v47, %v8563_v63  ;;  %v8748_v17 = vadd.f32 %v1325_v42, %v8566_v24  ;;  %v1563_v27 = vmul.f32 %v8698_v9, %v11926_v6  ;;  %v1562_v11 = vmul.f32 %v8698_v9, %v11927_v53  ;;  %v11928_v7 = vld [vmem:[#allocation110_spill] sm:$0xff]  ;;  %v11931_v6 = vld [vmem:[#allocation25_spill] sm:$0xff] }
 0x280   : > { %v8757_v39 = vadd.f32 %v1328_v46, %v8575_v52  ;;  %v8760_v62 = vadd.f32 %v1327_v8, %v8578_v50  ;;  %v1565_v63 = vmul.f32 %v8698_v9, %v11928_v7  ;;  %v1564_v24 = vmul.f32 %v8698_v9, %v11929_v37  ;;  %v11930_v52 = vld [vmem:[#allocation23_spill] sm:$0xff] }
 0x281   : > { %v8767_v47 = vadd.f32 %v1330_v43, %v8586_v30  ;;  %v8770_v42 = vadd.f32 %v1329_v10, %v8589_v1  ;;  %v8773_v36 = vadd.f32 %v1561_v54, %v8592_v5  ;;  %v1567_v46 = vmul.f32 %v8698_v9, %v11930_v52  ;;  %v11932_v7 = vld [vmem:[#allocation27_spill] sm:$0xff]  ;;  %v11933_v43 = vld [vmem:[#allocation29_spill] sm:$0xff] }
 0x282   : > { %v8780_v8 = vadd.f32 %v1331_v34, %v8595_v58  ;;  %v1566_v53 = vmul.f32 %v8698_v9, %v11931_v6  ;;  %v1569_v30 = vmul.f32 %v8698_v9, %v11932_v7  ;;  %v1568_v10 = vmul.f32 %v8698_v9, %v11933_v43  ;;  %v11934_v54 = vld [vmem:[#allocation31_spill] sm:$0xff]  ;;  %v11935_v58 = vld [vmem:[#allocation33_spill] sm:$0xff]  ;;  %v8798_v52 = vpop.permute.xlu0 %2484 }
 0x283   : > { %v8777_v50 = vpop.permute.xlu1 %2469  ;;  %v8789_v1 = vadd.f32 %v1563_v27, %v8600_v57  ;;  %v8792_v5 = vadd.f32 %v1562_v11, %v8609_v55  ;;  %v1571_v37 = vmul.f32 %v8698_v9, %v11934_v54  ;;  %v1570_v34 = vmul.f32 %v8698_v9, %v11935_v58  ;;  %v11936_v43 = vld [vmem:[#allocation35_spill] sm:$0xff]  ;;  %v11937_v57 = vld [vmem:[#allocation37_spill] sm:$0xff] }
 0x284   : > { %v8801_v6 = vadd.f32 %v1565_v63, %v8612_v3  ;;  %v8804_v7 = vadd.f32 %v1564_v24, %v8621_v48  ;;  %v1573_v27 = vmul.f32 %v8698_v9, %v11936_v43  ;;  %v1572_v55 = vmul.f32 %v8698_v9, %v11937_v57  ;;  %v11938_v54 = vld [vmem:[#allocation39_spill] sm:$0xff] }
 0x285   : > { %v8811_v11 = vadd.f32 %v1567_v46, %v8624_v49  ;;  %v1575_v58 = vmul.f32 %v8698_v9, %v11938_v54  ;;  %v1574_v25 = vmul.f32 %v8698_v9, %v11939_v40  ;;  %v11940_v3 = vld [vmem:[#allocation43_spill] sm:$0xff]  ;;  %v8822_v24 = vadd.f32 %v1566_v53, %v8639_v26  ;;  %v11941_v46 = vld [vmem:[#allocation45_spill] sm:$0xff] }
 0x286   : > { %v1577_v63 = vmul.f32 %v8698_v9, %v11940_v3  ;;  %v8825_v43 = vadd.f32 %v1569_v30, %v8642_v28  ;;  %v8828_v49 = vadd.f32 %v1568_v10, %v8645_v23  ;;  %v1576_v57 = vmul.f32 %v8698_v9, %v11941_v46  ;;  %v11942_v3 = vld [vmem:[#allocation47_spill] sm:$0xff]  ;;  %v11943_v26 = vld [vmem:[#allocation49_spill] sm:$0xff]  ;;  %v8842_v28 = vpop.permute.xlu0 %2494 }
 0x287   : > { %v8819_v48 = vpop.permute.xlu1 %2479  ;;  %v8833_v54 = vadd.f32 %v1571_v37, %v8651_v12  ;;  %v8836_v40 = vadd.f32 %v1570_v34, %v8654_v60  ;;  %v1579_v4 = vmul.f32 %v8698_v9, %v11942_v3  ;;  %v1578_v53 = vmul.f32 %v8698_v9, %v11943_v26  ;;  %v11944_v10 = vld [vmem:[#allocation51_spill] sm:$0xff]  ;;  %v11945_v37 = vld [vmem:[#allocation53_spill] sm:$0xff] }
 0x288   : > { %v8845_v23 = vadd.f32 %v1573_v27, %v8663_v29  ;;  %v8848_v30 = vadd.f32 %v1572_v55, %v8666_v13  ;;  %v1581_v12 = vmul.f32 %v8698_v9, %v11944_v10  ;;  %v1580_v60 = vmul.f32 %v8698_v9, %v11945_v37  ;;  %v11946_v29 = vld [vmem:[#allocation55_spill] sm:$0xff]  ;;  %v11948_v26 = vld [vmem:[#allocation57_spill] sm:$0xff] }
 0x289   : > { %v8855_v34 = vadd.f32 %v1575_v58, %v8674_v31  ;;  %v8858_v46 = vadd.f32 %v1574_v25, %v8677_v32  ;;  %v8861_v3 = vadd.f32 %v1577_v63, %v8680_v18  ;;  %v1583_v27 = vmul.f32 %v8698_v9, %v11946_v29  ;;  %v11949_v37 = vld [vmem:[#allocation59_spill] sm:$0xff]  ;;  %v11950_v58 = vld [vmem:[#allocation61_spill] sm:$0xff]  ;;  %v8879_v32 = vld [vmem:[%s11821_s1 + $0x4] ss:$0 sm:$0xff] }
 0x28a   : > { %v8868_v55 = vadd.f32 %v1576_v57, %v8687_v41  ;;  %v1582_v10 = vmul.f32 %v8698_v9, %v11948_v26  ;;  %v1585_v31 = vmul.f32 %v8698_v9, %v11949_v37  ;;  %v1584_v25 = vmul.f32 %v8698_v9, %v11950_v58  ;;  %v11951_v63 = vld [vmem:[#allocation63_spill] sm:$0xff]  ;;  %v11952_v29 = vld [vmem:[#allocation65_spill] sm:$0xff]  ;;  %v8891_v37 = vpop.permute.xlu0 %2504 }
 0x28b   : > { %v8865_v13 = vpop.permute.xlu1 %2489  ;;  %v8882_v18 = vadd.f32 %v1579_v4, %v8701_v61  ;;  %v8885_v41 = vadd.f32 %v1578_v53, %v8704_v16  ;;  %v1587_v57 = vmul.f32 %v8698_v9, %v11951_v63  ;;  %v1586_v26 = vmul.f32 %v8698_v9, %v11952_v29  ;;  %11953 = vst [vmem:[#allocation54_spill] sm:$0xff] %v8891_v37  ;;  %v11955_v61 = vld [vmem:[#allocation111_spill] sm:$0xff]  ;;  %v11956_v63 = vld [vmem:[#allocation70_spill] sm:$0xff] }
 0x28c   : > { %11947 = vst [vmem:[#allocation52_spill] sm:$0xff] %v8865_v13  ;;  %v8894_v58 = vadd.f32 %v1581_v12, %v8713_v45  ;;  %v8897_v20 = vadd.f32 %v1580_v60, %v8716_v56  ;;  %v11954_v13 = vld [vmem:[#allocation67_spill] sm:$0xff]  ;;  %v1588_v16 = vmul.f32 %v8698_v9, %v11955_v61  ;;  %v8904_v53 = vadd.f32 %v1583_v27, %v8723_v59  ;;  %v11958_v45 = vld [vmem:[#allocation114_spill] sm:$0xff] }
 0x28d   : > { %v1589_v4 = vmul.f32 %v8698_v9, %v11954_v13  ;;  %v1591_v29 = vmul.f32 %v8698_v9, %v11956_v63  ;;  %v1590_v37 = vmul.f32 %v8698_v9, %v11957_v21  ;;  %v1822_v12 = vmul.f32 %v8879_v32, %v11958_v45  ;;  %v11960_v27 = vld [vmem:[#allocation115_spill] sm:$0xff]  ;;  %v11961_v45 = vld [vmem:[#allocation116_spill] sm:$0xff] }
 0x28e   : > { %v8915_v60 = vadd.f32 %v1582_v10, %v8734_v51  ;;  %v8918_v13 = vadd.f32 %v1585_v31, %v8737_v0  ;;  %v8921_v59 = vadd.f32 %v1584_v25, %v8740_v14  ;;  %v1592_v61 = vmul.f32 %v8698_v9, %v11960_v27  ;;  %v11962_v51 = vld [vmem:[#allocation118_spill] sm:$0xff]  ;;  %v8935_v0 = vpop.permute.xlu0 %2514  ;;  %v11964_v9 = vld [vmem:[#allocation119_spill] sm:$0xff]  ;;  %v11965_v25 = vld [vmem:[#allocation120_spill] sm:$0xff] }
 0x28f   : > { %v8912_v56 = vpop.permute.xlu1 %2499  ;;  %v8926_v63 = vadd.f32 %v1587_v57, %v8745_v15  ;;  %v8929_v21 = vadd.f32 %v1586_v26, %v8748_v17  ;;  %v1823_v10 = vmul.f32 %v8879_v32, %v11962_v51  ;;  %11963 = vst [vmem:[#allocation56_spill] sm:$0xff] %v8935_v0  ;;  %v8938_v14 = vadd.f32 %v1589_v4, %v8757_v39  ;;  %v11966_v39 = vld [vmem:[#allocation121_spill] sm:$0xff]  ;;  %v11997_v0 = vld [vmem:[#allocation146_spill] sm:$0xff] }
 0x290   : > { %11959 = vst [vmem:[#allocation72_spill] sm:$0xff] %v8912_v56  ;;  %v1824_v56 = vmul.f32 %v8879_v32, %v11961_v45  ;;  %v8941_v31 = vadd.f32 %v1588_v16, %v8760_v62  ;;  %v1826_v15 = vmul.f32 %v8879_v32, %v11964_v9  ;;  %v1825_v17 = vmul.f32 %v8879_v32, %v11965_v25  ;;  %v11968_v45 = vld [vmem:[#allocation122_spill] sm:$0xff]  ;;  %v11969_v9 = vld [vmem:[#allocation123_spill] sm:$0xff] }
 0x291   : > { %v8948_v57 = vadd.f32 %v1591_v29, %v8767_v47  ;;  %v8951_v26 = vadd.f32 %v1590_v37, %v8770_v42  ;;  %v8954_v27 = vadd.f32 %v1822_v12, %v8773_v36  ;;  %v1828_v4 = vmul.f32 %v8879_v32, %v11966_v39  ;;  %v11970_v29 = vld [vmem:[#allocation124_spill] sm:$0xff]  ;;  %v11971_v12 = vld [vmem:[#allocation125_spill] sm:$0xff] }
 0x292   : > { %v8961_v16 = vadd.f32 %v1592_v61, %v8780_v8  ;;  %v1827_v51 = vmul.f32 %v8879_v32, %v11968_v45  ;;  %v1830_v47 = vmul.f32 %v8879_v32, %v11969_v9  ;;  %v1829_v42 = vmul.f32 %v8879_v32, %v11970_v29  ;;  %v11972_v8 = vld [vmem:[#allocation126_spill] sm:$0xff]  ;;  %v8979_v39 = vpop.permute.xlu0 %2524  ;;  %v11974_v29 = vld [vmem:[#allocation127_spill] sm:$0xff] }
 0x293   : > { %v8958_v62 = vpop.permute.xlu1 %2509  ;;  %v8970_v36 = vadd.f32 %v1824_v56, %v8789_v1  ;;  %v8973_v37 = vadd.f32 %v1823_v10, %v8792_v5  ;;  %v1832_v25 = vmul.f32 %v8879_v32, %v11971_v12  ;;  %v1831_v61 = vmul.f32 %v8879_v32, %v11972_v8  ;;  %11973 = vst [vmem:[#allocation60_spill] sm:$0xff] %v8979_v39  ;;  %v11975_v56 = vld [vmem:[#allocation128_spill] sm:$0xff]  ;;  %v11976_v12 = vld [vmem:[#allocation129_spill] sm:$0xff] }
 0x294   : > { %11967 = vst [vmem:[#allocation58_spill] sm:$0xff] %v8958_v62  ;;  %v8982_v45 = vadd.f32 %v1826_v15, %v8801_v6  ;;  %v8985_v9 = vadd.f32 %v1825_v17, %v8804_v7  ;;  %v1834_v1 = vmul.f32 %v8879_v32, %v11974_v29  ;;  %v1833_v5 = vmul.f32 %v8879_v32, %v11975_v56  ;;  %v11977_v62 = vld [vmem:[#allocation130_spill] sm:$0xff]  ;;  %v11978_v6 = vld [vmem:[#allocation131_spill] sm:$0xff] }
 0x295   : > { %v8992_v10 = vadd.f32 %v1828_v4, %v8811_v11  ;;  %v1836_v8 = vmul.f32 %v8879_v32, %v11976_v12  ;;  %v1835_v39 = vmul.f32 %v8879_v32, %v11977_v62  ;;  %v1838_v15 = vmul.f32 %v8879_v32, %v11978_v6  ;;  %v11980_v4 = vld [vmem:[#allocation132_spill] sm:$0xff]  ;;  %v11981_v6 = vld [vmem:[#allocation133_spill] sm:$0xff] }
 0x296   : > { %v9003_v17 = vadd.f32 %v1827_v51, %v8822_v24  ;;  %v9006_v29 = vadd.f32 %v1830_v47, %v8825_v43  ;;  %v9009_v11 = vadd.f32 %v1829_v42, %v8828_v49  ;;  %v1837_v56 = vmul.f32 %v8879_v32, %v11980_v4  ;;  %v11982_v24 = vld [vmem:[#allocation134_spill] sm:$0xff]  ;;  %v9023_v43 = vpop.permute.xlu0 %2534  ;;  %v11984_v42 = vld [vmem:[#allocation135_spill] sm:$0xff] }
 0x297   : > { %v9000_v7 = vpop.permute.xlu1 %2519  ;;  %v9014_v12 = vadd.f32 %v1832_v25, %v8833_v54  ;;  %v9017_v62 = vadd.f32 %v1831_v61, %v8836_v40  ;;  %v1839_v51 = vmul.f32 %v8879_v32, %v11982_v24  ;;  %11983 = vst [vmem:[#allocation62_spill] sm:$0xff] %v9023_v43  ;;  %v9026_v49 = vadd.f32 %v1834_v1, %v8845_v23  ;;  %v11985_v25 = vld [vmem:[#allocation136_spill] sm:$0xff]  ;;  %v11986_v23 = vld [vmem:[#allocation137_spill] sm:$0xff]  ;;  %v11988_v24 = vld [vmem:[#allocation138_spill] sm:$0xff] }
 0x298   : > { %11979 = vst [vmem:[#allocation74_spill] sm:$0xff] %v9000_v7  ;;  %v1840_v7 = vmul.f32 %v8879_v32, %v11981_v6  ;;  %v9029_v47 = vadd.f32 %v1833_v5, %v8848_v30  ;;  %v1842_v54 = vmul.f32 %v8879_v32, %v11984_v42  ;;  %v1841_v40 = vmul.f32 %v8879_v32, %v11985_v25  ;;  %v11989_v25 = vld [vmem:[#allocation139_spill] sm:$0xff] }
 0x299   : > { %v9036_v61 = vadd.f32 %v1836_v8, %v8855_v34  ;;  %v9039_v4 = vadd.f32 %v1835_v39, %v8858_v46  ;;  %v9042_v6 = vadd.f32 %v1838_v15, %v8861_v3  ;;  %v1844_v1 = vmul.f32 %v8879_v32, %v11986_v23  ;;  %v11990_v8 = vld [vmem:[#allocation140_spill] sm:$0xff]  ;;  %v9060_v3 = vld [vmem:[%s11821_s1 + $0x5] ss:$0 sm:$0xff]  ;;  %v11991_v15 = vld [vmem:[#allocation141_spill] sm:$0xff] }
 0x29a   : > { %v9049_v5 = vadd.f32 %v1837_v56, %v8868_v55  ;;  %v1843_v42 = vmul.f32 %v8879_v32, %v11988_v24  ;;  %v1846_v34 = vmul.f32 %v8879_v32, %v11989_v25  ;;  %v1845_v46 = vmul.f32 %v8879_v32, %v11990_v8  ;;  %v11992_v23 = vld [vmem:[#allocation142_spill] sm:$0xff]  ;;  %v9072_v25 = vpop.permute.xlu0 %2544  ;;  %v11994_v43 = vld [vmem:[#allocation143_spill] sm:$0xff] }
 0x29b   : > { %v9046_v30 = vpop.permute.xlu1 %2529  ;;  %v9063_v39 = vadd.f32 %v1840_v7, %v8882_v18  ;;  %v9066_v55 = vadd.f32 %v1839_v51, %v8885_v41  ;;  %v1848_v56 = vmul.f32 %v8879_v32, %v11991_v15  ;;  %v1847_v24 = vmul.f32 %v8879_v32, %v11992_v23  ;;  %11993 = vst [vmem:[#allocation75_spill] sm:$0xff] %v9072_v25  ;;  %v11995_v7 = vld [vmem:[#allocation144_spill] sm:$0xff]  ;;  %v11996_v15 = vld [vmem:[#allocation145_spill] sm:$0xff] }
 0x29c   : > { %11987 = vst [vmem:[#allocation64_spill] sm:$0xff] %v9046_v30  ;;  %v9075_v8 = vadd.f32 %v1842_v54, %v8894_v58  ;;  %v9078_v30 = vadd.f32 %v1841_v40, %v8897_v20  ;;  %v1850_v18 = vmul.f32 %v8879_v32, %v11994_v43  ;;  %v1849_v41 = vmul.f32 %v8879_v32, %v11995_v7  ;;  %v11998_v58 = vld [vmem:[#allocation147_spill] sm:$0xff] }
 0x29d   : > { %v9085_v51 = vadd.f32 %v1844_v1, %v8904_v53  ;;  %v1852_v23 = vmul.f32 %v8879_v32, %v11996_v15  ;;  %v1851_v25 = vmul.f32 %v8879_v32, %v11997_v0  ;;  %v2083_v54 = vmul.f32 %v9060_v3, %v11998_v58  ;;  %v12000_v1 = vld [vmem:[#allocation148_spill] sm:$0xff]  ;;  %v12001_v58 = vld [vmem:[#allocation149_spill] sm:$0xff] }
 0x29e   : > { %v9096_v40 = vadd.f32 %v1843_v42, %v8915_v60  ;;  %v9099_v43 = vadd.f32 %v1846_v34, %v8918_v13  ;;  %v9102_v53 = vadd.f32 %v1845_v46, %v8921_v59  ;;  %v1853_v7 = vmul.f32 %v8879_v32, %v12000_v1  ;;  %v12002_v60 = vld [vmem:[#allocation150_spill] sm:$0xff]  ;;  %v9116_v13 = vpop.permute.xlu0 %2554  ;;  %v12004_v32 = vld [vmem:[#allocation151_spill] sm:$0xff]  ;;  %v12005_v46 = vld [vmem:[#allocation152_spill] sm:$0xff] }
 0x29f   : > { %v9093_v20 = vpop.permute.xlu1 %2539  ;;  %v9107_v15 = vadd.f32 %v1848_v56, %v8926_v63  ;;  %v9110_v0 = vadd.f32 %v1847_v24, %v8929_v21  ;;  %v2084_v42 = vmul.f32 %v9060_v3, %v12002_v60  ;;  %12003 = vst [vmem:[#allocation68_spill] sm:$0xff] %v9116_v13  ;;  %v9119_v59 = vadd.f32 %v1850_v18, %v8938_v14  ;;  %v12006_v14 = vld [vmem:[#allocation153_spill] sm:$0xff]  ;;  %v12042_v13 = vld [vmem:[#allocation182_spill] sm:$0xff] }
 0x2a0   : > { %11999 = vst [vmem:[#allocation66_spill] sm:$0xff] %v9093_v20  ;;  %v2085_v20 = vmul.f32 %v9060_v3, %v12001_v58  ;;  %v9122_v34 = vadd.f32 %v1849_v41, %v8941_v31  ;;  %v2087_v63 = vmul.f32 %v9060_v3, %v12004_v32  ;;  %v2086_v21 = vmul.f32 %v9060_v3, %v12005_v46  ;;  %v12009_v58 = vld [vmem:[#allocation154_spill] sm:$0xff]  ;;  %v12010_v32 = vld [vmem:[#allocation155_spill] sm:$0xff] }
 0x2a1   : > { %v9129_v56 = vadd.f32 %v1852_v23, %v8948_v57  ;;  %v9132_v24 = vadd.f32 %v1851_v25, %v8951_v26  ;;  %v9135_v1 = vadd.f32 %v2083_v54, %v8954_v27  ;;  %v2089_v18 = vmul.f32 %v9060_v3, %v12006_v14  ;;  %v12011_v23 = vld [vmem:[#allocation156_spill] sm:$0xff]  ;;  %v12012_v54 = vld [vmem:[#allocation157_spill] sm:$0xff] }
 0x2a2   : > { %v9142_v41 = vadd.f32 %v1853_v7, %v8961_v16  ;;  %v2088_v60 = vmul.f32 %v9060_v3, %v12009_v58  ;;  %v2091_v57 = vmul.f32 %v9060_v3, %v12010_v32  ;;  %v2090_v26 = vmul.f32 %v9060_v3, %v12011_v23  ;;  %v12013_v16 = vld [vmem:[#allocation158_spill] sm:$0xff]  ;;  %v9160_v14 = vpop.permute.xlu0 %2564  ;;  %v12015_v23 = vld [vmem:[#allocation159_spill] sm:$0xff] }
 0x2a3   : > { %v9139_v31 = vpop.permute.xlu1 %2549  ;;  %v9151_v27 = vadd.f32 %v2085_v20, %v8970_v36  ;;  %v9154_v25 = vadd.f32 %v2084_v42, %v8973_v37  ;;  %v2093_v46 = vmul.f32 %v9060_v3, %v12012_v54  ;;  %v2092_v7 = vmul.f32 %v9060_v3, %v12013_v16  ;;  %12014 = vst [vmem:[#allocation73_spill] sm:$0xff] %v9160_v14  ;;  %v12016_v20 = vld [vmem:[#allocation160_spill] sm:$0xff]  ;;  %v12017_v54 = vld [vmem:[#allocation161_spill] sm:$0xff] }
 0x2a4   : > { %12007 = vst [vmem:[#allocation69_spill] sm:$0xff] %v9139_v31  ;;  %12008 = vst [vmem:[#allocation71_spill] sm:$0xff] %v9142_v41  ;;  %v9163_v58 = vadd.f32 %v2087_v63, %v8982_v45  ;;  %v9166_v32 = vadd.f32 %v2086_v21, %v8985_v9  ;;  %v2095_v36 = vmul.f32 %v9060_v3, %v12015_v23  ;;  %v12018_v41 = vld [vmem:[#allocation162_spill] sm:$0xff]  ;;  %v12019_v45 = vld [vmem:[#allocation163_spill] sm:$0xff] }
 0x2a5   : > { %v2094_v37 = vmul.f32 %v9060_v3, %v12016_v20  ;;  %v9173_v42 = vadd.f32 %v2089_v18, %v8992_v10  ;;  %v2097_v16 = vmul.f32 %v9060_v3, %v12017_v54  ;;  %v2096_v14 = vmul.f32 %v9060_v3, %v12018_v41  ;;  %v12021_v18 = vld [vmem:[#allocation164_spill] sm:$0xff]  ;;  %v12038_v31 = vld [vmem:[#allocation178_spill] sm:$0xff] }
 0x2a6   : > { %v2099_v63 = vmul.f32 %v9060_v3, %v12019_v45  ;;  %v9184_v21 = vadd.f32 %v2088_v60, %v9003_v17  ;;  %v9187_v23 = vadd.f32 %v2091_v57, %v9006_v29  ;;  %v9190_v10 = vadd.f32 %v2090_v26, %v9009_v11  ;;  %v12022_v45 = vld [vmem:[#allocation165_spill] sm:$0xff]  ;;  %v12023_v17 = vld [vmem:[#allocation166_spill] sm:$0xff]  ;;  %v9204_v29 = vpop.permute.xlu0 %2574  ;;  %v12025_v26 = vld [vmem:[#allocation167_spill] sm:$0xff] }
 0x2a7   : > { %v9181_v9 = vpop.permute.xlu1 %2559  ;;  %v2098_v20 = vmul.f32 %v9060_v3, %v12021_v18  ;;  %v9195_v54 = vadd.f32 %v2093_v46, %v9014_v12  ;;  %v9198_v41 = vadd.f32 %v2092_v7, %v9017_v62  ;;  %v2100_v60 = vmul.f32 %v9060_v3, %v12023_v17  ;;  %12024 = vst [vmem:[#allocation77_spill] sm:$0xff] %v9204_v29  ;;  %v12026_v46 = vld [vmem:[#allocation168_spill] sm:$0xff]  ;;  %v12029_v17 = vld [vmem:[#allocation170_spill] sm:$0xff]  ;;  %v12035_v29 = vld [vmem:[#allocation175_spill] sm:$0xff] }
 0x2a8   : > { %12020 = vst [vmem:[#allocation76_spill] sm:$0xff] %v9181_v9  ;;  %v2101_v9 = vmul.f32 %v9060_v3, %v12022_v45  ;;  %v9207_v11 = vadd.f32 %v2095_v36, %v9026_v49  ;;  %v9210_v57 = vadd.f32 %v2094_v37, %v9029_v47  ;;  %v2103_v12 = vmul.f32 %v9060_v3, %v12025_v26  ;;  %v12027_v49 = vld [vmem:[#allocation169_spill] sm:$0xff] }
 0x2a9   : > { %v2102_v62 = vmul.f32 %v9060_v3, %v12026_v46  ;;  %v9217_v7 = vadd.f32 %v2097_v16, %v9036_v61  ;;  %v9220_v18 = vadd.f32 %v2096_v14, %v9039_v4  ;;  %v9223_v45 = vadd.f32 %v2099_v63, %v9042_v6  ;;  %v12030_v46 = vld [vmem:[#allocation171_spill] sm:$0xff]  ;;  %v12031_v16 = vld [vmem:[#allocation172_spill] sm:$0xff]  ;;  %v9241_v6 = vld [vmem:[%s11821_s1 + $0x6] ss:$0 sm:$0xff] }
 0x2aa   : > { %v2105_v36 = vmul.f32 %v9060_v3, %v12027_v49  ;;  %v9230_v37 = vadd.f32 %v2098_v20, %v9049_v5  ;;  %v2104_v26 = vmul.f32 %v9060_v3, %v12029_v17  ;;  %v2107_v61 = vmul.f32 %v9060_v3, %v12030_v46  ;;  %v12032_v63 = vld [vmem:[#allocation173_spill] sm:$0xff]  ;;  %v12033_v49 = vld [vmem:[#allocation174_spill] sm:$0xff]  ;;  %v9253_v46 = vpop.permute.xlu0 %2584 }
 0x2ab   : > { %v9227_v47 = vpop.permute.xlu1 %2569  ;;  %v2106_v4 = vmul.f32 %v9060_v3, %v12031_v16  ;;  %v9244_v14 = vadd.f32 %v2101_v9, %v9063_v39  ;;  %v9247_v5 = vadd.f32 %v2100_v60, %v9066_v55  ;;  %v2109_v20 = vmul.f32 %v9060_v3, %v12032_v63  ;;  %12034 = vst [vmem:[#allocation79_spill] sm:$0xff] %v9253_v46  ;;  %v12036_v9 = vld [vmem:[#allocation176_spill] sm:$0xff]  ;;  %v12037_v63 = vld [vmem:[#allocation177_spill] sm:$0xff] }
 0x2ac   : > { %12028 = vst [vmem:[#allocation78_spill] sm:$0xff] %v9227_v47  ;;  %v2108_v17 = vmul.f32 %v9060_v3, %v12033_v49  ;;  %v9256_v16 = vadd.f32 %v2103_v12, %v9075_v8  ;;  %v9259_v47 = vadd.f32 %v2102_v62, %v9078_v30  ;;  %v2111_v39 = vmul.f32 %v9060_v3, %v12035_v29  ;;  %v12039_v8 = vld [vmem:[#allocation179_spill] sm:$0xff]  ;;  %v9277_v30 = vld [vmem:[%s11821_s1 + $0x7] ss:$0 sm:$0xff] }
 0x2ad   : > { %v2110_v55 = vmul.f32 %v9060_v3, %v12036_v9  ;;  %v9266_v60 = vadd.f32 %v2105_v36, %v9085_v51  ;;  %v2113_v49 = vmul.f32 %v9060_v3, %v12037_v63  ;;  %v2112_v46 = vmul.f32 %v9060_v3, %v12038_v31  ;;  %v12041_v31 = vld [vmem:[#allocation181_spill] sm:$0xff] }
 0x2ae   : > { %v2345_v12 = vmul.f32 %v9241_v6, %v12039_v8  ;;  %v9282_v62 = vadd.f32 %v2104_v26, %v9096_v40  ;;  %v9285_v51 = vadd.f32 %v2107_v61, %v9099_v43  ;;  %v9288_v36 = vadd.f32 %v2106_v4, %v9102_v53  ;;  %v12043_v40 = vld [vmem:[#allocation183_spill] sm:$0xff]  ;;  %v9302_v43 = vpop.permute.xlu0 %2594  ;;  %v12044_v4 = vld [vmem:[#allocation184_spill] sm:$0xff] }
 0x2af   : > { %v9279_v29 = vpop.permute.xlu1 %2579  ;;  %v2347_v9 = vmul.f32 %v9241_v6, %v12041_v31  ;;  %v9293_v63 = vadd.f32 %v2109_v20, %v9107_v15  ;;  %v9296_v8 = vadd.f32 %v2108_v17, %v9110_v0  ;;  %v2349_v26 = vmul.f32 %v9241_v6, %v12043_v40  ;;  %v12046_v31 = vld [vmem:[#allocation185_spill] sm:$0xff] }
 0x2b0   : > { %12040 = vst [vmem:[#allocation80_spill] sm:$0xff] %v9279_v29  ;;  %v2346_v29 = vmul.f32 %v9241_v6, %v12042_v13  ;;  %v9305_v53 = vadd.f32 %v2111_v39, %v9119_v59  ;;  %v9308_v61 = vadd.f32 %v2110_v55, %v9122_v34  ;;  %v2348_v15 = vmul.f32 %v9241_v6, %v12044_v4  ;;  %v9328_v34 = vld [vmem:[%s11821_s1 + $0x8] ss:$0 sm:$0xff]  ;;  %v12048_v55 = vld [vmem:[#allocation180_spill] sm:$0xff]  ;;  %s6644_s1 = scalar_lea.sflag [#allocation8], %s485_s0 }
 0x2b1   : > { %v2606_v0 = vmul.f32 %v9277_v30, %v8618_v35  ;;  %v9315_v20 = vadd.f32 %v2113_v49, %v9129_v56  ;;  %v9318_v13 = vadd.f32 %v2112_v46, %v9132_v24  ;;  %v2377_v17 = vadd.f32 %v2345_v12, %v9135_v1  ;;  %v12050_v24 = vld [vmem:[#allocation186_spill] sm:$0xff]  ;;  %v12051_v1 = vld [vmem:[#allocation187_spill] sm:$0xff]  ;;  %v12052_v4 = vld [vmem:[#allocation188_spill] sm:$0xff] }
 0x2b2   : > { %v2351_v59 = vmul.f32 %v9241_v6, %v12046_v31  ;;  %v9332_v35 = vmul.f32 %v9060_v3, %v12048_v55  ;;  %v2379_v56 = vadd.f32 %v2347_v9, %v9151_v27  ;;  %v2350_v46 = vmul.f32 %v9241_v6, %v12050_v24  ;;  %v2706_v3 = vpop.permute.xlu0 %2705 }
 0x2b3   : > { %12045 = vst [vmem:[#allocation81_spill] sm:$0xff] %v9318_v13  ;;  %v9323_v39 = vpop.permute.xlu1 %2589  ;;  %v2353_v49 = vmul.f32 %v9241_v6, %v12051_v1  ;;  %v2378_v12 = vadd.f32 %v2346_v29, %v9154_v25  ;;  %v2381_v40 = vadd.f32 %v2349_v26, %v9163_v58  ;;  %v2352_v31 = vmul.f32 %v9241_v6, %v12052_v4  ;;  %v12053_v13 = vld [vmem:[#allocation189_spill] sm:$0xff]  ;;  %v12054_v25 = vld [vmem:[#allocation190_spill] sm:$0xff]  ;;  %v12055_v29 = vld [vmem:[#allocation191_spill] sm:$0xff] }
 0x2b4   : > { %12047 = vst [vmem:[#allocation19_spill] sm:$0xff] %v9323_v39  ;;  %12049 = vst [vmem:[#allocation20_spill] sm:$0xff] %v9332_v35  ;;  %v2355_v39 = vmul.f32 %v9241_v6, %v12053_v13  ;;  %v2380_v55 = vadd.f32 %v2348_v15, %v9166_v32  ;;  %v2638_v27 = vadd.f32 %v2606_v0, %v2377_v17  ;;  %v12056_v4 = vld [vmem:[#allocation192_spill] sm:$0xff]  ;;  %v9359_v32 = vld [vmem:[%s12057_s2] ss:$0 sm:$0xff]  ;;  %s7058_s2 = scalar_lea.vmem %s6657_s30, 16 }
 0x2b5   : > { %v2608_v9 = vmul.f32 %v9277_v30, %v8660_v33  ;;  %v2867_v24 = vmul.f32 %v9328_v34, %v2706_v3  ;;  %v2383_v1 = vadd.f32 %v2351_v59, %v9173_v42  ;;  %v2354_v58 = vmul.f32 %v9241_v6, %v12054_v25  ;;  %v12059_v25 = vld [vmem:[#allocation193_spill] sm:$0xff]  ;;  %p7059_p11 = scmp.ne.s32.totalorder %s6657_s30, %s7058_s2 }
 0x2b6   : > { %v2357_v26 = vmul.f32 %v9241_v6, %v12055_v29  ;;  %v2356_v13 = vmul.f32 %v9241_v6, %v12056_v4  ;;  %v2382_v33 = vadd.f32 %v2350_v46, %v9184_v21  ;;  %v2385_v42 = vadd.f32 %v2353_v49, %v9187_v23  ;;  %v12060_v4 = vld [vmem:[#allocation194_spill] sm:$0xff]  ;;  %v2716_v35 = vpop.permute.xlu0 %2715 }
 0x2b7   : > { %v9361_v15 = vpop.permute.xlu1 %2599  ;;  %v2607_v0 = vmul.f32 %v9277_v30, %v8684_v19  ;;  %v2899_v17 = vadd.f32 %v2867_v24, %v2638_v27  ;;  %v9368_v59 = vadd.f32 %v2352_v31, %v9190_v10  ;;  %v9371_v3 = vadd.f32 %v2355_v39, %v9195_v54  ;;  %p7060_p12 = pnand %p7059_p11, %p7245_p5 }
 0x2b8   : > { %12058 = vst [vmem:[#allocation22_spill] sm:$0xff] %v9361_v15  ;;  %v2359_v29 = vmul.f32 %v9241_v6, %v12059_v25  ;;  %v2358_v15 = vmul.f32 %v9241_v6, %v12060_v4  ;;  %v2640_v21 = vadd.f32 %v2608_v9, %v2379_v56  ;;  %v2610_v23 = vmul.f32 %v9277_v30, %v8710_v44 }
 0x2b9   : > { %v2938_v19 = vadd.f32 %v9359_v32, %v2899_v17  ;;  %v2869_v46 = vmul.f32 %v9328_v34, %v2716_v35  ;;  %v9382_v10 = vadd.f32 %v2354_v58, %v9198_v41  ;;  %v9385_v54 = vadd.f32 %v2357_v26, %v9207_v11  ;;  %v12061_v11 = vld [vmem:[#allocation195_spill] sm:$0xff]  ;;  %p7061_p13 = pneg %p7060_p12 }
 0x2ba   : > { %v9388_v39 = vadd.f32 %v2356_v13, %v9210_v57  ;;  %v2609_v49 = vmul.f32 %v9277_v30, %v8731_v38  ;;  %v2639_v31 = vadd.f32 %v2607_v0, %v2378_v12  ;;  %v9394_v35 = vadd.f32 %v2359_v29, %v9217_v7  ;;  %v2726_v58 = vpop.permute.xlu0 %2725  ;;  %v12062_v7 = vld [vmem:[#allocation196_spill] sm:$0xff] }
 0x2bb   : > { %v2711_v56 = vpop.permute.xlu1 %2710  ;;  %v2970_v27 = vmax.f32 %v2938_v19, 0.0  ;;  %v2901_v44 = vadd.f32 %v2869_v46, %v2640_v21  ;;  %v9397_v41 = vadd.f32 %v2358_v15, %v9220_v18  ;;  %v2361_v24 = vmul.f32 %v9241_v6, %v12061_v11  ;;  %v12063_v18 = vld [vmem:[#allocation197_spill] sm:$0xff]  ;;  %v12064_v19 = vld [vmem:[#allocation14_spill] sm:$0xff] }
 0x2bc   : > { %v2868_v9 = vmul.f32 %v9328_v34, %v2711_v56  ;;  %v2612_v57 = vmul.f32 %v9277_v30, %v8754_v22  ;;  %v2642_v38 = vadd.f32 %v2610_v23, %v2381_v40  ;;  %v2871_v13 = vmul.f32 %v9328_v34, %v2726_v58 }
 0x2bd   : > { %3003 = vst.msk [vmem:[#allocation3] sm:$0xff] %vm3002_vm2, %v2970_v27  ;;  %v2940_v12 = vadd.f32 %v9359_v32, %v2901_v44  ;;  %v2360_v0 = vmul.f32 %v9241_v6, %v12062_v7  ;;  %v2363_v15 = vmul.f32 %v9241_v6, %v12063_v18  ;;  %v2641_v17 = vadd.f32 %v2609_v49, %v2380_v55 }
 0x2be   : > { %v2900_v26 = vadd.f32 %v2868_v9, %v2639_v31  ;;  %v2611_v25 = vmul.f32 %v9277_v30, %v8777_v50  ;;  %v2903_v4 = vadd.f32 %v2871_v13, %v2642_v38  ;;  %v9415_v23 = vadd.f32 %v2361_v24, %v9223_v45  ;;  %v2736_v49 = vpop.permute.xlu0 %2735 }
 0x2bf   : > { %v2721_v22 = vpop.permute.xlu1 %2720  ;;  %v2972_v29 = vmax.f32 %v2940_v12, 0.0  ;;  %v2362_v46 = vmul.f32 %v9241_v6, %v12064_v19  ;;  %v2644_v56 = vadd.f32 %v2612_v57, %v2383_v1  ;;  %v2614_v55 = vmul.f32 %v9277_v30, %v8798_v52  ;;  %v12068_v19 = vld [vmem:[#allocation34_spill] sm:$0xff] }
 0x2c0   : > { %v2939_v40 = vadd.f32 %v9359_v32, %v2900_v26  ;;  %v2870_v21 = vmul.f32 %v9328_v34, %v2721_v22  ;;  %v2942_v31 = vadd.f32 %v9359_v32, %v2903_v4  ;;  %v2873_v44 = vmul.f32 %v9328_v34, %v2736_v49 }
 0x2c1   : > { %3005 = vst.msk [vmem:[#allocation3 + $0x10] sm:$0xff] %vm3002_vm2, %v2972_v29  ;;  %v9425_v9 = vadd.f32 %v2360_v0, %v9230_v37  ;;  %v9428_v45 = vadd.f32 %v2363_v15, %v9244_v14  ;;  %v2643_v11 = vadd.f32 %v2611_v25, %v2382_v33  ;;  %v2613_v1 = vmul.f32 %v9277_v30, %v8819_v48  ;;  %v12065_v37 = vld [vmem:[#allocation16_spill] sm:$0xff]  ;;  %v12066_v15 = vld [vmem:[#allocation17_spill] sm:$0xff] }
 0x2c2   : > { %v2971_v50 = vmax.f32 %v2939_v40, 0.0  ;;  %v2902_v27 = vadd.f32 %v2870_v21, %v2641_v17  ;;  %v2974_v24 = vmax.f32 %v2942_v31, 0.0  ;;  %v2905_v58 = vadd.f32 %v2873_v44, %v2644_v56  ;;  %v2746_v48 = vpop.permute.xlu0 %2745  ;;  %v12067_v17 = vld [vmem:[#allocation28_spill] sm:$0xff] }
 0x2c3   : > { %v2731_v52 = vpop.permute.xlu1 %2730  ;;  %v9436_v12 = vadd.f32 %v2362_v46, %v9247_v5  ;;  %v2365_v14 = vmul.f32 %v9241_v6, %v12065_v37  ;;  %v2646_v26 = vadd.f32 %v2614_v55, %v2385_v42  ;;  %v2616_v33 = vmul.f32 %v9277_v30, %v8842_v28  ;;  %v12069_v55 = vld [vmem:[#allocation52_spill] sm:$0xff] }
 0x2c4   : > { %3004 = vst.msk [vmem:[#allocation3 + $0x8] sm:$0xff] %vm3002_vm2, %v2971_v50  ;;  %v2941_v57 = vadd.f32 %v9359_v32, %v2902_v27  ;;  %v2872_v38 = vmul.f32 %v9328_v34, %v2731_v52  ;;  %3007 = vst.msk [vmem:[#allocation3 + $0x20] sm:$0xff] %vm3002_vm2, %v2974_v24  ;;  %v2944_v7 = vadd.f32 %v9359_v32, %v2905_v58  ;;  %v12071_v24 = vld [vmem:[#allocation72_spill] sm:$0xff] }
 0x2c5   : > { %v2875_v18 = vmul.f32 %v9328_v34, %v2746_v48  ;;  %v2364_v5 = vmul.f32 %v9241_v6, %v12066_v15  ;;  %v2367_v25 = vmul.f32 %v9241_v6, %v12067_v17  ;;  %v2366_v42 = vmul.f32 %v9241_v6, %v8420_v2  ;;  %v12070_v2 = vld [vmem:[#allocation54_spill] sm:$0xff]  ;;  %v12073_v17 = vld [vmem:[#allocation56_spill] sm:$0xff] }
 0x2c6   : > { %v2973_v13 = vmax.f32 %v2941_v57, 0.0  ;;  %v2904_v0 = vadd.f32 %v2872_v38, %v2643_v11  ;;  %v2645_v28 = vadd.f32 %v2613_v1, %v9368_v59  ;;  %v2976_v29 = vmax.f32 %v2944_v7, 0.0  ;;  %v2756_v50 = vpop.permute.xlu0 %2755 }
 0x2c7   : > { %v2741_v22 = vpop.permute.xlu1 %2740  ;;  %v2907_v4 = vadd.f32 %v2875_v18, %v2646_v26  ;;  %v2369_v46 = vmul.f32 %v9241_v6, %v12068_v19  ;;  %v2648_v56 = vadd.f32 %v2616_v33, %v9371_v3  ;;  %v2615_v49 = vmul.f32 %v9277_v30, %v12069_v55 }
 0x2c8   : > { %3006 = vst.msk [vmem:[#allocation3 + $0x18] sm:$0xff] %vm3002_vm2, %v2973_v13  ;;  %v2943_v40 = vadd.f32 %v9359_v32, %v2904_v0  ;;  %v2874_v21 = vmul.f32 %v9328_v34, %v2741_v22  ;;  %v2618_v59 = vmul.f32 %v9277_v30, %v12070_v2  ;;  %3009 = vst.msk [vmem:[#allocation3 + $0x30] sm:$0xff] %vm3002_vm2, %v2976_v29 }
 0x2c9   : > { %v2946_v27 = vadd.f32 %v9359_v32, %v2907_v4  ;;  %v2877_v11 = vmul.f32 %v9328_v34, %v2756_v50  ;;  %v9466_v1 = vadd.f32 %v2365_v14, %v9256_v16  ;;  %v9469_v3 = vadd.f32 %v2364_v5, %v9259_v47 }
 0x2ca   : > { %v2975_v31 = vmax.f32 %v2943_v40, 0.0  ;;  %v2906_v44 = vadd.f32 %v2874_v21, %v2645_v28  ;;  %v9472_v52 = vadd.f32 %v2367_v25, %v9266_v60  ;;  %v2617_v57 = vmul.f32 %v9277_v30, %v12071_v24  ;;  %v12072_v60 = vld [vmem:[#allocation36_spill] sm:$0xff] }
 0x2cb   : > { %v2751_v58 = vpop.permute.xlu1 %2750  ;;  %v9477_v38 = vadd.f32 %v2366_v42, %v9282_v62  ;;  %v3035_v37 = vld [vmem:[#allocation3] ss:$2 sm:$0xff]  ;;  %v3051_v26 = vld [vmem:[#allocation3 + $0x1] ss:$2 sm:$0xff]  ;;  %v2978_v33 = vmax.f32 %v2946_v27, 0.0  ;;  %v2909_v14 = vadd.f32 %v2877_v11, %v2648_v56  ;;  %v9482_v47 = vadd.f32 %v2369_v46, %v9285_v51  ;;  %v2766_v62 = vpop.permute.xlu0 %2765  ;;  %v12074_v46 = vld [vmem:[#allocation58_spill] sm:$0xff] }
 0x2cc   : > { %3008 = vst.msk [vmem:[#allocation3 + $0x28] sm:$0xff] %vm3002_vm2, %v2975_v31  ;;  %v2945_v16 = vadd.f32 %v9359_v32, %v2906_v44  ;;  %v2368_v48 = vmul.f32 %v9241_v6, %v12072_v60  ;;  %v2647_v13 = vadd.f32 %v2615_v49, %v9382_v10  ;;  %v2876_v7 = vmul.f32 %v9328_v34, %v2751_v58  ;;  %v12075_v56 = vld [vmem:[#allocation60_spill] sm:$0xff]  ;;  %v9507_v49 = vld [vmem:[%s12076_s3] ss:$0 sm:$0xff]  ;;  %v12077_v11 = vld [vmem:[#allocation74_spill] sm:$0xff]  ;;  %s7126_s3 = smov [#allocation7]  }
 0x2cd   : > { %v2650_v0 = vadd.f32 %v2618_v59, %v9385_v54  ;;  %3011 = vst.msk [vmem:[#allocation3 + $0x40] sm:$0xff] %vm3002_vm2, %v2978_v33  ;;  %v2948_v15 = vadd.f32 %v9359_v32, %v2909_v14  ;;  %v2879_v5 = vmul.f32 %v9328_v34, %v2766_v62  ;;  %v2649_v51 = vadd.f32 %v2617_v57, %v9388_v39  ;;  %v12078_v57 = vld [vmem:[#allocation62_spill] sm:$0xff]  ;;  %v9521_v33 = vld [vmem:[%s12079_s4] ss:$0 sm:$0xff]  ;;  %s7062_s4 = sshll.u32 %s7126_s3, 4  ;;  %s7063_s4 = int_to_ptr.vmem [resolvable:$false] %s7062_s4 }
 0x2ce   : > { %v2977_v18 = vmax.f32 %v2945_v16, 0.0  ;;  %v2620_v25 = vmul.f32 %v9277_v30, %v12073_v17  ;;  %v3098_v42 = vmax.f32 %v3035_v37, %v3051_v26  ;;  %v2908_v22 = vadd.f32 %v2876_v7, %v2647_v13  ;;  %v12080_v16 = vld [vmem:[#allocation38_spill] sm:$0xff]  ;;  %v12081_v13 = vld [vmem:[#allocation40_spill] sm:$0xff]  ;;  %s7064_s22 = scalar_lea.vmem %s7063_s4, 32  ;;  %p7065_p0 = scmp.lt.s32.totalorder %s6657_s30, %s7063_s4 }
 0x2cf   : > { %v3067_v28 = vld [vmem:[#allocation3 + $0x10] ss:$2 sm:$0xff]  ;;  %v3083_v10 = vld [vmem:[#allocation3 + $0x11] ss:$2 sm:$0xff]  ;;  %v2761_v29 = vpop.permute.xlu1 %2760  ;;  %v2980_v54 = vmax.f32 %v2948_v15, 0.0  ;;  %v2911_v4 = vadd.f32 %v2879_v5, %v2650_v0  ;;  %v9498_v19 = vadd.f32 %v2368_v48, %v9288_v36  ;;  %v2619_v39 = vmul.f32 %v9277_v30, %v12074_v46  ;;  %v2776_v59 = vpop.permute.xlu0 %2775  ;;  %p7066_p1 = scmp.lt.s32.totalorder %s7064_s22, %s7058_s2 }
 0x2d0   : > { %v3106_v40 = vmax.f32 %v3067_v28, %v3083_v10  ;;  %3010 = vst.msk [vmem:[#allocation3 + $0x38] sm:$0xff] %vm3002_vm2, %v2977_v18  ;;  %v2878_v21 = vmul.f32 %v9328_v34, %v2761_v29  ;;  %v2622_v55 = vmul.f32 %v9277_v30, %v12075_v56  ;;  %v2947_v2 = vadd.f32 %v9359_v32, %v2908_v22  ;;  %v12082_v56 = vld [vmem:[#allocation64_spill] sm:$0xff] }
 0x2d1   : > { %3013 = vst.msk [vmem:[#allocation3 + $0x50] sm:$0xff] %vm3002_vm2, %v2980_v54  ;;  %v2950_v36 = vadd.f32 %v9359_v32, %v2911_v4  ;;  %v2881_v27 = vmul.f32 %v9328_v34, %v2776_v59  ;;  %v2652_v44 = vadd.f32 %v2620_v25, %v9394_v35  ;;  %v2621_v24 = vmul.f32 %v9277_v30, %v12077_v11  ;;  %p7067_p2 = por %p7066_p1, %p7065_p0 }
 0x2d2   : > { %v3114_v50 = vmax.f32 %v3098_v42, %v3106_v40  ;;  %v2910_v31 = vadd.f32 %v2878_v21, %v2649_v51  ;;  %v2624_v58 = vmul.f32 %v9277_v30, %v12078_v57  ;;  %v2979_v37 = vmax.f32 %v2947_v2, 0.0  ;;  %v12084_v57 = vld [vmem:[#allocation66_spill] sm:$0xff] }
 0x2d3   : > { %v2771_v26 = vpop.permute.xlu1 %2770  ;;  %v2371_v14 = vmul.f32 %v9241_v6, %v12080_v16  ;;  %v2982_v48 = vmax.f32 %v2950_v36, 0.0  ;;  %v2370_v7 = vmul.f32 %v9241_v6, %v12081_v13  ;;  %v2651_v62 = vadd.f32 %v2619_v39, %v9397_v41  ;;  %v3037_v0 = vld [vmem:[#allocation3 + $0x20] ss:$2 sm:$0xff]  ;;  %v3053_v18 = vld [vmem:[#allocation3 + $0x21] ss:$2 sm:$0xff]  ;;  %v2786_v51 = vpop.permute.xlu0 %2785  ;;  %p7068_p3 = pnand %p7067_p2, %p7061_p13 }
 0x2d4   : > { %v3129_v60 = vmul.f32 %v9507_v49, %v3114_v50  ;;  %v2949_v35 = vadd.f32 %v9359_v32, %v2910_v31  ;;  %3012 = vst.msk [vmem:[#allocation3 + $0x48] sm:$0xff] %vm3002_vm2, %v2979_v37  ;;  %v2913_v15 = vadd.f32 %v2881_v27, %v2652_v44  ;;  %v2880_v5 = vmul.f32 %v9328_v34, %v2771_v26 }
 0x2d5   : > { %v2654_v17 = vadd.f32 %v2622_v55, %v9415_v23  ;;  %3015 = vst.msk [vmem:[#allocation3 + $0x60] sm:$0xff] %vm3002_vm2, %v2982_v48  ;;  %v2883_v42 = vmul.f32 %v9328_v34, %v2786_v51  ;;  %v2653_v10 = vadd.f32 %v2621_v24, %v9425_v9  ;;  %v2656_v41 = vadd.f32 %v2624_v58, %v9428_v45  ;;  %v12083_v55 = vld [vmem:[#allocation75_spill] sm:$0xff] }
 0x2d6   : > { %v2981_v25 = vmax.f32 %v2949_v35, 0.0  ;;  %v3144_v28 = vadd.f32 %v9521_v33, %v3129_v60  ;;  %v2952_v40 = vadd.f32 %v9359_v32, %v2913_v15  ;;  %v2912_v54 = vadd.f32 %v2880_v5, %v2651_v62 }
 0x2d7   : > { %v3069_v22 = vld [vmem:[#allocation3 + $0x30] ss:$2 sm:$0xff]  ;;  %v3085_v29 = vld [vmem:[#allocation3 + $0x31] ss:$2 sm:$0xff]  ;;  %v2781_v4 = vpop.permute.xlu1 %2780  ;;  %v3099_v21 = vmax.f32 %v3037_v0, %v3053_v18  ;;  %v2915_v23 = vadd.f32 %v2883_v42, %v2654_v17  ;;  %v2623_v9 = vmul.f32 %v9277_v30, %v12082_v56  ;;  %v2626_v45 = vmul.f32 %v9277_v30, %v12083_v55  ;;  %v2796_v50 = vpop.permute.xlu0 %2795 }
 0x2d8   : > { %v3107_v46 = vmax.f32 %v3069_v22, %v3085_v29  ;;  %3014 = vst.msk [vmem:[#allocation3 + $0x58] sm:$0xff] %vm3002_vm2, %v2981_v25  ;;  %v2882_v39 = vmul.f32 %v9328_v34, %v2781_v4  ;;  %3174 = vst.msk [vmem:[#allocation4 + $0x11] sm:$0xff] %vm3002_vm2, %v3144_v28  ;;  %v2984_v2 = vmax.f32 %v2952_v40, 0.0  ;;  %v2951_v59 = vadd.f32 %v9359_v32, %v2912_v54 }
 0x2d9   : > { %v2954_v31 = vadd.f32 %v9359_v32, %v2915_v23  ;;  %v2885_v44 = vmul.f32 %v9328_v34, %v2796_v50  ;;  %v9550_v11 = vadd.f32 %v2371_v14, %v9293_v63  ;;  %v9553_v24 = vadd.f32 %v2370_v7, %v9296_v8  ;;  %v12085_v14 = vld [vmem:[#allocation68_spill] sm:$0xff] }
 0x2da   : > { %v3115_v36 = vmax.f32 %v3099_v21, %v3107_v46  ;;  %v2914_v27 = vadd.f32 %v2882_v39, %v2653_v10  ;;  %v2625_v58 = vmul.f32 %v9277_v30, %v12084_v57  ;;  %3017 = vst.msk [vmem:[#allocation3 + $0x70] sm:$0xff] %vm3002_vm2, %v2984_v2  ;;  %v2983_v37 = vmax.f32 %v2951_v59, 0.0  ;;  %v12087_v46 = vld [vmem:[#allocation69_spill] sm:$0xff] }
 0x2db   : > { %v2791_v26 = vpop.permute.xlu1 %2790  ;;  %v3039_v60 = vld [vmem:[#allocation3 + $0x40] ss:$2 sm:$0xff]  ;;  %v3055_v48 = vld [vmem:[#allocation3 + $0x41] ss:$2 sm:$0xff]  ;;  %v2986_v35 = vmax.f32 %v2954_v31, 0.0  ;;  %v2917_v62 = vadd.f32 %v2885_v44, %v2656_v41  ;;  %v2655_v63 = vadd.f32 %v2623_v9, %v9436_v12  ;;  %v2658_v8 = vadd.f32 %v2626_v45, %v9466_v1  ;;  %v2806_v18 = vpop.permute.xlu0 %2805  ;;  %v12086_v12 = vld [vmem:[#allocation42_spill] sm:$0xff] }
 0x2dc   : > { %v3130_v16 = vmul.f32 %v9507_v49, %v3115_v36  ;;  %v2953_v13 = vadd.f32 %v9359_v32, %v2914_v27  ;;  %v2628_v7 = vmul.f32 %v9277_v30, %v12085_v14  ;;  %3016 = vst.msk [vmem:[#allocation3 + $0x68] sm:$0xff] %vm3002_vm2, %v2983_v37  ;;  %v2884_v0 = vmul.f32 %v9328_v34, %v2791_v26  ;;  %v12088_v39 = vld [vmem:[#allocation73_spill] sm:$0xff]  ;;  %v12090_v27 = vld [vmem:[#allocation76_spill] sm:$0xff] }
 0x2dd   : > { %3019 = vst.msk [vmem:[#allocation3 + $0x80] sm:$0xff] %vm3002_vm2, %v2986_v35  ;;  %v2956_v5 = vadd.f32 %v9359_v32, %v2917_v62  ;;  %v2887_v51 = vmul.f32 %v9328_v34, %v2806_v18  ;;  %v2373_v1 = vmul.f32 %v9241_v6, %v12086_v12  ;;  %v2657_v25 = vadd.f32 %v2625_v58, %v9469_v3  ;;  %v12091_v62 = vld [vmem:[#allocation77_spill] sm:$0xff] }
 0x2de   : > { %v2985_v15 = vmax.f32 %v2953_v13, 0.0  ;;  %v3145_v17 = vadd.f32 %v9521_v33, %v3130_v16  ;;  %v3100_v42 = vmax.f32 %v3039_v60, %v3055_v48  ;;  %v2916_v41 = vadd.f32 %v2884_v0, %v2655_v63 }
 0x2df   : > { %v3071_v28 = vld [vmem:[#allocation3 + $0x50] ss:$2 sm:$0xff]  ;;  %v3087_v10 = vld [vmem:[#allocation3 + $0x51] ss:$2 sm:$0xff]  ;;  %v2801_v22 = vpop.permute.xlu1 %2800  ;;  %v2988_v54 = vmax.f32 %v2956_v5, 0.0  ;;  %v2919_v4 = vadd.f32 %v2887_v51, %v2658_v8  ;;  %v2660_v3 = vadd.f32 %v2628_v7, %v9472_v52  ;;  %v2627_v23 = vmul.f32 %v9277_v30, %v12087_v46  ;;  %v2816_v55 = vpop.permute.xlu0 %2815  ;;  %v12089_v52 = vld [vmem:[#allocation44_spill] sm:$0xff] }
 0x2e0   : > { %v9573_v29 = vld [vmem:[#allocation4 + $0x10] sm:$0xff]  ;;  %v3108_v40 = vmax.f32 %v3071_v28, %v3087_v10  ;;  %3018 = vst.msk [vmem:[#allocation3 + $0x78] sm:$0xff] %vm3002_vm2, %v2985_v15  ;;  %v2886_v21 = vmul.f32 %v9328_v34, %v2801_v22  ;;  %3175 = vst.msk [vmem:[#allocation4 + $0x21] sm:$0xff] %vm3002_vm2, %v3145_v17  ;;  %v2630_v56 = vmul.f32 %v9277_v30, %v12088_v39 }
 0x2e1   : > { %3198 = vperm.xlu1 %6979, %v9573_v29   ;;  %v2955_v9 = vadd.f32 %v9359_v32, %v2916_v41  ;;  %3021 = vst.msk [vmem:[#allocation3 + $0x90] sm:$0xff] %vm3002_vm2, %v2988_v54  ;;  %v2958_v2 = vadd.f32 %v9359_v32, %v2919_v4  ;;  %v2889_v50 = vmul.f32 %v9328_v34, %v2816_v55  ;;  %v12095_v55 = vld [vmem:[#allocation80_spill] sm:$0xff] }
 0x2e2   : > { %v3116_v45 = vmax.f32 %v3100_v42, %v3108_v40  ;;  %v2918_v59 = vadd.f32 %v2886_v21, %v2657_v25  ;;  %v2405_v36 = vadd.f32 %v2373_v1, %v9305_v53  ;;  %v2372_v31 = vmul.f32 %v9241_v6, %v12089_v52  ;;  %v12093_v40 = vld [vmem:[#allocation78_spill] sm:$0xff] }
 0x2e3   : > { %v2629_v44 = vmul.f32 %v9277_v30, %v12090_v27  ;;  %v2987_v57 = vmax.f32 %v2955_v9, 0.0  ;;  %v2811_v58 = vpop.permute.xlu1 %2810  ;;  %v3041_v26 = vld [vmem:[#allocation3 + $0x60] ss:$2 sm:$0xff]  ;;  %v3057_v16 = vld [vmem:[#allocation3 + $0x61] ss:$2 sm:$0xff]  ;;  %v2990_v60 = vmax.f32 %v2958_v2, 0.0  ;;  %v2921_v35 = vadd.f32 %v2889_v50, %v2660_v3 }
 0x2e4   : > { %v3131_v37 = vmul.f32 %v9507_v49, %v3116_v45  ;;  %v2957_v48 = vadd.f32 %v9359_v32, %v2918_v59  ;;  %v2659_v13 = vadd.f32 %v2627_v23, %v9477_v38  ;;  %v2662_v53 = vadd.f32 %v2630_v56, %v9482_v47  ;;  %v2826_v14 = vpop.permute.xlu0 %2825  ;;  %v12092_v38 = vld [vmem:[#allocation46_spill] sm:$0xff] }
 0x2e5   : > { %v2632_v63 = vmul.f32 %v9277_v30, %v12091_v62  ;;  %3020 = vst.msk [vmem:[#allocation3 + $0x88] sm:$0xff] %vm3002_vm2, %v2987_v57  ;;  %v2888_v8 = vmul.f32 %v9328_v34, %v2811_v58  ;;  %3023 = vst.msk [vmem:[#allocation3 + $0xa0] sm:$0xff] %vm3002_vm2, %v2990_v60  ;;  %v2960_v0 = vadd.f32 %v9359_v32, %v2921_v35 }
 0x2e6   : > { %v2989_v7 = vmax.f32 %v2957_v48, 0.0  ;;  %v2891_v18 = vmul.f32 %v9328_v34, %v2826_v14  ;;  %v3146_v15 = vadd.f32 %v9521_v33, %v3131_v37  ;;  %v2375_v47 = vmul.f32 %v9241_v6, %v12092_v38  ;;  %v12097_v38 = vld [vmem:[#allocation50_spill] sm:$0xff] }
 0x2e7   : > { %v2661_v5 = vadd.f32 %v2629_v44, %v9498_v19  ;;  %v3101_v51 = vmax.f32 %v3041_v26, %v3057_v16  ;;  %v3073_v17 = vld [vmem:[#allocation3 + $0x70] ss:$2 sm:$0xff]  ;;  %v3089_v12 = vld [vmem:[#allocation3 + $0x71] ss:$2 sm:$0xff]  ;;  %v2920_v1 = vadd.f32 %v2888_v8, %v2659_v13  ;;  %v2821_v25 = vpop.permute.xlu1 %2820  ;;  %v2992_v28 = vmax.f32 %v2960_v0, 0.0  ;;  %v12096_v13 = vld [vmem:[#allocation48_spill] sm:$0xff] }
 0x2e8   : > { %v3109_v42 = vmax.f32 %v3073_v17, %v3089_v12  ;;  %3022 = vst.msk [vmem:[#allocation3 + $0x98] sm:$0xff] %vm3002_vm2, %v2989_v7  ;;  %v2923_v10 = vadd.f32 %v2891_v18, %v2662_v53  ;;  %v2890_v41 = vmul.f32 %v9328_v34, %v2821_v25  ;;  %3176 = vst.msk [vmem:[#allocation4 + $0x31] sm:$0xff] %vm3002_vm2, %v3146_v15  ;;  %v12094_v19 = vld [vmem:[#allocation79_spill] sm:$0xff]  ;;  %v2836_v3 = vpop.permute.xlu0 %2835 }
 0x2e9   : > { %v2664_v22 = vadd.f32 %v2632_v63, %v9550_v11  ;;  %v2631_v54 = vmul.f32 %v9277_v30, %v12093_v40  ;;  %v2634_v4 = vmul.f32 %v9277_v30, %v12094_v19  ;;  %v2959_v21 = vadd.f32 %v9359_v32, %v2920_v1  ;;  %3025 = vst.msk [vmem:[#allocation3 + $0xb0] sm:$0xff] %vm3002_vm2, %v2992_v28  ;;  %v12102_v19 = vld [vmem:[#allocation22_spill] sm:$0xff] }
 0x2ea   : > { %v3117_v46 = vmax.f32 %v3101_v51, %v3109_v42  ;;  %v2962_v23 = vadd.f32 %v9359_v32, %v2923_v10  ;;  %v2922_v39 = vadd.f32 %v2890_v41, %v2661_v5  ;;  %v2893_v56 = vmul.f32 %v9328_v34, %v2836_v3  ;;  %v12098_v51 = vld [vmem:[#allocation19_spill] sm:$0xff] }
 0x2eb   : > { %v2404_v9 = vadd.f32 %v2372_v31, %v9308_v61  ;;  %v2407_v11 = vadd.f32 %v2375_v47, %v9315_v20  ;;  %v2633_v45 = vmul.f32 %v9277_v30, %v12095_v55  ;;  %v2991_v2 = vmax.f32 %v2959_v21, 0.0  ;;  %v2831_v59 = vpop.permute.xlu1 %2830  ;;  %v12099_v41 = vld [vmem:[#allocation71_spill] sm:$0xff] }
 0x2ec   : > { %v3132_v50 = vmul.f32 %v9507_v49, %v3117_v46  ;;  %v3043_v52 = vld [vmem:[#allocation3 + $0x80] ss:$2 sm:$0xff]  ;;  %v3059_v27 = vld [vmem:[#allocation3 + $0x81] ss:$2 sm:$0xff]  ;;  %v2994_v44 = vmax.f32 %v2962_v23, 0.0  ;;  %v2961_v57 = vadd.f32 %v9359_v32, %v2922_v39  ;;  %v2925_v58 = vadd.f32 %v2893_v56, %v2664_v22  ;;  %v2846_v31 = vpop.permute.xlu0 %2845 }
 0x2ed   : > { %v2663_v37 = vadd.f32 %v2631_v54, %v9553_v24  ;;  %v2666_v26 = vadd.f32 %v2634_v4, %v2405_v36  ;;  %v2636_v61 = vmul.f32 %v9277_v30, %v9302_v43  ;;  %3024 = vst.msk [vmem:[#allocation3 + $0xa8] sm:$0xff] %vm3002_vm2, %v2991_v2  ;;  %v2892_v20 = vmul.f32 %v9328_v34, %v2831_v59  ;;  %v12100_v22 = vld [vmem:[#allocation20_spill] sm:$0xff]  ;;  %v12101_v54 = vld [vmem:[#allocation81_spill] sm:$0xff] }
 0x2ee   : > { %3027 = vst.msk [vmem:[#allocation3 + $0xc0] sm:$0xff] %vm3002_vm2, %v2994_v44  ;;  %v2993_v16 = vmax.f32 %v2961_v57, 0.0  ;;  %v2964_v60 = vadd.f32 %v9359_v32, %v2925_v58  ;;  %v2895_v48 = vmul.f32 %v9328_v34, %v2846_v31  ;;  %v3147_v35 = vadd.f32 %v9521_v33, %v3132_v50 }
 0x2ef   : > { %v2374_v24 = vmul.f32 %v9241_v6, %v12096_v13  ;;  %v2665_v36 = vadd.f32 %v2633_v45, %v2404_v9  ;;  %v3102_v53 = vmax.f32 %v3043_v52, %v3059_v27  ;;  %v3075_v43 = vld [vmem:[#allocation3 + $0x90] ss:$2 sm:$0xff]  ;;  %v3091_v62 = vld [vmem:[#allocation3 + $0x91] ss:$2 sm:$0xff]  ;;  %v2924_v63 = vadd.f32 %v2892_v20, %v2663_v37  ;;  %v2841_v8 = vpop.permute.xlu1 %2840 }
 0x2f0   : > { %v9637_v14 = vld [vmem:[#allocation4 + $0x30] sm:$0xff]  ;;  %v3110_v7 = vmax.f32 %v3075_v43, %v3091_v62  ;;  %3026 = vst.msk [vmem:[#allocation3 + $0xb8] sm:$0xff] %vm3002_vm2, %v2993_v16  ;;  %v2996_v0 = vmax.f32 %v2964_v60, 0.0  ;;  %v2927_v18 = vadd.f32 %v2895_v48, %v2666_v26  ;;  %v2894_v15 = vmul.f32 %v9328_v34, %v2841_v8  ;;  %3177 = vst.msk [vmem:[#allocation4 + $0x41] sm:$0xff] %vm3002_vm2, %v3147_v35  ;;  %v2856_v1 = vpop.permute.xlu0 %2855 }
 0x2f1   : > { %3257 = vperm.xlu0 %6980, %v9637_v14   ;;  %3208 = vperm.xlu1 %6979, %v9637_v14   ;;  %v2376_v47 = vmul.f32 %v9241_v6, %v12097_v38  ;;  %v2668_v5 = vadd.f32 %v2636_v61, %v2407_v11  ;;  %v2635_v17 = vmul.f32 %v9277_v30, %v12098_v51 }
 0x2f2   : > { %v2963_v12 = vadd.f32 %v9359_v32, %v2924_v63  ;;  %v3118_v25 = vmax.f32 %v3102_v53, %v3110_v7  ;;  %3029 = vst.msk [vmem:[#allocation3 + $0xd0] sm:$0xff] %vm3002_vm2, %v2996_v0  ;;  %v2966_v42 = vadd.f32 %v9359_v32, %v2927_v18  ;;  %v2926_v28 = vadd.f32 %v2894_v15, %v2665_v36 }
 0x2f3   : > { %v2897_v10 = vmul.f32 %v9328_v34, %v2856_v1  ;;  %v2146_v40 = vadd.f32 %v12100_v22, %v12099_v41  ;;  %v2406_v6 = vadd.f32 %v2374_v24, %v12101_v54  ;;  %v2637_v4 = vmul.f32 %v9277_v30, %v12102_v19  ;;  %v2851_v3 = vpop.permute.xlu1 %2850  ;;  %v9694_v41 = vld [vmem:[#allocation4 + $0x31] sm:$0xff] }
 0x2f4   : > { %v2995_v21 = vmax.f32 %v2963_v12, 0.0  ;;  %v3133_v46 = vmul.f32 %v9507_v49, %v3118_v25  ;;  %v2998_v23 = vmax.f32 %v2966_v42, 0.0  ;;  %v2965_v39 = vadd.f32 %v9359_v32, %v2926_v28  ;;  %v3045_v55 = vld [vmem:[#allocation3 + $0xa0] ss:$2 sm:$0xff]  ;;  %v3061_v45 = vld [vmem:[#allocation3 + $0xa1] ss:$2 sm:$0xff] }
 0x2f5   : > { %v2929_v56 = vadd.f32 %v2897_v10, %v2668_v5  ;;  %v2408_v9 = vadd.f32 %v2376_v47, %v2146_v40  ;;  %v2667_v11 = vadd.f32 %v2635_v17, %v2406_v6  ;;  %v2896_v2 = vmul.f32 %v9328_v34, %v2851_v3  ;;  %v9689_v28 = vld [vmem:[#allocation4 + $0x1] sm:$0xff] }
 0x2f6   : > { %3028 = vst.msk [vmem:[#allocation3 + $0xc8] sm:$0xff] %vm3002_vm2, %v2995_v21  ;;  %3031 = vst.msk [vmem:[#allocation3 + $0xe0] sm:$0xff] %vm3002_vm2, %v2998_v23  ;;  %v2997_v59 = vmax.f32 %v2965_v39, 0.0  ;;  %v3148_v50 = vadd.f32 %v9521_v33, %v3133_v46  ;;  %v3103_v37 = vmax.f32 %v3045_v55, %v3061_v45  ;;  %v12103_v10 = vmov 1   ;;  %v9712_v6 = vld [vmem:[#allocation4 + $0x2] sm:$0xff]  ;;  %v9719_v21 = vld [vmem:[#allocation4 + $0x32] sm:$0xff] }
 0x2f7   : > { %v2968_v30 = vadd.f32 %v9359_v32, %v2929_v56  ;;  %v2669_v52 = vadd.f32 %v2637_v4, %v2408_v9  ;;  %v3077_v27 = vld [vmem:[#allocation3 + $0xb0] ss:$2 sm:$0xff]  ;;  %v3093_v44 = vld [vmem:[#allocation3 + $0xb1] ss:$2 sm:$0xff]  ;;  %v2928_v57 = vadd.f32 %v2896_v2, %v2667_v11  ;;  %v2861_v58 = vpop.permute.xlu1 %2860  ;;  %v9703_v22 = vld [vmem:[#allocation4 + $0x40] sm:$0xff]  ;;  %v11550_v19 = vmov 2  }
 0x2f8   : > { %v3111_v26 = vmax.f32 %v3077_v27, %v3093_v44  ;;  %3030 = vst.msk [vmem:[#allocation3 + $0xd8] sm:$0xff] %vm3002_vm2, %v2997_v59  ;;  %v2898_v20 = vmul.f32 %v9328_v34, %v2861_v58  ;;  %3178 = vst.msk [vmem:[#allocation4 + $0x51] sm:$0xff] %vm3002_vm2, %v3148_v50  ;;  %v9716_v4 = vld [vmem:[#allocation4] sm:$0xff]  ;;  %v11548_v23 = vmov 3   ;;  %v9738_v39 = vld [vmem:[#allocation4 + $0x12] sm:$0xff]  ;;  %v12104_v9 = vmov 0   ;;  %v9793_v44 = vpop.permute.xlu0 %3245 }
 0x2f9   : > { %v3000_v61 = vmax.f32 %v2968_v30, 0.0  ;;  %v2967_v31 = vadd.f32 %v9359_v32, %v2928_v57  ;;  %v9750_v11 = vld [vmem:[#allocation4 + $0x21] sm:$0xff]  ;;  %v9768_v59 = vld [vmem:[#allocation4 + $0x11] sm:$0xff] }
 0x2fa   : > { %v3119_v16 = vmax.f32 %v3103_v37, %v3111_v26  ;;  %v2930_v60 = vadd.f32 %v2898_v20, %v2669_v52  ;;  %v9764_v2 = vld [vmem:[#allocation4 + $0x41] sm:$0xff]  ;;  %v9775_v50 = vld [vmem:[#allocation4 + $0x90] sm:$0xff] }
 0x2fb   : > { %3033 = vst.msk [vmem:[#allocation3 + $0xf0] sm:$0xff] %vm3002_vm2, %v3000_v61  ;;  %v2999_v48 = vmax.f32 %v2967_v31, 0.0  ;;  %v9771_v30 = vld [vmem:[#allocation4 + $0x22] sm:$0xff] }
 0x2fc   : > { %v3134_v35 = vmul.f32 %v9507_v49, %v3119_v16  ;;  %v2969_v13 = vadd.f32 %v9359_v32, %v2930_v60  ;;  %v9779_v52 = vld [vmem:[#allocation4 + $0x42] sm:$0xff] }
 0x2fd   : > { %v3047_v24 = vld [vmem:[#allocation3 + $0xc0] ss:$2 sm:$0xff]  ;;  %v3063_v36 = vld [vmem:[#allocation3 + $0xc1] ss:$2 sm:$0xff]  ;;  %3032 = vst.msk [vmem:[#allocation3 + $0xe8] sm:$0xff] %vm3002_vm2, %v2999_v48 }
 0x2fe   : > { %v3001_v53 = vmax.f32 %v2969_v13, 0.0  ;;  %v3149_v34 = vadd.f32 %v9521_v33, %v3134_v35  ;;  %v3104_v8 = vmax.f32 %v3047_v24, %v3063_v36 }
 0x2ff   : > { %v3079_v43 = vld [vmem:[#allocation3 + $0xd0] ss:$2 sm:$0xff]  ;;  %v3095_v62 = vld [vmem:[#allocation3 + $0xd1] ss:$2 sm:$0xff] }
 0x300   : > { %v9673_v63 = vld [vmem:[#allocation4 + $0x50] sm:$0xff]  ;;  %v3112_v7 = vmax.f32 %v3079_v43, %v3095_v62  ;;  %3034 = vst.msk [vmem:[#allocation3 + $0xf8] sm:$0xff] %vm3002_vm2, %v3001_v53  ;;  %3179 = vst.msk [vmem:[#allocation4 + $0x61] sm:$0xff] %vm3002_vm2, %v3149_v34 }
 0x301   : > { %3265 = vperm.xlu0 %6980, %v9673_v63   ;;  %3218 = vperm.xlu1 %6979, %v9673_v63   ;;  %v9723_v3 = vld [vmem:[#allocation4 + $0x52] sm:$0xff] }
 0x302   : > { %v3120_v32 = vmax.f32 %v3104_v8, %v3112_v7 }
 0x304   : > { %v3135_v0 = vmul.f32 %v9507_v49, %v3120_v32  ;;  %v3049_v18 = vld [vmem:[#allocation3 + $0xe0] ss:$2 sm:$0xff]  ;;  %v3065_v15 = vld [vmem:[#allocation3 + $0xe1] ss:$2 sm:$0xff] }
 0x305   : > { %v3105_v51 = vmax.f32 %v3049_v18, %v3065_v15 }
 0x306   : > { %v3150_v38 = vadd.f32 %v9521_v33, %v3135_v0 }
 0x307   : > { %v3081_v47 = vld [vmem:[#allocation3 + $0xf0] ss:$2 sm:$0xff]  ;;  %v3097_v5 = vld [vmem:[#allocation3 + $0xf1] ss:$2 sm:$0xff]  ;;  %v9709_v54 = vld [vmem:[#allocation4 + $0x60] sm:$0xff] }
 0x308   : > { %v3113_v17 = vmax.f32 %v3081_v47, %v3097_v5  ;;  %3180 = vst.msk [vmem:[#allocation4 + $0x71] sm:$0xff] %vm3002_vm2, %v3150_v38  ;;  %v9782_v27 = vld [vmem:[#allocation4 + $0x61] sm:$0xff] }
 0x309   : > { %v9824_v48 = vld [vmem:[#allocation4 + $0x62] sm:$0xff] }
 0x30a   : > { %v3121_v12 = vmax.f32 %v3105_v51, %v3113_v17 }
 0x30c   : > { %v3136_v1 = vmul.f32 %v9507_v49, %v3121_v12  ;;  %v9697_v49 = vld [vmem:[#allocation4 + $0x20] sm:$0xff] }
 0x30e   : > { %v3151_v25 = vadd.f32 %v9521_v33, %v3136_v1  ;;  %v9700_v33 = vld [vmem:[#allocation4 + $0x51] sm:$0xff] }
 0x30f   : > { %v9684_v42 = vld [vmem:[#allocation4 + $0x70] sm:$0xff] }
 0x310   : > { %3273 = vperm.xlu0 %6980, %v9684_v42   ;;  %3228 = vperm.xlu1 %6979, %v9684_v42   ;;  %3181 = vst.msk [vmem:[#allocation4 + $0x81] sm:$0xff] %vm3002_vm2, %v3151_v25  ;;  %v9706_v40 = vld [vmem:[#allocation4 + $0x71] sm:$0xff] }
 0x311   : > { %v9727_v46 = vld [vmem:[#allocation4 + $0x72] sm:$0xff] }
 0x314   : > { %3473 = vperm.xlu0 %6980, %v9689_v28   ;;  %6981 = vset.pattern.permute.xlu1 %v12103_v10 }
 0x315   : > { %3249 = vperm.xlu1 %6981, %v9573_v29  }
 0x317   : > { %v9742_v56 = vld [vmem:[#allocation4 + $0x80] sm:$0xff] }
 0x318   : > { %3485 = vperm.xlu0 %6980, %v9694_v41   ;;  %v9752_v55 = vld [vmem:[#allocation4 + $0x81] sm:$0xff] }
 0x319   : > { %3253 = vperm.xlu1 %6981, %v9697_v49   ;;  %v9760_v45 = vld [vmem:[#allocation4 + $0x82] sm:$0xff] }
 0x31c   : > { %3493 = vperm.xlu0 %6980, %v9700_v33  }
 0x31d   : > { %3261 = vperm.xlu1 %6981, %v9703_v22  }
 0x320   : > { %3501 = vperm.xlu0 %6980, %v9706_v40  }
 0x321   : > { %3269 = vperm.xlu1 %6981, %v9709_v54  }
 0x324   : > { %3701 = vperm.xlu0 %6980, %v9712_v6  }
 0x325   : > { %6982 = vset.pattern.permute.xlu1 %v11550_v19 }
 0x326   : > { %3298 = vperm.xlu1 %6982, %v9716_v4  }
 0x328   : > { %3713 = vperm.xlu0 %6980, %v9719_v21  }
 0x32a   : > { %3306 = vperm.xlu1 %6982, %v9697_v49  }
 0x32c   : > { %3721 = vperm.xlu0 %6980, %v9723_v3  }
 0x32e   : > { %3310 = vperm.xlu1 %6982, %v9637_v14  }
 0x330   : > { %3729 = vperm.xlu0 %6980, %v9727_v46  }
 0x332   : > { %3318 = vperm.xlu1 %6982, %v9673_v63  }
 0x334   : > { %3929 = vperm.xlu0 %6980, %v9573_v29  }
 0x336   : > { %3326 = vperm.xlu1 %6982, %v9684_v42  }
 0x338   : > { %3941 = vperm.xlu0 %6980, %v9703_v22  }
 0x33a   : > { %6983 = vset.pattern.permute.xlu1 %v11548_v23 }
 0x33b   : > { %3355 = vperm.xlu1 %6983, %v9573_v29  }
 0x33c   : > { %3949 = vperm.xlu0 %6980, %v9709_v54  }
 0x33f   : > { %3359 = vperm.xlu1 %6983, %v9697_v49  }
 0x340   : > { %4385 = vperm.xlu0 %6980, %v9738_v39  }
 0x343   : > { %3367 = vperm.xlu1 %6983, %v9703_v22  }
 0x344   : > { %3957 = vperm.xlu0 %6980, %v9742_v56  }
 0x347   : > { %3375 = vperm.xlu1 %6983, %v9709_v54  }
 0x348   : > { %4393 = vperm.xlu0 %6980, %v9719_v21  }
 0x34b   : > { %6984 = vset.pattern.permute.xlu1 %v12104_v9 }
 0x34c   : > { %3413 = vperm.xlu1 %6984, %v9689_v28   ;;  %4614 = vperm.xlu0 %6980, %v9697_v49  }
 0x350   : > { %3423 = vperm.xlu1 %6984, %v9750_v11   ;;  %4185 = vperm.xlu0 %6980, %v9752_v55  }
 0x354   : > { %3428 = vperm.xlu1 %6984, %v9694_v41   ;;  %4622 = vperm.xlu0 %6980, %v9703_v22  }
 0x358   : > { %3438 = vperm.xlu1 %6984, %v9700_v33   ;;  %4842 = vperm.xlu0 %6980, %v9750_v11  }
 0x35c   : > { %3448 = vperm.xlu1 %6984, %v9706_v40   ;;  %4413 = vperm.xlu0 %6980, %v9760_v45   ;;  %v9797_v57 = vpop.permute.xlu1 %3198 }
 0x35d   : > { %12105 = vst [vmem:[#allocation82_spill] sm:$0xff] %v9797_v57 }
 0x360   : > { %6985 = vset.pattern.permute.xlu1 %v12103_v10  ;;  %4850 = vperm.xlu0 %6980, %v9764_v2  }
 0x361   : > { %3477 = vperm.xlu1 %6985, %v9768_v59  }
 0x364   : > { %5070 = vperm.xlu0 %6980, %v9771_v30  }
 0x365   : > { %3481 = vperm.xlu1 %6985, %v9750_v11  }
 0x368   : > { %4642 = vperm.xlu0 %6980, %v9775_v50  }
 0x369   : > { %3489 = vperm.xlu1 %6985, %v9764_v2  }
 0x36c   : > { %5078 = vperm.xlu0 %6980, %v9779_v52   ;;  %v9801_v58 = vpop.permute.xlu0 %3257  ;;  %v9803_v37 = vpop.permute.xlu1 %3208 }
 0x36d   : > { %3497 = vperm.xlu1 %6985, %v9782_v27  }
 0x370   : > { %7018 = vset.pattern.permute.xlu0 %v11550_v19 }
 0x371   : > { %6986 = vset.pattern.permute.xlu1 %v11550_v19  ;;  %3302 = vperm.xlu0 %7018, %v9573_v29  }
 0x372   : > { %3526 = vperm.xlu1 %6986, %v9689_v28  }
 0x375   : > { %3314 = vperm.xlu0 %7018, %v9703_v22  }
 0x376   : > { %3534 = vperm.xlu1 %6986, %v9750_v11  }
 0x379   : > { %3322 = vperm.xlu0 %7018, %v9709_v54  }
 0x37a   : > { %3538 = vperm.xlu1 %6986, %v9694_v41  }
 0x37c   : > { %v9807_v26 = vpop.permute.xlu0 %3265  ;;  %v9809_v61 = vpop.permute.xlu1 %3218 }
 0x37d   : > { %3530 = vperm.xlu0 %7018, %v9768_v59  }
 0x37e   : > { %3546 = vperm.xlu1 %6986, %v9700_v33  }
 0x381   : > { %3542 = vperm.xlu0 %7018, %v9764_v2  }
 0x382   : > { %3554 = vperm.xlu1 %6986, %v9706_v40  }
 0x385   : > { %3550 = vperm.xlu0 %7018, %v9782_v27  }
 0x386   : > { %6987 = vset.pattern.permute.xlu1 %v11548_v23 }
 0x387   : > { %3583 = vperm.xlu1 %6987, %v9768_v59  }
 0x389   : > { %3758 = vperm.xlu0 %7018, %v9738_v39  }
 0x38b   : > { %v9813_v20 = vpop.permute.xlu0 %3273  ;;  %3587 = vperm.xlu1 %6987, %v9750_v11   ;;  %v9816_v31 = vpop.permute.xlu1 %3228 }
 0x38d   : > { %3770 = vperm.xlu0 %7018, %v9779_v52  }
 0x38f   : > { %v9819_v16 = vpop.permute.xlu0 %3473  ;;  %3595 = vperm.xlu1 %6987, %v9764_v2  }
 0x390   : > { %v9822_v60 = vpop.permute.xlu1 %3249 }
 0x391   : > { %12106 = vst [vmem:[#allocation24_spill] sm:$0xff] %v9822_v60  ;;  %3778 = vperm.xlu0 %7018, %v9824_v48  }
 0x393   : > { %v9827_v35 = vpop.permute.xlu0 %3485  ;;  %3603 = vperm.xlu1 %6987, %v9782_v27  }
 0x394   : > { %v9830_v13 = vpop.permute.xlu1 %3253 }
 0x395   : > { %3982 = vperm.xlu0 %7018, %v9573_v29  }
 0x397   : > { %v9833_v24 = vpop.permute.xlu0 %3493  ;;  %6988 = vset.pattern.permute.xlu1 %v12104_v9 }
 0x398   : > { %3641 = vperm.xlu1 %6988, %v9712_v6   ;;  %v9837_v36 = vpop.permute.xlu1 %3261 }
 0x399   : > { %3990 = vperm.xlu0 %7018, %v9637_v14  }
 0x39b   : > { %v9840_v53 = vpop.permute.xlu0 %3501 }
 0x39c   : > { %3651 = vperm.xlu1 %6988, %v9771_v30   ;;  %v9843_v34 = vpop.permute.xlu1 %3269 }
 0x39d   : > { %4214 = vperm.xlu0 %7018, %v9750_v11  }
 0x39f   : > { %v9846_v43 = vpop.permute.xlu0 %3701 }
 0x3a0   : > { %3656 = vperm.xlu1 %6988, %v9719_v21  }
 0x3a1   : > { %3998 = vperm.xlu0 %7018, %v9673_v63   ;;  %v9850_v62 = vpop.permute.xlu1 %3298 }
 0x3a3   : > { %v9852_v8 = vpop.permute.xlu0 %3713 }
 0x3a4   : > { %3666 = vperm.xlu1 %6988, %v9723_v3  }
 0x3a5   : > { %4222 = vperm.xlu0 %7018, %v9764_v2   ;;  %v9856_v7 = vpop.permute.xlu1 %3306 }
 0x3a7   : > { %v9858_v32 = vpop.permute.xlu0 %3721 }
 0x3a8   : > { %3676 = vperm.xlu1 %6988, %v9727_v46  }
 0x3a9   : > { %4442 = vperm.xlu0 %7018, %v9771_v30   ;;  %v9862_v0 = vpop.permute.xlu1 %3310 }
 0x3ab   : > { %v9864_v18 = vpop.permute.xlu0 %3729 }
 0x3ac   : > { %6989 = vset.pattern.permute.xlu1 %v12103_v10 }
 0x3ad   : > { %3705 = vperm.xlu1 %6989, %v9738_v39   ;;  %4006 = vperm.xlu0 %7018, %v9684_v42   ;;  %v9869_v15 = vpop.permute.xlu1 %3318 }
 0x3af   : > { %v9871_v38 = vpop.permute.xlu0 %3929 }
 0x3b1   : > { %3709 = vperm.xlu1 %6989, %v9771_v30   ;;  %4230 = vperm.xlu0 %7018, %v9782_v27   ;;  %v9875_v47 = vpop.permute.xlu1 %3326 }
 0x3b3   : > { %v9877_v5 = vpop.permute.xlu0 %3941 }
 0x3b5   : > { %3717 = vperm.xlu1 %6989, %v9779_v52   ;;  %4450 = vperm.xlu0 %7018, %v9779_v52  }
 0x3b6   : > { %v9881_v51 = vpop.permute.xlu1 %3355 }
 0x3b7   : > { %12107 = vst [vmem:[#allocation26_spill] sm:$0xff] %v9881_v51  ;;  %v9883_v17 = vpop.permute.xlu0 %3949 }
 0x3b8   : > { %12108 = vst [vmem:[#allocation83_spill] sm:$0xff] %v9883_v17 }
 0x3b9   : > { %3725 = vperm.xlu1 %6989, %v9824_v48   ;;  %4671 = vperm.xlu0 %7018, %v9637_v14  }
 0x3ba   : > { %v9887_v12 = vpop.permute.xlu1 %3359 }
 0x3bb   : > { %v9889_v1 = vpop.permute.xlu0 %4385 }
 0x3bc   : > { %12109 = vst [vmem:[#allocation84_spill] sm:$0xff] %v9889_v1 }
 0x3bd   : > { %6990 = vset.pattern.permute.xlu1 %v11550_v19  ;;  %4234 = vperm.xlu0 %7018, %v9706_v40  }
 0x3be   : > { %3754 = vperm.xlu1 %6990, %v9712_v6   ;;  %v9894_v25 = vpop.permute.xlu1 %3367 }
 0x3bf   : > { %12110 = vst [vmem:[#allocation30_spill] sm:$0xff] %v9894_v25  ;;  %v9896_v23 = vpop.permute.xlu0 %3957 }
 0x3c0   : > { %12111 = vst [vmem:[#allocation32_spill] sm:$0xff] %v9896_v23 }
 0x3c1   : > { %4458 = vperm.xlu0 %7018, %v9824_v48  }
 0x3c2   : > { %3762 = vperm.xlu1 %6990, %v9771_v30   ;;  %v9900_v51 = vpop.permute.xlu1 %3375 }
 0x3c3   : > { %12112 = vst [vmem:[#allocation85_spill] sm:$0xff] %v9900_v51  ;;  %v9902_v57 = vpop.permute.xlu0 %4393 }
 0x3c4   : > { %12113 = vst [vmem:[#allocation86_spill] sm:$0xff] %v9902_v57 }
 0x3c5   : > { %4679 = vperm.xlu0 %7018, %v9673_v63  }
 0x3c6   : > { %3766 = vperm.xlu1 %6990, %v9719_v21  }
 0x3c7   : > { %v9906_v19 = vpop.permute.xlu0 %4614  ;;  %v9908_v60 = vpop.permute.xlu1 %3413 }
 0x3c8   : > { %12114 = vst [vmem:[#allocation113_spill] sm:$0xff] %v9906_v19  ;;  %v12119_v19 = vmov 3  }
 0x3c9   : > { %4899 = vperm.xlu0 %7018, %v9694_v41  }
 0x3ca   : > { %3774 = vperm.xlu1 %6990, %v9723_v3  }
 0x3cb   : > { %v9912_v17 = vpop.permute.xlu0 %4185  ;;  %v9914_v23 = vpop.permute.xlu1 %3423 }
 0x3cc   : > { %12115 = vst [vmem:[#allocation87_spill] sm:$0xff] %v9912_v17  ;;  %12116 = vst [vmem:[#allocation88_spill] sm:$0xff] %v9914_v23 }
 0x3cd   : > { %4462 = vperm.xlu0 %7018, %v9727_v46  }
 0x3ce   : > { %3782 = vperm.xlu1 %6990, %v9727_v46  }
 0x3cf   : > { %v9918_v57 = vpop.permute.xlu0 %4622  ;;  %v9920_v1 = vpop.permute.xlu1 %3428 }
 0x3d0   : > { %12117 = vst [vmem:[#allocation89_spill] sm:$0xff] %v9918_v57  ;;  %12118 = vst [vmem:[#allocation90_spill] sm:$0xff] %v9920_v1 }
 0x3d1   : > { %4687 = vperm.xlu0 %7018, %v9684_v42  }
 0x3d2   : > { %6991 = vset.pattern.permute.xlu1 %v12119_v19 }
 0x3d3   : > { %v9924_v51 = vpop.permute.xlu0 %4842  ;;  %3811 = vperm.xlu1 %6991, %v9738_v39   ;;  %v9927_v25 = vpop.permute.xlu1 %3438 }
 0x3d4   : > { %12120 = vst [vmem:[#allocation91_spill] sm:$0xff] %v9924_v51  ;;  %12121 = vst [vmem:[#allocation92_spill] sm:$0xff] %v9927_v25 }
 0x3d5   : > { %4907 = vperm.xlu0 %7018, %v9700_v33  }
 0x3d7   : > { %v9930_v17 = vpop.permute.xlu0 %4413  ;;  %3815 = vperm.xlu1 %6991, %v9771_v30   ;;  %v9933_v23 = vpop.permute.xlu1 %3448 }
 0x3d8   : > { %12122 = vst [vmem:[#allocation93_spill] sm:$0xff] %v9930_v17  ;;  %12123 = vst [vmem:[#allocation94_spill] sm:$0xff] %v9933_v23 }
 0x3d9   : > { %5127 = vperm.xlu0 %7018, %v9719_v21  }
 0x3db   : > { %v9936_v57 = vpop.permute.xlu0 %4850  ;;  %3823 = vperm.xlu1 %6991, %v9779_v52  }
 0x3dc   : > { %12124 = vst [vmem:[#allocation95_spill] sm:$0xff] %v9936_v57  ;;  %v9939_v1 = vpop.permute.xlu1 %3477 }
 0x3dd   : > { %12125 = vst [vmem:[#allocation96_spill] sm:$0xff] %v9939_v1  ;;  %4691 = vperm.xlu0 %7018, %v9742_v56  }
 0x3df   : > { %v9942_v51 = vpop.permute.xlu0 %5070  ;;  %3831 = vperm.xlu1 %6991, %v9824_v48  }
 0x3e0   : > { %12126 = vst [vmem:[#allocation97_spill] sm:$0xff] %v9942_v51  ;;  %v9945_v25 = vpop.permute.xlu1 %3481 }
 0x3e1   : > { %12127 = vst [vmem:[#allocation117_spill] sm:$0xff] %v9945_v25  ;;  %4915 = vperm.xlu0 %7018, %v9706_v40  }
 0x3e3   : > { %v9948_v17 = vpop.permute.xlu0 %4642  ;;  %6992 = vset.pattern.permute.xlu1 %v12104_v9 }
 0x3e4   : > { %12128 = vst [vmem:[#allocation98_spill] sm:$0xff] %v9948_v17  ;;  %3869 = vperm.xlu1 %6992, %v9573_v29   ;;  %v9952_v57 = vpop.permute.xlu1 %3489 }
 0x3e5   : > { %12129 = vst [vmem:[#allocation99_spill] sm:$0xff] %v9952_v57  ;;  %5135 = vperm.xlu0 %7018, %v9723_v3  }
 0x3e7   : > { %v9955_v1 = vpop.permute.xlu0 %5078 }
 0x3e8   : > { %12130 = vst [vmem:[#allocation100_spill] sm:$0xff] %v9955_v1  ;;  %3879 = vperm.xlu1 %6992, %v9637_v14   ;;  %v9958_v51 = vpop.permute.xlu1 %3497 }
 0x3e9   : > { %12131 = vst [vmem:[#allocation101_spill] sm:$0xff] %v9958_v51  ;;  %4919 = vperm.xlu0 %7018, %v9752_v55  }
 0x3ec   : > { %v9961_v25 = vpop.permute.xlu0 %3302  ;;  %3884 = vperm.xlu1 %6992, %v9703_v22  }
 0x3ed   : > { %12132 = vst [vmem:[#allocation102_spill] sm:$0xff] %v9961_v25  ;;  %5143 = vperm.xlu0 %7018, %v9727_v46   ;;  %v9965_v17 = vpop.permute.xlu1 %3526 }
 0x3ee   : > { %12133 = vst [vmem:[#allocation103_spill] sm:$0xff] %v9965_v17  ;;  %v12143_v17 = vmov 2  }
 0x3f0   : > { %v9967_v23 = vpop.permute.xlu0 %3314  ;;  %3894 = vperm.xlu1 %6992, %v9709_v54  }
 0x3f1   : > { %12134 = vst [vmem:[#allocation104_spill] sm:$0xff] %v9967_v23  ;;  %7024 = vset.pattern.permute.xlu0 %v12119_v19  ;;  %v9971_v1 = vpop.permute.xlu1 %3534 }
 0x3f2   : > { %12135 = vst [vmem:[#allocation105_spill] sm:$0xff] %v9971_v1  ;;  %3351 = vperm.xlu0 %7024, %v9716_v4  }
 0x3f4   : > { %v9974_v51 = vpop.permute.xlu0 %3322  ;;  %3904 = vperm.xlu1 %6992, %v9742_v56  }
 0x3f5   : > { %12136 = vst [vmem:[#allocation106_spill] sm:$0xff] %v9974_v51  ;;  %v9977_v25 = vpop.permute.xlu1 %3538 }
 0x3f6   : > { %12137 = vst [vmem:[#allocation107_spill] sm:$0xff] %v9977_v25  ;;  %3363 = vperm.xlu0 %7024, %v9637_v14  }
 0x3f8   : > { %v9980_v57 = vpop.permute.xlu0 %3530  ;;  %6993 = vset.pattern.permute.xlu1 %v12103_v10 }
 0x3f9   : > { %12138 = vst [vmem:[#allocation10_spill] sm:$0xff] %v9980_v57  ;;  %3933 = vperm.xlu1 %6993, %v9697_v49   ;;  %v9984_v23 = vpop.permute.xlu1 %3546 }
 0x3fa   : > { %12139 = vst [vmem:[#allocation11_spill] sm:$0xff] %v9984_v23  ;;  %3371 = vperm.xlu0 %7024, %v9673_v63  }
 0x3fc   : > { %v9987_v1 = vpop.permute.xlu0 %3542 }
 0x3fd   : > { %12140 = vst [vmem:[#allocation12_spill] sm:$0xff] %v9987_v1  ;;  %3937 = vperm.xlu1 %6993, %v9637_v14   ;;  %v9990_v51 = vpop.permute.xlu1 %3554 }
 0x3fe   : > { %12141 = vst [vmem:[#allocation13_spill] sm:$0xff] %v9990_v51  ;;  %3379 = vperm.xlu0 %7024, %v9684_v42  }
 0x400   : > { %v9993_v25 = vpop.permute.xlu0 %3550 }
 0x401   : > { %12142 = vst [vmem:[#allocation15_spill] sm:$0xff] %v9993_v25  ;;  %6994 = vset.pattern.permute.xlu1 %v12143_v17 }
 0x402   : > { %3579 = vperm.xlu0 %7024, %v9689_v28   ;;  %3986 = vperm.xlu1 %6994, %v9697_v49   ;;  %v9998_v57 = vpop.permute.xlu1 %3583 }
 0x403   : > { %12144 = vst [vmem:[#allocation108_spill] sm:$0xff] %v9998_v57 }
 0x404   : > { %v10000_v23 = vpop.permute.xlu0 %3758 }
 0x405   : > { %12145 = vst [vmem:[#allocation109_spill] sm:$0xff] %v10000_v23 }
 0x406   : > { %3591 = vperm.xlu0 %7024, %v9694_v41   ;;  %6995 = vset.pattern.permute.xlu1 %v12119_v19  ;;  %v10004_v1 = vpop.permute.xlu1 %3587 }
 0x407   : > { %12146 = vst [vmem:[#allocation18_spill] sm:$0xff] %v10004_v1  ;;  %4035 = vperm.xlu1 %6995, %v9573_v29  }
 0x408   : > { %v10007_v51 = vpop.permute.xlu0 %3770 }
 0x409   : > { %12147 = vst [vmem:[#allocation110_spill] sm:$0xff] %v10007_v51 }
 0x40a   : > { %3599 = vperm.xlu0 %7024, %v9700_v33   ;;  %v10010_v25 = vpop.permute.xlu1 %3595 }
 0x40b   : > { %12148 = vst [vmem:[#allocation21_spill] sm:$0xff] %v10010_v25  ;;  %6996 = vset.pattern.permute.xlu1 %v12104_v9 }
 0x40c   : > { %v10013_v28 = vpop.permute.xlu0 %3778  ;;  %4097 = vperm.xlu1 %6996, %v9768_v59  }
 0x40d   : > { %12149 = vst [vmem:[#allocation23_spill] sm:$0xff] %v10013_v28 }
 0x40e   : > { %3607 = vperm.xlu0 %7024, %v9706_v40   ;;  %v10017_v23 = vpop.permute.xlu1 %3603 }
 0x40f   : > { %12150 = vst [vmem:[#allocation25_spill] sm:$0xff] %v10017_v23 }
 0x410   : > { %v10019_v57 = vpop.permute.xlu0 %3982  ;;  %4102 = vperm.xlu1 %6996, %v9750_v11  }
 0x411   : > { %12151 = vst [vmem:[#allocation27_spill] sm:$0xff] %v10019_v57 }
 0x412   : > { %3807 = vperm.xlu0 %7024, %v9712_v6  }
 0x413   : > { %v10023_v29 = vpop.permute.xlu1 %3641 }
 0x414   : > { %v10025_v51 = vpop.permute.xlu0 %3990  ;;  %6997 = vset.pattern.permute.xlu1 %v12103_v10 }
 0x415   : > { %12152 = vst [vmem:[#allocation29_spill] sm:$0xff] %v10025_v51  ;;  %4157 = vperm.xlu1 %6997, %v9768_v59  }
 0x416   : > { %3819 = vperm.xlu0 %7024, %v9719_v21  }
 0x417   : > { %v10030_v28 = vpop.permute.xlu1 %3651 }
 0x418   : > { %12153 = vst [vmem:[#allocation31_spill] sm:$0xff] %v10030_v28  ;;  %v10032_v25 = vpop.permute.xlu0 %4214 }
 0x419   : > { %12154 = vst [vmem:[#allocation33_spill] sm:$0xff] %v10032_v25  ;;  %4161 = vperm.xlu1 %6997, %v9750_v11  }
 0x41a   : > { %3827 = vperm.xlu0 %7024, %v9723_v3  }
 0x41b   : > { %v10036_v23 = vpop.permute.xlu1 %3656 }
 0x41c   : > { %12155 = vst [vmem:[#allocation35_spill] sm:$0xff] %v10036_v23  ;;  %v10038_v6 = vpop.permute.xlu0 %3998 }
 0x41d   : > { %12156 = vst [vmem:[#allocation37_spill] sm:$0xff] %v10038_v6  ;;  %6998 = vset.pattern.permute.xlu1 %v12143_v17 }
 0x41e   : > { %3835 = vperm.xlu0 %7024, %v9727_v46   ;;  %3994 = vperm.xlu1 %6998, %v9703_v22  }
 0x41f   : > { %v10043_v51 = vpop.permute.xlu1 %3666 }
 0x420   : > { %12157 = vst [vmem:[#allocation39_spill] sm:$0xff] %v10043_v51  ;;  %v10045_v57 = vpop.permute.xlu0 %4222 }
 0x421   : > { %12158 = vst [vmem:[#allocation41_spill] sm:$0xff] %v10045_v57 }
 0x422   : > { %4039 = vperm.xlu0 %7024, %v9697_v49   ;;  %4210 = vperm.xlu1 %6998, %v9768_v59  }
 0x423   : > { %v10049_v25 = vpop.permute.xlu1 %3676 }
 0x424   : > { %12159 = vst [vmem:[#allocation43_spill] sm:$0xff] %v10049_v25  ;;  %v10051_v28 = vpop.permute.xlu0 %4442 }
 0x425   : > { %12160 = vst [vmem:[#allocation45_spill] sm:$0xff] %v10051_v28 }
 0x426   : > { %4047 = vperm.xlu0 %7024, %v9703_v22   ;;  %6999 = vset.pattern.permute.xlu1 %v12119_v19 }
 0x427   : > { %4043 = vperm.xlu1 %6999, %v9637_v14  }
 0x428   : > { %v10056_v6 = vpop.permute.xlu0 %4006  ;;  %v10058_v23 = vpop.permute.xlu1 %3705 }
 0x429   : > { %12161 = vst [vmem:[#allocation47_spill] sm:$0xff] %v10056_v6  ;;  %12162 = vst [vmem:[#allocation49_spill] sm:$0xff] %v10058_v23 }
 0x42a   : > { %4055 = vperm.xlu0 %7024, %v9709_v54  }
 0x42b   : > { %4263 = vperm.xlu1 %6999, %v9768_v59  }
 0x42c   : > { %v10062_v57 = vpop.permute.xlu0 %4230  ;;  %v10064_v51 = vpop.permute.xlu1 %3709 }
 0x42d   : > { %12163 = vst [vmem:[#allocation51_spill] sm:$0xff] %v10062_v57  ;;  %12164 = vst [vmem:[#allocation53_spill] sm:$0xff] %v10064_v51 }
 0x42e   : > { %4491 = vperm.xlu0 %7024, %v9738_v39  }
 0x42f   : > { %4267 = vperm.xlu1 %6999, %v9750_v11  }
 0x430   : > { %v10068_v28 = vpop.permute.xlu0 %4450  ;;  %v10070_v25 = vpop.permute.xlu1 %3717 }
 0x431   : > { %12165 = vst [vmem:[#allocation55_spill] sm:$0xff] %v10068_v28  ;;  %12166 = vst [vmem:[#allocation57_spill] sm:$0xff] %v10070_v25 }
 0x432   : > { %4063 = vperm.xlu0 %7024, %v9742_v56  }
 0x433   : > { %7000 = vset.pattern.permute.xlu1 %v12104_v9 }
 0x434   : > { %v10074_v23 = vpop.permute.xlu0 %4671  ;;  %4112 = vperm.xlu1 %7000, %v9764_v2   ;;  %v10077_v6 = vpop.permute.xlu1 %3725 }
 0x435   : > { %12167 = vst [vmem:[#allocation59_spill] sm:$0xff] %v10074_v23  ;;  %12168 = vst [vmem:[#allocation61_spill] sm:$0xff] %v10077_v6 }
 0x436   : > { %4499 = vperm.xlu0 %7024, %v9719_v21  }
 0x438   : > { %v10080_v57 = vpop.permute.xlu0 %4234  ;;  %4325 = vperm.xlu1 %7000, %v9738_v39  }
 0x439   : > { %12169 = vst [vmem:[#allocation63_spill] sm:$0xff] %v10080_v57  ;;  %v10083_v51 = vpop.permute.xlu1 %3754 }
 0x43a   : > { %12170 = vst [vmem:[#allocation65_spill] sm:$0xff] %v10083_v51  ;;  %4720 = vperm.xlu0 %7024, %v9697_v49  }
 0x43c   : > { %v10086_v28 = vpop.permute.xlu0 %4458  ;;  %7001 = vset.pattern.permute.xlu1 %v12103_v10 }
 0x43d   : > { %12171 = vst [vmem:[#allocation67_spill] sm:$0xff] %v10086_v28  ;;  %3945 = vperm.xlu1 %7001, %v9673_v63   ;;  %v10090_v23 = vpop.permute.xlu1 %3762 }
 0x43e   : > { %12172 = vst [vmem:[#allocation111_spill] sm:$0xff] %v10090_v23  ;;  %4291 = vperm.xlu0 %7024, %v9752_v55  }
 0x440   : > { %v10093_v6 = vpop.permute.xlu0 %4679 }
 0x441   : > { %12173 = vst [vmem:[#allocation70_spill] sm:$0xff] %v10093_v6  ;;  %4165 = vperm.xlu1 %7001, %v9694_v41   ;;  %v10096_v57 = vpop.permute.xlu1 %3766 }
 0x442   : > { %12174 = vst [vmem:[#allocation112_spill] sm:$0xff] %v10096_v57  ;;  %4728 = vperm.xlu0 %7024, %v9703_v22  }
 0x444   : > { %v10099_v25 = vpop.permute.xlu0 %4899 }
 0x445   : > { %12175 = vst [vmem:[#allocation114_spill] sm:$0xff] %v10099_v25  ;;  %4169 = vperm.xlu1 %7001, %v9764_v2   ;;  %v10102_v28 = vpop.permute.xlu1 %3774 }
 0x446   : > { %12176 = vst [vmem:[#allocation115_spill] sm:$0xff] %v10102_v28  ;;  %4948 = vperm.xlu0 %7024, %v9750_v11  }
 0x448   : > { %v10105_v51 = vpop.permute.xlu0 %4462 }
 0x449   : > { %12177 = vst [vmem:[#allocation116_spill] sm:$0xff] %v10105_v51  ;;  %4389 = vperm.xlu1 %7001, %v9771_v30   ;;  %v10108_v23 = vpop.permute.xlu1 %3782 }
 0x44a   : > { %12178 = vst [vmem:[#allocation118_spill] sm:$0xff] %v10108_v23  ;;  %4519 = vperm.xlu0 %7024, %v9760_v45  }
 0x44c   : > { %v10111_v6 = vpop.permute.xlu0 %4687 }
 0x44d   : > { %12179 = vst [vmem:[#allocation119_spill] sm:$0xff] %v10111_v6  ;;  %7002 = vset.pattern.permute.xlu1 %v12143_v17 }
 0x44e   : > { %4956 = vperm.xlu0 %7024, %v9764_v2   ;;  %4002 = vperm.xlu1 %7002, %v9709_v54   ;;  %v10116_v25 = vpop.permute.xlu1 %3811 }
 0x44f   : > { %12180 = vst [vmem:[#allocation120_spill] sm:$0xff] %v10116_v25  ;;  %v10137_v25 = vld [vmem:[#allocation4 + $0x91] sm:$0xff] }
 0x450   : > { %v10118_v28 = vpop.permute.xlu0 %4907 }
 0x451   : > { %12181 = vst [vmem:[#allocation121_spill] sm:$0xff] %v10118_v28 }
 0x452   : > { %5176 = vperm.xlu0 %7024, %v9771_v30   ;;  %4218 = vperm.xlu1 %7002, %v9694_v41   ;;  %v10122_v51 = vpop.permute.xlu1 %3815 }
 0x453   : > { %12182 = vst [vmem:[#allocation122_spill] sm:$0xff] %v10122_v51 }
 0x454   : > { %v10124_v57 = vpop.permute.xlu0 %5127 }
 0x455   : > { %12183 = vst [vmem:[#allocation123_spill] sm:$0xff] %v10124_v57 }
 0x456   : > { %4748 = vperm.xlu0 %7024, %v9775_v50   ;;  %4438 = vperm.xlu1 %7002, %v9738_v39   ;;  %v10128_v45 = vpop.permute.xlu1 %3823 }
 0x457   : > { %12184 = vst [vmem:[#allocation124_spill] sm:$0xff] %v10128_v45 }
 0x458   : > { %v10130_v6 = vpop.permute.xlu0 %4691 }
 0x459   : > { %12185 = vst [vmem:[#allocation125_spill] sm:$0xff] %v10130_v6 }
 0x45a   : > { %5184 = vperm.xlu0 %7024, %v9779_v52   ;;  %7003 = vset.pattern.permute.xlu1 %v12119_v19  ;;  %v10134_v28 = vpop.permute.xlu1 %3831 }
 0x45b   : > { %12186 = vst [vmem:[#allocation126_spill] sm:$0xff] %v10134_v28  ;;  %4051 = vperm.xlu1 %7003, %v9673_v63  }
 0x45c   : > { %v10139_v51 = vpop.permute.xlu0 %4915 }
 0x45d   : > { %12187 = vst [vmem:[#allocation127_spill] sm:$0xff] %v10139_v51 }
 0x45e   : > { %4976 = vperm.xlu0 %7024, %v10137_v25  }
 0x45f   : > { %4271 = vperm.xlu1 %7003, %v9694_v41   ;;  %v10143_v50 = vpop.permute.xlu1 %3869 }
 0x460   : > { %12188 = vst [vmem:[#allocation128_spill] sm:$0xff] %v10143_v50  ;;  %v10145_v57 = vpop.permute.xlu0 %5135 }
 0x461   : > { %12189 = vst [vmem:[#allocation129_spill] sm:$0xff] %v10145_v57 }
 0x462   : > { %7026 = vset.pattern.permute.xlu0 %v12104_v9 }
 0x463   : > { %3193 = vperm.xlu0 %7026, %v9716_v4   ;;  %4275 = vperm.xlu1 %7003, %v9764_v2   ;;  %v10150_v6 = vpop.permute.xlu1 %3879 }
 0x464   : > { %12190 = vst [vmem:[#allocation130_spill] sm:$0xff] %v10150_v6  ;;  %v10152_v28 = vpop.permute.xlu0 %4919 }
 0x465   : > { %12191 = vst [vmem:[#allocation131_spill] sm:$0xff] %v10152_v28 }
 0x467   : > { %3203 = vperm.xlu0 %7026, %v9697_v49   ;;  %4495 = vperm.xlu1 %7003, %v9771_v30   ;;  %v10156_v51 = vpop.permute.xlu1 %3884 }
 0x468   : > { %12192 = vst [vmem:[#allocation132_spill] sm:$0xff] %v10156_v51  ;;  %v10158_v45 = vpop.permute.xlu0 %5143 }
 0x469   : > { %12193 = vst [vmem:[#allocation133_spill] sm:$0xff] %v10158_v45 }
 0x46b   : > { %3213 = vperm.xlu0 %7026, %v9703_v22   ;;  %7004 = vset.pattern.permute.xlu1 %v12104_v9  ;;  %v10162_v57 = vpop.permute.xlu1 %3894 }
 0x46c   : > { %12194 = vst [vmem:[#allocation134_spill] sm:$0xff] %v10162_v57  ;;  %4122 = vperm.xlu1 %7004, %v9782_v27  }
 0x46d   : > { %v10165_v4 = vpop.permute.xlu0 %3351 }
 0x46f   : > { %3223 = vperm.xlu0 %7026, %v9709_v54   ;;  %v10168_v28 = vpop.permute.xlu1 %3904 }
 0x470   : > { %12195 = vst [vmem:[#allocation135_spill] sm:$0xff] %v10168_v28  ;;  %4335 = vperm.xlu1 %7004, %v9719_v21   ;;  %v4090_v28 = vld [vmem:[#allocation4 + $0x51] sm:$0xff] }
 0x471   : > { %v10171_v6 = vpop.permute.xlu0 %3363 }
 0x473   : > { %3418 = vperm.xlu0 %7026, %v9768_v59  }
 0x474   : > { %4554 = vperm.xlu1 %7004, %v9697_v49   ;;  %v10175_v45 = vpop.permute.xlu1 %3933 }
 0x475   : > { %12196 = vst [vmem:[#allocation136_spill] sm:$0xff] %v10175_v45  ;;  %v10177_v51 = vpop.permute.xlu0 %3371 }
 0x477   : > { %3433 = vperm.xlu0 %7026, %v9764_v2  }
 0x478   : > { %7005 = vset.pattern.permute.xlu1 %v12103_v10  ;;  %v10181_v57 = vpop.permute.xlu1 %3937 }
 0x479   : > { %12197 = vst [vmem:[#allocation137_spill] sm:$0xff] %v10181_v57  ;;  %v10183_v54 = vpop.permute.xlu0 %3379  ;;  %3953 = vperm.xlu1 %7005, %v9684_v42  }
 0x47b   : > { %3443 = vperm.xlu0 %7026, %v9782_v27  }
 0x47d   : > { %v10187_v59 = vpop.permute.xlu0 %3579  ;;  %4173 = vperm.xlu1 %7005, %v4090_v28   ;;  %v10189_v23 = vpop.permute.xlu1 %3986 }
 0x47e   : > { %12198 = vst [vmem:[#allocation138_spill] sm:$0xff] %v10189_v23 }
 0x47f   : > { %3646 = vperm.xlu0 %7026, %v9738_v39  }
 0x481   : > { %v10192_v45 = vpop.permute.xlu0 %3591  ;;  %4177 = vperm.xlu1 %7005, %v9782_v27  }
 0x482   : > { %12199 = vst [vmem:[#allocation139_spill] sm:$0xff] %v10192_v45  ;;  %v10195_v2 = vpop.permute.xlu1 %4035 }
 0x483   : > { %12200 = vst [vmem:[#allocation140_spill] sm:$0xff] %v10195_v2  ;;  %3661 = vperm.xlu0 %7026, %v9779_v52  }
 0x485   : > { %v10198_v57 = vpop.permute.xlu0 %3599  ;;  %4397 = vperm.xlu1 %7005, %v9779_v52  }
 0x486   : > { %12201 = vst [vmem:[#allocation141_spill] sm:$0xff] %v10198_v57 }
 0x487   : > { %3671 = vperm.xlu0 %7026, %v9824_v48   ;;  %v10202_v50 = vpop.permute.xlu1 %4097 }
 0x488   : > { %12202 = vst [vmem:[#allocation142_spill] sm:$0xff] %v10202_v50 }
 0x489   : > { %v10204_v1 = vpop.permute.xlu0 %3607  ;;  %4618 = vperm.xlu1 %7005, %v9637_v14  }
 0x48b   : > { %3874 = vperm.xlu0 %7026, %v9697_v49   ;;  %v10208_v39 = vpop.permute.xlu1 %4102 }
 0x48c   : > { %12203 = vst [vmem:[#allocation143_spill] sm:$0xff] %v10208_v39 }
 0x48d   : > { %v10210_v23 = vpop.permute.xlu0 %3807  ;;  %7006 = vset.pattern.permute.xlu1 %v12143_v17 }
 0x48e   : > { %12204 = vst [vmem:[#allocation144_spill] sm:$0xff] %v10210_v23  ;;  %4010 = vperm.xlu1 %7006, %v9742_v56  }
 0x48f   : > { %3889 = vperm.xlu0 %7026, %v9673_v63  }
 0x490   : > { %v10215_v57 = vpop.permute.xlu1 %4157 }
 0x491   : > { %12205 = vst [vmem:[#allocation145_spill] sm:$0xff] %v10215_v57  ;;  %v10217_v2 = vpop.permute.xlu0 %3819 }
 0x492   : > { %12206 = vst [vmem:[#allocation146_spill] sm:$0xff] %v10217_v2  ;;  %4226 = vperm.xlu1 %7006, %v4090_v28  }
 0x493   : > { %3899 = vperm.xlu0 %7026, %v9684_v42  }
 0x494   : > { %v10220_v50 = vpop.permute.xlu1 %4161 }
 0x495   : > { %12207 = vst [vmem:[#allocation147_spill] sm:$0xff] %v10220_v50  ;;  %v10222_v45 = vpop.permute.xlu0 %3827 }
 0x496   : > { %12208 = vst [vmem:[#allocation148_spill] sm:$0xff] %v10222_v45  ;;  %4446 = vperm.xlu1 %7006, %v9719_v21  }
 0x497   : > { %4107 = vperm.xlu0 %7026, %v9694_v41  }
 0x499   : > { %v10226_v39 = vpop.permute.xlu0 %3835  ;;  %v10228_v23 = vpop.permute.xlu1 %3994 }
 0x49a   : > { %12209 = vst [vmem:[#allocation149_spill] sm:$0xff] %v10228_v23  ;;  %4667 = vperm.xlu1 %7006, %v9697_v49  }
 0x49b   : > { %4330 = vperm.xlu0 %7026, %v9771_v30  }
 0x49d   : > { %v10232_v2 = vpop.permute.xlu0 %4039  ;;  %v10234_v57 = vpop.permute.xlu1 %4210 }
 0x49e   : > { %12210 = vst [vmem:[#allocation150_spill] sm:$0xff] %v10232_v2  ;;  %7007 = vset.pattern.permute.xlu1 %v12119_v19 }
 0x49f   : > { %4117 = vperm.xlu0 %7026, %v4090_v28   ;;  %4059 = vperm.xlu1 %7007, %v9684_v42  }
 0x4a1   : > { %v10238_v50 = vpop.permute.xlu0 %4047 }
 0x4a2   : > { %12211 = vst [vmem:[#allocation151_spill] sm:$0xff] %v10238_v50  ;;  %v10240_v45 = vpop.permute.xlu1 %4043 }
 0x4a3   : > { %12212 = vst [vmem:[#allocation152_spill] sm:$0xff] %v10240_v45  ;;  %4340 = vperm.xlu0 %7026, %v9779_v52   ;;  %4279 = vperm.xlu1 %7007, %v4090_v28  }
 0x4a5   : > { %v10243_v23 = vpop.permute.xlu0 %4055 }
 0x4a6   : > { %12213 = vst [vmem:[#allocation153_spill] sm:$0xff] %v10243_v23  ;;  %v10245_v49 = vpop.permute.xlu1 %4263 }
 0x4a7   : > { %4559 = vperm.xlu0 %7026, %v9637_v14   ;;  %4283 = vperm.xlu1 %7007, %v9782_v27  }
 0x4a9   : > { %v10249_v30 = vpop.permute.xlu0 %4491 }
 0x4aa   : > { %v10251_v2 = vpop.permute.xlu1 %4267 }
 0x4ab   : > { %12214 = vst [vmem:[#allocation154_spill] sm:$0xff] %v10251_v2  ;;  %4127 = vperm.xlu0 %7026, %v9706_v40   ;;  %4503 = vperm.xlu1 %7007, %v9779_v52   ;;  %v10271_v52 = vld [vmem:[#allocation4 + $0x52] sm:$0xff] }
 0x4ad   : > { %v10255_v45 = vpop.permute.xlu0 %4063 }
 0x4ae   : > { %12215 = vst [vmem:[#allocation155_spill] sm:$0xff] %v10255_v45 }
 0x4af   : > { %4350 = vperm.xlu0 %7026, %v9824_v48   ;;  %4724 = vperm.xlu1 %7007, %v9637_v14   ;;  %v10259_v28 = vpop.permute.xlu1 %4112 }
 0x4b0   : > { %12216 = vst [vmem:[#allocation156_spill] sm:$0xff] %v10259_v28 }
 0x4b1   : > { %v10261_v23 = vpop.permute.xlu0 %4499 }
 0x4b2   : > { %12217 = vst [vmem:[#allocation157_spill] sm:$0xff] %v10261_v23 }
 0x4b3   : > { %4569 = vperm.xlu0 %7026, %v9673_v63   ;;  %7008 = vset.pattern.permute.xlu1 %v12104_v9  ;;  %v10265_v27 = vpop.permute.xlu1 %4325 }
 0x4b4   : > { %4132 = vperm.xlu1 %7008, %v9752_v55  }
 0x4b5   : > { %v10268_v2 = vpop.permute.xlu0 %4720 }
 0x4b6   : > { %12218 = vst [vmem:[#allocation158_spill] sm:$0xff] %v10268_v2 }
 0x4b7   : > { %4787 = vperm.xlu0 %7026, %v9694_v41  }
 0x4b8   : > { %4345 = vperm.xlu1 %7008, %v10271_v52   ;;  %v10274_v14 = vpop.permute.xlu1 %3945 }
 0x4b9   : > { %12219 = vst [vmem:[#allocation159_spill] sm:$0xff] %v10274_v14  ;;  %v10276_v28 = vpop.permute.xlu0 %4291 }
 0x4ba   : > { %12220 = vst [vmem:[#allocation160_spill] sm:$0xff] %v10276_v28 }
 0x4bb   : > { %4355 = vperm.xlu0 %7026, %v9727_v46  }
 0x4bc   : > { %4564 = vperm.xlu1 %7008, %v9703_v22   ;;  %v10280_v23 = vpop.permute.xlu1 %4165 }
 0x4bd   : > { %12221 = vst [vmem:[#allocation161_spill] sm:$0xff] %v10280_v23  ;;  %v10282_v50 = vpop.permute.xlu0 %4728 }
 0x4be   : > { %12222 = vst [vmem:[#allocation162_spill] sm:$0xff] %v10282_v50 }
 0x4bf   : > { %4579 = vperm.xlu0 %7026, %v9684_v42  }
 0x4c0   : > { %4782 = vperm.xlu1 %7008, %v9750_v11   ;;  %v10286_v2 = vpop.permute.xlu1 %4169 }
 0x4c1   : > { %v10288_v45 = vpop.permute.xlu0 %4948 }
 0x4c2   : > { %12223 = vst [vmem:[#allocation163_spill] sm:$0xff] %v10288_v45 }
 0x4c3   : > { %4797 = vperm.xlu0 %7026, %v9700_v33  }
 0x4c4   : > { %7009 = vset.pattern.permute.xlu1 %v12103_v10  ;;  %v10292_v28 = vpop.permute.xlu1 %4389 }
 0x4c5   : > { %12224 = vst [vmem:[#allocation164_spill] sm:$0xff] %v10292_v28  ;;  %v10294_v14 = vpop.permute.xlu0 %4519  ;;  %4181 = vperm.xlu1 %7009, %v9706_v40  }
 0x4c6   : > { %12225 = vst [vmem:[#allocation165_spill] sm:$0xff] %v10294_v14 }
 0x4c7   : > { %5015 = vperm.xlu0 %7026, %v9719_v21  }
 0x4c9   : > { %v10298_v50 = vpop.permute.xlu0 %4956  ;;  %4401 = vperm.xlu1 %7009, %v10271_v52   ;;  %v10301_v42 = vpop.permute.xlu1 %4002 }
 0x4ca   : > { %12226 = vst [vmem:[#allocation166_spill] sm:$0xff] %v10298_v50  ;;  %12227 = vst [vmem:[#allocation167_spill] sm:$0xff] %v10301_v42  ;;  %v5006_v42 = vld [vmem:[#allocation4 + $0x92] sm:$0xff] }
 0x4cb   : > { %4584 = vperm.xlu0 %7026, %v9742_v56  }
 0x4cd   : > { %v10304_v45 = vpop.permute.xlu0 %5176  ;;  %4405 = vperm.xlu1 %7009, %v9824_v48   ;;  %v10307_v33 = vpop.permute.xlu1 %4218 }
 0x4ce   : > { %12228 = vst [vmem:[#allocation168_spill] sm:$0xff] %v10304_v45  ;;  %12229 = vst [vmem:[#allocation169_spill] sm:$0xff] %v10307_v33  ;;  %v10324_v45 = vld [vmem:[%s12233_s5 + $0x1] ss:$0 sm:$0xff] }
 0x4cf   : > { %4807 = vperm.xlu0 %7026, %v9706_v40   ;;  %12234 = vst [vmem:[#allocation173_spill] sm:$0xff] %v10324_v45 }
 0x4d1   : > { %v10310_v14 = vpop.permute.xlu0 %4748  ;;  %4626 = vperm.xlu1 %7009, %v9673_v63   ;;  %v10313_v21 = vpop.permute.xlu1 %4438  ;;  %v10330_v63 = vld [vmem:[%s12233_s5] ss:$0 sm:$0xff] }
 0x4d2   : > { %12230 = vst [vmem:[#allocation170_spill] sm:$0xff] %v10310_v14  ;;  %v3240_v14 = vmul.f32 %v10330_v63, %v9809_v61  ;;  %v10361_v61 = vld [vmem:[%s12233_s5 + $0x2] ss:$0 sm:$0xff] }
 0x4d3   : > { %5025 = vperm.xlu0 %7026, %v9723_v3   ;;  %v3238_v3 = vmul.f32 %v10330_v63, %v9803_v37  ;;  %v3280_v37 = vmul.f32 %v10324_v45, %v9793_v44  ;;  %12238 = vst [vmem:[#allocation177_spill] sm:$0xff] %v10361_v61 }
 0x4d5   : > { %v10316_v50 = vpop.permute.xlu0 %5184  ;;  %4846 = vperm.xlu1 %7009, %v9694_v41   ;;  %v3283_v41 = vmul.f32 %v10324_v45, %v9801_v58  ;;  %v10354_v58 = vld [vmem:[%s12233_s5 + $0x5] ss:$0 sm:$0xff] }
 0x4d6   : > { %12231 = vst [vmem:[#allocation171_spill] sm:$0xff] %v10316_v50  ;;  %v10319_v56 = vpop.permute.xlu1 %4051  ;;  %v3285_v50 = vmul.f32 %v10324_v45, %v9807_v26  ;;  %12237 = vst [vmem:[#allocation176_spill] sm:$0xff] %v10354_v58  ;;  %v10372_v44 = vmul.f32 %v10354_v58, %v9827_v35  ;;  %v3340_v35 = vmul.f32 %v10361_v61, %v9875_v47 }
 0x4d7   : > { %12232 = vst [vmem:[#allocation172_spill] sm:$0xff] %v10319_v56  ;;  %4812 = vperm.xlu0 %7026, %v9752_v55   ;;  %v3291_v26 = vadd.f32 %v3283_v41, %v3238_v3  ;;  %v3508_v56 = vmul.f32 %v10354_v58, %v9819_v16  ;;  %v10380_v41 = vmul.f32 %v10354_v58, %v9833_v24 }
 0x4d8   : > { %v3336_v16 = vmul.f32 %v10361_v61, %v9862_v0  ;;  %v3333_v24 = vmul.f32 %v10361_v61, %v9850_v62  ;;  %v10404_v0 = vmul.f32 %v10354_v58, %v9840_v53  ;;  %v10408_v47 = vmul.f32 %v10324_v45, %v9843_v34 }
 0x4d9   : > { %7010 = vset.pattern.permute.xlu1 %v12143_v17  ;;  %v10333_v40 = vpop.permute.xlu0 %4976  ;;  %v3287_v17 = vmul.f32 %v10324_v45, %v9813_v20 }
 0x4da   : > { %12235 = vst [vmem:[#allocation174_spill] sm:$0xff] %v10333_v40  ;;  %4238 = vperm.xlu1 %7010, %v9752_v55   ;;  %v10344_v28 = vpop.permute.xlu1 %4271  ;;  %v3242_v40 = vmul.f32 %v10330_v63, %v9816_v31  ;;  %v3293_v55 = vadd.f32 %v3285_v50, %v3240_v14  ;;  %v3282_v14 = vmul.f32 %v10324_v45, %v9830_v13 }
 0x4db   : > { %12236 = vst [vmem:[#allocation175_spill] sm:$0xff] %v10344_v28  ;;  %5035 = vperm.xlu0 %7026, %v9727_v46   ;;  %v10366_v46 = vld [vmem:[#allocation4 + $0x82] sm:$0xff]  ;;  %v3284_v13 = vmul.f32 %v10324_v45, %v9837_v36  ;;  %v10415_v36 = vld [vmem:[%s12233_s5 + $0x4] ss:$0 sm:$0xff] }
 0x4dc   : > { %v3295_v28 = vadd.f32 %v3287_v17, %v3242_v40  ;;  %v10385_v17 = vld [vmem:[%s12233_s5 + $0x9] ss:$0 sm:$0xff]  ;;  %v10394_v40 = vld [vmem:[%s12233_s5 + $0x3] ss:$0 sm:$0xff] }
 0x4dd   : > { %12240 = vst [vmem:[#allocation179_spill] sm:$0xff] %v10385_v17  ;;  %12241 = vst [vmem:[#allocation181_spill] sm:$0xff] %v10394_v40  ;;  %v3386_v3 = vmul.f32 %v10394_v40, %v10165_v4  ;;  %v3393_v62 = vmul.f32 %v10394_v40, %v10183_v54  ;;  %v10424_v34 = vmul.f32 %v10385_v17, %v9846_v43 }
 0x4de   : > { %v3194_v20 = vpop.permute.xlu0 %3193  ;;  %4454 = vperm.xlu1 %7010, %v10271_v52   ;;  %v10364_v31 = vpop.permute.xlu1 %4275  ;;  %v10441_v43 = vmul.f32 %v10385_v17, %v9858_v32  ;;  %v10446_v45 = vmul.f32 %v10385_v17, %v9864_v18  ;;  %v10463_v18 = vld [vmem:[%s12233_s5 + $0x6] ss:$0 sm:$0xff] }
 0x4df   : > { %12239 = vst [vmem:[#allocation178_spill] sm:$0xff] %v10364_v31  ;;  %v3235_v50 = vmul.f32 %v10330_v63, %v3194_v20  ;;  %5040 = vperm.xlu0 %7026, %v10366_v46   ;;  %v3338_v31 = vmul.f32 %v10361_v61, %v9869_v15  ;;  %v10428_v15 = vmul.f32 %v10385_v17, %v9852_v8 }
 0x4e0   : > { %v3348_v8 = vadd.f32 %v3340_v35, %v3295_v28  ;;  %v3388_v28 = vmul.f32 %v10394_v40, %v9887_v12  ;;  %v3389_v12 = vmul.f32 %v10394_v40, %v10171_v6  ;;  %v10501_v6 = vld [vmem:[%s12233_s5 + $0x8] ss:$0 sm:$0xff] }
 0x4e1   : > { %v3288_v20 = vadd.f32 %v3280_v37, %v3235_v50  ;;  %v10433_v37 = vld [vmem:[%s12233_s5 + $0xd] ss:$0 sm:$0xff]  ;;  %v10450_v33 = vadd.f32 %v3338_v31, %v3293_v55  ;;  %12251 = vst [vmem:[#allocation184_spill] sm:$0xff] %v10501_v6 }
 0x4e2   : > { %v3204_v4 = vpop.permute.xlu0 %3203  ;;  %4675 = vperm.xlu1 %7010, %v9703_v22   ;;  %v10420_v53 = vpop.permute.xlu1 %4495  ;;  %v3335_v22 = vmul.f32 %v10361_v61, %v9856_v7  ;;  %v10454_v7 = vmul.f32 %v10433_v37, %v9871_v38  ;;  %v10458_v32 = vmul.f32 %v10433_v37, %v9877_v5  ;;  %v12244_v5 = vld [vmem:[#allocation30_spill] sm:$0xff] }
 0x4e3   : > { %12242 = vst [vmem:[#allocation182_spill] sm:$0xff] %v10420_v53  ;;  %v3341_v50 = vadd.f32 %v3333_v24, %v3288_v20  ;;  %v3237_v54 = vmul.f32 %v10330_v63, %v3204_v4  ;;  %7027 = vset.pattern.permute.xlu0 %v12103_v10  ;;  %v3344_v53 = vadd.f32 %v3336_v16, %v3291_v26  ;;  %v12245_v16 = vld [vmem:[#allocation88_spill] sm:$0xff] }
 0x4e4   : > { %4870 = vperm.xlu0 %7027, %v10137_v25   ;;  %v3455_v24 = vmul.f32 %v10415_v36, %v9908_v60  ;;  %v3401_v25 = vadd.f32 %v3393_v62, %v3348_v8  ;;  %v3457_v35 = vmul.f32 %v10415_v36, %v12245_v16  ;;  %v12250_v16 = vld [vmem:[#allocation117_spill] sm:$0xff] }
 0x4e5   : > { %v3394_v20 = vadd.f32 %v3386_v3, %v3341_v50  ;;  %v3290_v4 = vadd.f32 %v3282_v14, %v3237_v54  ;;  %v10473_v14 = vmul.f32 %v10394_v40, %v12244_v5  ;;  %v12246_v3 = vld [vmem:[#allocation94_spill] sm:$0xff]  ;;  %v12247_v50 = vld [vmem:[#allocation103_spill] sm:$0xff] }
 0x4e6   : > { %v3214_v60 = vpop.permute.xlu0 %3213  ;;  %4895 = vperm.xlu1 %7010, %v9750_v11   ;;  %v3462_v62 = vmul.f32 %v10415_v36, %v12246_v3  ;;  %v10482_v11 = vld [vmem:[%s12233_s5 + $0x7] ss:$0 sm:$0xff]  ;;  %v3561_v54 = vmul.f32 %v10463_v18, %v12247_v50  ;;  %v3510_v3 = vmul.f32 %v10354_v58, %v12250_v16 }
 0x4e7   : > { %v3463_v26 = vadd.f32 %v3455_v24, %v3394_v20  ;;  %v3343_v55 = vadd.f32 %v3335_v22, %v3290_v4  ;;  %v3239_v38 = vmul.f32 %v10330_v63, %v3214_v60  ;;  %v10469_v31 = vpop.permute.xlu1 %4122  ;;  %v3614_v22 = vmul.f32 %v10482_v11, %v10187_v59  ;;  %v12248_v20 = vld [vmem:[#allocation85_spill] sm:$0xff]  ;;  %v12249_v60 = vld [vmem:[#allocation90_spill] sm:$0xff] }
 0x4e8   : > { %12243 = vst [vmem:[#allocation183_spill] sm:$0xff] %v10469_v31  ;;  %5098 = vperm.xlu0 %7027, %v5006_v42   ;;  %v10492_v4 = vmul.f32 %v10394_v40, %v12248_v20  ;;  %v3458_v5 = vmul.f32 %v10415_v36, %v12249_v60  ;;  %v3470_v42 = vadd.f32 %v3462_v62, %v3401_v25  ;;  %v12253_v60 = vld [vmem:[#allocation92_spill] sm:$0xff]  ;;  %v12254_v31 = vld [vmem:[#allocation99_spill] sm:$0xff] }
 0x4e9   : > { %v3516_v8 = vadd.f32 %v3508_v56, %v3463_v26  ;;  %v3396_v24 = vadd.f32 %v3388_v28, %v3343_v55  ;;  %v3292_v28 = vadd.f32 %v3284_v13, %v3239_v38  ;;  %v10505_v55 = vld [vmem:[#allocation4 + $0x71] sm:$0xff]  ;;  %v3460_v16 = vmul.f32 %v10415_v36, %v12253_v60  ;;  %v12255_v62 = vld [vmem:[#allocation104_spill] sm:$0xff] }
 0x4ea   : > { %v3224_v50 = vpop.permute.xlu0 %3223  ;;  %7011 = vset.pattern.permute.xlu1 %v12119_v19  ;;  %12252 = vst [vmem:[#allocation185_spill] sm:$0xff] %v10505_v55  ;;  %v3512_v25 = vmul.f32 %v10354_v58, %v12254_v31  ;;  %v3337_v23 = vmul.f32 %v10361_v61, %v12255_v62  ;;  %v12256_v13 = vld [vmem:[#allocation105_spill] sm:$0xff]  ;;  %v12258_v31 = vld [vmem:[#allocation106_spill] sm:$0xff] }
 0x4eb   : > { %v3569_v59 = vadd.f32 %v3561_v54, %v3516_v8  ;;  %v3465_v56 = vadd.f32 %v3457_v35, %v3396_v24  ;;  %v3241_v26 = vmul.f32 %v10330_v63, %v3224_v50  ;;  %4287 = vperm.xlu1 %7011, %v10505_v55   ;;  %v10508_v20 = vpop.permute.xlu1 %4335  ;;  %v3397_v54 = vadd.f32 %v3389_v12, %v3344_v53  ;;  %v12257_v50 = vld [vmem:[#allocation101_spill] sm:$0xff] }
 0x4ec   : > { %7031 = vset.pattern.permute.xlu0 %v12119_v19  ;;  %v3563_v38 = vmul.f32 %v10463_v18, %v12256_v13  ;;  %v3683_v35 = vmul.f32 %v10501_v6, %v10023_v29  ;;  %v10524_v60 = vmul.f32 %v10354_v58, %v12257_v50  ;;  %v3339_v62 = vmul.f32 %v10361_v61, %v12258_v31  ;;  %v12265_v31 = vld [vmem:[#allocation11_spill] sm:$0xff] }
 0x4ed   : > { %v3622_v8 = vadd.f32 %v3614_v22, %v3569_v59  ;;  %v3518_v24 = vadd.f32 %v3510_v3, %v3465_v56  ;;  %5200 = vperm.xlu0 %7031, %v10366_v46   ;;  %v3391_v53 = vmul.f32 %v10394_v40, %v10177_v51  ;;  %v3523_v12 = vadd.f32 %v10404_v0, %v3470_v42  ;;  %v12260_v59 = vld [vmem:[#allocation13_spill] sm:$0xff]  ;;  %v10542_v51 = vld [vmem:[%s12233_s5 + $0xa] ss:$0 sm:$0xff]  ;;  %v12261_v0 = vld [vmem:[#allocation18_spill] sm:$0xff] }
 0x4ee   : > { %v10531_v13 = vpop.permute.xlu0 %3418  ;;  %v3345_v22 = vadd.f32 %v3337_v23, %v3292_v28  ;;  %v3294_v3 = vadd.f32 %v10408_v47, %v3241_v26  ;;  %v3568_v56 = vmul.f32 %v10463_v18, %v12260_v59  ;;  %v3616_v42 = vmul.f32 %v10482_v11, %v12261_v0  ;;  %v10549_v23 = vld [vmem:[%s12233_s5 + $0xb] ss:$0 sm:$0xff] }
 0x4ef   : > { %12259 = vst [vmem:[#allocation180_spill] sm:$0xff] %v10531_v13  ;;  %v3691_v55 = vadd.f32 %v3683_v35, %v3622_v8  ;;  %v3571_v29 = vadd.f32 %v3563_v38, %v3518_v24  ;;  %4507 = vperm.xlu1 %7011, %v10271_v52   ;;  %v10535_v46 = vpop.permute.xlu1 %4554  ;;  %v3466_v47 = vadd.f32 %v3458_v5, %v3397_v54  ;;  %v12262_v28 = vld [vmem:[#allocation107_spill] sm:$0xff]  ;;  %v12263_v38 = vld [vmem:[#allocation65_spill] sm:$0xff]  ;;  %v12264_v8 = vld [vmem:[#allocation144_spill] sm:$0xff] }
 0x4f0   : > { %v3621_v52 = vmul.f32 %v10482_v11, %v10204_v1  ;;  %v3564_v26 = vmul.f32 %v10463_v18, %v12262_v28  ;;  %v3789_v35 = vmul.f32 %v10542_v51, %v12263_v38  ;;  %v3842_v24 = vmul.f32 %v10549_v23, %v12264_v8  ;;  %v10567_v5 = vld [vmem:[%s12233_s5 + $0xc] ss:$0 sm:$0xff] }
 0x4f1   : > { %v3744_v50 = vadd.f32 %v10424_v34, %v3691_v55  ;;  %v10562_v59 = vmul.f32 %v10463_v18, %v12265_v31  ;;  %12266 = vst [vmem:[#allocation186_spill] sm:$0xff] %v10567_v5  ;;  %v3399_v1 = vadd.f32 %v3391_v53, %v10450_v33  ;;  %v3576_v54 = vadd.f32 %v3568_v56, %v3523_v12  ;;  %v12267_v55 = vld [vmem:[#allocation12_spill] sm:$0xff]  ;;  %v12268_v13 = vld [vmem:[#allocation31_spill] sm:$0xff] }
 0x4f2   : > { %v3624_v0 = vadd.f32 %v3616_v42, %v3571_v29  ;;  %v3434_v28 = vpop.permute.xlu0 %3433  ;;  %v3347_v58 = vadd.f32 %v3339_v62, %v3294_v3  ;;  %v3398_v8 = vadd.f32 %v10473_v14, %v3345_v22  ;;  %v3565_v31 = vmul.f32 %v10463_v18, %v12267_v55  ;;  %v12269_v12 = vld [vmem:[#allocation15_spill] sm:$0xff]  ;;  %v12270_v29 = vld [vmem:[#allocation128_spill] sm:$0xff]  ;;  %v12274_v55 = vld [vmem:[#allocation53_spill] sm:$0xff] }
 0x4f3   : > { %v3797_v38 = vadd.f32 %v3789_v35, %v3744_v50  ;;  %v3459_v34 = vmul.f32 %v10415_v36, %v3434_v28  ;;  %4511 = vperm.xlu1 %7011, %v9824_v48   ;;  %v3685_v40 = vmul.f32 %v10501_v6, %v12268_v13  ;;  %v3519_v61 = vadd.f32 %v10372_v44, %v3466_v47  ;;  %v10587_v48 = vld [vmem:[%s12233_s5 + $0xe] ss:$0 sm:$0xff] }
 0x4f4   : > { %v3629_v33 = vadd.f32 %v3621_v52, %v3576_v54  ;;  %v10578_v53 = vpop.permute.xlu1 %3953  ;;  %v3567_v62 = vmul.f32 %v10463_v18, %v12269_v12  ;;  %v3911_v14 = vmul.f32 %v10567_v5, %v12270_v29  ;;  %v12271_v56 = vld [vmem:[#allocation43_spill] sm:$0xff]  ;;  %v3468_v44 = vadd.f32 %v3460_v16, %v3399_v1 }
 0x4f5   : > { %v3850_v22 = vadd.f32 %v3842_v24, %v3797_v38  ;;  %v3467_v3 = vadd.f32 %v3459_v34, %v3398_v8  ;;  %v3690_v13 = vmul.f32 %v10501_v6, %v12271_v56  ;;  %v12272_v42 = vld [vmem:[#allocation139_spill] sm:$0xff]  ;;  %v3693_v52 = vadd.f32 %v3685_v40, %v3624_v0  ;;  %v7039_v38 = vld [vmem:[#allocation4 + $0x50] sm:$0xff] }
 0x4f6   : > { %v3617_v47 = vmul.f32 %v10482_v11, %v12272_v42  ;;  %v3444_v35 = vpop.permute.xlu0 %3443  ;;  %v3400_v28 = vadd.f32 %v10492_v4, %v3347_v58  ;;  %v12273_v8 = vld [vmem:[#allocation110_spill] sm:$0xff]  ;;  %v3738_v16 = vmul.f32 %v10385_v17, %v12274_v55  ;;  %v3572_v1 = vadd.f32 %v3564_v26, %v3519_v61  ;;  %v10604_v40 = vld [vmem:[%s12233_s5 + $0xf] ss:$0 sm:$0xff]  ;;  %v10617_v26 = vld [vmem:[%s12233_s5 + $0x10] ss:$0 sm:$0xff] }
 0x4f7   : > { %v3919_v50 = vadd.f32 %v3911_v14, %v3850_v22  ;;  %v3520_v54 = vadd.f32 %v3512_v25, %v3467_v3  ;;  %v3461_v24 = vmul.f32 %v10415_v36, %v3444_v35  ;;  %4732 = vperm.xlu1 %7011, %v7039_v38   ;;  %v10597_v34 = vmul.f32 %v10542_v51, %v12273_v8  ;;  %v12276_v58 = vld [vmem:[#allocation27_spill] sm:$0xff]  ;;  %v12277_v22 = vld [vmem:[#allocation21_spill] sm:$0xff]  ;;  %v12283_v38 = vld [vmem:[#allocation118_spill] sm:$0xff] }
 0x4f8   : > { %v3698_v25 = vadd.f32 %v3690_v13, %v3629_v33  ;;  %v10606_v0 = vpop.permute.xlu1 %4173  ;;  %v4017_v4 = vmul.f32 %v10587_v48, %v12276_v58  ;;  %v3618_v3 = vmul.f32 %v10482_v11, %v12277_v22  ;;  %v3625_v56 = vadd.f32 %v3617_v47, %v3572_v1  ;;  %v12279_v42 = vld [vmem:[#allocation25_spill] sm:$0xff]  ;;  %v12285_v58 = vld [vmem:[#allocation142_spill] sm:$0xff] }
 0x4f9   : > { %12275 = vst [vmem:[#allocation187_spill] sm:$0xff] %v10606_v0  ;;  %v3972_v12 = vadd.f32 %v10454_v7, %v3919_v50  ;;  %v3469_v29 = vadd.f32 %v3461_v24, %v3400_v28  ;;  %v3573_v14 = vadd.f32 %v3565_v31, %v3520_v54  ;;  %v3521_v61 = vadd.f32 %v10380_v41, %v3468_v44  ;;  %v12280_v7 = vld [vmem:[#allocation140_spill] sm:$0xff]  ;;  %v7040_v47 = vld [vmem:[#allocation4 + $0x31] sm:$0xff]  ;;  %v12281_v41 = vld [vmem:[#allocation35_spill] sm:$0xff] }
 0x4fa   : > { %v10619_v33 = vpop.permute.xlu0 %3646  ;;  %v3746_v13 = vadd.f32 %v3738_v16, %v3693_v52  ;;  %v3620_v35 = vmul.f32 %v10482_v11, %v12279_v42  ;;  %v4070_v31 = vmul.f32 %v10604_v40, %v12280_v7  ;;  %v3686_v44 = vmul.f32 %v10501_v6, %v12281_v41  ;;  %v12282_v28 = vld [vmem:[#allocation111_spill] sm:$0xff]  ;;  %v12284_v16 = vld [vmem:[#allocation141_spill] sm:$0xff] }
 0x4fb   : > { %12278 = vst [vmem:[#allocation188_spill] sm:$0xff] %v10619_v33  ;;  %v4025_v50 = vadd.f32 %v4017_v4, %v3972_v12  ;;  %v3522_v54 = vadd.f32 %v10524_v60, %v3469_v29  ;;  %4952 = vperm.xlu1 %7011, %v7040_v47   ;;  %v3791_v24 = vmul.f32 %v10542_v51, %v12282_v28  ;;  %v10642_v29 = vld [vmem:[%s12233_s5 + $0x11] ss:$0 sm:$0xff]  ;;  %v12286_v47 = vld [vmem:[#allocation145_spill] sm:$0xff]  ;;  %v12298_v33 = vld [vmem:[#allocation32_spill] sm:$0xff] }
 0x4fc   : > { %v3796_v52 = vmul.f32 %v10542_v51, %v12283_v38  ;;  %v3751_v8 = vadd.f32 %v10446_v45, %v3698_v25  ;;  %v10633_v55 = vpop.permute.xlu1 %4177  ;;  %v3619_v1 = vmul.f32 %v10482_v11, %v12284_v16  ;;  %v4139_v60 = vmul.f32 %v10617_v26, %v12285_v58 }
 0x4fd   : > { %v4078_v4 = vadd.f32 %v4070_v31, %v4025_v50  ;;  %v3575_v12 = vadd.f32 %v3567_v62, %v3522_v54  ;;  %v3694_v22 = vadd.f32 %v3686_v44, %v3625_v56  ;;  %v3574_v42 = vadd.f32 %v10562_v59, %v3521_v61  ;;  %v10652_v62 = vld [vmem:[%s12233_s5 + $0x13] ss:$0 sm:$0xff]  ;;  %v12287_v59 = vld [vmem:[#allocation39_spill] sm:$0xff]  ;;  %v12288_v61 = vld [vmem:[#allocation57_spill] sm:$0xff] }
 0x4fe   : > { %v3849_v45 = vmul.f32 %v10549_v23, %v10226_v39  ;;  %v3662_v25 = vpop.permute.xlu0 %3661  ;;  %v3799_v7 = vadd.f32 %v3791_v24, %v3746_v13  ;;  %v4192_v41 = vmul.f32 %v10642_v29, %v12286_v47  ;;  %v3626_v50 = vadd.f32 %v3618_v3, %v3573_v14  ;;  %v10659_v39 = vld [vmem:[%s12233_s5 + $0x12] ss:$0 sm:$0xff]  ;;  %v12289_v44 = vld [vmem:[#allocation122_spill] sm:$0xff] }
 0x4ff   : > { %v4147_v31 = vadd.f32 %v4139_v60, %v4078_v4  ;;  %v3687_v54 = vmul.f32 %v10501_v6, %v3662_v25  ;;  %7012 = vset.pattern.permute.xlu1 %v12104_v9  ;;  %v3688_v56 = vmul.f32 %v10501_v6, %v12287_v59  ;;  %v3740_v13 = vmul.f32 %v10385_v17, %v12288_v61  ;;  %v10667_v14 = vld [vmem:[#allocation4 + $0x82] sm:$0xff] }
 0x500   : > { %v3844_v28 = vmul.f32 %v10549_v23, %v12289_v44  ;;  %v3804_v24 = vadd.f32 %v3796_v52, %v3751_v8  ;;  %4360 = vperm.xlu1 %7012, %v10667_v14   ;;  %v10670_v3 = vpop.permute.xlu1 %4397  ;;  %v3627_v38 = vadd.f32 %v3619_v1, %v3574_v42  ;;  %v4245_v16 = vmul.f32 %v10659_v39, %v10234_v57  ;;  %v10680_v52 = vld [vmem:[%s12233_s5 + $0x14] ss:$0 sm:$0xff] }
 0x501   : > { %v4200_v58 = vadd.f32 %v4192_v41, %v4147_v31  ;;  %v3695_v60 = vadd.f32 %v3687_v54, %v3626_v50  ;;  %v3747_v4 = vadd.f32 %v10428_v15, %v3694_v22  ;;  %v4298_v47 = vmul.f32 %v10652_v62, %v10245_v49  ;;  %v10683_v41 = vld [vmem:[#allocation4 + $0x60] sm:$0xff]  ;;  %v12293_v54 = vld [vmem:[#allocation146_spill] sm:$0xff] }
 0x502   : > { %v3857_v25 = vadd.f32 %v3849_v45, %v3804_v24  ;;  %v3672_v8 = vpop.permute.xlu0 %3671  ;;  %v3852_v59 = vadd.f32 %v3844_v28, %v3799_v7  ;;  %v3628_v42 = vadd.f32 %v3620_v35, %v3575_v12  ;;  %v10688_v15 = vld [vmem:[%s12233_s5 + $0x15] ss:$0 sm:$0xff]  ;;  %v12291_v45 = vld [vmem:[#allocation130_spill] sm:$0xff]  ;;  %v12292_v50 = vld [vmem:[#allocation135_spill] sm:$0xff]  ;;  %v3845_v35 = vmul.f32 %v10549_v23, %v12293_v54 }
 0x503   : > { %v4253_v61 = vadd.f32 %v4245_v16, %v4200_v58  ;;  %v3748_v1 = vadd.f32 %v3740_v13, %v3695_v60  ;;  %v3689_v57 = vmul.f32 %v10501_v6, %v3672_v8  ;;  %v12290_v49 = vld [vmem:[#allocation112_spill] sm:$0xff]  ;;  %v3913_v31 = vmul.f32 %v10567_v5, %v12291_v45  ;;  %v12295_v13 = vld [vmem:[#allocation61_spill] sm:$0xff] }
 0x504   : > { %v3792_v22 = vmul.f32 %v10542_v51, %v12290_v49  ;;  %v3918_v7 = vmul.f32 %v10567_v5, %v12292_v50  ;;  %4574 = vperm.xlu1 %7012, %v10683_v41   ;;  %v10699_v12 = vpop.permute.xlu1 %4618  ;;  %v3742_v44 = vmul.f32 %v10385_v17, %v12295_v13  ;;  %v4367_v28 = vmul.f32 %v10680_v52, %v10265_v27  ;;  %v12297_v50 = vld [vmem:[#allocation84_spill] sm:$0xff]  ;;  %v12299_v17 = vld [vmem:[#allocation23_spill] sm:$0xff] }
 0x505   : > { %12294 = vst [vmem:[#allocation189_spill] sm:$0xff] %v10699_v12  ;;  %v4306_v24 = vadd.f32 %v4298_v47, %v4253_v61  ;;  %v3697_v16 = vadd.f32 %v3689_v57, %v3628_v42  ;;  %v3696_v58 = vadd.f32 %v3688_v56, %v3627_v38  ;;  %v3921_v45 = vadd.f32 %v3913_v31, %v3852_v59  ;;  %v10717_v56 = vld [vmem:[%s12233_s5 + $0x16] ss:$0 sm:$0xff]  ;;  %v12300_v38 = vld [vmem:[#allocation137_spill] sm:$0xff] }
 0x506   : > { %v3800_v60 = vadd.f32 %v3792_v22, %v3747_v4  ;;  %v3926_v8 = vadd.f32 %v3918_v7, %v3857_v25  ;;  %v10705_v49 = vpop.permute.xlu0 %3874  ;;  %v4420_v54 = vmul.f32 %v10688_v15, %v12297_v50  ;;  %v3801_v12 = vadd.f32 %v10597_v34, %v3748_v1  ;;  %v10721_v47 = vld [vmem:[#allocation4 + $0x41] sm:$0xff] }
 0x507   : > { %12296 = vst [vmem:[#allocation190_spill] sm:$0xff] %v10705_v49  ;;  %v4375_v0 = vadd.f32 %v4367_v28, %v4306_v24  ;;  %v3750_v6 = vadd.f32 %v3742_v44, %v3697_v16  ;;  %v3971_v13 = vmul.f32 %v10433_v37, %v12298_v33  ;;  %v3795_v27 = vmul.f32 %v10542_v51, %v12299_v17  ;;  %v12301_v34 = vld [vmem:[#allocation124_spill] sm:$0xff] }
 0x508   : > { %v3966_v4 = vmul.f32 %v10433_v37, %v12300_v38  ;;  %v3853_v25 = vadd.f32 %v3845_v35, %v3800_v60  ;;  %4792 = vperm.xlu1 %7012, %v10721_v47   ;;  %v3846_v59 = vmul.f32 %v10549_v23, %v12301_v34  ;;  %v12302_v33 = vld [vmem:[#allocation132_spill] sm:$0xff]  ;;  %v4473_v1 = vmul.f32 %v10717_v56, %v10313_v21  ;;  %v12303_v34 = vld [vmem:[#allocation155_spill] sm:$0xff] }
 0x509   : > { %v3914_v61 = vmul.f32 %v10567_v5, %v12302_v33  ;;  %v10731_v17 = vld [vmem:[%s12233_s5 + $0x17] ss:$0 sm:$0xff]  ;;  %v4428_v42 = vadd.f32 %v4420_v54, %v4375_v0  ;;  %v4011_v57 = vpop.permute.xlu1 %4010  ;;  %v3749_v22 = vadd.f32 %v10441_v43, %v3696_v58  ;;  %v3979_v31 = vadd.f32 %v3971_v13, %v3926_v8  ;;  %v12304_v43 = vld [vmem:[#allocation29_spill] sm:$0xff]  ;;  %v12305_v8 = vld [vmem:[#allocation115_spill] sm:$0xff] }
 0x50a   : > { %v4024_v7 = vmul.f32 %v10587_v48, %v4011_v57  ;;  %v3890_v35 = vpop.permute.xlu0 %3889  ;;  %v3974_v44 = vadd.f32 %v3966_v4, %v3921_v45  ;;  %v3854_v24 = vadd.f32 %v3846_v59, %v3801_v12  ;;  %v3803_v60 = vadd.f32 %v3795_v27, %v3750_v6  ;;  %v10742_v54 = vld [vmem:[#allocation4 + $0x22] sm:$0xff]  ;;  %v12306_v45 = vld [vmem:[#allocation126_spill] sm:$0xff]  ;;  %v12308_v59 = vld [vmem:[#allocation149_spill] sm:$0xff] }
 0x50b   : > { %v4481_v28 = vadd.f32 %v4473_v1, %v4428_v42  ;;  %v3915_v16 = vmul.f32 %v10567_v5, %v3890_v35  ;;  %v3922_v50 = vadd.f32 %v3914_v61, %v3853_v25  ;;  %v4526_v38 = vmul.f32 %v10731_v17, %v10249_v30  ;;  %v10754_v30 = vld [vmem:[%s12233_s5 + $0x18] ss:$0 sm:$0xff] }
 0x50c   : > { %v4077_v21 = vmul.f32 %v10604_v40, %v12303_v34  ;;  %v4032_v0 = vadd.f32 %v4024_v7, %v3979_v31  ;;  %5010 = vperm.xlu1 %7012, %v10742_v54   ;;  %v4019_v58 = vmul.f32 %v10587_v48, %v12304_v43  ;;  %v3794_v12 = vmul.f32 %v10542_v51, %v12305_v8  ;;  %v12307_v4 = vld [vmem:[#allocation148_spill] sm:$0xff] }
 0x50d   : > { %v3848_v6 = vmul.f32 %v10549_v23, %v12306_v45  ;;  %v3923_v13 = vadd.f32 %v3915_v16, %v3854_v24  ;;  %v10756_v27 = vpop.permute.xlu1 %4226  ;;  %v3847_v25 = vmul.f32 %v10549_v23, %v12307_v4  ;;  %v4020_v33 = vmul.f32 %v10587_v48, %v12308_v59  ;;  %v12309_v24 = vld [vmem:[#allocation151_spill] sm:$0xff] }
 0x50e   : > { %v4534_v61 = vadd.f32 %v4526_v38, %v4481_v28  ;;  %v3900_v1 = vpop.permute.xlu0 %3899  ;;  %v10762_v42 = vadd.f32 %v4077_v21, %v4032_v0  ;;  %v4027_v7 = vadd.f32 %v4019_v58, %v3974_v44  ;;  %v3802_v35 = vadd.f32 %v3794_v12, %v3749_v22  ;;  %v10774_v28 = vld [vmem:[%s12233_s5 + $0x19] ss:$0 sm:$0xff]  ;;  %v12311_v44 = vld [vmem:[#allocation159_spill] sm:$0xff] }
 0x50f   : > { %v3856_v57 = vadd.f32 %v3848_v6, %v3803_v60  ;;  %v3917_v31 = vmul.f32 %v10567_v5, %v3900_v1  ;;  %v3975_v34 = vadd.f32 %v10458_v32, %v3922_v50  ;;  %v4073_v16 = vmul.f32 %v10604_v40, %v12309_v24  ;;  %v12310_v60 = vld [vmem:[#allocation152_spill] sm:$0xff]  ;;  %v10782_v50 = vld [vmem:[#allocation4 + $0x72] sm:$0xff]  ;;  %v12313_v1 = vld [vmem:[#allocation113_spill] sm:$0xff] }
 0x510   : > { %v4596_v43 = vmul.f32 %v10754_v30, %v10535_v46  ;;  %7013 = vset.pattern.permute.xlu1 %v12103_v10  ;;  %v4072_v38 = vmul.f32 %v10604_v40, %v12310_v60  ;;  %v3968_v22 = vmul.f32 %v10433_v37, %v12311_v44  ;;  %v3855_v21 = vadd.f32 %v3847_v25, %v3802_v35  ;;  %v12312_v58 = vld [vmem:[#allocation156_spill] sm:$0xff] }
 0x511   : > { %v10780_v32 = vadd.f32 %v3917_v31, %v3856_v57  ;;  %4409 = vperm.xlu1 %7013, %v10782_v50   ;;  %v4447_v46 = vpop.permute.xlu1 %4446  ;;  %v4028_v0 = vadd.f32 %v4020_v33, %v3975_v34  ;;  %v4142_v8 = vmul.f32 %v10617_v26, %v12312_v58  ;;  %v4649_v57 = vmul.f32 %v10774_v28, %v12313_v1  ;;  %v12314_v31 = vld [vmem:[#allocation134_spill] sm:$0xff]  ;;  %v12315_v33 = vld [vmem:[#allocation37_spill] sm:$0xff] }
 0x512   : > { %v4604_v12 = vadd.f32 %v4596_v43, %v4534_v61  ;;  %v4108_v45 = vpop.permute.xlu0 %4107  ;;  %v3976_v6 = vadd.f32 %v3968_v22, %v3923_v13  ;;  %v4080_v4 = vadd.f32 %v4072_v38, %v4027_v7  ;;  %v3916_v24 = vmul.f32 %v10567_v5, %v12314_v31  ;;  %v10799_v13 = vld [vmem:[%s12233_s5 + $0x1a] ss:$0 sm:$0xff]  ;;  %v10804_v61 = vld [vmem:[%s12233_s5 + $0x1b] ss:$0 sm:$0xff] }
 0x513   : > { %v4141_v59 = vmul.f32 %v10617_v26, %v4108_v45  ;;  %v4081_v60 = vadd.f32 %v4073_v16, %v4028_v0  ;;  %v4195_v25 = vmul.f32 %v10642_v29, %v10286_v2  ;;  %v4021_v35 = vmul.f32 %v10587_v48, %v12315_v33  ;;  %v12316_v7 = vld [vmem:[#allocation161_spill] sm:$0xff]  ;;  %v12319_v33 = vld [vmem:[#allocation83_spill] sm:$0xff] }
 0x514   : > { %v4194_v34 = vmul.f32 %v10642_v29, %v12316_v7  ;;  %v3924_v43 = vadd.f32 %v3916_v24, %v3855_v21  ;;  %v4657_v44 = vadd.f32 %v4649_v57, %v4604_v12  ;;  %v12318_v58 = vld [vmem:[#allocation169_spill] sm:$0xff]  ;;  %v3969_v5 = vmul.f32 %v10433_v37, %v12319_v33  ;;  %v12320_v7 = vld [vmem:[#allocation158_spill] sm:$0xff]  ;;  %v12321_v21 = vld [vmem:[#allocation167_spill] sm:$0xff] }
 0x515   : > { %v4149_v16 = vadd.f32 %v4141_v59, %v4080_v4  ;;  %4630 = vperm.xlu1 %7013, %v10683_v41   ;;  %v4668_v2 = vpop.permute.xlu1 %4667  ;;  %v4150_v38 = vadd.f32 %v4142_v8, %v4081_v60  ;;  %v4247_v45 = vmul.f32 %v10659_v39, %v12318_v58  ;;  %v4029_v31 = vadd.f32 %v4021_v35, %v3976_v6  ;;  %v12322_v12 = vld [vmem:[#allocation172_spill] sm:$0xff]  ;;  %v12323_v24 = vld [vmem:[#allocation175_spill] sm:$0xff]  ;;  %v12324_v6 = vld [vmem:[#allocation41_spill] sm:$0xff] }
 0x516   : > { %v4702_v22 = vmul.f32 %v10799_v13, %v4668_v2  ;;  %v10810_v0 = vpop.permute.xlu0 %4330  ;;  %v4755_v4 = vmul.f32 %v10804_v61, %v12320_v7  ;;  %v4022_v8 = vmul.f32 %v10587_v48, %v12321_v21  ;;  %v4074_v57 = vmul.f32 %v10604_v40, %v12322_v12 }
 0x517   : > { %12317 = vst [vmem:[#allocation191_spill] sm:$0xff] %v10810_v0  ;;  %v4202_v1 = vadd.f32 %v4194_v34, %v4149_v16  ;;  %v4203_v59 = vadd.f32 %v4195_v25, %v4150_v38  ;;  %v4300_v60 = vmul.f32 %v10652_v62, %v12323_v24  ;;  %v10824_v34 = vld [vmem:[#allocation4 + $0x70] sm:$0xff]  ;;  %v4248_v35 = vmul.f32 %v10659_v39, %v12324_v6 }
 0x518   : > { %v4710_v49 = vadd.f32 %v4702_v22, %v4657_v44  ;;  %v3977_v16 = vadd.f32 %v3969_v5, %v3924_v43  ;;  %v12325_v25 = vld [vmem:[#allocation178_spill] sm:$0xff]  ;;  %v4369_v33 = vmul.f32 %v10680_v52, %v10508_v20 }
 0x519   : > { %v4255_v2 = vadd.f32 %v4247_v45, %v4202_v1  ;;  %4634 = vperm.xlu1 %7013, %v10824_v34   ;;  %v4301_v38 = vmul.f32 %v10652_v62, %v12325_v25  ;;  %v4082_v45 = vadd.f32 %v4074_v57, %v4029_v31  ;;  %v4256_v12 = vadd.f32 %v4248_v35, %v4203_v59  ;;  %v10838_v5 = vld [vmem:[#allocation4 + $0x51] sm:$0xff]  ;;  %v12328_v57 = vld [vmem:[#allocation183_spill] sm:$0xff] }
 0x51a   : > { %v4118_v44 = vpop.permute.xlu0 %4117  ;;  %v4060_v22 = vpop.permute.xlu1 %4059  ;;  %v10831_v58 = vadd.f32 %v4755_v4, %v4710_v49  ;;  %v4030_v21 = vadd.f32 %v4022_v8, %v3977_v16  ;;  %v12326_v43 = vld [vmem:[#allocation86_spill] sm:$0xff]  ;;  %v12327_v4 = vld [vmem:[#allocation153_spill] sm:$0xff]  ;;  %v4144_v59 = vmul.f32 %v10617_v26, %v12328_v57  ;;  %v3970_v8 = vmul.f32 %v10433_v37, %v10578_v53 }
 0x51b   : > { %v4308_v7 = vadd.f32 %v4300_v60, %v4255_v2  ;;  %v4143_v1 = vmul.f32 %v10617_v26, %v4118_v44  ;;  %v4422_v49 = vmul.f32 %v10688_v15, %v12326_v43  ;;  %v4075_v6 = vmul.f32 %v10604_v40, %v12327_v4  ;;  %v12330_v4 = vld [vmem:[#allocation47_spill] sm:$0xff] }
 0x51c   : > { %v4309_v31 = vadd.f32 %v4301_v38, %v4256_v12  ;;  %v4475_v35 = vmul.f32 %v10717_v56, %v4447_v46  ;;  %v4197_v44 = vmul.f32 %v10642_v29, %v10633_v55  ;;  %v12329_v38 = vld [vmem:[#allocation157_spill] sm:$0xff]  ;;  %v4023_v46 = vmul.f32 %v10587_v48, %v12330_v4 }
 0x51d   : > { %v4377_v24 = vadd.f32 %v4369_v33, %v4308_v7  ;;  %v10836_v0 = vadd.f32 %v4143_v1, %v4082_v45  ;;  %4854 = vperm.xlu1 %7013, %v10838_v5   ;;  %v4083_v25 = vadd.f32 %v4075_v6, %v4030_v21  ;;  %v3978_v33 = vadd.f32 %v3970_v8, %v10780_v32  ;;  %v7047_v45 = vld [vmem:[#allocation4 + $0x32] sm:$0xff] }
 0x51e   : > { %v4341_v20 = vpop.permute.xlu0 %4340  ;;  %v10845_v60 = vpop.permute.xlu1 %4279  ;;  %v4528_v1 = vmul.f32 %v10731_v17, %v12329_v38  ;;  %v4076_v21 = vmul.f32 %v10604_v40, %v4060_v22  ;;  %v12331_v6 = vmov 2  }
 0x51f   : > { %v4370_v2 = vmul.f32 %v10680_v52, %v4341_v20  ;;  %v4430_v16 = vadd.f32 %v4422_v49, %v4377_v24  ;;  %v4152_v24 = vadd.f32 %v4144_v59, %v4083_v25  ;;  %v4031_v32 = vadd.f32 %v4023_v46, %v3978_v33  ;;  %v12332_v20 = vld [vmem:[#allocation51_spill] sm:$0xff] }
 0x521   : > { %v4378_v7 = vadd.f32 %v4370_v2, %v4309_v31  ;;  %5074 = vperm.xlu1 %7013, %v7047_v45   ;;  %v4483_v43 = vadd.f32 %v4475_v35, %v4430_v16  ;;  %v4205_v55 = vadd.f32 %v4197_v44, %v4152_v24  ;;  %v4250_v31 = vmul.f32 %v10659_v39, %v12332_v20 }
 0x522   : > { %v10858_v12 = vpop.permute.xlu0 %4559  ;;  %v4284_v53 = vpop.permute.xlu1 %4283  ;;  %v4423_v2 = vmul.f32 %v10688_v15, %v10670_v3  ;;  %v4084_v35 = vadd.f32 %v4076_v21, %v4031_v32 }
 0x523   : > { %v10863_v49 = vadd.f32 %v4528_v1, %v4483_v43  ;;  %v4303_v59 = vmul.f32 %v10652_v62, %v4284_v53  ;;  %v4258_v25 = vadd.f32 %v4250_v31, %v4205_v55  ;;  %v12334_v1 = vld [vmem:[#allocation55_spill] sm:$0xff] }
 0x524   : > { %v4431_v16 = vadd.f32 %v4423_v2, %v4378_v7 }
 0x525   : > { %7014 = vset.pattern.permute.xlu1 %v12331_v6  ;;  %v4311_v43 = vadd.f32 %v4303_v59, %v4258_v25  ;;  %v12335_v59 = vld [vmem:[#allocation24_spill] sm:$0xff] }
 0x526   : > { %v4128_v57 = vpop.permute.xlu0 %4127  ;;  %4466 = vperm.xlu1 %7014, %v10667_v14   ;;  %v4504_v8 = vpop.permute.xlu1 %4503  ;;  %v4476_v14 = vmul.f32 %v10717_v56, %v12334_v1  ;;  %v12340_v1 = vld [vmem:[#allocation177_spill] sm:$0xff] }
 0x527   : > { %v4145_v22 = vmul.f32 %v10617_v26, %v4128_v57  ;;  %v4529_v3 = vmul.f32 %v10731_v17, %v4504_v8 }
 0x528   : > { %v4484_v53 = vadd.f32 %v4476_v14, %v4431_v16  ;;  %v10909_v16 = vld [vmem:[#allocation4 + $0x61] sm:$0xff] }
 0x529   : > { %v10873_v44 = vadd.f32 %v4145_v22, %v4084_v35 }
 0x52a   : > { %v4351_v33 = vpop.permute.xlu0 %4350  ;;  %4683 = vperm.xlu1 %7014, %v10683_v41   ;;  %v10876_v38 = vpop.permute.xlu1 %4724  ;;  %v4537_v24 = vadd.f32 %v4529_v3, %v4484_v53 }
 0x52b   : > { %12333 = vst [vmem:[#allocation192_spill] sm:$0xff] %v10876_v38  ;;  %v4372_v4 = vmul.f32 %v10680_v52, %v4351_v33  ;;  %v12339_v33 = vld [vmem:[#allocation102_spill] sm:$0xff] }
 0x52c   : > { %v3334_v14 = vmul.f32 %v12340_v1, %v12339_v33  ;;  %v12344_v1 = vld [vmem:[#allocation180_spill] sm:$0xff] }
 0x52d   : > { %v10882_v46 = vadd.f32 %v4372_v4, %v4311_v43  ;;  %v12341_v4 = vld [vmem:[#allocation87_spill] sm:$0xff] }
 0x52e   : > { %v4570_v7 = vpop.permute.xlu0 %4569  ;;  %4903 = vperm.xlu1 %7014, %v10721_v47   ;;  %v4199_v53 = vmul.f32 %v10642_v29, %v12341_v4 }
 0x52f   : > { %v4599_v21 = vmul.f32 %v10754_v30, %v4570_v7  ;;  %v4133_v55 = vpop.permute.xlu1 %4132  ;;  %v10921_v7 = vld [vmem:[#allocation4 + $0x42] sm:$0xff] }
 0x531   : > { %v10886_v32 = vadd.f32 %v4599_v21, %v4537_v24 }
 0x532   : > { %5123 = vperm.xlu1 %7014, %v10742_v54   ;;  %v10901_v54 = vld [vmem:[#allocation4 + $0x90] sm:$0xff] }
 0x533   : > { %v10889_v20 = vpop.permute.xlu1 %4345 }
 0x536   : > { %7015 = vset.pattern.permute.xlu1 %v12119_v19 }
 0x537   : > { %4515 = vperm.xlu1 %7015, %v10782_v50   ;;  %v4565_v31 = vpop.permute.xlu1 %4564 }
 0x53b   : > { %4736 = vperm.xlu1 %7015, %v10683_v41   ;;  %v4783_v57 = vpop.permute.xlu1 %4782  ;;  %v4146_v41 = vmul.f32 %v10617_v26, %v4133_v55  ;;  %v4598_v55 = vmul.f32 %v10754_v30, %v4565_v31  ;;  %v10936_v31 = vld [vmem:[%s12233_s5 + $0x1c] ss:$0 sm:$0xff] }
 0x53d   : > { %v4154_v43 = vadd.f32 %v4146_v41, %v10762_v42  ;;  %v3456_v42 = vmul.f32 %v10415_v36, %v12344_v1  ;;  %v12345_v41 = vld [vmem:[#allocation160_spill] sm:$0xff]  ;;  %v4606_v36 = vadd.f32 %v4598_v55, %v10863_v49 }
 0x53f   : > { %4740 = vperm.xlu1 %7015, %v10824_v34   ;;  %v12336_v34 = vld [vmem:[#allocation173_spill] sm:$0xff] }
 0x540   : > { %v4182_v47 = vpop.permute.xlu1 %4181  ;;  %v3281_v22 = vmul.f32 %v12336_v34, %v12335_v59  ;;  %v4207_v59 = vadd.f32 %v4199_v53, %v4154_v43  ;;  %v12342_v34 = vld [vmem:[#allocation26_spill] sm:$0xff] }
 0x543   : > { %4960 = vperm.xlu1 %7015, %v10838_v5  }
 0x544   : > { %v10896_v8 = vpop.permute.xlu1 %4401 }
 0x547   : > { %5180 = vperm.xlu1 %7015, %v7047_v45   ;;  %v12338_v45 = vld [vmem:[#allocation82_spill] sm:$0xff] }
 0x548   : > { %v10898_v2 = vpop.permute.xlu1 %4405  ;;  %v3236_v25 = vmul.f32 %v10330_v63, %v12338_v45  ;;  %v12343_v45 = vld [vmem:[#allocation181_spill] sm:$0xff] }
 0x549   : > { %v3387_v33 = vmul.f32 %v12343_v45, %v12342_v34  ;;  %v12347_v34 = vld [vmem:[#allocation96_spill] sm:$0xff] }
 0x54a   : > { %v3289_v3 = vadd.f32 %v3281_v22, %v3236_v25  ;;  %v4305_v22 = vmul.f32 %v10652_v62, %v12345_v41  ;;  %v12348_v45 = vld [vmem:[#allocation176_spill] sm:$0xff]  ;;  %v4198_v41 = vmul.f32 %v10642_v29, %v4182_v47  ;;  %v10976_v47 = vld [vmem:[%s12233_s5 + $0x1f] ss:$0 sm:$0xff] }
 0x54b   : > { %7016 = vset.pattern.permute.xlu1 %v12104_v9 }
 0x54c   : > { %4589 = vperm.xlu1 %7016, %v10901_v54   ;;  %v10904_v35 = vpop.permute.xlu1 %4626  ;;  %v3342_v24 = vadd.f32 %v3334_v14, %v3289_v3  ;;  %v10938_v14 = vld [vmem:[#allocation4 + $0x80] sm:$0xff]  ;;  %v4824_v3 = vmul.f32 %v10936_v31, %v4783_v57 }
 0x54e   : > { %v3395_v4 = vadd.f32 %v3387_v33, %v3342_v24  ;;  %v3509_v33 = vmul.f32 %v12348_v45, %v12347_v34  ;;  %v4832_v49 = vadd.f32 %v4824_v3, %v10831_v58  ;;  %v12352_v45 = vld [vmem:[#allocation10_spill] sm:$0xff]  ;;  %v10971_v58 = vld [vmem:[%s12233_s5 + $0x1e] ss:$0 sm:$0xff] }
 0x54f   : > { %v3562_v38 = vmul.f32 %v10463_v18, %v12352_v45  ;;  %v4206_v18 = vadd.f32 %v4198_v41, %v10873_v44 }
 0x550   : > { %4802 = vperm.xlu1 %7016, %v10909_v16   ;;  %v10912_v5 = vpop.permute.xlu1 %4846 }
 0x551   : > { %12337 = vst [vmem:[#allocation193_spill] sm:$0xff] %v10912_v5  ;;  %v10964_v5 = vpop.permute.xlu0 %4787 }
 0x552   : > { %12351 = vst [vmem:[#allocation194_spill] sm:$0xff] %v10964_v5  ;;  %v12361_v5 = vld [vmem:[#allocation179_spill] sm:$0xff] }
 0x554   : > { %5020 = vperm.xlu1 %7016, %v10921_v7  }
 0x555   : > { %v4239_v21 = vpop.permute.xlu1 %4238 }
 0x556   : > { %v4252_v63 = vmul.f32 %v10659_v39, %v4239_v21  ;;  %v3464_v21 = vadd.f32 %v3456_v42, %v3395_v4  ;;  %v12350_v4 = vld [vmem:[#allocation162_spill] sm:$0xff] }
 0x558   : > { %v4260_v25 = vadd.f32 %v4252_v63, %v4207_v59  ;;  %7017 = vset.pattern.permute.xlu1 %v12103_v10  ;;  %v12346_v59 = vld [vmem:[#allocation89_spill] sm:$0xff]  ;;  %v3517_v42 = vadd.f32 %v3509_v33, %v3464_v21 }
 0x559   : > { %4638 = vperm.xlu1 %7017, %v10938_v14   ;;  %v10941_v43 = vpop.permute.xlu1 %4454  ;;  %v4651_v24 = vmul.f32 %v10774_v28, %v12346_v59  ;;  %v10952_v63 = vld [vmem:[%s12233_s5 + $0x1d] ss:$0 sm:$0xff]  ;;  %v4757_v59 = vmul.f32 %v10804_v61, %v12350_v4 }
 0x55a   : > { %v10945_v53 = vadd.f32 %v4305_v22, %v4260_v25  ;;  %v12349_v22 = vld [vmem:[#allocation91_spill] sm:$0xff] }
 0x55b   : > { %v4659_v57 = vadd.f32 %v4651_v24, %v4606_v36  ;;  %v4877_v25 = vmul.f32 %v10952_v63, %v12349_v22  ;;  %v12353_v36 = vld [vmem:[#allocation185_spill] sm:$0xff]  ;;  %v12354_v22 = vld [vmem:[#allocation163_spill] sm:$0xff] }
 0x55c   : > { %v4983_v4 = vmul.f32 %v10976_v47, %v12354_v22  ;;  %v4425_v22 = vmul.f32 %v10688_v15, %v10898_v2 }
 0x55d   : > { %4858 = vperm.xlu1 %7017, %v10909_v16   ;;  %v4676_v1 = vpop.permute.xlu1 %4675  ;;  %v4885_v21 = vadd.f32 %v4877_v25, %v4832_v49  ;;  %v12355_v49 = vmov 0.0   ;;  %v12358_v25 = vld [vmem:[#allocation188_spill] sm:$0xff] }
 0x55e   : > { %v4704_v55 = vmul.f32 %v10799_v13, %v4676_v1  ;;  %v3570_v1 = vadd.f32 %v3562_v38, %v3517_v42  ;;  %6848 = vmatprep.mubr.msk.f32.mxu0 %vm7125_vm4, %v12355_v49  ;;  %v12356_v38 = vld [vmem:[#allocation108_spill] sm:$0xff]  ;;  %v12357_v42 = vld [vmem:[#allocation63_spill] sm:$0xff]  ;;  %6853 = vmatprep.mubr.msk.f32.mxu1 %vm7125_vm4, %v12355_v49 }
 0x55f   : > { %v3615_v44 = vmul.f32 %v10482_v11, %v12356_v38  ;;  %v4251_v41 = vmul.f32 %v10659_v39, %v12357_v42 }
 0x560   : > { %v4712_v34 = vadd.f32 %v4704_v55, %v4659_v57  ;;  %v5332_v57 = vld [vmem:[%s11501_s9 + $0x8] sm:$0xff]  ;;  %v5330_v55 = vld [vmem:[%s11501_s9] sm:$0xff] }
 0x561   : > { %4862 = vperm.xlu1 %7017, %v12353_v36   ;;  %v4896_v3 = vpop.permute.xlu1 %4895  ;;  %6847 = vmatpush3.msra.mxu0 %v5332_v57  ;;  %v3623_v11 = vadd.f32 %v3615_v44, %v3570_v1  ;;  %v4259_v38 = vadd.f32 %v4251_v41, %v4206_v18  ;;  %v4433_v44 = vadd.f32 %v4425_v22, %v10882_v46  ;;  %v12362_v18 = vld [vmem:[#allocation67_spill] sm:$0xff] }
 0x562   : > { %v4930_v24 = vmul.f32 %v10971_v58, %v4896_v3  ;;  %v10980_v33 = vadd.f32 %v4757_v59, %v4712_v34  ;;  %v12359_v59 = vld [vmem:[#allocation184_spill] sm:$0xff]  ;;  %v10999_v3 = vld [vmem:[#allocation4 + $0x52] sm:$0xff]  ;;  %6852 = vmatpush3.msra.mxu1 %v5330_v55  ;;  %6856 = vmatprep.subr.mxu0 %v12355_v49  ;;  %v4478_v41 = vmul.f32 %v10717_v56, %v12362_v18 }
 0x563   : > { %v3684_v34 = vmul.f32 %v12359_v59, %v12358_v25  ;;  %6861 = vmatprep.subr.mxu1 %v12355_v49 }
 0x564   : > { %v4938_v45 = vadd.f32 %v4930_v24, %v4885_v21  ;;  %v4356_v21 = vpop.permute.xlu0 %4355  ;;  %v4486_v49 = vadd.f32 %v4478_v41, %v4433_v44 }
 0x565   : > { %5082 = vperm.xlu1 %7017, %v10999_v3   ;;  %v3692_v25 = vadd.f32 %v3684_v34, %v3623_v11  ;;  %v4373_v55 = vmul.f32 %v10680_v52, %v4356_v21  ;;  %v12363_v34 = vld [vmem:[#allocation187_spill] sm:$0xff] }
 0x566   : > { %v4288_v24 = vpop.permute.xlu1 %4287  ;;  %v11002_v57 = vadd.f32 %v4983_v4, %v4938_v45  ;;  %v12360_v45 = vld [vmem:[#allocation49_spill] sm:$0xff]  ;;  %v4196_v21 = vmul.f32 %v10642_v29, %v12363_v34  ;;  %v12366_v34 = vld [vmem:[#allocation190_spill] sm:$0xff] }
 0x567   : > { %v4304_v42 = vmul.f32 %v10652_v62, %v4288_v24  ;;  %v3737_v1 = vmul.f32 %v12361_v5, %v12360_v45 }
 0x568   : > { %v4580_v11 = vpop.permute.xlu0 %4579  ;;  %v4204_v46 = vadd.f32 %v4196_v21, %v10836_v0  ;;  %v4424_v21 = vmul.f32 %v10688_v15, %v10896_v8 }
 0x569   : > { %v4312_v59 = vadd.f32 %v4304_v42, %v4259_v38  ;;  %7019 = vset.pattern.permute.xlu1 %v12331_v6  ;;  %v3745_v24 = vadd.f32 %v3737_v1, %v3692_v25  ;;  %v4249_v25 = vmul.f32 %v10659_v39, %v10756_v27  ;;  %v12365_v1 = vld [vmem:[#allocation120_spill] sm:$0xff] }
 0x56a   : > { %4695 = vperm.xlu1 %7019, %v10901_v54   ;;  %v4508_v4 = vpop.permute.xlu1 %4507  ;;  %v12364_v54 = vld [vmem:[#allocation109_spill] sm:$0xff]  ;;  %v3843_v18 = vmul.f32 %v10549_v23, %v12365_v1 }
 0x56b   : > { %v11017_v2 = vadd.f32 %v4373_v55, %v4312_v59  ;;  %v3790_v42 = vmul.f32 %v10542_v51, %v12364_v54  ;;  %v4601_v55 = vmul.f32 %v10754_v30, %v4580_v11  ;;  %v12367_v51 = vld [vmem:[#allocation186_spill] sm:$0xff]  ;;  %v12368_v11 = vld [vmem:[#allocation136_spill] sm:$0xff] }
 0x56c   : > { %v3912_v44 = vmul.f32 %v12367_v51, %v12366_v34  ;;  %v3965_v54 = vmul.f32 %v10433_v37, %v12368_v11 }
 0x56d   : > { %v3798_v22 = vadd.f32 %v3790_v42, %v3745_v24  ;;  %v4302_v24 = vmul.f32 %v10652_v62, %v10845_v60  ;;  %v4477_v60 = vmul.f32 %v10717_v56, %v10941_v43 }
 0x56e   : > { %4911 = vperm.xlu1 %7019, %v10909_v16   ;;  %v4512_v38 = vpop.permute.xlu1 %4511 }
 0x56f   : > { %v4531_v5 = vmul.f32 %v10731_v17, %v4512_v38  ;;  %v4257_v38 = vadd.f32 %v4249_v25, %v4204_v46  ;;  %v3851_v0 = vadd.f32 %v3843_v18, %v3798_v22  ;;  %v4530_v22 = vmul.f32 %v10731_v17, %v4508_v4  ;;  %v12370_v18 = vld [vmem:[#allocation150_spill] sm:$0xff] }
 0x570   : > { %v4071_v34 = vmul.f32 %v10604_v40, %v12370_v18  ;;  %v12372_v40 = vld [vmem:[#allocation147_spill] sm:$0xff] }
 0x571   : > { %v4539_v59 = vadd.f32 %v4531_v5, %v4486_v49  ;;  %v4371_v49 = vmul.f32 %v10680_v52, %v10889_v20  ;;  %v4310_v23 = vadd.f32 %v4302_v24, %v4257_v38  ;;  %v12371_v38 = vld [vmem:[#allocation143_spill] sm:$0xff] }
 0x572   : > { %5131 = vperm.xlu1 %7019, %v10921_v7   ;;  %v4733_v45 = vpop.permute.xlu1 %4732  ;;  %v3920_v7 = vadd.f32 %v3912_v44, %v3851_v0 }
 0x573   : > { %v11036_v41 = vadd.f32 %v4601_v55, %v4539_v59  ;;  %v4379_v42 = vadd.f32 %v4371_v49, %v4310_v23  ;;  %v12369_v55 = vld [vmem:[#allocation138_spill] sm:$0xff] }
 0x574   : > { %v3973_v5 = vadd.f32 %v3965_v54, %v3920_v7  ;;  %v4018_v59 = vmul.f32 %v10587_v48, %v12369_v55  ;;  %v7052_v49 = vld [vmem:[#allocation4 + $0x91] sm:$0xff]  ;;  %v4193_v7 = vmul.f32 %v10642_v29, %v12372_v40  ;;  %v7053_v55 = vld [vmem:[#allocation4 + $0x81] sm:$0xff] }
 0x575   : > { %v4432_v46 = vadd.f32 %v4424_v21, %v4379_v42  ;;  %v11076_v21 = vld [vmem:[#allocation4 + $0x62] sm:$0xff]  ;;  %v12378_v40 = vld [vmem:[#allocation45_spill] sm:$0xff] }
 0x576   : > { %7020 = vset.pattern.permute.xlu1 %v12119_v19  ;;  %v11043_v27 = vpop.permute.xlu1 %4952  ;;  %v4026_v37 = vadd.f32 %v4018_v59, %v3973_v5 }
 0x577   : > { %4744 = vperm.xlu1 %7020, %v10938_v14   ;;  %v4485_v8 = vadd.f32 %v4477_v60, %v4432_v46  ;;  %v12375_v46 = vld [vmem:[#allocation154_spill] sm:$0xff] }
 0x578   : > { %v4079_v51 = vadd.f32 %v4071_v34, %v4026_v37 }
 0x579   : > { %v4538_v1 = vadd.f32 %v4530_v22, %v4485_v8  ;;  %v4299_v22 = vmul.f32 %v10652_v62, %v12375_v46 }
 0x57b   : > { %4964 = vperm.xlu1 %7020, %v10909_v16   ;;  %v4361_v20 = vpop.permute.xlu1 %4360 }
 0x57c   : > { %v4374_v14 = vmul.f32 %v10680_v52, %v4361_v20 }
 0x57e   : > { %v11058_v25 = vadd.f32 %v4374_v14, %v10945_v53  ;;  %v4140_v53 = vmul.f32 %v10617_v26, %v12371_v38  ;;  %v4758_v14 = vmul.f32 %v10804_v61, %v4733_v45 }
 0x57f   : > { %4968 = vperm.xlu1 %7020, %v12353_v36   ;;  %v4575_v43 = vpop.permute.xlu1 %4574 }
 0x580   : > { %v4600_v16 = vmul.f32 %v10754_v30, %v4575_v43  ;;  %v4148_v36 = vadd.f32 %v4140_v53, %v4079_v51  ;;  %v4798_v43 = vpop.permute.xlu0 %4797 }
 0x581   : > { %v4827_v45 = vmul.f32 %v10936_v31, %v4798_v43  ;;  %v11140_v43 = vld [vmem:[%s12233_s5 + $0x21] ss:$0 sm:$0xff] }
 0x582   : > { %v4608_v4 = vadd.f32 %v4600_v16, %v4538_v1  ;;  %v4201_v23 = vadd.f32 %v4193_v7, %v4148_v36  ;;  %v4474_v7 = vmul.f32 %v10717_v56, %v12378_v40 }
 0x583   : > { %5188 = vperm.xlu1 %7020, %v10999_v3   ;;  %v4793_v44 = vpop.permute.xlu1 %4792  ;;  %v4652_v3 = vmul.f32 %v10774_v28, %v10904_v35  ;;  %v12374_v35 = vld [vmem:[#allocation70_spill] sm:$0xff] }
 0x584   : > { %v4826_v48 = vmul.f32 %v10936_v31, %v4793_v44  ;;  %v4705_v20 = vmul.f32 %v10799_v13, %v12374_v35  ;;  %v12377_v44 = vld [vmem:[#allocation164_spill] sm:$0xff]  ;;  %v12381_v35 = vld [vmem:[#allocation165_spill] sm:$0xff] }
 0x585   : > { %v4660_v60 = vadd.f32 %v4652_v3, %v10886_v32  ;;  %v12376_v32 = vld [vmem:[#allocation191_spill] sm:$0xff] }
 0x586   : > { %v11069_v0 = vadd.f32 %v4826_v48, %v10980_v33  ;;  %v12373_v33 = vld [vmem:[#allocation33_spill] sm:$0xff]  ;;  %v4421_v48 = vmul.f32 %v10688_v15, %v12377_v44 }
 0x587   : > { %7021 = vset.pattern.permute.xlu1 %v12104_v9  ;;  %v5011_v24 = vpop.permute.xlu1 %5010  ;;  %v4246_v11 = vmul.f32 %v10659_v39, %v12373_v33  ;;  %v4713_v8 = vadd.f32 %v4705_v20, %v4660_v60 }
 0x588   : > { %4817 = vperm.xlu1 %7021, %v7052_v49  }
 0x589   : > { %v4254_v42 = vadd.f32 %v4246_v11, %v4201_v23  ;;  %v4766_v16 = vadd.f32 %v4758_v14, %v4713_v8  ;;  %v12379_v23 = vld [vmem:[#allocation93_spill] sm:$0xff]  ;;  %v4597_v11 = vmul.f32 %v10754_v30, %v10858_v12 }
 0x58a   : > { %v4427_v3 = vmul.f32 %v10688_v15, %v12379_v23 }
 0x58b   : > { %v4307_v59 = vadd.f32 %v4299_v22, %v4254_v42 }
 0x58c   : > { %5030 = vperm.xlu1 %7021, %v11076_v21   ;;  %v4410_v26 = vpop.permute.xlu1 %4409  ;;  %v4435_v42 = vadd.f32 %v4427_v3, %v11058_v25 }
 0x58d   : > { %v4426_v54 = vmul.f32 %v10688_v15, %v4410_v26  ;;  %v12380_v26 = vld [vmem:[#allocation182_spill] sm:$0xff]  ;;  %v11126_v15 = vld [vmem:[%s12233_s5 + $0x20] ss:$0 sm:$0xff] }
 0x58e   : > { %v4527_v33 = vmul.f32 %v10731_v17, %v12380_v26  ;;  %v5052_v12 = vmul.f32 %v11126_v15, %v5011_v24 }
 0x58f   : > { %v11084_v5 = vadd.f32 %v4426_v54, %v11017_v2  ;;  %v4368_v2 = vmul.f32 %v10680_v52, %v12376_v32  ;;  %v4835_v52 = vadd.f32 %v4827_v45, %v4766_v16  ;;  %v12383_v32 = vld [vmem:[#allocation95_spill] sm:$0xff] }
 0x590   : > { %7022 = vset.pattern.permute.xlu1 %v12103_v10  ;;  %v4631_v29 = vpop.permute.xlu1 %4630  ;;  %v5060_v16 = vadd.f32 %v5052_v12, %v11002_v57  ;;  %v12384_v45 = vld [vmem:[#allocation59_spill] sm:$0xff]  ;;  %v11157_v57 = vld [vmem:[%s12233_s5 + $0x22] ss:$0 sm:$0xff] }
 0x591   : > { %v4653_v39 = vmul.f32 %v10774_v28, %v4631_v29  ;;  %4866 = vperm.xlu1 %7022, %v7053_v55   ;;  %v4376_v62 = vadd.f32 %v4368_v2, %v4307_v59  ;;  %v4879_v2 = vmul.f32 %v10952_v63, %v12383_v32  ;;  %v7054_v32 = vld [vmem:[#allocation4 + $0x92] sm:$0xff] }
 0x593   : > { %v4661_v37 = vadd.f32 %v4653_v39, %v4608_v4  ;;  %v4429_v38 = vadd.f32 %v4421_v48, %v4376_v62  ;;  %v12382_v39 = vld [vmem:[#allocation189_spill] sm:$0xff] }
 0x594   : > { %v4635_v1 = vpop.permute.xlu1 %4634  ;;  %v4650_v59 = vmul.f32 %v10774_v28, %v12382_v39 }
 0x595   : > { %v4654_v18 = vmul.f32 %v10774_v28, %v4635_v1  ;;  %5086 = vperm.xlu1 %7022, %v11076_v21  }
 0x597   : > { %v11099_v34 = vadd.f32 %v4654_v18, %v11036_v41  ;;  %v4482_v41 = vadd.f32 %v4474_v7, %v4429_v38  ;;  %v4887_v18 = vadd.f32 %v4879_v2, %v11069_v0  ;;  %v11162_v0 = vld [vmem:[%s12233_s5 + $0x23] ss:$0 sm:$0xff] }
 0x598   : > { %v4855_v51 = vpop.permute.xlu1 %4854  ;;  %v12388_v7 = vld [vmem:[#allocation194_spill] sm:$0xff] }
 0x599   : > { %v4880_v4 = vmul.f32 %v10952_v63, %v4855_v51  ;;  %5090 = vperm.xlu1 %7022, %v10782_v50   ;;  %v4535_v29 = vadd.f32 %v4527_v33, %v4482_v41  ;;  %v12385_v51 = vld [vmem:[#allocation192_spill] sm:$0xff] }
 0x59a   : > { %v4756_v44 = vmul.f32 %v10804_v61, %v12385_v51 }
 0x59b   : > { %v11105_v53 = vadd.f32 %v4880_v4, %v4835_v52  ;;  %v4605_v46 = vadd.f32 %v4597_v11, %v4535_v29  ;;  %v12387_v52 = vld [vmem:[#allocation166_spill] sm:$0xff]  ;;  %v12389_v11 = vld [vmem:[#allocation193_spill] sm:$0xff] }
 0x59c   : > { %v11107_v36 = vpop.permute.xlu1 %5074  ;;  %v4985_v4 = vmul.f32 %v10976_v47, %v12387_v52 }
 0x59d   : > { %7023 = vset.pattern.permute.xlu1 %v12331_v6  ;;  %v4658_v24 = vadd.f32 %v4650_v59, %v4605_v46  ;;  %v11179_v46 = vld [vmem:[%s11498_s6] ss:$0 sm:$0xff] }
 0x59e   : > { %4923 = vperm.xlu1 %7023, %v7052_v49   ;;  %v4533_v49 = vmul.f32 %v10731_v17, %v12381_v35  ;;  %v12391_v35 = vld [vmem:[#allocation116_spill] sm:$0xff] }
 0x5a1   : > { %v4467_v54 = vpop.permute.xlu1 %4466 }
 0x5a2   : > { %v4480_v60 = vmul.f32 %v10717_v56, %v4467_v54  ;;  %5139 = vperm.xlu1 %7023, %v11076_v21   ;;  %v4878_v54 = vmul.f32 %v10952_v63, %v12389_v11 }
 0x5a4   : > { %v4488_v20 = vadd.f32 %v4480_v60, %v4435_v42  ;;  %v12390_v42 = vld [vmem:[#allocation168_spill] sm:$0xff] }
 0x5a5   : > { %v4684_v22 = vpop.permute.xlu1 %4683  ;;  %v5211_v60 = vmul.f32 %v11162_v0, %v12390_v42 }
 0x5a6   : > { %v4706_v25 = vmul.f32 %v10799_v13, %v4684_v22  ;;  %7025 = vset.pattern.permute.xlu1 %v12119_v19  ;;  %v11131_v14 = vadd.f32 %v4533_v49, %v4488_v20  ;;  %v4479_v49 = vmul.f32 %v10717_v56, %v12391_v35  ;;  %v12392_v56 = vld [vmem:[#allocation114_spill] sm:$0xff] }
 0x5a7   : > { %4972 = vperm.xlu1 %7025, %v7053_v55   ;;  %v4703_v55 = vmul.f32 %v10799_v13, %v12384_v45  ;;  %v4931_v2 = vmul.f32 %v10971_v58, %v12392_v56 }
 0x5a8   : > { %v4714_v8 = vadd.f32 %v4706_v25, %v4661_v37  ;;  %v12386_v37 = vld [vmem:[#allocation97_spill] sm:$0xff]  ;;  %v4487_v39 = vadd.f32 %v4479_v49, %v11084_v5 }
 0x5a9   : > { %v4904_v1 = vpop.permute.xlu1 %4903  ;;  %v5105_v48 = vmul.f32 %v11140_v43, %v12386_v37  ;;  %v4711_v40 = vadd.f32 %v4703_v55, %v4658_v24  ;;  %v4984_v24 = vmul.f32 %v10976_v47, %v11043_v27 }
 0x5aa   : > { %v4932_v62 = vmul.f32 %v10971_v58, %v4904_v1 }
 0x5ab   : > { %5192 = vperm.xlu1 %7025, %v11076_v21   ;;  %v4825_v21 = vmul.f32 %v10936_v31, %v12388_v7  ;;  %v5113_v23 = vadd.f32 %v5105_v48, %v5060_v16  ;;  %v4764_v33 = vadd.f32 %v4756_v44, %v4711_v40  ;;  %v7055_v44 = vld [vmem:[#allocation4 + $0x82] sm:$0xff]  ;;  %v5106_v48 = vmul.f32 %v11140_v43, %v11107_v36  ;;  %v12394_v7 = vld [vmem:[#allocation123_spill] sm:$0xff] }
 0x5ac   : > { %v4940_v38 = vadd.f32 %v4932_v62, %v4887_v18 }
 0x5ad   : > { %v5124_v41 = vpop.permute.xlu1 %5123  ;;  %v4833_v20 = vadd.f32 %v4825_v21, %v4764_v33  ;;  %v5159_v21 = vmul.f32 %v11157_v57, %v12394_v7 }
 0x5ae   : > { %v5158_v3 = vmul.f32 %v11157_v57, %v5124_v41  ;;  %v11167_v26 = vadd.f32 %v4985_v4, %v4940_v38 }
 0x5af   : > { %5196 = vperm.xlu1 %7025, %v10782_v50   ;;  %v4886_v25 = vadd.f32 %v4878_v54, %v4833_v20 }
 0x5b0   : > { %v5166_v29 = vadd.f32 %v5158_v3, %v5113_v23 }
 0x5b1   : > { %v4939_v62 = vadd.f32 %v4931_v2, %v4886_v25 }
 0x5b2   : > { %v5219_v22 = vadd.f32 %v5211_v60, %v5166_v29  ;;  %v4516_v12 = vpop.permute.xlu1 %4515 }
 0x5b3   : > { %v4532_v50 = vmul.f32 %v10731_v17, %v4516_v12  ;;  %7028 = vset.pattern.permute.xlu1 %v12104_v9  ;;  %v5016_v17 = vpop.permute.xlu0 %5015  ;;  %v12393_v9 = vld [vmem:[#allocation119_spill] sm:$0xff]  ;;  %v4992_v55 = vadd.f32 %v4984_v24, %v4939_v62  ;;  %v11221_v24 = vld [vmem:[%s11500_s8] ss:$0 sm:$0xff] }
 0x5b4   : > { %v5234_v59 = vadd.f32 %v11179_v46, %v5219_v22  ;;  %5045 = vperm.xlu1 %7028, %v7054_v32   ;;  %v4707_v45 = vmul.f32 %v10799_v13, %v12393_v9  ;;  %v5053_v37 = vmul.f32 %v11126_v15, %v5016_v17 }
 0x5b5   : > { %v4540_v1 = vadd.f32 %v4532_v50, %v4487_v39 }
 0x5b6   : > { %v5242_v16 = vmax.f32 %v5234_v59, 0.0  ;;  %v4737_v18 = vpop.permute.xlu1 %4736  ;;  %v4715_v52 = vadd.f32 %v4707_v45, %v11099_v34  ;;  %v5061_v38 = vadd.f32 %v5053_v37, %v4992_v55  ;;  %v5480_v37 = vld [vmem:[%s11501_s9 + $0x10] sm:$0xff] }
 0x5b7   : > { %v4759_v5 = vmul.f32 %v10804_v61, %v4737_v18  ;;  %v4585_v49 = vpop.permute.xlu0 %4584 }
 0x5b8   : > { %5251 = vst.msk [vmem:[#allocation5] sm:$0xff] %vm5250_vm5, %v5242_v16  ;;  %7029 = vset.pattern.permute.xlu1 %v12103_v10  ;;  %v4602_v25 = vmul.f32 %v10754_v30, %v4585_v49 }
 0x5b9   : > { %v4767_v51 = vadd.f32 %v4759_v5, %v4714_v8  ;;  %5094 = vperm.xlu1 %7029, %v7055_v44   ;;  %v5114_v8 = vadd.f32 %v5106_v48, %v5061_v38  ;;  %v12395_v38 = vld [vmem:[#allocation98_spill] sm:$0xff] }
 0x5ba   : > { %v4741_v27 = vpop.permute.xlu1 %4740 }
 0x5bb   : > { %v4760_v4 = vmul.f32 %v10804_v61, %v4741_v27  ;;  %v5167_v23 = vadd.f32 %v5159_v21, %v5114_v8  ;;  %v4808_v18 = vpop.permute.xlu0 %4807  ;;  %v12396_v8 = vmov 0.0   ;;  %v5633_v21 = vld [vmem:[%s11501_s9 + $0x20] sm:$0xff] }
 0x5bd   : > { %v4768_v40 = vadd.f32 %v4760_v4, %v4715_v52  ;;  %7030 = vset.pattern.permute.xlu1 %v12331_v6  ;;  %v5556_v4 = vld [vmem:[%s11501_s9 + $0x18] sm:$0xff] }
 0x5be   : > { %5147 = vperm.xlu1 %7030, %v7055_v44   ;;  %v11200_v10 = vpop.permute.xlu1 %4960 }
 0x5bf   : > { %v5259_v20 = vld [vmem:[#allocation5] ss:$2 sm:$0xf]  ;;  %v5267_v22 = vld [vmem:[#allocation5 + $0x1] ss:$2 sm:$0xf] }
 0x5c0   : > { %v5290_v39 = vmax.f32 %v5259_v20, %v5267_v22  ;;  %v12399_v20 = vld [vmem:[#allocation171_spill] sm:$0xff] }
 0x5c1   : > { %v5213_v22 = vmul.f32 %v11162_v0, %v12399_v20 }
 0x5c2   : > { %5151 = vperm.xlu1 %7030, %v7054_v32   ;;  %v5181_v41 = vpop.permute.xlu1 %5180 }
 0x5c3   : > { %v5212_v36 = vmul.f32 %v11162_v0, %v5181_v41 }
 0x5c5   : > { %v5220_v3 = vadd.f32 %v5212_v36, %v5167_v23 }
 0x5c6   : > { %7032 = vset.pattern.permute.xlu1 %v12119_v19 }
 0x5c7   : > { %v5235_v34 = vadd.f32 %v11179_v46, %v5220_v3  ;;  %5204 = vperm.xlu1 %7032, %v7054_v32   ;;  %v4590_v33 = vpop.permute.xlu1 %4589  ;;  %v4610_v32 = vadd.f32 %v4602_v25, %v4540_v1  ;;  %v4829_v1 = vmul.f32 %v10936_v31, %v4808_v18 }
 0x5c8   : > { %v4603_v6 = vmul.f32 %v10754_v30, %v4590_v33  ;;  %v12397_v33 = vld [vmem:[#allocation170_spill] sm:$0xff] }
 0x5c9   : > { %v5243_v11 = vmax.f32 %v5235_v34, 0.0  ;;  %v4837_v55 = vadd.f32 %v4829_v1, %v4768_v40  ;;  %v4656_v40 = vmul.f32 %v10774_v28, %v12395_v38  ;;  %v5709_v34 = vld [vmem:[%s11501_s9 + $0x28] sm:$0xff] }
 0x5ca   : > { %v4611_v54 = vadd.f32 %v4603_v6, %v11131_v14  ;;  %v11215_v14 = vld [vmem:[%s11499_s7] ss:$0 sm:$0xff]  ;;  %v4762_v6 = vmul.f32 %v10804_v61, %v12397_v33 }
 0x5cb   : > { %5252 = vst.msk [vmem:[#allocation5 + $0x8] sm:$0xff] %vm5250_vm5, %v5243_v11  ;;  %v4803_v42 = vpop.permute.xlu1 %4802 }
 0x5cc   : > { %v4828_v60 = vmul.f32 %v10936_v31, %v4803_v42  ;;  %v4664_v23 = vadd.f32 %v4656_v40, %v4611_v54 }
 0x5ce   : > { %v4836_v29 = vadd.f32 %v4828_v60, %v4767_v51  ;;  %v12398_v60 = vld [vmem:[#allocation100_spill] sm:$0xff] }
 0x5cf   : > { %v5021_v35 = vpop.permute.xlu1 %5020  ;;  %v5107_v61 = vmul.f32 %v11140_v43, %v12398_v60 }
 0x5d0   : > { %v5054_v41 = vmul.f32 %v11126_v15, %v5021_v35 }
 0x5d2   : > { %v5275_v19 = vld [vmem:[#allocation5 + $0x8] ss:$2 sm:$0xf]  ;;  %v5283_v12 = vld [vmem:[#allocation5 + $0x9] ss:$2 sm:$0xf]  ;;  %v5062_v54 = vadd.f32 %v5054_v41, %v11167_v26  ;;  %v4986_v26 = vmul.f32 %v10976_v47, %v11200_v10 }
 0x5d3   : > { %v5294_v50 = vmax.f32 %v5275_v19, %v5283_v12  ;;  %v12400_v12 = vld [vmem:[#allocation121_spill] sm:$0xff] }
 0x5d4   : > { %v4639_v59 = vpop.permute.xlu1 %4638  ;;  %v5115_v35 = vadd.f32 %v5107_v61, %v5062_v54  ;;  %v4933_v25 = vmul.f32 %v10971_v58, %v12400_v12 }
 0x5d5   : > { %v4655_v56 = vmul.f32 %v10774_v28, %v4639_v59  ;;  %v5298_v2 = vmax.f32 %v5290_v39, %v5294_v50 }
 0x5d6   : > { %v4941_v59 = vadd.f32 %v4933_v25, %v11105_v53 }
 0x5d7   : > { %v11223_v16 = vadd.f32 %v4655_v56, %v4610_v32  ;;  %v5309_v30 = vmul.f32 %v11215_v14, %v5298_v2  ;;  %v5026_v32 = vpop.permute.xlu0 %5025 }
 0x5d8   : > { %v4859_v62 = vpop.permute.xlu1 %4858  ;;  %v4994_v2 = vadd.f32 %v4986_v26, %v4941_v59  ;;  %v12402_v26 = vld [vmem:[#allocation174_spill] sm:$0xff] }
 0x5d9   : > { %v4881_v5 = vmul.f32 %v10952_v63, %v4859_v62  ;;  %v5320_v17 = vadd.f32 %v11221_v24, %v5309_v30  ;;  %v5055_v62 = vmul.f32 %v11126_v15, %v5026_v32  ;;  %v12403_v32 = vld [vmem:[#allocation127_spill] sm:$0xff] }
 0x5db   : > { %v11229_v9 = vadd.f32 %v4881_v5, %v4836_v29  ;;  %5325 = vst.msk [vmem:[#allocation6] sm:$0xf] %vm5324_vm6, %v5320_v17  ;;  %v5063_v17 = vadd.f32 %v5055_v62, %v4994_v2  ;;  %v11290_v38 = vpop.permute.xlu0 %4812  ;;  %v5785_v62 = vld [vmem:[%s11501_s9 + $0x30] sm:$0xff] }
 0x5dc   : > { %v4863_v45 = vpop.permute.xlu1 %4862 }
 0x5dd   : > { %v4882_v51 = vmul.f32 %v10952_v63, %v4863_v45  ;;  %v12401_v45 = vld [vmem:[#allocation129_spill] sm:$0xff] }
 0x5df   : > { %v11233_v44 = vadd.f32 %v4882_v51, %v4837_v55  ;;  %v5161_v55 = vmul.f32 %v11157_v57, %v12401_v45 }
 0x5e0   : > { %v5083_v27 = vpop.permute.xlu1 %5082 }
 0x5e1   : > { %v5108_v5 = vmul.f32 %v11140_v43, %v5083_v27 }
 0x5e2   : > { %v5331_v48 = vld [vmem:[#allocation6 + $0x1] sm:$0x1]  ;;  %v5329_v52 = vld [vmem:[#allocation6] sm:$0x1]  ;;  %v5479_v3 = vld [vmem:[#allocation6 + $0x2] sm:$0x1] }
 0x5e3   : > { %6849 = vmatmul.mubr.msk.f32.vlgmr.msra.gmra.mxu0 %vm5250_vm5, %v5331_v48  ;;  %6854 = vmatmul.mubr.msk.f32.vlgmr.msra.gmra.mxu1 %vm5250_vm5, %v5329_v52  ;;  %v5555_v28 = vld [vmem:[#allocation6 + $0x3] sm:$0x1]  ;;  %v5116_v10 = vadd.f32 %v5108_v5, %v5063_v17 }
 0x5e4   : > { %6857 = vmatpush3.msra.mxu0 %v5480_v37  ;;  %6858 = vmatprep.mubr.msk.f32.mxu0 %vm7125_vm4, %v12396_v8 }
 0x5e5   : > { %v4696_v7 = vpop.permute.xlu1 %4695  ;;  %6862 = vmatpush3.msra.mxu1 %v5556_v4  ;;  %6863 = vmatprep.mubr.msk.f32.mxu1 %vm7125_vm4, %v12396_v8  ;;  %v5169_v53 = vadd.f32 %v5161_v55, %v5116_v10 }
 0x5e6   : > { %v4709_v36 = vmul.f32 %v10799_v13, %v4696_v7  ;;  %6866 = vmatprep.subr.mxu0 %v12396_v8  ;;  %6871 = vmatprep.subr.mxu1 %v12396_v8  ;;  %v5036_v7 = vpop.permute.xlu0 %5035 }
 0x5e7   : > { %6859 = vmatmul.mubr.msk.f32.vlgmr.msra.gmra.mxu0 %vm5250_vm5, %v5479_v3  ;;  %6864 = vmatmul.mubr.msk.f32.vlgmr.msra.gmra.mxu1 %vm5250_vm5, %v5555_v28 }
 0x5e8   : > { %v4717_v11 = vadd.f32 %v4709_v36, %v4664_v23  ;;  %6867 = vmatpush3.msra.mxu0 %v5633_v21  ;;  %6868 = vmatprep.mubr.msk.f32.mxu0 %vm7125_vm4, %v12396_v8 }
 0x5e9   : > { %v4912_v13 = vpop.permute.xlu1 %4911  ;;  %6872 = vmatpush3.msra.mxu1 %v5709_v34  ;;  %6873 = vmatprep.mubr.msk.f32.mxu1 %vm7125_vm4, %v12396_v8 }
 0x5ea   : > { %v4770_v42 = vadd.f32 %v4762_v6, %v4717_v11  ;;  %6876 = vmatprep.subr.mxu0 %v12396_v8  ;;  %6881 = vmatprep.subr.mxu1 %v12396_v8  ;;  %v11295_v6 = vpop.permute.xlu0 %5040  ;;  %v4934_v25 = vmul.f32 %v10971_v58, %v4912_v13  ;;  %v5861_v13 = vld [vmem:[%s11501_s9 + $0x38] sm:$0xff] }
 0x5ec   : > { %v4942_v45 = vadd.f32 %v4934_v25, %v11229_v9  ;;  %v5938_v9 = vld [vmem:[%s11501_s9 + $0x40] sm:$0xff] }
 0x5ed   : > { %v5132_v29 = vpop.permute.xlu1 %5131 }
 0x5ee   : > { %v5160_v49 = vmul.f32 %v11157_v57, %v5132_v29  ;;  %v4871_v29 = vpop.permute.xlu0 %4870 }
 0x5f0   : > { %v5168_v19 = vadd.f32 %v5160_v49, %v5115_v35  ;;  %v4884_v49 = vmul.f32 %v10952_v63, %v4871_v29 }
 0x5f2   : > { %v5221_v39 = vadd.f32 %v5213_v22, %v5168_v19  ;;  %v11279_v50 = vpop.permute.xlu1 %4744 }
 0x5f4   : > { %v5236_v56 = vadd.f32 %v11179_v46, %v5221_v39  ;;  %v4990_v39 = vmul.f32 %v10976_v47, %v12402_v26 }
 0x5f6   : > { %v5244_v30 = vmax.f32 %v5236_v56, 0.0  ;;  %v4965_v18 = vpop.permute.xlu1 %4964  ;;  %v4935_v56 = vmul.f32 %v10971_v58, %v12403_v32 }
 0x5f7   : > { %v4987_v2 = vmul.f32 %v10976_v47, %v4965_v18 }
 0x5f8   : > { %5253 = vst.msk [vmem:[#allocation5 + $0x10] sm:$0xff] %vm5250_vm5, %v5244_v30  ;;  %v4943_v55 = vadd.f32 %v4935_v56, %v11233_v44  ;;  %v5057_v44 = vmul.f32 %v11126_v15, %v5036_v7  ;;  %v7056_v7 = vld [vmem:[%s12233_s5 + $0x1a] ss:$0 sm:$0xff] }
 0x5fa   : > { %v4969_v1 = vpop.permute.xlu1 %4968 }
 0x5fb   : > { %v4988_v30 = vmul.f32 %v10976_v47, %v4969_v1  ;;  %v4995_v1 = vadd.f32 %v4987_v2, %v4942_v45 }
 0x5fe   : > { %v5189_v51 = vpop.permute.xlu1 %5188 }
 0x5ff   : > { %v5214_v37 = vmul.f32 %v11162_v0, %v5189_v51  ;;  %v5261_v21 = vld [vmem:[#allocation5 + $0x10] ss:$2 sm:$0xf]  ;;  %v5269_v41 = vld [vmem:[#allocation5 + $0x11] ss:$2 sm:$0xf]  ;;  %v4996_v51 = vadd.f32 %v4988_v30, %v4943_v55 }
 0x600   : > { %v5291_v28 = vmax.f32 %v5261_v21, %v5269_v41  ;;  %v12404_v41 = vld [vmem:[#allocation125_spill] sm:$0xff] }
 0x601   : > { %v5222_v48 = vadd.f32 %v5214_v37, %v5169_v53 }
 0x603   : > { %v5237_v52 = vadd.f32 %v11179_v46, %v5222_v48  ;;  %v4818_v4 = vpop.permute.xlu1 %4817 }
 0x604   : > { %v4831_v54 = vmul.f32 %v10936_v31, %v4818_v4  ;;  %v6014_v4 = vld [vmem:[%s11501_s9 + $0x48] sm:$0xff] }
 0x605   : > { %v5245_v40 = vmax.f32 %v5237_v52, 0.0 }
 0x606   : > { %v4839_v20 = vadd.f32 %v4831_v54, %v4770_v42 }
 0x607   : > { %5254 = vst.msk [vmem:[#allocation5 + $0x18] sm:$0xff] %vm5250_vm5, %v5245_v40  ;;  %v5031_v27 = vpop.permute.xlu1 %5030 }
 0x608   : > { %v4892_v19 = vadd.f32 %v4884_v49, %v4839_v20  ;;  %v5056_v18 = vmul.f32 %v11126_v15, %v5031_v27 }
 0x60a   : > { %v5064_v40 = vadd.f32 %v5056_v18, %v4995_v1 }
 0x60c   : > { %v11293_v23 = vpop.permute.xlu1 %4866 }
 0x60e   : > { %v5277_v36 = vld [vmem:[#allocation5 + $0x18] ss:$2 sm:$0xf]  ;;  %v5285_v3 = vld [vmem:[#allocation5 + $0x19] ss:$2 sm:$0xf] }
 0x60f   : > { %v5295_v34 = vmax.f32 %v5277_v36, %v5285_v3  ;;  %v4708_v36 = vmul.f32 %v7056_v7, %v12404_v41  ;;  %v7057_v3 = vld [vmem:[%s12233_s5 + $0x1b] ss:$0 sm:$0xff] }
 0x610   : > { %v5087_v33 = vpop.permute.xlu1 %5086 }
 0x611   : > { %v5299_v11 = vmax.f32 %v5291_v28, %v5295_v34  ;;  %v5109_v53 = vmul.f32 %v11140_v43, %v5087_v33  ;;  %v4761_v28 = vmul.f32 %v7057_v3, %v11279_v50  ;;  %v5065_v33 = vadd.f32 %v5057_v44, %v4996_v51 }
 0x613   : > { %v5310_v60 = vmul.f32 %v11215_v14, %v5299_v11  ;;  %v5117_v34 = vadd.f32 %v5109_v53, %v5064_v40  ;;  %v4716_v11 = vadd.f32 %v4708_v36, %v11223_v16  ;;  %v4883_v16 = vmul.f32 %v10952_v63, %v11293_v23 }
 0x614   : > { %v5091_v61 = vpop.permute.xlu1 %5090 }
 0x615   : > { %v5321_v35 = vadd.f32 %v11221_v24, %v5310_v60  ;;  %v5110_v27 = vmul.f32 %v11140_v43, %v5091_v61  ;;  %v4769_v29 = vadd.f32 %v4761_v28, %v4716_v11 }
 0x617   : > { %5326 = vst.msk [vmem:[#allocation6 + $0x4] sm:$0xf] %vm5324_vm6, %v5321_v35  ;;  %v5118_v60 = vadd.f32 %v5110_v27, %v5065_v33  ;;  %v12405_v35 = vld [vmem:[#allocation133_spill] sm:$0xff] }
 0x618   : > { %v5163_v49 = vmul.f32 %v11157_v57, %v12405_v35  ;;  %v6166_v35 = vld [vmem:[%s11501_s9 + $0x58] sm:$0xff] }
 0x619   : > { %v4924_v22 = vpop.permute.xlu1 %4923 }
 0x61a   : > { %v4937_v12 = vmul.f32 %v10971_v58, %v4924_v22  ;;  %v4830_v22 = vmul.f32 %v10936_v31, %v11290_v38  ;;  %v5171_v25 = vadd.f32 %v5163_v49, %v5118_v60 }
 0x61c   : > { %v4945_v59 = vadd.f32 %v4937_v12, %v4892_v19 }
 0x61d   : > { %v5140_v42 = vpop.permute.xlu1 %5139 }
 0x61e   : > { %v5632_v5 = vld [vmem:[#allocation6 + $0x4] sm:$0x1]  ;;  %v5708_v17 = vld [vmem:[#allocation6 + $0x5] sm:$0x1]  ;;  %v11316_v10 = vadd.f32 %v4990_v39, %v4945_v59  ;;  %v5784_v48 = vld [vmem:[#allocation6 + $0x6] sm:$0x1]  ;;  %v5162_v21 = vmul.f32 %v11157_v57, %v5140_v42  ;;  %v4838_v39 = vadd.f32 %v4830_v22, %v4769_v29 }
 0x61f   : > { %6869 = vmatmul.mubr.msk.f32.vlgmr.msra.gmra.mxu0 %vm5250_vm5, %v5632_v5  ;;  %6874 = vmatmul.mubr.msk.f32.vlgmr.msra.gmra.mxu1 %vm5250_vm5, %v5708_v17  ;;  %v5860_v52 = vld [vmem:[#allocation6 + $0x7] sm:$0x1]  ;;  %v12406_v42 = vld [vmem:[#allocation131_spill] sm:$0xff] }
 0x620   : > { %6877 = vmatpush3.msra.mxu0 %v5785_v62  ;;  %6878 = vmatprep.mubr.msk.f32.mxu0 %vm7125_vm4, %v12396_v8  ;;  %v5170_v61 = vadd.f32 %v5162_v21, %v5117_v34  ;;  %v4891_v56 = vadd.f32 %v4883_v16, %v4838_v39  ;;  %v4936_v31 = vmul.f32 %v10971_v58, %v12406_v42  ;;  %v5099_v62 = vpop.permute.xlu0 %5098 }
 0x621   : > { %6882 = vmatpush3.msra.mxu1 %v5861_v13  ;;  %6883 = vmatprep.mubr.msk.f32.mxu1 %vm7125_vm4, %v12396_v8  ;;  %v5058_v13 = vmul.f32 %v11126_v15, %v11295_v6  ;;  %v5112_v6 = vmul.f32 %v11140_v43, %v5099_v62 }
 0x622   : > { %v4973_v37 = vpop.permute.xlu1 %4972  ;;  %6886 = vmatprep.subr.mxu0 %v12396_v8  ;;  %6891 = vmatprep.subr.mxu1 %v12396_v8  ;;  %v4944_v23 = vadd.f32 %v4936_v31, %v4891_v56  ;;  %v6395_v56 = vld [vmem:[%s11501_s9 + $0x70] sm:$0xff] }
 0x623   : > { %6879 = vmatmul.mubr.msk.f32.vlgmr.msra.gmra.mxu0 %vm5250_vm5, %v5784_v48  ;;  %6884 = vmatmul.mubr.msk.f32.vlgmr.msra.gmra.mxu1 %vm5250_vm5, %v5860_v52  ;;  %v4989_v63 = vmul.f32 %v10976_v47, %v4973_v37 }
 0x624   : > { %6887 = vmatpush3.msra.mxu0 %v5938_v9  ;;  %6888 = vmatprep.mubr.msk.f32.mxu0 %vm7125_vm4, %v12396_v8  ;;  %v5201_v51 = vpop.permute.xlu0 %5200 }
 0x625   : > { %6892 = vmatpush3.msra.mxu1 %v6014_v4  ;;  %6893 = vmatprep.mubr.msk.f32.mxu1 %vm7125_vm4, %v12396_v8  ;;  %v4997_v5 = vadd.f32 %v4989_v63, %v4944_v23  ;;  %v5217_v4 = vmul.f32 %v11162_v0, %v5201_v51  ;;  %v6553_v51 = vld [vmem:[%s11505_s13] sm:$0xff] }
 0x626   : > { %v5193_v54 = vpop.permute.xlu1 %5192  ;;  %6896 = vmatprep.subr.mxu0 %v12396_v8  ;;  %6901 = vmatprep.subr.mxu1 %v12396_v8 }
 0x627   : > { %v5215_v50 = vmul.f32 %v11162_v0, %v5193_v54  ;;  %v5066_v1 = vadd.f32 %v5058_v13, %v4997_v5 }
 0x629   : > { %v5223_v20 = vadd.f32 %v5215_v50, %v5170_v61  ;;  %v6090_v61 = vld [vmem:[%s11501_s9 + $0x50] sm:$0xff] }
 0x62a   : > { %v5197_v19 = vpop.permute.xlu1 %5196 }
 0x62b   : > { %v5238_v12 = vadd.f32 %v11179_v46, %v5223_v20  ;;  %v5216_v26 = vmul.f32 %v11162_v0, %v5197_v19 }
 0x62d   : > { %v5246_v59 = vmax.f32 %v5238_v12, 0.0  ;;  %v5224_v32 = vadd.f32 %v5216_v26, %v5171_v25 }
 0x62f   : > { %5255 = vst.msk [vmem:[#allocation5 + $0x20] sm:$0xff] %vm5250_vm5, %v5246_v59  ;;  %v5239_v2 = vadd.f32 %v11179_v46, %v5224_v32  ;;  %v5046_v30 = vpop.permute.xlu1 %5045 }
 0x630   : > { %v5059_v58 = vmul.f32 %v11126_v15, %v5046_v30 }
 0x631   : > { %v5247_v38 = vmax.f32 %v5239_v2, 0.0  ;;  %v6471_v2 = vld [vmem:[%s11501_s9 + $0x78] sm:$0xff] }
 0x632   : > { %v5067_v21 = vadd.f32 %v5059_v58, %v11316_v10 }
 0x633   : > { %5256 = vst.msk [vmem:[#allocation5 + $0x28] sm:$0xff] %vm5250_vm5, %v5247_v38 }
 0x634   : > { %v5095_v17 = vpop.permute.xlu1 %5094  ;;  %v5120_v28 = vadd.f32 %v5112_v6, %v5067_v21 }
 0x635   : > { %v5111_v45 = vmul.f32 %v11140_v43, %v5095_v17 }
 0x636   : > { %v5263_v55 = vld [vmem:[#allocation5 + $0x20] ss:$2 sm:$0xf]  ;;  %v5271_v18 = vld [vmem:[#allocation5 + $0x21] ss:$2 sm:$0xf] }
 0x637   : > { %v5119_v44 = vadd.f32 %v5111_v45, %v5066_v1  ;;  %v5292_v48 = vmax.f32 %v5263_v55, %v5271_v18  ;;  %v6554_v1 = vld [vmem:[%s11505_s13 + $0x8] sm:$0xff] }
 0x639   : > { %v5148_v53 = vpop.permute.xlu1 %5147 }
 0x63a   : > { %v5279_v47 = vld [vmem:[#allocation5 + $0x28] ss:$2 sm:$0xf]  ;;  %v5287_v9 = vld [vmem:[#allocation5 + $0x29] ss:$2 sm:$0xf]  ;;  %v5164_v37 = vmul.f32 %v11157_v57, %v5148_v53 }
 0x63b   : > { %v5296_v52 = vmax.f32 %v5279_v47, %v5287_v9 }
 0x63c   : > { %v5172_v40 = vadd.f32 %v5164_v37, %v5119_v44 }
 0x63d   : > { %v5300_v27 = vmax.f32 %v5292_v48, %v5296_v52  ;;  %v5152_v7 = vpop.permute.xlu1 %5151 }
 0x63e   : > { %v5225_v41 = vadd.f32 %v5217_v4, %v5172_v40  ;;  %v5165_v15 = vmul.f32 %v11157_v57, %v5152_v7 }
 0x63f   : > { %v5311_v36 = vmul.f32 %v11215_v14, %v5300_v27 }
 0x640   : > { %v5240_v3 = vadd.f32 %v11179_v46, %v5225_v41  ;;  %v5173_v54 = vadd.f32 %v5165_v15, %v5120_v28 }
 0x641   : > { %v5322_v34 = vadd.f32 %v11221_v24, %v5311_v36 }
 0x642   : > { %v5248_v33 = vmax.f32 %v5240_v3, 0.0  ;;  %v5205_v11 = vpop.permute.xlu1 %5204 }
 0x643   : > { %v5218_v60 = vmul.f32 %v11162_v0, %v5205_v11  ;;  %5327 = vst.msk [vmem:[#allocation6 + $0x8] sm:$0xf] %vm5324_vm6, %v5322_v34  ;;  %v6243_v0 = vld [vmem:[%s11501_s9 + $0x60] sm:$0xff] }
 0x644   : > { %5257 = vst.msk [vmem:[#allocation5 + $0x30] sm:$0xff] %vm5250_vm5, %v5248_v33 }
 0x645   : > { %v5226_v43 = vadd.f32 %v5218_v60, %v5173_v54 }
 0x647   : > { %v5241_v10 = vadd.f32 %v11179_v46, %v5226_v43  ;;  %v6319_v46 = vld [vmem:[%s11501_s9 + $0x68] sm:$0xff] }
 0x649   : > { %v5249_v57 = vmax.f32 %v5241_v10, 0.0 }
 0x64a   : > { %v5937_v50 = vld [vmem:[#allocation6 + $0x8] sm:$0x1]  ;;  %v6013_v29 = vld [vmem:[#allocation6 + $0x9] sm:$0x1]  ;;  %v6089_v49 = vld [vmem:[#allocation6 + $0xa] sm:$0x1] }
 0x64b   : > { %5258 = vst.msk [vmem:[#allocation5 + $0x38] sm:$0xff] %vm5250_vm5, %v5249_v57  ;;  %6889 = vmatmul.mubr.msk.f32.vlgmr.msra.gmra.mxu0 %vm5250_vm5, %v5937_v50  ;;  %6894 = vmatmul.mubr.msk.f32.vlgmr.msra.gmra.mxu1 %vm5250_vm5, %v6013_v29  ;;  %v6165_v20 = vld [vmem:[#allocation6 + $0xb] sm:$0x1]  ;;  %v5265_v22 = vld [vmem:[#allocation5 + $0x30] ss:$2 sm:$0xf] }
 0x64c   : > { %6897 = vmatpush3.msra.mxu0 %v6090_v61  ;;  %6898 = vmatprep.mubr.msk.f32.mxu0 %vm7125_vm4, %v12396_v8  ;;  %v5273_v16 = vld [vmem:[#allocation5 + $0x31] ss:$2 sm:$0xf] }
 0x64d   : > { %6902 = vmatpush3.msra.mxu1 %v6166_v35  ;;  %6903 = vmatprep.mubr.msk.f32.mxu1 %vm7125_vm4, %v12396_v8  ;;  %v5293_v25 = vmax.f32 %v5265_v22, %v5273_v16 }
 0x64e   : > { %6906 = vmatprep.subr.mxu0 %v12396_v8  ;;  %6911 = vmatprep.subr.mxu1 %v12396_v8 }
 0x64f   : > { %6899 = vmatmul.mubr.msk.f32.vlgmr.msra.gmra.mxu0 %vm5250_vm5, %v6089_v49  ;;  %6904 = vmatmul.mubr.msk.f32.vlgmr.msra.gmra.mxu1 %vm5250_vm5, %v6165_v20 }
 0x650   : > { %6907 = vmatpush3.msra.mxu0 %v6243_v0  ;;  %6912 = vmatpush3.msra.mxu1 %v6319_v46  ;;  %v6546_v46 = vld [vmem:[%s11502_s10] sm:$0x1] }
 0x651   : > { %6908 = vmatprep.mubr.msk.f32.mxu0 %vm7125_vm4, %v12396_v8  ;;  %6913 = vmatprep.mubr.msk.f32.mxu1 %vm7125_vm4, %v12396_v8 }
 0x652   : > { %v5281_v19 = vld [vmem:[#allocation5 + $0x38] ss:$2 sm:$0xf]  ;;  %v5289_v12 = vld [vmem:[#allocation5 + $0x39] ss:$2 sm:$0xf]  ;;  %6916 = vmatprep.subr.mxu0 %v12396_v8  ;;  %6921 = vmatprep.subr.mxu1 %v12396_v8 }
 0x653   : > { %v5297_v26 = vmax.f32 %v5281_v19, %v5289_v12  ;;  %v6549_v19 = vld [vmem:[%s11503_s11] sm:$0x1] }
 0x655   : > { %v5301_v39 = vmax.f32 %v5293_v25, %v5297_v26  ;;  %v6551_v25 = vld [vmem:[%s11504_s12] sm:$0x1] }
 0x657   : > { %v5312_v59 = vmul.f32 %v11215_v14, %v5301_v39 }
 0x659   : > { %v5323_v32 = vadd.f32 %v11221_v24, %v5312_v59  ;;  %v6555_v59 = vld [vmem:[%s11506_s14] sm:$0x1] }
 0x65b   : > { %5328 = vst.msk [vmem:[#allocation6 + $0xc] sm:$0xf] %vm5324_vm6, %v5323_v32 }
 0x662   : > { %v6242_v30 = vld [vmem:[#allocation6 + $0xc] sm:$0x1]  ;;  %v6318_v42 = vld [vmem:[#allocation6 + $0xd] sm:$0x1]  ;;  %v6394_v14 = vld [vmem:[#allocation6 + $0xe] sm:$0x1] }
 0x663   : > { %6909 = vmatmul.mubr.msk.f32.vlgmr.msra.gmra.mxu0 %vm5250_vm5, %v6242_v30  ;;  %6914 = vmatmul.mubr.msk.f32.vlgmr.msra.gmra.mxu1 %vm5250_vm5, %v6318_v42  ;;  %v6470_v24 = vld [vmem:[#allocation6 + $0xf] sm:$0x1] }
 0x664   : > { %6917 = vmatpush3.msra.mxu0 %v6395_v56  ;;  %6922 = vmatpush3.msra.mxu1 %v6471_v2 }
 0x665   : > { %6918 = vmatprep.mubr.msk.f32.mxu0 %vm7125_vm4, %v12396_v8  ;;  %6923 = vmatprep.mubr.msk.f32.mxu1 %vm7125_vm4, %v12396_v8 }
 0x666   : > { %6926 = vmatprep.subr.mxu0 %v12396_v8 }
 0x667   : > { %6919 = vmatmul.mubr.msk.f32.vlgmr.msra.gmra.mxu0 %vm5250_vm5, %v6394_v14  ;;  %6924 = vmatmul.mubr.msk.f32.vlgmr.msra.gmra.mxu1 %vm5250_vm5, %v6470_v24 }
 0x668   : > { %6930 = vmatprep.mubr.msk.f32.mxu0 %vm7125_vm4, %v12396_v8  ;;  %6927 = vmatpush3.msra.mxu0 %v6554_v1 }
 0x669   : > { %6928 = vmatprep.subr.mxu0 %v12396_v8 }
 0x66a   : > { %6929 = vmatpush3.msra.mxu0 %v6553_v51 }
 0x6a3   : > { %v5402_v31 = vpop.f32.mrf.mxu0  ;;  %v5475_v63 = vpop.f32.mrf.mxu1 }
 0x6a4   : > { %v5476_v38 = vadd.f32 %v5475_v63, %v5402_v31 }
 0x6a5   : > { %v6850_v23 = vpop.f32.mrf.mxu0  ;;  %v6855_v62 = vpop.f32.mrf.mxu1 }
 0x6a7   : > { %v5550_v5 = vpop.f32.mrf.mxu0  ;;  %v5626_v17 = vpop.f32.mrf.mxu1 }
 0x6a8   : > { %v5554_v13 = vadd.f32 %v5550_v5, %v5476_v38 }
 0x6a9   : > { %v6860_v45 = vpop.f32.mrf.mxu0  ;;  %v6865_v55 = vpop.f32.mrf.mxu1 }
 0x6aa   : > { %v5630_v18 = vadd.f32 %v5626_v17, %v5554_v13 }
 0x6df   : > { %v5703_v58 = vpop.f32.mrf.mxu0  ;;  %v5779_v53 = vpop.f32.mrf.mxu1 }
 0x6e0   : > { %v5707_v4 = vadd.f32 %v5703_v58, %v5630_v18 }
 0x6e1   : > { %v6870_v47 = vpop.f32.mrf.mxu0  ;;  %v6875_v9 = vpop.f32.mrf.mxu1 }
 0x6e2   : > { %v5783_v27 = vadd.f32 %v5779_v53, %v5707_v4 }
 0x6e3   : > { %v5855_v44 = vpop.f32.mrf.mxu0  ;;  %v5931_v37 = vpop.f32.mrf.mxu1 }
 0x6e4   : > { %v5859_v36 = vadd.f32 %v5855_v44, %v5783_v27 }
 0x6e5   : > { %v6880_v48 = vpop.f32.mrf.mxu0  ;;  %v6885_v52 = vpop.f32.mrf.mxu1 }
 0x6e6   : > { %v5935_v28 = vadd.f32 %v5931_v37, %v5859_v36 }
 0x70b   : > { %v6008_v40 = vpop.f32.mrf.mxu0  ;;  %v6084_v6 = vpop.f32.mrf.mxu1 }
 0x70c   : > { %v6012_v34 = vadd.f32 %v6008_v40, %v5935_v28 }
 0x70d   : > { %v6890_v21 = vpop.f32.mrf.mxu0  ;;  %v6895_v7 = vpop.f32.mrf.mxu1 }
 0x70e   : > { %v6088_v33 = vadd.f32 %v6084_v6, %v6012_v34 }
 0x70f   : > { %v6160_v41 = vpop.f32.mrf.mxu0  ;;  %v6236_v15 = vpop.f32.mrf.mxu1 }
 0x710   : > { %v6164_v11 = vadd.f32 %v6160_v41, %v6088_v33 }
 0x711   : > { %v6900_v3 = vpop.f32.mrf.mxu0  ;;  %v6905_v8 = vpop.f32.mrf.mxu1 }
 0x712   : > { %v6240_v54 = vadd.f32 %v6236_v15, %v6164_v11 }
 0x723   : > { %v6313_v60 = vpop.f32.mrf.mxu0  ;;  %v6389_v43 = vpop.f32.mrf.mxu1 }
 0x724   : > { %v6317_v10 = vadd.f32 %v6313_v60, %v6240_v54 }
 0x725   : > { %v6910_v57 = vpop.f32.mrf.mxu0  ;;  %v6915_v61 = vpop.f32.mrf.mxu1 }
 0x726   : > { %v6393_v50 = vadd.f32 %v6389_v43, %v6317_v10 }
 0x727   : > { %v6465_v29 = vpop.f32.mrf.mxu0  ;;  %v6541_v35 = vpop.f32.mrf.mxu1 }
 0x728   : > { %v6469_v0 = vadd.f32 %v6465_v29, %v6393_v50 }
 0x729   : > { %v6920_v49 = vpop.f32.mrf.mxu0  ;;  %v6925_v20 = vpop.f32.mrf.mxu1 }
 0x72a   : > { %v6545_v22 = vadd.f32 %v6541_v35, %v6469_v0 }
 0x72c   : > { %v6547_v16 = vadd.f32 %v6546_v46, %v6545_v22 }
 0x72e   : > { %v6548_v12 = vmax.f32 %v6547_v16, 0.0 }
 0x730   : > { %v6550_v26 = vmul.f32 %v6549_v19, %v6548_v12 }
 0x732   : > { %v6552_v39 = vadd.f32 %v6551_v25, %v6550_v26 }
 0x734   : > { %6931 = vmatmul.mubr.msk.f32.vlgmr.msra.gmra.mxu0 %vm6556_vm7, %v6552_v39 }
 0x7f4   : > { %v6626_v32 = vpop.f32.mrf.mxu0 }
 0x7f5   : > { %v6627_v56 = vadd.f32 %v6626_v32, %v6555_v59 }
 0x7f6   : > { %v6932_v2 = vpop.f32.mrf.mxu0 }
 0x7f7   : > { %v6631_v30 = vsel %vm6630_vm8, %v6627_v56, -inf }
 0x7f8   : > { %6632 = vmax.xlane.f32.xlu1 %v6631_v30 }
 0x881   : > { %v6633_v42 = vpop.xlane.xlu1 %6632 }
 0x882   : > { %v6634_v14 = vsub.f32 %v6627_v56, %v6633_v42 }
 0x884   : > { %v6635_v24 = vmul.f32 1.442695, %v6634_v14 }
 0x886   : > { %7033 = vpow2.f32 %v6635_v24 }
 0x893   : > { %v7034_v31 = vpop.eup %7033 }
 0x894   : > { %v6637_v63 = vsel %vm6630_vm8, %v7034_v31, 0.0 }
 0x895   : > { %6638 = vadd.xlane.f32.xlu0 %v6637_v63 }
 0x91e   : > { %v6639_v38 = vpop.xlane.xlu0 %6638 }
 0x91f   : > { %7035 = vrcp.f32 %v6639_v38 }
 0x92c   : > { %v7036_v23 = vpop.eup %7035 }
 0x92d   : > { %v6641_v62 = vmul.f32 %v7036_v23, %v7034_v31 }
 0x92f   : > { %6642 = vst.msk [vmem:[%s486_s26] sm:$0x1] %vm6630_vm8, %v6641_v62 }
 0x930   : > { %7071 = shalt.err (!%p7068_p3)
}
 0x931   : > { %s7072_s16 = scalar_lea.hbm %s6654_s23, 16  ;;  %s7076_s26 = scalar_lea.hbm %s11507_s15, 32 }
 0x932   : > { %p7073_p4 = scmp.ne.s32.totalorder %s6654_s23, %s7072_s16  ;;  %p7077_p9 = scmp.lt.s32.totalorder %s6654_s23, %s11507_s15 }
 0x933   : > { %p7078_p10 = scmp.lt.s32.totalorder %s7076_s26, %s7072_s16 }
 0x934   : > { %p7074_p7 = pnand %p7073_p4, %p7245_p5 }
 0x935   : > { %p7079_p11 = por %p7078_p10, %p7077_p9 }
 0x936   : > { %p7075_p8 = pneg %p7074_p7 }
 0x938   : > { %p7080_p12 = pnand %p7079_p11, %p7075_p8 }
 0x93a   : > { %7083 = shalt.err (!%p7080_p12)
}
 0x93b   : > { %6933 = dma.vmem_to_hbm [thread:$0]  (%p7245_p5), %s6657_s30, 16, %s6654_s23, %s6644_s1  }
 0x93c PF: > { %p6939_p13 = scmp.ge.s32.totalorder %s7118_s21, 2  ;;  %s6668_s2 = sand.u32 1, %s7106_s18  }
 0x93d   : > { %s6669_s3 = scalar_lea.sflag [#allocation8], %s6668_s2 }
 0x93e   : > { %p6936_p0 = pnand %p6939_p13, %p7249_p6 }
 0x940   : > { %p6937_p1 = pneg %p6936_p0 }
 0x942   : > { %7101 = dma.done.wait (%p6937_p1), %s6669_s3, 16  }
 0x943   : > { %7103 = vsyncadd (%p6937_p1), %s6669_s3, 4294967280  ;;  %p25_p2 = scmp.ge.s32.totalorder %s7232_s24, 4   ;;  %s12407_s18 = smov %s7110_s19 }
 0x944   : > { %s12408_s19 = smov %s7114_s20  ;;  %s12409_s20 = smov %s7243_s27 }
 0x945   : > { %s12410_s21 = smov %s7232_s24  ;;  %27 = sbr.rel (!%p25_p2) target bundleno = 10 (0xa), region = 168 }
 0x94a   :  { %6673 = vsyncpa [#allocation8], 1 }
 0x94b   :  { %6675 = vsyncpa [#allocation8 + $0x1], 1 }

</bundles_post_ra>
